<compile_context>
chip_gen: v6e
topology: v6e:2x2x1
jax: 0.10.0
libtpu: 0.0.40
codegen_flags: <defaults>
</compile_context>

<pallas_src>
import functools

import jax
import jax.numpy as jnp
from jax.experimental import pallas as pl
from jax.experimental.pallas import tpu as pltpu

import numpy as np


def lstm_fc_kernel(x_ref, wih_ref, whh_ref, b_ref, wfc_ref, bfc_ref,
                   out_ref, gx0_ref, *, T, B):
    # x_ref:   (T*B, H)     layer-0 input, time-major, feature dim zero-padded to H
    # wih_ref: (L, H, 4H)   transposed input->gate weights, gate cols [i,f,o,g]
    # whh_ref: (L, H, 4H)   transposed hidden->gate weights, gate cols [i,f,o,g]
    # b_ref:   (L, 1, 4H)   combined bias (b_ih + b_hh), gate cols [i,f,o,g]
    # wfc_ref: (H, Opad)    final linear weight (transposed, lane-padded)
    # bfc_ref: (1, Opad)    final linear bias (lane-padded)
    # out_ref: (B, Opad)
    # gx0_ref: (T*B, 4H)    hoisted layer-0 input projection (+ bias), scratch
    L, H, H4 = wih_ref.shape

    def sig(z):
        # sigmoid(z) == 0.5 * tanh(0.5 * z) + 0.5 : single EUP push per vreg,
        # the scale/offset run on the (otherwise idle) VPU slot.
        return 0.5 * jnp.tanh(0.5 * z) + 0.5

    # Hoisted layer-0 input projection: ONE (T*B, H) @ (H, 4H) matmul with the
    # bias folded in, entirely off the serial recurrence chain.
    gx0_ref[...] = (
        jnp.dot(x_ref[...], wih_ref[0], preferred_element_type=jnp.float32)
        + b_ref[0]
    )

    zero = jnp.zeros((B, H), jnp.float32)
    h = [zero] * L          # per-layer hidden state (most recent time step)
    c = [zero] * L          # per-layer cell state

    # Wavefront schedule: wavefront w processes every (l, t) with l + t == w.
    # Reads of h[l-1] / h[l] use the values from the PREVIOUS wavefront (the
    # `h` list is only swapped after the inner loop), so all cells of one
    # wavefront are mutually independent and the scheduler interleaves them.
    for w in range(L + T - 1):                      # 12 wavefronts (static)
        h_new = list(h)
        c_new = list(c)
        for l in range(L):                          # static -> static slices
            t = w - l
            if not (0 <= t < T):
                continue
            if l == 0:
                # static, 8-aligned row slice of the hoisted projection
                gx = gx0_ref[t * B:(t + 1) * B, :]
            else:
                gx = jnp.dot(h[l - 1], wih_ref[l],
                             preferred_element_type=jnp.float32) + b_ref[l]
            gates = gx + jnp.dot(h[l], whh_ref[l],
                                 preferred_element_type=jnp.float32)
            # Gate columns were permuted to [i, f, o | g] in the wrapper:
            # sigmoid only over the contiguous 3H slab, tanh only over g.
            s = sig(gates[:, :3 * H])               # (B, 3H)
            g_g = jnp.tanh(gates[:, 3 * H:])        # (B, H)
            i_g = s[:, 0 * H:1 * H]
            f_g = s[:, 1 * H:2 * H]
            o_g = s[:, 2 * H:3 * H]
            c_new[l] = f_g * c[l] + i_g * g_g
            h_new[l] = o_g * jnp.tanh(c_new[l])
        h, c = h_new, c_new

    # fc(out[:, -1, :]) == h_last_layer(T-1) @ W_fc.T + b_fc  (lane-padded)
    out_ref[...] = (jnp.dot(h[L - 1], wfc_ref[...],
                            preferred_element_type=jnp.float32)
                    + bfc_ref[...]).astype(out_ref.dtype)


def lstm_forward(x, params):
    """x: (B, T, input_size) float32, batch_first like the PyTorch module."""
    B, T, D = x.shape
    L = len(params["w_ih"])
    H = params["w_hh"][0].shape[1]
    O = params["w_fc"].shape[0]
    assert D <= H, "kernel packs layer-0 features into the H-wide slot"

    B_pad = int(np.ceil(B / 8) * 8)          # sublane-align the batch
    O_pad = 128                               # lane-dense FC output store

    # Gate permutation: PyTorch row order is [i, f, g, o]; put the three
    # sigmoid gates first and tanh gate last -> [i, f, o, g].
    gate_perm = np.concatenate([np.arange(0, H),           # i
                                np.arange(H, 2 * H),       # f
                                np.arange(3 * H, 4 * H),   # o
                                np.arange(2 * H, 3 * H)])  # g

    # Pad layer-0 features to H (exact: matching W_ih rows are zero-padded),
    # pad batch to a multiple of 8, flatten time-major to 2-D for the kernel.
    x_pad = jnp.pad(x.astype(jnp.float32),
                    ((0, B_pad - B), (0, 0), (0, H - D)))
    x_tm2d = jnp.transpose(x_pad, (1, 0, 2)).reshape(T * B_pad, H)

    wih_list, whh_list, b_list = [], [], []
    for l in range(L):
        w_ih = params["w_ih"][l][gate_perm, :]                    # (4H, in)
        w_hh = params["w_hh"][l][gate_perm, :]                    # (4H, H)
        b = (params["b_ih"][l] + params["b_hh"][l])[gate_perm]    # (4H,)
        w_ih_t = w_ih.T                                           # (in, 4H)
        if w_ih_t.shape[0] < H:
            w_ih_t = jnp.pad(w_ih_t, ((0, H - w_ih_t.shape[0]), (0, 0)))
        wih_list.append(w_ih_t)
        whh_list.append(w_hh.T)
        b_list.append(b.reshape(1, 4 * H))
    wih_all = jnp.stack(wih_list).astype(jnp.float32)             # (L, H, 4H)
    whh_all = jnp.stack(whh_list).astype(jnp.float32)             # (L, H, 4H)
    b_all = jnp.stack(b_list).astype(jnp.float32)                 # (L, 1, 4H)

    wfc = jnp.pad(params["w_fc"].T.astype(jnp.float32),
                  ((0, 0), (0, O_pad - O)))                       # (H, Opad)
    bfc = jnp.pad(params["b_fc"].astype(jnp.float32),
                  (0, O_pad - O)).reshape(1, O_pad)               # (1, Opad)

    kernel = functools.partial(lstm_fc_kernel, T=T, B=B_pad)
    out = pl.pallas_call(
        kernel,
        out_shape=jax.ShapeDtypeStruct((B_pad, O_pad), jnp.float32),
        in_specs=[pl.BlockSpec(memory_space=pltpu.MemorySpace.VMEM)] * 6,
        out_specs=pl.BlockSpec(memory_space=pltpu.MemorySpace.VMEM),
        scratch_shapes=[
            pltpu.VMEM((T * B_pad, 4 * H), jnp.float32),   # hoisted layer-0 gx
        ],
    )(x_tm2d, wih_all, whh_all, b_all, wfc, bfc)
    return out[:B, :O]


def make_params(key, input_size, hidden_size, num_layers, output_size):
    """Deterministic init mimicking nn.LSTM / nn.Linear (uniform +/-1/sqrt(H))."""
    H = hidden_size
    scale = 1.0 / np.sqrt(H)
    params = {"w_ih": [], "w_hh": [], "b_ih": [], "b_hh": []}
    for l in range(num_layers):
        in_dim = input_size if l == 0 else H
        key, k1, k2, k3, k4 = jax.random.split(key, 5)
        params["w_ih"].append(jax.random.uniform(k1, (4 * H, in_dim),
                                                 minval=-scale, maxval=scale))
        params["w_hh"].append(jax.random.uniform(k2, (4 * H, H),
                                                 minval=-scale, maxval=scale))
        params["b_ih"].append(jax.random.uniform(k3, (4 * H,),
                                                 minval=-scale, maxval=scale))
        params["b_hh"].append(jax.random.uniform(k4, (4 * H,),
                                                 minval=-scale, maxval=scale))
    key, k1, k2 = jax.random.split(key, 3)
    params["w_fc"] = jax.random.uniform(k1, (output_size, H),
                                        minval=-scale, maxval=scale)
    params["b_fc"] = jax.random.uniform(k2, (output_size,),
                                        minval=-scale, maxval=scale)
    return params


def ref_forward(x, params):
    """Pure-JAX reference matching PyTorch LSTM semantics (original gate order)."""
    B = x.shape[0]
    H = params["w_hh"][0].shape[1]
    layer_in = x
    for l in range(len(params["w_ih"])):
        w_ih, w_hh = params["w_ih"][l], params["w_hh"][l]
        b_ih, b_hh = params["b_ih"][l], params["b_hh"][l]
        h = jnp.zeros((B, H), jnp.float32)
        c = jnp.zeros((B, H), jnp.float32)
        outs = []
        for t in range(layer_in.shape[1]):
            xt = layer_in[:, t, :]
            gates = xt @ w_ih.T + b_ih + h @ w_hh.T + b_hh
            i = jax.nn.sigmoid(gates[:, 0 * H:1 * H])
            f = jax.nn.sigmoid(gates[:, 1 * H:2 * H])
            g = jnp.tanh(gates[:, 2 * H:3 * H])
            o = jax.nn.sigmoid(gates[:, 3 * H:4 * H])
            c = f * c + i * g
            h = o * jnp.tanh(c)
            outs.append(h)
        layer_in = jnp.stack(outs, axis=1)
    return layer_in[:, -1, :] @ params["w_fc"].T + params["b_fc"]


if __name__ == "__main__":
    B, T = 4, 8
    input_size = 16
    hidden_size = 64
    num_layers = 5
    output_size = 1

    key = jax.random.PRNGKey(0)
    key, kx, kp = jax.random.split(key, 3)
    x = jax.random.normal(kx, (B, T, input_size), dtype=jnp.float32)
    params = make_params(kp, input_size, hidden_size, num_layers, output_size)

    out = lstm_forward(x, params)
    out = jax.block_until_ready(out)

    ref = ref_forward(x, params)
    np.testing.assert_allclose(np.asarray(out), np.asarray(ref),
                               rtol=1e-3, atol=1e-3)
    assert out.shape == (B, output_size)
    print("KERNEL_OK")
</pallas_src>

<mosaic_0001>
module attributes {stable_mosaic.version = 11 : i64} {
  func.func @lstm_fc_kernel(%arg0: memref<64x64xf32, #tpu.memory_space<vmem>>, %arg1: memref<5x64x256xf32, #tpu.memory_space<vmem>>, %arg2: memref<5x64x256xf32, #tpu.memory_space<vmem>>, %arg3: memref<5x1x256xf32, #tpu.memory_space<vmem>>, %arg4: memref<64x128xf32, #tpu.memory_space<vmem>>, %arg5: memref<1x128xf32, #tpu.memory_space<vmem>>, %arg6: memref<8x128xf32, #tpu.memory_space<vmem>>, %arg7: memref<64x256xf32, #tpu.memory_space<vmem>>) attributes {dimension_semantics = [], scalar_prefetch = 0 : i64, scratch_operands = 1 : i64, tpu.core_type = #tpu.core_type<tc>} {
    %c0 = arith.constant 0 : index
    %c0_0 = arith.constant 0 : index
    %0 = vector.load %arg0[%c0, %c0_0] : memref<64x64xf32, #tpu.memory_space<vmem>>, vector<64x64xf32>
    %c0_1 = arith.constant 0 : index
    %c0_2 = arith.constant 0 : index
    %c0_3 = arith.constant 0 : index
    %1 = vector.load %arg1[%c0_1, %c0_2, %c0_3] : memref<5x64x256xf32, #tpu.memory_space<vmem>>, vector<1x64x256xf32>
    %2 = vector.shape_cast %1 : vector<1x64x256xf32> to vector<64x256xf32>
    %cst = arith.constant dense<0.000000e+00> : vector<64x256xf32>
    %3 = tpu.matmul %0, %2, %cst {dimension_numbers = #tpu.dot_dimension_numbers<[1], [0], [0], [1], [0, 0, 1, 1], [], []>} : vector<64x64xf32>, vector<64x256xf32>, vector<64x256xf32> -> vector<64x256xf32>
    %c0_4 = arith.constant 0 : index
    %c0_5 = arith.constant 0 : index
    %c0_6 = arith.constant 0 : index
    %4 = vector.load %arg3[%c0_4, %c0_5, %c0_6] : memref<5x1x256xf32, #tpu.memory_space<vmem>>, vector<1x1x256xf32>
    %5 = vector.shape_cast %4 : vector<1x1x256xf32> to vector<1x256xf32>
    %6 = vector.broadcast %5 : vector<1x256xf32> to vector<64x256xf32>
    %7 = arith.addf %3, %6 : vector<64x256xf32>
    %c0_7 = arith.constant 0 : index
    %c0_8 = arith.constant 0 : index
    %8 = vector.load %arg7[%c0_7, %c0_8] : memref<64x256xf32, #tpu.memory_space<vmem>>, vector<64x256xf32>
    tpu.vector_store %arg7[%c0_7, %c0_8], %7 {strides = array<i32>} : memref<64x256xf32, #tpu.memory_space<vmem>>, vector<64x256xf32>,
    %cst_9 = arith.constant 0.000000e+00 : f32
    %9 = vector.broadcast %cst_9 : f32 to vector<8x64xf32>
    %c0_10 = arith.constant 0 : index
    %c0_11 = arith.constant 0 : index
    %10 = vector.load %arg7[%c0_10, %c0_11] : memref<64x256xf32, #tpu.memory_space<vmem>>, vector<8x256xf32>
    %c0_12 = arith.constant 0 : index
    %c0_13 = arith.constant 0 : index
    %c0_14 = arith.constant 0 : index
    %11 = vector.load %arg2[%c0_12, %c0_13, %c0_14] : memref<5x64x256xf32, #tpu.memory_space<vmem>>, vector<1x64x256xf32>
    %12 = vector.shape_cast %11 : vector<1x64x256xf32> to vector<64x256xf32>
    %cst_15 = arith.constant dense<0.000000e+00> : vector<8x256xf32>
    %13 = tpu.matmul %9, %12, %cst_15 {dimension_numbers = #tpu.dot_dimension_numbers<[1], [0], [0], [1], [0, 0, 1, 1], [], []>} : vector<8x64xf32>, vector<64x256xf32>, vector<8x256xf32> -> vector<8x256xf32>
    %14 = arith.addf %10, %13 : vector<8x256xf32>
    %15 = vector.extract_strided_slice %14 {offsets = [0, 0], sizes = [8, 192], strides = [1, 1]} : vector<8x256xf32> to vector<8x192xf32>
    %cst_16 = arith.constant 5.000000e-01 : f32
    %16 = vector.broadcast %cst_16 : f32 to vector<8x192xf32>
    %17 = arith.mulf %16, %15 : vector<8x192xf32>
    %18 = math.tanh %17 : vector<8x192xf32>
    %cst_17 = arith.constant 5.000000e-01 : f32
    %19 = vector.broadcast %cst_17 : f32 to vector<8x192xf32>
    %20 = arith.mulf %19, %18 : vector<8x192xf32>
    %cst_18 = arith.constant 5.000000e-01 : f32
    %21 = vector.broadcast %cst_18 : f32 to vector<8x192xf32>
    %22 = arith.addf %20, %21 : vector<8x192xf32>
    %23 = vector.extract_strided_slice %14 {offsets = [0, 192], sizes = [8, 64], strides = [1, 1]} : vector<8x256xf32> to vector<8x64xf32>
    %24 = math.tanh %23 : vector<8x64xf32>
    %25 = vector.extract_strided_slice %22 {offsets = [0, 0], sizes = [8, 64], strides = [1, 1]} : vector<8x192xf32> to vector<8x64xf32>
    %26 = vector.extract_strided_slice %22 {offsets = [0, 64], sizes = [8, 64], strides = [1, 1]} : vector<8x192xf32> to vector<8x64xf32>
    %27 = vector.extract_strided_slice %22 {offsets = [0, 128], sizes = [8, 64], strides = [1, 1]} : vector<8x192xf32> to vector<8x64xf32>
    %28 = arith.mulf %26, %9 : vector<8x64xf32>
    %29 = arith.mulf %25, %24 : vector<8x64xf32>
    %30 = arith.addf %28, %29 : vector<8x64xf32>
    %31 = math.tanh %30 : vector<8x64xf32>
    %32 = arith.mulf %27, %31 : vector<8x64xf32>
    %c8 = arith.constant 8 : index
    %c0_19 = arith.constant 0 : index
    %33 = vector.load %arg7[%c8, %c0_19] : memref<64x256xf32, #tpu.memory_space<vmem>>, vector<8x256xf32>
    %c0_20 = arith.constant 0 : index
    %c0_21 = arith.constant 0 : index
    %c0_22 = arith.constant 0 : index
    %34 = vector.load %arg2[%c0_20, %c0_21, %c0_22] : memref<5x64x256xf32, #tpu.memory_space<vmem>>, vector<1x64x256xf32>
    %35 = vector.shape_cast %34 : vector<1x64x256xf32> to vector<64x256xf32>
    %cst_23 = arith.constant dense<0.000000e+00> : vector<8x256xf32>
    %36 = tpu.matmul %32, %35, %cst_23 {dimension_numbers = #tpu.dot_dimension_numbers<[1], [0], [0], [1], [0, 0, 1, 1], [], []>} : vector<8x64xf32>, vector<64x256xf32>, vector<8x256xf32> -> vector<8x256xf32>
    %37 = arith.addf %33, %36 : vector<8x256xf32>
    %38 = vector.extract_strided_slice %37 {offsets = [0, 0], sizes = [8, 192], strides = [1, 1]} : vector<8x256xf32> to vector<8x192xf32>
    %cst_24 = arith.constant 5.000000e-01 : f32
    %39 = vector.broadcast %cst_24 : f32 to vector<8x192xf32>
    %40 = arith.mulf %39, %38 : vector<8x192xf32>
    %41 = math.tanh %40 : vector<8x192xf32>
    %cst_25 = arith.constant 5.000000e-01 : f32
    %42 = vector.broadcast %cst_25 : f32 to vector<8x192xf32>
    %43 = arith.mulf %42, %41 : vector<8x192xf32>
    %cst_26 = arith.constant 5.000000e-01 : f32
    %44 = vector.broadcast %cst_26 : f32 to vector<8x192xf32>
    %45 = arith.addf %43, %44 : vector<8x192xf32>
    %46 = vector.extract_strided_slice %37 {offsets = [0, 192], sizes = [8, 64], strides = [1, 1]} : vector<8x256xf32> to vector<8x64xf32>
    %47 = math.tanh %46 : vector<8x64xf32>
    %48 = vector.extract_strided_slice %45 {offsets = [0, 0], sizes = [8, 64], strides = [1, 1]} : vector<8x192xf32> to vector<8x64xf32>
    %49 = vector.extract_strided_slice %45 {offsets = [0, 64], sizes = [8, 64], strides = [1, 1]} : vector<8x192xf32> to vector<8x64xf32>
    %50 = vector.extract_strided_slice %45 {offsets = [0, 128], sizes = [8, 64], strides = [1, 1]} : vector<8x192xf32> to vector<8x64xf32>
    %51 = arith.mulf %49, %30 : vector<8x64xf32>
    %52 = arith.mulf %48, %47 : vector<8x64xf32>
    %53 = arith.addf %51, %52 : vector<8x64xf32>
    %54 = math.tanh %53 : vector<8x64xf32>
    %55 = arith.mulf %50, %54 : vector<8x64xf32>
    %c1 = arith.constant 1 : index
    %c0_27 = arith.constant 0 : index
    %c0_28 = arith.constant 0 : index
    %56 = vector.load %arg1[%c1, %c0_27, %c0_28] : memref<5x64x256xf32, #tpu.memory_space<vmem>>, vector<1x64x256xf32>
    %57 = vector.shape_cast %56 : vector<1x64x256xf32> to vector<64x256xf32>
    %cst_29 = arith.constant dense<0.000000e+00> : vector<8x256xf32>
    %58 = tpu.matmul %32, %57, %cst_29 {dimension_numbers = #tpu.dot_dimension_numbers<[1], [0], [0], [1], [0, 0, 1, 1], [], []>} : vector<8x64xf32>, vector<64x256xf32>, vector<8x256xf32> -> vector<8x256xf32>
    %c1_30 = arith.constant 1 : index
    %c0_31 = arith.constant 0 : index
    %c0_32 = arith.constant 0 : index
    %59 = vector.load %arg3[%c1_30, %c0_31, %c0_32] : memref<5x1x256xf32, #tpu.memory_space<vmem>>, vector<1x1x256xf32>
    %60 = vector.shape_cast %59 : vector<1x1x256xf32> to vector<1x256xf32>
    %61 = vector.broadcast %60 : vector<1x256xf32> to vector<8x256xf32>
    %62 = arith.addf %58, %61 : vector<8x256xf32>
    %c1_33 = arith.constant 1 : index
    %c0_34 = arith.constant 0 : index
    %c0_35 = arith.constant 0 : index
    %63 = vector.load %arg2[%c1_33, %c0_34, %c0_35] : memref<5x64x256xf32, #tpu.memory_space<vmem>>, vector<1x64x256xf32>
    %64 = vector.shape_cast %63 : vector<1x64x256xf32> to vector<64x256xf32>
    %cst_36 = arith.constant dense<0.000000e+00> : vector<8x256xf32>
    %65 = tpu.matmul %9, %64, %cst_36 {dimension_numbers = #tpu.dot_dimension_numbers<[1], [0], [0], [1], [0, 0, 1, 1], [], []>} : vector<8x64xf32>, vector<64x256xf32>, vector<8x256xf32> -> vector<8x256xf32>
    %66 = arith.addf %62, %65 : vector<8x256xf32>
    %67 = vector.extract_strided_slice %66 {offsets = [0, 0], sizes = [8, 192], strides = [1, 1]} : vector<8x256xf32> to vector<8x192xf32>
    %cst_37 = arith.constant 5.000000e-01 : f32
    %68 = vector.broadcast %cst_37 : f32 to vector<8x192xf32>
    %69 = arith.mulf %68, %67 : vector<8x192xf32>
    %70 = math.tanh %69 : vector<8x192xf32>
    %cst_38 = arith.constant 5.000000e-01 : f32
    %71 = vector.broadcast %cst_38 : f32 to vector<8x192xf32>
    %72 = arith.mulf %71, %70 : vector<8x192xf32>
    %cst_39 = arith.constant 5.000000e-01 : f32
    %73 = vector.broadcast %cst_39 : f32 to vector<8x192xf32>
    %74 = arith.addf %72, %73 : vector<8x192xf32>
    %75 = vector.extract_strided_slice %66 {offsets = [0, 192], sizes = [8, 64], strides = [1, 1]} : vector<8x256xf32> to vector<8x64xf32>
    %76 = math.tanh %75 : vector<8x64xf32>
    %77 = vector.extract_strided_slice %74 {offsets = [0, 0], sizes = [8, 64], strides = [1, 1]} : vector<8x192xf32> to vector<8x64xf32>
    %78 = vector.extract_strided_slice %74 {offsets = [0, 64], sizes = [8, 64], strides = [1, 1]} : vector<8x192xf32> to vector<8x64xf32>
    %79 = vector.extract_strided_slice %74 {offsets = [0, 128], sizes = [8, 64], strides = [1, 1]} : vector<8x192xf32> to vector<8x64xf32>
    %80 = arith.mulf %78, %9 : vector<8x64xf32>
    %81 = arith.mulf %77, %76 : vector<8x64xf32>
    %82 = arith.addf %80, %81 : vector<8x64xf32>
    %83 = math.tanh %82 : vector<8x64xf32>
    %84 = arith.mulf %79, %83 : vector<8x64xf32>
    %c16 = arith.constant 16 : index
    %c0_40 = arith.constant 0 : index
    %85 = vector.load %arg7[%c16, %c0_40] : memref<64x256xf32, #tpu.memory_space<vmem>>, vector<8x256xf32>
    %c0_41 = arith.constant 0 : index
    %c0_42 = arith.constant 0 : index
    %c0_43 = arith.constant 0 : index
    %86 = vector.load %arg2[%c0_41, %c0_42, %c0_43] : memref<5x64x256xf32, #tpu.memory_space<vmem>>, vector<1x64x256xf32>
    %87 = vector.shape_cast %86 : vector<1x64x256xf32> to vector<64x256xf32>
    %cst_44 = arith.constant dense<0.000000e+00> : vector<8x256xf32>
    %88 = tpu.matmul %55, %87, %cst_44 {dimension_numbers = #tpu.dot_dimension_numbers<[1], [0], [0], [1], [0, 0, 1, 1], [], []>} : vector<8x64xf32>, vector<64x256xf32>, vector<8x256xf32> -> vector<8x256xf32>
    %89 = arith.addf %85, %88 : vector<8x256xf32>
    %90 = vector.extract_strided_slice %89 {offsets = [0, 0], sizes = [8, 192], strides = [1, 1]} : vector<8x256xf32> to vector<8x192xf32>
    %cst_45 = arith.constant 5.000000e-01 : f32
    %91 = vector.broadcast %cst_45 : f32 to vector<8x192xf32>
    %92 = arith.mulf %91, %90 : vector<8x192xf32>
    %93 = math.tanh %92 : vector<8x192xf32>
    %cst_46 = arith.constant 5.000000e-01 : f32
    %94 = vector.broadcast %cst_46 : f32 to vector<8x192xf32>
    %95 = arith.mulf %94, %93 : vector<8x192xf32>
    %cst_47 = arith.constant 5.000000e-01 : f32
    %96 = vector.broadcast %cst_47 : f32 to vector<8x192xf32>
    %97 = arith.addf %95, %96 : vector<8x192xf32>
    %98 = vector.extract_strided_slice %89 {offsets = [0, 192], sizes = [8, 64], strides = [1, 1]} : vector<8x256xf32> to vector<8x64xf32>
    %99 = math.tanh %98 : vector<8x64xf32>
    %100 = vector.extract_strided_slice %97 {offsets = [0, 0], sizes = [8, 64], strides = [1, 1]} : vector<8x192xf32> to vector<8x64xf32>
    %101 = vector.extract_strided_slice %97 {offsets = [0, 64], sizes = [8, 64], strides = [1, 1]} : vector<8x192xf32> to vector<8x64xf32>
    %102 = vector.extract_strided_slice %97 {offsets = [0, 128], sizes = [8, 64], strides = [1, 1]} : vector<8x192xf32> to vector<8x64xf32>
    %103 = arith.mulf %101, %53 : vector<8x64xf32>
    %104 = arith.mulf %100, %99 : vector<8x64xf32>
    %105 = arith.addf %103, %104 : vector<8x64xf32>
    %106 = math.tanh %105 : vector<8x64xf32>
    %107 = arith.mulf %102, %106 : vector<8x64xf32>
    %c1_48 = arith.constant 1 : index
    %c0_49 = arith.constant 0 : index
    %c0_50 = arith.constant 0 : index
    %108 = vector.load %arg1[%c1_48, %c0_49, %c0_50] : memref<5x64x256xf32, #tpu.memory_space<vmem>>, vector<1x64x256xf32>
    %109 = vector.shape_cast %108 : vector<1x64x256xf32> to vector<64x256xf32>
    %cst_51 = arith.constant dense<0.000000e+00> : vector<8x256xf32>
    %110 = tpu.matmul %55, %109, %cst_51 {dimension_numbers = #tpu.dot_dimension_numbers<[1], [0], [0], [1], [0, 0, 1, 1], [], []>} : vector<8x64xf32>, vector<64x256xf32>, vector<8x256xf32> -> vector<8x256xf32>
    %c1_52 = arith.constant 1 : index
    %c0_53 = arith.constant 0 : index
    %c0_54 = arith.constant 0 : index
    %111 = vector.load %arg3[%c1_52, %c0_53, %c0_54] : memref<5x1x256xf32, #tpu.memory_space<vmem>>, vector<1x1x256xf32>
    %112 = vector.shape_cast %111 : vector<1x1x256xf32> to vector<1x256xf32>
    %113 = vector.broadcast %112 : vector<1x256xf32> to vector<8x256xf32>
    %114 = arith.addf %110, %113 : vector<8x256xf32>
    %c1_55 = arith.constant 1 : index
    %c0_56 = arith.constant 0 : index
    %c0_57 = arith.constant 0 : index
    %115 = vector.load %arg2[%c1_55, %c0_56, %c0_57] : memref<5x64x256xf32, #tpu.memory_space<vmem>>, vector<1x64x256xf32>
    %116 = vector.shape_cast %115 : vector<1x64x256xf32> to vector<64x256xf32>
    %cst_58 = arith.constant dense<0.000000e+00> : vector<8x256xf32>
    %117 = tpu.matmul %84, %116, %cst_58 {dimension_numbers = #tpu.dot_dimension_numbers<[1], [0], [0], [1], [0, 0, 1, 1], [], []>} : vector<8x64xf32>, vector<64x256xf32>, vector<8x256xf32> -> vector<8x256xf32>
    %118 = arith.addf %114, %117 : vector<8x256xf32>
    %119 = vector.extract_strided_slice %118 {offsets = [0, 0], sizes = [8, 192], strides = [1, 1]} : vector<8x256xf32> to vector<8x192xf32>
    %cst_59 = arith.constant 5.000000e-01 : f32
    %120 = vector.broadcast %cst_59 : f32 to vector<8x192xf32>
    %121 = arith.mulf %120, %119 : vector<8x192xf32>
    %122 = math.tanh %121 : vector<8x192xf32>
    %cst_60 = arith.constant 5.000000e-01 : f32
    %123 = vector.broadcast %cst_60 : f32 to vector<8x192xf32>
    %124 = arith.mulf %123, %122 : vector<8x192xf32>
    %cst_61 = arith.constant 5.000000e-01 : f32
    %125 = vector.broadcast %cst_61 : f32 to vector<8x192xf32>
    %126 = arith.addf %124, %125 : vector<8x192xf32>
    %127 = vector.extract_strided_slice %118 {offsets = [0, 192], sizes = [8, 64], strides = [1, 1]} : vector<8x256xf32> to vector<8x64xf32>
    %128 = math.tanh %127 : vector<8x64xf32>
    %129 = vector.extract_strided_slice %126 {offsets = [0, 0], sizes = [8, 64], strides = [1, 1]} : vector<8x192xf32> to vector<8x64xf32>
    %130 = vector.extract_strided_slice %126 {offsets = [0, 64], sizes = [8, 64], strides = [1, 1]} : vector<8x192xf32> to vector<8x64xf32>
    %131 = vector.extract_strided_slice %126 {offsets = [0, 128], sizes = [8, 64], strides = [1, 1]} : vector<8x192xf32> to vector<8x64xf32>
    %132 = arith.mulf %130, %82 : vector<8x64xf32>
    %133 = arith.mulf %129, %128 : vector<8x64xf32>
    %134 = arith.addf %132, %133 : vector<8x64xf32>
    %135 = math.tanh %134 : vector<8x64xf32>
    %136 = arith.mulf %131, %135 : vector<8x64xf32>
    %c2 = arith.constant 2 : index
    %c0_62 = arith.constant 0 : index
    %c0_63 = arith.constant 0 : index
    %137 = vector.load %arg1[%c2, %c0_62, %c0_63] : memref<5x64x256xf32, #tpu.memory_space<vmem>>, vector<1x64x256xf32>
    %138 = vector.shape_cast %137 : vector<1x64x256xf32> to vector<64x256xf32>
    %cst_64 = arith.constant dense<0.000000e+00> : vector<8x256xf32>
    %139 = tpu.matmul %84, %138, %cst_64 {dimension_numbers = #tpu.dot_dimension_numbers<[1], [0], [0], [1], [0, 0, 1, 1], [], []>} : vector<8x64xf32>, vector<64x256xf32>, vector<8x256xf32> -> vector<8x256xf32>
    %c2_65 = arith.constant 2 : index
    %c0_66 = arith.constant 0 : index
    %c0_67 = arith.constant 0 : index
    %140 = vector.load %arg3[%c2_65, %c0_66, %c0_67] : memref<5x1x256xf32, #tpu.memory_space<vmem>>, vector<1x1x256xf32>
    %141 = vector.shape_cast %140 : vector<1x1x256xf32> to vector<1x256xf32>
    %142 = vector.broadcast %141 : vector<1x256xf32> to vector<8x256xf32>
    %143 = arith.addf %139, %142 : vector<8x256xf32>
    %c2_68 = arith.constant 2 : index
    %c0_69 = arith.constant 0 : index
    %c0_70 = arith.constant 0 : index
    %144 = vector.load %arg2[%c2_68, %c0_69, %c0_70] : memref<5x64x256xf32, #tpu.memory_space<vmem>>, vector<1x64x256xf32>
    %145 = vector.shape_cast %144 : vector<1x64x256xf32> to vector<64x256xf32>
    %cst_71 = arith.constant dense<0.000000e+00> : vector<8x256xf32>
    %146 = tpu.matmul %9, %145, %cst_71 {dimension_numbers = #tpu.dot_dimension_numbers<[1], [0], [0], [1], [0, 0, 1, 1], [], []>} : vector<8x64xf32>, vector<64x256xf32>, vector<8x256xf32> -> vector<8x256xf32>
    %147 = arith.addf %143, %146 : vector<8x256xf32>
    %148 = vector.extract_strided_slice %147 {offsets = [0, 0], sizes = [8, 192], strides = [1, 1]} : vector<8x256xf32> to vector<8x192xf32>
    %cst_72 = arith.constant 5.000000e-01 : f32
    %149 = vector.broadcast %cst_72 : f32 to vector<8x192xf32>
    %150 = arith.mulf %149, %148 : vector<8x192xf32>
    %151 = math.tanh %150 : vector<8x192xf32>
    %cst_73 = arith.constant 5.000000e-01 : f32
    %152 = vector.broadcast %cst_73 : f32 to vector<8x192xf32>
    %153 = arith.mulf %152, %151 : vector<8x192xf32>
    %cst_74 = arith.constant 5.000000e-01 : f32
    %154 = vector.broadcast %cst_74 : f32 to vector<8x192xf32>
    %155 = arith.addf %153, %154 : vector<8x192xf32>
    %156 = vector.extract_strided_slice %147 {offsets = [0, 192], sizes = [8, 64], strides = [1, 1]} : vector<8x256xf32> to vector<8x64xf32>
    %157 = math.tanh %156 : vector<8x64xf32>
    %158 = vector.extract_strided_slice %155 {offsets = [0, 0], sizes = [8, 64], strides = [1, 1]} : vector<8x192xf32> to vector<8x64xf32>
    %159 = vector.extract_strided_slice %155 {offsets = [0, 64], sizes = [8, 64], strides = [1, 1]} : vector<8x192xf32> to vector<8x64xf32>
    %160 = vector.extract_strided_slice %155 {offsets = [0, 128], sizes = [8, 64], strides = [1, 1]} : vector<8x192xf32> to vector<8x64xf32>
    %161 = arith.mulf %159, %9 : vector<8x64xf32>
    %162 = arith.mulf %158, %157 : vector<8x64xf32>
    %163 = arith.addf %161, %162 : vector<8x64xf32>
    %164 = math.tanh %163 : vector<8x64xf32>
    %165 = arith.mulf %160, %164 : vector<8x64xf32>
    %c24 = arith.constant 24 : index
    %c0_75 = arith.constant 0 : index
    %166 = vector.load %arg7[%c24, %c0_75] : memref<64x256xf32, #tpu.memory_space<vmem>>, vector<8x256xf32>
    %c0_76 = arith.constant 0 : index
    %c0_77 = arith.constant 0 : index
    %c0_78 = arith.constant 0 : index
    %167 = vector.load %arg2[%c0_76, %c0_77, %c0_78] : memref<5x64x256xf32, #tpu.memory_space<vmem>>, vector<1x64x256xf32>
    %168 = vector.shape_cast %167 : vector<1x64x256xf32> to vector<64x256xf32>
    %cst_79 = arith.constant dense<0.000000e+00> : vector<8x256xf32>
    %169 = tpu.matmul %107, %168, %cst_79 {dimension_numbers = #tpu.dot_dimension_numbers<[1], [0], [0], [1], [0, 0, 1, 1], [], []>} : vector<8x64xf32>, vector<64x256xf32>, vector<8x256xf32> -> vector<8x256xf32>
    %170 = arith.addf %166, %169 : vector<8x256xf32>
    %171 = vector.extract_strided_slice %170 {offsets = [0, 0], sizes = [8, 192], strides = [1, 1]} : vector<8x256xf32> to vector<8x192xf32>
    %cst_80 = arith.constant 5.000000e-01 : f32
    %172 = vector.broadcast %cst_80 : f32 to vector<8x192xf32>
    %173 = arith.mulf %172, %171 : vector<8x192xf32>
    %174 = math.tanh %173 : vector<8x192xf32>
    %cst_81 = arith.constant 5.000000e-01 : f32
    %175 = vector.broadcast %cst_81 : f32 to vector<8x192xf32>
    %176 = arith.mulf %175, %174 : vector<8x192xf32>
    %cst_82 = arith.constant 5.000000e-01 : f32
    %177 = vector.broadcast %cst_82 : f32 to vector<8x192xf32>
    %178 = arith.addf %176, %177 : vector<8x192xf32>
    %179 = vector.extract_strided_slice %170 {offsets = [0, 192], sizes = [8, 64], strides = [1, 1]} : vector<8x256xf32> to vector<8x64xf32>
    %180 = math.tanh %179 : vector<8x64xf32>
    %181 = vector.extract_strided_slice %178 {offsets = [0, 0], sizes = [8, 64], strides = [1, 1]} : vector<8x192xf32> to vector<8x64xf32>
    %182 = vector.extract_strided_slice %178 {offsets = [0, 64], sizes = [8, 64], strides = [1, 1]} : vector<8x192xf32> to vector<8x64xf32>
    %183 = vector.extract_strided_slice %178 {offsets = [0, 128], sizes = [8, 64], strides = [1, 1]} : vector<8x192xf32> to vector<8x64xf32>
    %184 = arith.mulf %182, %105 : vector<8x64xf32>
    %185 = arith.mulf %181, %180 : vector<8x64xf32>
    %186 = arith.addf %184, %185 : vector<8x64xf32>
    %187 = math.tanh %186 : vector<8x64xf32>
    %188 = arith.mulf %183, %187 : vector<8x64xf32>
    %c1_83 = arith.constant 1 : index
    %c0_84 = arith.constant 0 : index
    %c0_85 = arith.constant 0 : index
    %189 = vector.load %arg1[%c1_83, %c0_84, %c0_85] : memref<5x64x256xf32, #tpu.memory_space<vmem>>, vector<1x64x256xf32>
    %190 = vector.shape_cast %189 : vector<1x64x256xf32> to vector<64x256xf32>
    %cst_86 = arith.constant dense<0.000000e+00> : vector<8x256xf32>
    %191 = tpu.matmul %107, %190, %cst_86 {dimension_numbers = #tpu.dot_dimension_numbers<[1], [0], [0], [1], [0, 0, 1, 1], [], []>} : vector<8x64xf32>, vector<64x256xf32>, vector<8x256xf32> -> vector<8x256xf32>
    %c1_87 = arith.constant 1 : index
    %c0_88 = arith.constant 0 : index
    %c0_89 = arith.constant 0 : index
    %192 = vector.load %arg3[%c1_87, %c0_88, %c0_89] : memref<5x1x256xf32, #tpu.memory_space<vmem>>, vector<1x1x256xf32>
    %193 = vector.shape_cast %192 : vector<1x1x256xf32> to vector<1x256xf32>
    %194 = vector.broadcast %193 : vector<1x256xf32> to vector<8x256xf32>
    %195 = arith.addf %191, %194 : vector<8x256xf32>
    %c1_90 = arith.constant 1 : index
    %c0_91 = arith.constant 0 : index
    %c0_92 = arith.constant 0 : index
    %196 = vector.load %arg2[%c1_90, %c0_91, %c0_92] : memref<5x64x256xf32, #tpu.memory_space<vmem>>, vector<1x64x256xf32>
    %197 = vector.shape_cast %196 : vector<1x64x256xf32> to vector<64x256xf32>
    %cst_93 = arith.constant dense<0.000000e+00> : vector<8x256xf32>
    %198 = tpu.matmul %136, %197, %cst_93 {dimension_numbers = #tpu.dot_dimension_numbers<[1], [0], [0], [1], [0, 0, 1, 1], [], []>} : vector<8x64xf32>, vector<64x256xf32>, vector<8x256xf32> -> vector<8x256xf32>
    %199 = arith.addf %195, %198 : vector<8x256xf32>
    %200 = vector.extract_strided_slice %199 {offsets = [0, 0], sizes = [8, 192], strides = [1, 1]} : vector<8x256xf32> to vector<8x192xf32>
    %cst_94 = arith.constant 5.000000e-01 : f32
    %201 = vector.broadcast %cst_94 : f32 to vector<8x192xf32>
    %202 = arith.mulf %201, %200 : vector<8x192xf32>
    %203 = math.tanh %202 : vector<8x192xf32>
    %cst_95 = arith.constant 5.000000e-01 : f32
    %204 = vector.broadcast %cst_95 : f32 to vector<8x192xf32>
    %205 = arith.mulf %204, %203 : vector<8x192xf32>
    %cst_96 = arith.constant 5.000000e-01 : f32
    %206 = vector.broadcast %cst_96 : f32 to vector<8x192xf32>
    %207 = arith.addf %205, %206 : vector<8x192xf32>
    %208 = vector.extract_strided_slice %199 {offsets = [0, 192], sizes = [8, 64], strides = [1, 1]} : vector<8x256xf32> to vector<8x64xf32>
    %209 = math.tanh %208 : vector<8x64xf32>
    %210 = vector.extract_strided_slice %207 {offsets = [0, 0], sizes = [8, 64], strides = [1, 1]} : vector<8x192xf32> to vector<8x64xf32>
    %211 = vector.extract_strided_slice %207 {offsets = [0, 64], sizes = [8, 64], strides = [1, 1]} : vector<8x192xf32> to vector<8x64xf32>
    %212 = vector.extract_strided_slice %207 {offsets = [0, 128], sizes = [8, 64], strides = [1, 1]} : vector<8x192xf32> to vector<8x64xf32>
    %213 = arith.mulf %211, %134 : vector<8x64xf32>
    %214 = arith.mulf %210, %209 : vector<8x64xf32>
    %215 = arith.addf %213, %214 : vector<8x64xf32>
    %216 = math.tanh %215 : vector<8x64xf32>
    %217 = arith.mulf %212, %216 : vector<8x64xf32>
    %c2_97 = arith.constant 2 : index
    %c0_98 = arith.constant 0 : index
    %c0_99 = arith.constant 0 : index
    %218 = vector.load %arg1[%c2_97, %c0_98, %c0_99] : memref<5x64x256xf32, #tpu.memory_space<vmem>>, vector<1x64x256xf32>
    %219 = vector.shape_cast %218 : vector<1x64x256xf32> to vector<64x256xf32>
    %cst_100 = arith.constant dense<0.000000e+00> : vector<8x256xf32>
    %220 = tpu.matmul %136, %219, %cst_100 {dimension_numbers = #tpu.dot_dimension_numbers<[1], [0], [0], [1], [0, 0, 1, 1], [], []>} : vector<8x64xf32>, vector<64x256xf32>, vector<8x256xf32> -> vector<8x256xf32>
    %c2_101 = arith.constant 2 : index
    %c0_102 = arith.constant 0 : index
    %c0_103 = arith.constant 0 : index
    %221 = vector.load %arg3[%c2_101, %c0_102, %c0_103] : memref<5x1x256xf32, #tpu.memory_space<vmem>>, vector<1x1x256xf32>
    %222 = vector.shape_cast %221 : vector<1x1x256xf32> to vector<1x256xf32>
    %223 = vector.broadcast %222 : vector<1x256xf32> to vector<8x256xf32>
    %224 = arith.addf %220, %223 : vector<8x256xf32>
    %c2_104 = arith.constant 2 : index
    %c0_105 = arith.constant 0 : index
    %c0_106 = arith.constant 0 : index
    %225 = vector.load %arg2[%c2_104, %c0_105, %c0_106] : memref<5x64x256xf32, #tpu.memory_space<vmem>>, vector<1x64x256xf32>
    %226 = vector.shape_cast %225 : vector<1x64x256xf32> to vector<64x256xf32>
    %cst_107 = arith.constant dense<0.000000e+00> : vector<8x256xf32>
    %227 = tpu.matmul %165, %226, %cst_107 {dimension_numbers = #tpu.dot_dimension_numbers<[1], [0], [0], [1], [0, 0, 1, 1], [], []>} : vector<8x64xf32>, vector<64x256xf32>, vector<8x256xf32> -> vector<8x256xf32>
    %228 = arith.addf %224, %227 : vector<8x256xf32>
    %229 = vector.extract_strided_slice %228 {offsets = [0, 0], sizes = [8, 192], strides = [1, 1]} : vector<8x256xf32> to vector<8x192xf32>
    %cst_108 = arith.constant 5.000000e-01 : f32
    %230 = vector.broadcast %cst_108 : f32 to vector<8x192xf32>
    %231 = arith.mulf %230, %229 : vector<8x192xf32>
    %232 = math.tanh %231 : vector<8x192xf32>
    %cst_109 = arith.constant 5.000000e-01 : f32
    %233 = vector.broadcast %cst_109 : f32 to vector<8x192xf32>
    %234 = arith.mulf %233, %232 : vector<8x192xf32>
    %cst_110 = arith.constant 5.000000e-01 : f32
    %235 = vector.broadcast %cst_110 : f32 to vector<8x192xf32>
    %236 = arith.addf %234, %235 : vector<8x192xf32>
    %237 = vector.extract_strided_slice %228 {offsets = [0, 192], sizes = [8, 64], strides = [1, 1]} : vector<8x256xf32> to vector<8x64xf32>
    %238 = math.tanh %237 : vector<8x64xf32>
    %239 = vector.extract_strided_slice %236 {offsets = [0, 0], sizes = [8, 64], strides = [1, 1]} : vector<8x192xf32> to vector<8x64xf32>
    %240 = vector.extract_strided_slice %236 {offsets = [0, 64], sizes = [8, 64], strides = [1, 1]} : vector<8x192xf32> to vector<8x64xf32>
    %241 = vector.extract_strided_slice %236 {offsets = [0, 128], sizes = [8, 64], strides = [1, 1]} : vector<8x192xf32> to vector<8x64xf32>
    %242 = arith.mulf %240, %163 : vector<8x64xf32>
    %243 = arith.mulf %239, %238 : vector<8x64xf32>
    %244 = arith.addf %242, %243 : vector<8x64xf32>
    %245 = math.tanh %244 : vector<8x64xf32>
    %246 = arith.mulf %241, %245 : vector<8x64xf32>
    %c3 = arith.constant 3 : index
    %c0_111 = arith.constant 0 : index
    %c0_112 = arith.constant 0 : index
    %247 = vector.load %arg1[%c3, %c0_111, %c0_112] : memref<5x64x256xf32, #tpu.memory_space<vmem>>, vector<1x64x256xf32>
    %248 = vector.shape_cast %247 : vector<1x64x256xf32> to vector<64x256xf32>
    %cst_113 = arith.constant dense<0.000000e+00> : vector<8x256xf32>
    %249 = tpu.matmul %165, %248, %cst_113 {dimension_numbers = #tpu.dot_dimension_numbers<[1], [0], [0], [1], [0, 0, 1, 1], [], []>} : vector<8x64xf32>, vector<64x256xf32>, vector<8x256xf32> -> vector<8x256xf32>
    %c3_114 = arith.constant 3 : index
    %c0_115 = arith.constant 0 : index
    %c0_116 = arith.constant 0 : index
    %250 = vector.load %arg3[%c3_114, %c0_115, %c0_116] : memref<5x1x256xf32, #tpu.memory_space<vmem>>, vector<1x1x256xf32>
    %251 = vector.shape_cast %250 : vector<1x1x256xf32> to vector<1x256xf32>
    %252 = vector.broadcast %251 : vector<1x256xf32> to vector<8x256xf32>
    %253 = arith.addf %249, %252 : vector<8x256xf32>
    %c3_117 = arith.constant 3 : index
    %c0_118 = arith.constant 0 : index
    %c0_119 = arith.constant 0 : index
    %254 = vector.load %arg2[%c3_117, %c0_118, %c0_119] : memref<5x64x256xf32, #tpu.memory_space<vmem>>, vector<1x64x256xf32>
    %255 = vector.shape_cast %254 : vector<1x64x256xf32> to vector<64x256xf32>
    %cst_120 = arith.constant dense<0.000000e+00> : vector<8x256xf32>
    %256 = tpu.matmul %9, %255, %cst_120 {dimension_numbers = #tpu.dot_dimension_numbers<[1], [0], [0], [1], [0, 0, 1, 1], [], []>} : vector<8x64xf32>, vector<64x256xf32>, vector<8x256xf32> -> vector<8x256xf32>
    %257 = arith.addf %253, %256 : vector<8x256xf32>
    %258 = vector.extract_strided_slice %257 {offsets = [0, 0], sizes = [8, 192], strides = [1, 1]} : vector<8x256xf32> to vector<8x192xf32>
    %cst_121 = arith.constant 5.000000e-01 : f32
    %259 = vector.broadcast %cst_121 : f32 to vector<8x192xf32>
    %260 = arith.mulf %259, %258 : vector<8x192xf32>
    %261 = math.tanh %260 : vector<8x192xf32>
    %cst_122 = arith.constant 5.000000e-01 : f32
    %262 = vector.broadcast %cst_122 : f32 to vector<8x192xf32>
    %263 = arith.mulf %262, %261 : vector<8x192xf32>
    %cst_123 = arith.constant 5.000000e-01 : f32
    %264 = vector.broadcast %cst_123 : f32 to vector<8x192xf32>
    %265 = arith.addf %263, %264 : vector<8x192xf32>
    %266 = vector.extract_strided_slice %257 {offsets = [0, 192], sizes = [8, 64], strides = [1, 1]} : vector<8x256xf32> to vector<8x64xf32>
    %267 = math.tanh %266 : vector<8x64xf32>
    %268 = vector.extract_strided_slice %265 {offsets = [0, 0], sizes = [8, 64], strides = [1, 1]} : vector<8x192xf32> to vector<8x64xf32>
    %269 = vector.extract_strided_slice %265 {offsets = [0, 64], sizes = [8, 64], strides = [1, 1]} : vector<8x192xf32> to vector<8x64xf32>
    %270 = vector.extract_strided_slice %265 {offsets = [0, 128], sizes = [8, 64], strides = [1, 1]} : vector<8x192xf32> to vector<8x64xf32>
    %271 = arith.mulf %269, %9 : vector<8x64xf32>
    %272 = arith.mulf %268, %267 : vector<8x64xf32>
    %273 = arith.addf %271, %272 : vector<8x64xf32>
    %274 = math.tanh %273 : vector<8x64xf32>
    %275 = arith.mulf %270, %274 : vector<8x64xf32>
    %c32 = arith.constant 32 : index
    %c0_124 = arith.constant 0 : index
    %276 = vector.load %arg7[%c32, %c0_124] : memref<64x256xf32, #tpu.memory_space<vmem>>, vector<8x256xf32>
    %c0_125 = arith.constant 0 : index
    %c0_126 = arith.constant 0 : index
    %c0_127 = arith.constant 0 : index
    %277 = vector.load %arg2[%c0_125, %c0_126, %c0_127] : memref<5x64x256xf32, #tpu.memory_space<vmem>>, vector<1x64x256xf32>
    %278 = vector.shape_cast %277 : vector<1x64x256xf32> to vector<64x256xf32>
    %cst_128 = arith.constant dense<0.000000e+00> : vector<8x256xf32>
    %279 = tpu.matmul %188, %278, %cst_128 {dimension_numbers = #tpu.dot_dimension_numbers<[1], [0], [0], [1], [0, 0, 1, 1], [], []>} : vector<8x64xf32>, vector<64x256xf32>, vector<8x256xf32> -> vector<8x256xf32>
    %280 = arith.addf %276, %279 : vector<8x256xf32>
    %281 = vector.extract_strided_slice %280 {offsets = [0, 0], sizes = [8, 192], strides = [1, 1]} : vector<8x256xf32> to vector<8x192xf32>
    %cst_129 = arith.constant 5.000000e-01 : f32
    %282 = vector.broadcast %cst_129 : f32 to vector<8x192xf32>
    %283 = arith.mulf %282, %281 : vector<8x192xf32>
    %284 = math.tanh %283 : vector<8x192xf32>
    %cst_130 = arith.constant 5.000000e-01 : f32
    %285 = vector.broadcast %cst_130 : f32 to vector<8x192xf32>
    %286 = arith.mulf %285, %284 : vector<8x192xf32>
    %cst_131 = arith.constant 5.000000e-01 : f32
    %287 = vector.broadcast %cst_131 : f32 to vector<8x192xf32>
    %288 = arith.addf %286, %287 : vector<8x192xf32>
    %289 = vector.extract_strided_slice %280 {offsets = [0, 192], sizes = [8, 64], strides = [1, 1]} : vector<8x256xf32> to vector<8x64xf32>
    %290 = math.tanh %289 : vector<8x64xf32>
    %291 = vector.extract_strided_slice %288 {offsets = [0, 0], sizes = [8, 64], strides = [1, 1]} : vector<8x192xf32> to vector<8x64xf32>
    %292 = vector.extract_strided_slice %288 {offsets = [0, 64], sizes = [8, 64], strides = [1, 1]} : vector<8x192xf32> to vector<8x64xf32>
    %293 = vector.extract_strided_slice %288 {offsets = [0, 128], sizes = [8, 64], strides = [1, 1]} : vector<8x192xf32> to vector<8x64xf32>
    %294 = arith.mulf %292, %186 : vector<8x64xf32>
    %295 = arith.mulf %291, %290 : vector<8x64xf32>
    %296 = arith.addf %294, %295 : vector<8x64xf32>
    %297 = math.tanh %296 : vector<8x64xf32>
    %298 = arith.mulf %293, %297 : vector<8x64xf32>
    %c1_132 = arith.constant 1 : index
    %c0_133 = arith.constant 0 : index
    %c0_134 = arith.constant 0 : index
    %299 = vector.load %arg1[%c1_132, %c0_133, %c0_134] : memref<5x64x256xf32, #tpu.memory_space<vmem>>, vector<1x64x256xf32>
    %300 = vector.shape_cast %299 : vector<1x64x256xf32> to vector<64x256xf32>
    %cst_135 = arith.constant dense<0.000000e+00> : vector<8x256xf32>
    %301 = tpu.matmul %188, %300, %cst_135 {dimension_numbers = #tpu.dot_dimension_numbers<[1], [0], [0], [1], [0, 0, 1, 1], [], []>} : vector<8x64xf32>, vector<64x256xf32>, vector<8x256xf32> -> vector<8x256xf32>
    %c1_136 = arith.constant 1 : index
    %c0_137 = arith.constant 0 : index
    %c0_138 = arith.constant 0 : index
    %302 = vector.load %arg3[%c1_136, %c0_137, %c0_138] : memref<5x1x256xf32, #tpu.memory_space<vmem>>, vector<1x1x256xf32>
    %303 = vector.shape_cast %302 : vector<1x1x256xf32> to vector<1x256xf32>
    %304 = vector.broadcast %303 : vector<1x256xf32> to vector<8x256xf32>
    %305 = arith.addf %301, %304 : vector<8x256xf32>
    %c1_139 = arith.constant 1 : index
    %c0_140 = arith.constant 0 : index
    %c0_141 = arith.constant 0 : index
    %306 = vector.load %arg2[%c1_139, %c0_140, %c0_141] : memref<5x64x256xf32, #tpu.memory_space<vmem>>, vector<1x64x256xf32>
    %307 = vector.shape_cast %306 : vector<1x64x256xf32> to vector<64x256xf32>
    %cst_142 = arith.constant dense<0.000000e+00> : vector<8x256xf32>
    %308 = tpu.matmul %217, %307, %cst_142 {dimension_numbers = #tpu.dot_dimension_numbers<[1], [0], [0], [1], [0, 0, 1, 1], [], []>} : vector<8x64xf32>, vector<64x256xf32>, vector<8x256xf32> -> vector<8x256xf32>
    %309 = arith.addf %305, %308 : vector<8x256xf32>
    %310 = vector.extract_strided_slice %309 {offsets = [0, 0], sizes = [8, 192], strides = [1, 1]} : vector<8x256xf32> to vector<8x192xf32>
    %cst_143 = arith.constant 5.000000e-01 : f32
    %311 = vector.broadcast %cst_143 : f32 to vector<8x192xf32>
    %312 = arith.mulf %311, %310 : vector<8x192xf32>
    %313 = math.tanh %312 : vector<8x192xf32>
    %cst_144 = arith.constant 5.000000e-01 : f32
    %314 = vector.broadcast %cst_144 : f32 to vector<8x192xf32>
    %315 = arith.mulf %314, %313 : vector<8x192xf32>
    %cst_145 = arith.constant 5.000000e-01 : f32
    %316 = vector.broadcast %cst_145 : f32 to vector<8x192xf32>
    %317 = arith.addf %315, %316 : vector<8x192xf32>
    %318 = vector.extract_strided_slice %309 {offsets = [0, 192], sizes = [8, 64], strides = [1, 1]} : vector<8x256xf32> to vector<8x64xf32>
    %319 = math.tanh %318 : vector<8x64xf32>
    %320 = vector.extract_strided_slice %317 {offsets = [0, 0], sizes = [8, 64], strides = [1, 1]} : vector<8x192xf32> to vector<8x64xf32>
    %321 = vector.extract_strided_slice %317 {offsets = [0, 64], sizes = [8, 64], strides = [1, 1]} : vector<8x192xf32> to vector<8x64xf32>
    %322 = vector.extract_strided_slice %317 {offsets = [0, 128], sizes = [8, 64], strides = [1, 1]} : vector<8x192xf32> to vector<8x64xf32>
    %323 = arith.mulf %321, %215 : vector<8x64xf32>
    %324 = arith.mulf %320, %319 : vector<8x64xf32>
    %325 = arith.addf %323, %324 : vector<8x64xf32>
    %326 = math.tanh %325 : vector<8x64xf32>
    %327 = arith.mulf %322, %326 : vector<8x64xf32>
    %c2_146 = arith.constant 2 : index
    %c0_147 = arith.constant 0 : index
    %c0_148 = arith.constant 0 : index
    %328 = vector.load %arg1[%c2_146, %c0_147, %c0_148] : memref<5x64x256xf32, #tpu.memory_space<vmem>>, vector<1x64x256xf32>
    %329 = vector.shape_cast %328 : vector<1x64x256xf32> to vector<64x256xf32>
    %cst_149 = arith.constant dense<0.000000e+00> : vector<8x256xf32>
    %330 = tpu.matmul %217, %329, %cst_149 {dimension_numbers = #tpu.dot_dimension_numbers<[1], [0], [0], [1], [0, 0, 1, 1], [], []>} : vector<8x64xf32>, vector<64x256xf32>, vector<8x256xf32> -> vector<8x256xf32>
    %c2_150 = arith.constant 2 : index
    %c0_151 = arith.constant 0 : index
    %c0_152 = arith.constant 0 : index
    %331 = vector.load %arg3[%c2_150, %c0_151, %c0_152] : memref<5x1x256xf32, #tpu.memory_space<vmem>>, vector<1x1x256xf32>
    %332 = vector.shape_cast %331 : vector<1x1x256xf32> to vector<1x256xf32>
    %333 = vector.broadcast %332 : vector<1x256xf32> to vector<8x256xf32>
    %334 = arith.addf %330, %333 : vector<8x256xf32>
    %c2_153 = arith.constant 2 : index
    %c0_154 = arith.constant 0 : index
    %c0_155 = arith.constant 0 : index
    %335 = vector.load %arg2[%c2_153, %c0_154, %c0_155] : memref<5x64x256xf32, #tpu.memory_space<vmem>>, vector<1x64x256xf32>
    %336 = vector.shape_cast %335 : vector<1x64x256xf32> to vector<64x256xf32>
    %cst_156 = arith.constant dense<0.000000e+00> : vector<8x256xf32>
    %337 = tpu.matmul %246, %336, %cst_156 {dimension_numbers = #tpu.dot_dimension_numbers<[1], [0], [0], [1], [0, 0, 1, 1], [], []>} : vector<8x64xf32>, vector<64x256xf32>, vector<8x256xf32> -> vector<8x256xf32>
    %338 = arith.addf %334, %337 : vector<8x256xf32>
    %339 = vector.extract_strided_slice %338 {offsets = [0, 0], sizes = [8, 192], strides = [1, 1]} : vector<8x256xf32> to vector<8x192xf32>
    %cst_157 = arith.constant 5.000000e-01 : f32
    %340 = vector.broadcast %cst_157 : f32 to vector<8x192xf32>
    %341 = arith.mulf %340, %339 : vector<8x192xf32>
    %342 = math.tanh %341 : vector<8x192xf32>
    %cst_158 = arith.constant 5.000000e-01 : f32
    %343 = vector.broadcast %cst_158 : f32 to vector<8x192xf32>
    %344 = arith.mulf %343, %342 : vector<8x192xf32>
    %cst_159 = arith.constant 5.000000e-01 : f32
    %345 = vector.broadcast %cst_159 : f32 to vector<8x192xf32>
    %346 = arith.addf %344, %345 : vector<8x192xf32>
    %347 = vector.extract_strided_slice %338 {offsets = [0, 192], sizes = [8, 64], strides = [1, 1]} : vector<8x256xf32> to vector<8x64xf32>
    %348 = math.tanh %347 : vector<8x64xf32>
    %349 = vector.extract_strided_slice %346 {offsets = [0, 0], sizes = [8, 64], strides = [1, 1]} : vector<8x192xf32> to vector<8x64xf32>
    %350 = vector.extract_strided_slice %346 {offsets = [0, 64], sizes = [8, 64], strides = [1, 1]} : vector<8x192xf32> to vector<8x64xf32>
    %351 = vector.extract_strided_slice %346 {offsets = [0, 128], sizes = [8, 64], strides = [1, 1]} : vector<8x192xf32> to vector<8x64xf32>
    %352 = arith.mulf %350, %244 : vector<8x64xf32>
    %353 = arith.mulf %349, %348 : vector<8x64xf32>
    %354 = arith.addf %352, %353 : vector<8x64xf32>
    %355 = math.tanh %354 : vector<8x64xf32>
    %356 = arith.mulf %351, %355 : vector<8x64xf32>
    %c3_160 = arith.constant 3 : index
    %c0_161 = arith.constant 0 : index
    %c0_162 = arith.constant 0 : index
    %357 = vector.load %arg1[%c3_160, %c0_161, %c0_162] : memref<5x64x256xf32, #tpu.memory_space<vmem>>, vector<1x64x256xf32>
    %358 = vector.shape_cast %357 : vector<1x64x256xf32> to vector<64x256xf32>
    %cst_163 = arith.constant dense<0.000000e+00> : vector<8x256xf32>
    %359 = tpu.matmul %246, %358, %cst_163 {dimension_numbers = #tpu.dot_dimension_numbers<[1], [0], [0], [1], [0, 0, 1, 1], [], []>} : vector<8x64xf32>, vector<64x256xf32>, vector<8x256xf32> -> vector<8x256xf32>
    %c3_164 = arith.constant 3 : index
    %c0_165 = arith.constant 0 : index
    %c0_166 = arith.constant 0 : index
    %360 = vector.load %arg3[%c3_164, %c0_165, %c0_166] : memref<5x1x256xf32, #tpu.memory_space<vmem>>, vector<1x1x256xf32>
    %361 = vector.shape_cast %360 : vector<1x1x256xf32> to vector<1x256xf32>
    %362 = vector.broadcast %361 : vector<1x256xf32> to vector<8x256xf32>
    %363 = arith.addf %359, %362 : vector<8x256xf32>
    %c3_167 = arith.constant 3 : index
    %c0_168 = arith.constant 0 : index
    %c0_169 = arith.constant 0 : index
    %364 = vector.load %arg2[%c3_167, %c0_168, %c0_169] : memref<5x64x256xf32, #tpu.memory_space<vmem>>, vector<1x64x256xf32>
    %365 = vector.shape_cast %364 : vector<1x64x256xf32> to vector<64x256xf32>
    %cst_170 = arith.constant dense<0.000000e+00> : vector<8x256xf32>
    %366 = tpu.matmul %275, %365, %cst_170 {dimension_numbers = #tpu.dot_dimension_numbers<[1], [0], [0], [1], [0, 0, 1, 1], [], []>} : vector<8x64xf32>, vector<64x256xf32>, vector<8x256xf32> -> vector<8x256xf32>
    %367 = arith.addf %363, %366 : vector<8x256xf32>
    %368 = vector.extract_strided_slice %367 {offsets = [0, 0], sizes = [8, 192], strides = [1, 1]} : vector<8x256xf32> to vector<8x192xf32>
    %cst_171 = arith.constant 5.000000e-01 : f32
    %369 = vector.broadcast %cst_171 : f32 to vector<8x192xf32>
    %370 = arith.mulf %369, %368 : vector<8x192xf32>
    %371 = math.tanh %370 : vector<8x192xf32>
    %cst_172 = arith.constant 5.000000e-01 : f32
    %372 = vector.broadcast %cst_172 : f32 to vector<8x192xf32>
    %373 = arith.mulf %372, %371 : vector<8x192xf32>
    %cst_173 = arith.constant 5.000000e-01 : f32
    %374 = vector.broadcast %cst_173 : f32 to vector<8x192xf32>
    %375 = arith.addf %373, %374 : vector<8x192xf32>
    %376 = vector.extract_strided_slice %367 {offsets = [0, 192], sizes = [8, 64], strides = [1, 1]} : vector<8x256xf32> to vector<8x64xf32>
    %377 = math.tanh %376 : vector<8x64xf32>
    %378 = vector.extract_strided_slice %375 {offsets = [0, 0], sizes = [8, 64], strides = [1, 1]} : vector<8x192xf32> to vector<8x64xf32>
    %379 = vector.extract_strided_slice %375 {offsets = [0, 64], sizes = [8, 64], strides = [1, 1]} : vector<8x192xf32> to vector<8x64xf32>
    %380 = vector.extract_strided_slice %375 {offsets = [0, 128], sizes = [8, 64], strides = [1, 1]} : vector<8x192xf32> to vector<8x64xf32>
    %381 = arith.mulf %379, %273 : vector<8x64xf32>
    %382 = arith.mulf %378, %377 : vector<8x64xf32>
    %383 = arith.addf %381, %382 : vector<8x64xf32>
    %384 = math.tanh %383 : vector<8x64xf32>
    %385 = arith.mulf %380, %384 : vector<8x64xf32>
    %c4 = arith.constant 4 : index
    %c0_174 = arith.constant 0 : index
    %c0_175 = arith.constant 0 : index
    %386 = vector.load %arg1[%c4, %c0_174, %c0_175] : memref<5x64x256xf32, #tpu.memory_space<vmem>>, vector<1x64x256xf32>
    %387 = vector.shape_cast %386 : vector<1x64x256xf32> to vector<64x256xf32>
    %cst_176 = arith.constant dense<0.000000e+00> : vector<8x256xf32>
    %388 = tpu.matmul %275, %387, %cst_176 {dimension_numbers = #tpu.dot_dimension_numbers<[1], [0], [0], [1], [0, 0, 1, 1], [], []>} : vector<8x64xf32>, vector<64x256xf32>, vector<8x256xf32> -> vector<8x256xf32>
    %c4_177 = arith.constant 4 : index
    %c0_178 = arith.constant 0 : index
    %c0_179 = arith.constant 0 : index
    %389 = vector.load %arg3[%c4_177, %c0_178, %c0_179] : memref<5x1x256xf32, #tpu.memory_space<vmem>>, vector<1x1x256xf32>
    %390 = vector.shape_cast %389 : vector<1x1x256xf32> to vector<1x256xf32>
    %391 = vector.broadcast %390 : vector<1x256xf32> to vector<8x256xf32>
    %392 = arith.addf %388, %391 : vector<8x256xf32>
    %c4_180 = arith.constant 4 : index
    %c0_181 = arith.constant 0 : index
    %c0_182 = arith.constant 0 : index
    %393 = vector.load %arg2[%c4_180, %c0_181, %c0_182] : memref<5x64x256xf32, #tpu.memory_space<vmem>>, vector<1x64x256xf32>
    %394 = vector.shape_cast %393 : vector<1x64x256xf32> to vector<64x256xf32>
    %cst_183 = arith.constant dense<0.000000e+00> : vector<8x256xf32>
    %395 = tpu.matmul %9, %394, %cst_183 {dimension_numbers = #tpu.dot_dimension_numbers<[1], [0], [0], [1], [0, 0, 1, 1], [], []>} : vector<8x64xf32>, vector<64x256xf32>, vector<8x256xf32> -> vector<8x256xf32>
    %396 = arith.addf %392, %395 : vector<8x256xf32>
    %397 = vector.extract_strided_slice %396 {offsets = [0, 0], sizes = [8, 192], strides = [1, 1]} : vector<8x256xf32> to vector<8x192xf32>
    %cst_184 = arith.constant 5.000000e-01 : f32
    %398 = vector.broadcast %cst_184 : f32 to vector<8x192xf32>
    %399 = arith.mulf %398, %397 : vector<8x192xf32>
    %400 = math.tanh %399 : vector<8x192xf32>
    %cst_185 = arith.constant 5.000000e-01 : f32
    %401 = vector.broadcast %cst_185 : f32 to vector<8x192xf32>
    %402 = arith.mulf %401, %400 : vector<8x192xf32>
    %cst_186 = arith.constant 5.000000e-01 : f32
    %403 = vector.broadcast %cst_186 : f32 to vector<8x192xf32>
    %404 = arith.addf %402, %403 : vector<8x192xf32>
    %405 = vector.extract_strided_slice %396 {offsets = [0, 192], sizes = [8, 64], strides = [1, 1]} : vector<8x256xf32> to vector<8x64xf32>
    %406 = math.tanh %405 : vector<8x64xf32>
    %407 = vector.extract_strided_slice %404 {offsets = [0, 0], sizes = [8, 64], strides = [1, 1]} : vector<8x192xf32> to vector<8x64xf32>
    %408 = vector.extract_strided_slice %404 {offsets = [0, 64], sizes = [8, 64], strides = [1, 1]} : vector<8x192xf32> to vector<8x64xf32>
    %409 = vector.extract_strided_slice %404 {offsets = [0, 128], sizes = [8, 64], strides = [1, 1]} : vector<8x192xf32> to vector<8x64xf32>
    %410 = arith.mulf %408, %9 : vector<8x64xf32>
    %411 = arith.mulf %407, %406 : vector<8x64xf32>
    %412 = arith.addf %410, %411 : vector<8x64xf32>
    %413 = math.tanh %412 : vector<8x64xf32>
    %414 = arith.mulf %409, %413 : vector<8x64xf32>
    %c40 = arith.constant 40 : index
    %c0_187 = arith.constant 0 : index
    %415 = vector.load %arg7[%c40, %c0_187] : memref<64x256xf32, #tpu.memory_space<vmem>>, vector<8x256xf32>
    %c0_188 = arith.constant 0 : index
    %c0_189 = arith.constant 0 : index
    %c0_190 = arith.constant 0 : index
    %416 = vector.load %arg2[%c0_188, %c0_189, %c0_190] : memref<5x64x256xf32, #tpu.memory_space<vmem>>, vector<1x64x256xf32>
    %417 = vector.shape_cast %416 : vector<1x64x256xf32> to vector<64x256xf32>
    %cst_191 = arith.constant dense<0.000000e+00> : vector<8x256xf32>
    %418 = tpu.matmul %298, %417, %cst_191 {dimension_numbers = #tpu.dot_dimension_numbers<[1], [0], [0], [1], [0, 0, 1, 1], [], []>} : vector<8x64xf32>, vector<64x256xf32>, vector<8x256xf32> -> vector<8x256xf32>
    %419 = arith.addf %415, %418 : vector<8x256xf32>
    %420 = vector.extract_strided_slice %419 {offsets = [0, 0], sizes = [8, 192], strides = [1, 1]} : vector<8x256xf32> to vector<8x192xf32>
    %cst_192 = arith.constant 5.000000e-01 : f32
    %421 = vector.broadcast %cst_192 : f32 to vector<8x192xf32>
    %422 = arith.mulf %421, %420 : vector<8x192xf32>
    %423 = math.tanh %422 : vector<8x192xf32>
    %cst_193 = arith.constant 5.000000e-01 : f32
    %424 = vector.broadcast %cst_193 : f32 to vector<8x192xf32>
    %425 = arith.mulf %424, %423 : vector<8x192xf32>
    %cst_194 = arith.constant 5.000000e-01 : f32
    %426 = vector.broadcast %cst_194 : f32 to vector<8x192xf32>
    %427 = arith.addf %425, %426 : vector<8x192xf32>
    %428 = vector.extract_strided_slice %419 {offsets = [0, 192], sizes = [8, 64], strides = [1, 1]} : vector<8x256xf32> to vector<8x64xf32>
    %429 = math.tanh %428 : vector<8x64xf32>
    %430 = vector.extract_strided_slice %427 {offsets = [0, 0], sizes = [8, 64], strides = [1, 1]} : vector<8x192xf32> to vector<8x64xf32>
    %431 = vector.extract_strided_slice %427 {offsets = [0, 64], sizes = [8, 64], strides = [1, 1]} : vector<8x192xf32> to vector<8x64xf32>
    %432 = vector.extract_strided_slice %427 {offsets = [0, 128], sizes = [8, 64], strides = [1, 1]} : vector<8x192xf32> to vector<8x64xf32>
    %433 = arith.mulf %431, %296 : vector<8x64xf32>
    %434 = arith.mulf %430, %429 : vector<8x64xf32>
    %435 = arith.addf %433, %434 : vector<8x64xf32>
    %436 = math.tanh %435 : vector<8x64xf32>
    %437 = arith.mulf %432, %436 : vector<8x64xf32>
    %c1_195 = arith.constant 1 : index
    %c0_196 = arith.constant 0 : index
    %c0_197 = arith.constant 0 : index
    %438 = vector.load %arg1[%c1_195, %c0_196, %c0_197] : memref<5x64x256xf32, #tpu.memory_space<vmem>>, vector<1x64x256xf32>
    %439 = vector.shape_cast %438 : vector<1x64x256xf32> to vector<64x256xf32>
    %cst_198 = arith.constant dense<0.000000e+00> : vector<8x256xf32>
    %440 = tpu.matmul %298, %439, %cst_198 {dimension_numbers = #tpu.dot_dimension_numbers<[1], [0], [0], [1], [0, 0, 1, 1], [], []>} : vector<8x64xf32>, vector<64x256xf32>, vector<8x256xf32> -> vector<8x256xf32>
    %c1_199 = arith.constant 1 : index
    %c0_200 = arith.constant 0 : index
    %c0_201 = arith.constant 0 : index
    %441 = vector.load %arg3[%c1_199, %c0_200, %c0_201] : memref<5x1x256xf32, #tpu.memory_space<vmem>>, vector<1x1x256xf32>
    %442 = vector.shape_cast %441 : vector<1x1x256xf32> to vector<1x256xf32>
    %443 = vector.broadcast %442 : vector<1x256xf32> to vector<8x256xf32>
    %444 = arith.addf %440, %443 : vector<8x256xf32>
    %c1_202 = arith.constant 1 : index
    %c0_203 = arith.constant 0 : index
    %c0_204 = arith.constant 0 : index
    %445 = vector.load %arg2[%c1_202, %c0_203, %c0_204] : memref<5x64x256xf32, #tpu.memory_space<vmem>>, vector<1x64x256xf32>
    %446 = vector.shape_cast %445 : vector<1x64x256xf32> to vector<64x256xf32>
    %cst_205 = arith.constant dense<0.000000e+00> : vector<8x256xf32>
    %447 = tpu.matmul %327, %446, %cst_205 {dimension_numbers = #tpu.dot_dimension_numbers<[1], [0], [0], [1], [0, 0, 1, 1], [], []>} : vector<8x64xf32>, vector<64x256xf32>, vector<8x256xf32> -> vector<8x256xf32>
    %448 = arith.addf %444, %447 : vector<8x256xf32>
    %449 = vector.extract_strided_slice %448 {offsets = [0, 0], sizes = [8, 192], strides = [1, 1]} : vector<8x256xf32> to vector<8x192xf32>
    %cst_206 = arith.constant 5.000000e-01 : f32
    %450 = vector.broadcast %cst_206 : f32 to vector<8x192xf32>
    %451 = arith.mulf %450, %449 : vector<8x192xf32>
    %452 = math.tanh %451 : vector<8x192xf32>
    %cst_207 = arith.constant 5.000000e-01 : f32
    %453 = vector.broadcast %cst_207 : f32 to vector<8x192xf32>
    %454 = arith.mulf %453, %452 : vector<8x192xf32>
    %cst_208 = arith.constant 5.000000e-01 : f32
    %455 = vector.broadcast %cst_208 : f32 to vector<8x192xf32>
    %456 = arith.addf %454, %455 : vector<8x192xf32>
    %457 = vector.extract_strided_slice %448 {offsets = [0, 192], sizes = [8, 64], strides = [1, 1]} : vector<8x256xf32> to vector<8x64xf32>
    %458 = math.tanh %457 : vector<8x64xf32>
    %459 = vector.extract_strided_slice %456 {offsets = [0, 0], sizes = [8, 64], strides = [1, 1]} : vector<8x192xf32> to vector<8x64xf32>
    %460 = vector.extract_strided_slice %456 {offsets = [0, 64], sizes = [8, 64], strides = [1, 1]} : vector<8x192xf32> to vector<8x64xf32>
    %461 = vector.extract_strided_slice %456 {offsets = [0, 128], sizes = [8, 64], strides = [1, 1]} : vector<8x192xf32> to vector<8x64xf32>
    %462 = arith.mulf %460, %325 : vector<8x64xf32>
    %463 = arith.mulf %459, %458 : vector<8x64xf32>
    %464 = arith.addf %462, %463 : vector<8x64xf32>
    %465 = math.tanh %464 : vector<8x64xf32>
    %466 = arith.mulf %461, %465 : vector<8x64xf32>
    %c2_209 = arith.constant 2 : index
    %c0_210 = arith.constant 0 : index
    %c0_211 = arith.constant 0 : index
    %467 = vector.load %arg1[%c2_209, %c0_210, %c0_211] : memref<5x64x256xf32, #tpu.memory_space<vmem>>, vector<1x64x256xf32>
    %468 = vector.shape_cast %467 : vector<1x64x256xf32> to vector<64x256xf32>
    %cst_212 = arith.constant dense<0.000000e+00> : vector<8x256xf32>
    %469 = tpu.matmul %327, %468, %cst_212 {dimension_numbers = #tpu.dot_dimension_numbers<[1], [0], [0], [1], [0, 0, 1, 1], [], []>} : vector<8x64xf32>, vector<64x256xf32>, vector<8x256xf32> -> vector<8x256xf32>
    %c2_213 = arith.constant 2 : index
    %c0_214 = arith.constant 0 : index
    %c0_215 = arith.constant 0 : index
    %470 = vector.load %arg3[%c2_213, %c0_214, %c0_215] : memref<5x1x256xf32, #tpu.memory_space<vmem>>, vector<1x1x256xf32>
    %471 = vector.shape_cast %470 : vector<1x1x256xf32> to vector<1x256xf32>
    %472 = vector.broadcast %471 : vector<1x256xf32> to vector<8x256xf32>
    %473 = arith.addf %469, %472 : vector<8x256xf32>
    %c2_216 = arith.constant 2 : index
    %c0_217 = arith.constant 0 : index
    %c0_218 = arith.constant 0 : index
    %474 = vector.load %arg2[%c2_216, %c0_217, %c0_218] : memref<5x64x256xf32, #tpu.memory_space<vmem>>, vector<1x64x256xf32>
    %475 = vector.shape_cast %474 : vector<1x64x256xf32> to vector<64x256xf32>
    %cst_219 = arith.constant dense<0.000000e+00> : vector<8x256xf32>
    %476 = tpu.matmul %356, %475, %cst_219 {dimension_numbers = #tpu.dot_dimension_numbers<[1], [0], [0], [1], [0, 0, 1, 1], [], []>} : vector<8x64xf32>, vector<64x256xf32>, vector<8x256xf32> -> vector<8x256xf32>
    %477 = arith.addf %473, %476 : vector<8x256xf32>
    %478 = vector.extract_strided_slice %477 {offsets = [0, 0], sizes = [8, 192], strides = [1, 1]} : vector<8x256xf32> to vector<8x192xf32>
    %cst_220 = arith.constant 5.000000e-01 : f32
    %479 = vector.broadcast %cst_220 : f32 to vector<8x192xf32>
    %480 = arith.mulf %479, %478 : vector<8x192xf32>
    %481 = math.tanh %480 : vector<8x192xf32>
    %cst_221 = arith.constant 5.000000e-01 : f32
    %482 = vector.broadcast %cst_221 : f32 to vector<8x192xf32>
    %483 = arith.mulf %482, %481 : vector<8x192xf32>
    %cst_222 = arith.constant 5.000000e-01 : f32
    %484 = vector.broadcast %cst_222 : f32 to vector<8x192xf32>
    %485 = arith.addf %483, %484 : vector<8x192xf32>
    %486 = vector.extract_strided_slice %477 {offsets = [0, 192], sizes = [8, 64], strides = [1, 1]} : vector<8x256xf32> to vector<8x64xf32>
    %487 = math.tanh %486 : vector<8x64xf32>
    %488 = vector.extract_strided_slice %485 {offsets = [0, 0], sizes = [8, 64], strides = [1, 1]} : vector<8x192xf32> to vector<8x64xf32>
    %489 = vector.extract_strided_slice %485 {offsets = [0, 64], sizes = [8, 64], strides = [1, 1]} : vector<8x192xf32> to vector<8x64xf32>
    %490 = vector.extract_strided_slice %485 {offsets = [0, 128], sizes = [8, 64], strides = [1, 1]} : vector<8x192xf32> to vector<8x64xf32>
    %491 = arith.mulf %489, %354 : vector<8x64xf32>
    %492 = arith.mulf %488, %487 : vector<8x64xf32>
    %493 = arith.addf %491, %492 : vector<8x64xf32>
    %494 = math.tanh %493 : vector<8x64xf32>
    %495 = arith.mulf %490, %494 : vector<8x64xf32>
    %c3_223 = arith.constant 3 : index
    %c0_224 = arith.constant 0 : index
    %c0_225 = arith.constant 0 : index
    %496 = vector.load %arg1[%c3_223, %c0_224, %c0_225] : memref<5x64x256xf32, #tpu.memory_space<vmem>>, vector<1x64x256xf32>
    %497 = vector.shape_cast %496 : vector<1x64x256xf32> to vector<64x256xf32>
    %cst_226 = arith.constant dense<0.000000e+00> : vector<8x256xf32>
    %498 = tpu.matmul %356, %497, %cst_226 {dimension_numbers = #tpu.dot_dimension_numbers<[1], [0], [0], [1], [0, 0, 1, 1], [], []>} : vector<8x64xf32>, vector<64x256xf32>, vector<8x256xf32> -> vector<8x256xf32>
    %c3_227 = arith.constant 3 : index
    %c0_228 = arith.constant 0 : index
    %c0_229 = arith.constant 0 : index
    %499 = vector.load %arg3[%c3_227, %c0_228, %c0_229] : memref<5x1x256xf32, #tpu.memory_space<vmem>>, vector<1x1x256xf32>
    %500 = vector.shape_cast %499 : vector<1x1x256xf32> to vector<1x256xf32>
    %501 = vector.broadcast %500 : vector<1x256xf32> to vector<8x256xf32>
    %502 = arith.addf %498, %501 : vector<8x256xf32>
    %c3_230 = arith.constant 3 : index
    %c0_231 = arith.constant 0 : index
    %c0_232 = arith.constant 0 : index
    %503 = vector.load %arg2[%c3_230, %c0_231, %c0_232] : memref<5x64x256xf32, #tpu.memory_space<vmem>>, vector<1x64x256xf32>
    %504 = vector.shape_cast %503 : vector<1x64x256xf32> to vector<64x256xf32>
    %cst_233 = arith.constant dense<0.000000e+00> : vector<8x256xf32>
    %505 = tpu.matmul %385, %504, %cst_233 {dimension_numbers = #tpu.dot_dimension_numbers<[1], [0], [0], [1], [0, 0, 1, 1], [], []>} : vector<8x64xf32>, vector<64x256xf32>, vector<8x256xf32> -> vector<8x256xf32>
    %506 = arith.addf %502, %505 : vector<8x256xf32>
    %507 = vector.extract_strided_slice %506 {offsets = [0, 0], sizes = [8, 192], strides = [1, 1]} : vector<8x256xf32> to vector<8x192xf32>
    %cst_234 = arith.constant 5.000000e-01 : f32
    %508 = vector.broadcast %cst_234 : f32 to vector<8x192xf32>
    %509 = arith.mulf %508, %507 : vector<8x192xf32>
    %510 = math.tanh %509 : vector<8x192xf32>
    %cst_235 = arith.constant 5.000000e-01 : f32
    %511 = vector.broadcast %cst_235 : f32 to vector<8x192xf32>
    %512 = arith.mulf %511, %510 : vector<8x192xf32>
    %cst_236 = arith.constant 5.000000e-01 : f32
    %513 = vector.broadcast %cst_236 : f32 to vector<8x192xf32>
    %514 = arith.addf %512, %513 : vector<8x192xf32>
    %515 = vector.extract_strided_slice %506 {offsets = [0, 192], sizes = [8, 64], strides = [1, 1]} : vector<8x256xf32> to vector<8x64xf32>
    %516 = math.tanh %515 : vector<8x64xf32>
    %517 = vector.extract_strided_slice %514 {offsets = [0, 0], sizes = [8, 64], strides = [1, 1]} : vector<8x192xf32> to vector<8x64xf32>
    %518 = vector.extract_strided_slice %514 {offsets = [0, 64], sizes = [8, 64], strides = [1, 1]} : vector<8x192xf32> to vector<8x64xf32>
    %519 = vector.extract_strided_slice %514 {offsets = [0, 128], sizes = [8, 64], strides = [1, 1]} : vector<8x192xf32> to vector<8x64xf32>
    %520 = arith.mulf %518, %383 : vector<8x64xf32>
    %521 = arith.mulf %517, %516 : vector<8x64xf32>
    %522 = arith.addf %520, %521 : vector<8x64xf32>
    %523 = math.tanh %522 : vector<8x64xf32>
    %524 = arith.mulf %519, %523 : vector<8x64xf32>
    %c4_237 = arith.constant 4 : index
    %c0_238 = arith.constant 0 : index
    %c0_239 = arith.constant 0 : index
    %525 = vector.load %arg1[%c4_237, %c0_238, %c0_239] : memref<5x64x256xf32, #tpu.memory_space<vmem>>, vector<1x64x256xf32>
    %526 = vector.shape_cast %525 : vector<1x64x256xf32> to vector<64x256xf32>
    %cst_240 = arith.constant dense<0.000000e+00> : vector<8x256xf32>
    %527 = tpu.matmul %385, %526, %cst_240 {dimension_numbers = #tpu.dot_dimension_numbers<[1], [0], [0], [1], [0, 0, 1, 1], [], []>} : vector<8x64xf32>, vector<64x256xf32>, vector<8x256xf32> -> vector<8x256xf32>
    %c4_241 = arith.constant 4 : index
    %c0_242 = arith.constant 0 : index
    %c0_243 = arith.constant 0 : index
    %528 = vector.load %arg3[%c4_241, %c0_242, %c0_243] : memref<5x1x256xf32, #tpu.memory_space<vmem>>, vector<1x1x256xf32>
    %529 = vector.shape_cast %528 : vector<1x1x256xf32> to vector<1x256xf32>
    %530 = vector.broadcast %529 : vector<1x256xf32> to vector<8x256xf32>
    %531 = arith.addf %527, %530 : vector<8x256xf32>
    %c4_244 = arith.constant 4 : index
    %c0_245 = arith.constant 0 : index
    %c0_246 = arith.constant 0 : index
    %532 = vector.load %arg2[%c4_244, %c0_245, %c0_246] : memref<5x64x256xf32, #tpu.memory_space<vmem>>, vector<1x64x256xf32>
    %533 = vector.shape_cast %532 : vector<1x64x256xf32> to vector<64x256xf32>
    %cst_247 = arith.constant dense<0.000000e+00> : vector<8x256xf32>
    %534 = tpu.matmul %414, %533, %cst_247 {dimension_numbers = #tpu.dot_dimension_numbers<[1], [0], [0], [1], [0, 0, 1, 1], [], []>} : vector<8x64xf32>, vector<64x256xf32>, vector<8x256xf32> -> vector<8x256xf32>
    %535 = arith.addf %531, %534 : vector<8x256xf32>
    %536 = vector.extract_strided_slice %535 {offsets = [0, 0], sizes = [8, 192], strides = [1, 1]} : vector<8x256xf32> to vector<8x192xf32>
    %cst_248 = arith.constant 5.000000e-01 : f32
    %537 = vector.broadcast %cst_248 : f32 to vector<8x192xf32>
    %538 = arith.mulf %537, %536 : vector<8x192xf32>
    %539 = math.tanh %538 : vector<8x192xf32>
    %cst_249 = arith.constant 5.000000e-01 : f32
    %540 = vector.broadcast %cst_249 : f32 to vector<8x192xf32>
    %541 = arith.mulf %540, %539 : vector<8x192xf32>
    %cst_250 = arith.constant 5.000000e-01 : f32
    %542 = vector.broadcast %cst_250 : f32 to vector<8x192xf32>
    %543 = arith.addf %541, %542 : vector<8x192xf32>
    %544 = vector.extract_strided_slice %535 {offsets = [0, 192], sizes = [8, 64], strides = [1, 1]} : vector<8x256xf32> to vector<8x64xf32>
    %545 = math.tanh %544 : vector<8x64xf32>
    %546 = vector.extract_strided_slice %543 {offsets = [0, 0], sizes = [8, 64], strides = [1, 1]} : vector<8x192xf32> to vector<8x64xf32>
    %547 = vector.extract_strided_slice %543 {offsets = [0, 64], sizes = [8, 64], strides = [1, 1]} : vector<8x192xf32> to vector<8x64xf32>
    %548 = vector.extract_strided_slice %543 {offsets = [0, 128], sizes = [8, 64], strides = [1, 1]} : vector<8x192xf32> to vector<8x64xf32>
    %549 = arith.mulf %547, %412 : vector<8x64xf32>
    %550 = arith.mulf %546, %545 : vector<8x64xf32>
    %551 = arith.addf %549, %550 : vector<8x64xf32>
    %552 = math.tanh %551 : vector<8x64xf32>
    %553 = arith.mulf %548, %552 : vector<8x64xf32>
    %c48 = arith.constant 48 : index
    %c0_251 = arith.constant 0 : index
    %554 = vector.load %arg7[%c48, %c0_251] : memref<64x256xf32, #tpu.memory_space<vmem>>, vector<8x256xf32>
    %c0_252 = arith.constant 0 : index
    %c0_253 = arith.constant 0 : index
    %c0_254 = arith.constant 0 : index
    %555 = vector.load %arg2[%c0_252, %c0_253, %c0_254] : memref<5x64x256xf32, #tpu.memory_space<vmem>>, vector<1x64x256xf32>
    %556 = vector.shape_cast %555 : vector<1x64x256xf32> to vector<64x256xf32>
    %cst_255 = arith.constant dense<0.000000e+00> : vector<8x256xf32>
    %557 = tpu.matmul %437, %556, %cst_255 {dimension_numbers = #tpu.dot_dimension_numbers<[1], [0], [0], [1], [0, 0, 1, 1], [], []>} : vector<8x64xf32>, vector<64x256xf32>, vector<8x256xf32> -> vector<8x256xf32>
    %558 = arith.addf %554, %557 : vector<8x256xf32>
    %559 = vector.extract_strided_slice %558 {offsets = [0, 0], sizes = [8, 192], strides = [1, 1]} : vector<8x256xf32> to vector<8x192xf32>
    %cst_256 = arith.constant 5.000000e-01 : f32
    %560 = vector.broadcast %cst_256 : f32 to vector<8x192xf32>
    %561 = arith.mulf %560, %559 : vector<8x192xf32>
    %562 = math.tanh %561 : vector<8x192xf32>
    %cst_257 = arith.constant 5.000000e-01 : f32
    %563 = vector.broadcast %cst_257 : f32 to vector<8x192xf32>
    %564 = arith.mulf %563, %562 : vector<8x192xf32>
    %cst_258 = arith.constant 5.000000e-01 : f32
    %565 = vector.broadcast %cst_258 : f32 to vector<8x192xf32>
    %566 = arith.addf %564, %565 : vector<8x192xf32>
    %567 = vector.extract_strided_slice %558 {offsets = [0, 192], sizes = [8, 64], strides = [1, 1]} : vector<8x256xf32> to vector<8x64xf32>
    %568 = math.tanh %567 : vector<8x64xf32>
    %569 = vector.extract_strided_slice %566 {offsets = [0, 0], sizes = [8, 64], strides = [1, 1]} : vector<8x192xf32> to vector<8x64xf32>
    %570 = vector.extract_strided_slice %566 {offsets = [0, 64], sizes = [8, 64], strides = [1, 1]} : vector<8x192xf32> to vector<8x64xf32>
    %571 = vector.extract_strided_slice %566 {offsets = [0, 128], sizes = [8, 64], strides = [1, 1]} : vector<8x192xf32> to vector<8x64xf32>
    %572 = arith.mulf %570, %435 : vector<8x64xf32>
    %573 = arith.mulf %569, %568 : vector<8x64xf32>
    %574 = arith.addf %572, %573 : vector<8x64xf32>
    %575 = math.tanh %574 : vector<8x64xf32>
    %576 = arith.mulf %571, %575 : vector<8x64xf32>
    %c1_259 = arith.constant 1 : index
    %c0_260 = arith.constant 0 : index
    %c0_261 = arith.constant 0 : index
    %577 = vector.load %arg1[%c1_259, %c0_260, %c0_261] : memref<5x64x256xf32, #tpu.memory_space<vmem>>, vector<1x64x256xf32>
    %578 = vector.shape_cast %577 : vector<1x64x256xf32> to vector<64x256xf32>
    %cst_262 = arith.constant dense<0.000000e+00> : vector<8x256xf32>
    %579 = tpu.matmul %437, %578, %cst_262 {dimension_numbers = #tpu.dot_dimension_numbers<[1], [0], [0], [1], [0, 0, 1, 1], [], []>} : vector<8x64xf32>, vector<64x256xf32>, vector<8x256xf32> -> vector<8x256xf32>
    %c1_263 = arith.constant 1 : index
    %c0_264 = arith.constant 0 : index
    %c0_265 = arith.constant 0 : index
    %580 = vector.load %arg3[%c1_263, %c0_264, %c0_265] : memref<5x1x256xf32, #tpu.memory_space<vmem>>, vector<1x1x256xf32>
    %581 = vector.shape_cast %580 : vector<1x1x256xf32> to vector<1x256xf32>
    %582 = vector.broadcast %581 : vector<1x256xf32> to vector<8x256xf32>
    %583 = arith.addf %579, %582 : vector<8x256xf32>
    %c1_266 = arith.constant 1 : index
    %c0_267 = arith.constant 0 : index
    %c0_268 = arith.constant 0 : index
    %584 = vector.load %arg2[%c1_266, %c0_267, %c0_268] : memref<5x64x256xf32, #tpu.memory_space<vmem>>, vector<1x64x256xf32>
    %585 = vector.shape_cast %584 : vector<1x64x256xf32> to vector<64x256xf32>
    %cst_269 = arith.constant dense<0.000000e+00> : vector<8x256xf32>
    %586 = tpu.matmul %466, %585, %cst_269 {dimension_numbers = #tpu.dot_dimension_numbers<[1], [0], [0], [1], [0, 0, 1, 1], [], []>} : vector<8x64xf32>, vector<64x256xf32>, vector<8x256xf32> -> vector<8x256xf32>
    %587 = arith.addf %583, %586 : vector<8x256xf32>
    %588 = vector.extract_strided_slice %587 {offsets = [0, 0], sizes = [8, 192], strides = [1, 1]} : vector<8x256xf32> to vector<8x192xf32>
    %cst_270 = arith.constant 5.000000e-01 : f32
    %589 = vector.broadcast %cst_270 : f32 to vector<8x192xf32>
    %590 = arith.mulf %589, %588 : vector<8x192xf32>
    %591 = math.tanh %590 : vector<8x192xf32>
    %cst_271 = arith.constant 5.000000e-01 : f32
    %592 = vector.broadcast %cst_271 : f32 to vector<8x192xf32>
    %593 = arith.mulf %592, %591 : vector<8x192xf32>
    %cst_272 = arith.constant 5.000000e-01 : f32
    %594 = vector.broadcast %cst_272 : f32 to vector<8x192xf32>
    %595 = arith.addf %593, %594 : vector<8x192xf32>
    %596 = vector.extract_strided_slice %587 {offsets = [0, 192], sizes = [8, 64], strides = [1, 1]} : vector<8x256xf32> to vector<8x64xf32>
    %597 = math.tanh %596 : vector<8x64xf32>
    %598 = vector.extract_strided_slice %595 {offsets = [0, 0], sizes = [8, 64], strides = [1, 1]} : vector<8x192xf32> to vector<8x64xf32>
    %599 = vector.extract_strided_slice %595 {offsets = [0, 64], sizes = [8, 64], strides = [1, 1]} : vector<8x192xf32> to vector<8x64xf32>
    %600 = vector.extract_strided_slice %595 {offsets = [0, 128], sizes = [8, 64], strides = [1, 1]} : vector<8x192xf32> to vector<8x64xf32>
    %601 = arith.mulf %599, %464 : vector<8x64xf32>
    %602 = arith.mulf %598, %597 : vector<8x64xf32>
    %603 = arith.addf %601, %602 : vector<8x64xf32>
    %604 = math.tanh %603 : vector<8x64xf32>
    %605 = arith.mulf %600, %604 : vector<8x64xf32>
    %c2_273 = arith.constant 2 : index
    %c0_274 = arith.constant 0 : index
    %c0_275 = arith.constant 0 : index
    %606 = vector.load %arg1[%c2_273, %c0_274, %c0_275] : memref<5x64x256xf32, #tpu.memory_space<vmem>>, vector<1x64x256xf32>
    %607 = vector.shape_cast %606 : vector<1x64x256xf32> to vector<64x256xf32>
    %cst_276 = arith.constant dense<0.000000e+00> : vector<8x256xf32>
    %608 = tpu.matmul %466, %607, %cst_276 {dimension_numbers = #tpu.dot_dimension_numbers<[1], [0], [0], [1], [0, 0, 1, 1], [], []>} : vector<8x64xf32>, vector<64x256xf32>, vector<8x256xf32> -> vector<8x256xf32>
    %c2_277 = arith.constant 2 : index
    %c0_278 = arith.constant 0 : index
    %c0_279 = arith.constant 0 : index
    %609 = vector.load %arg3[%c2_277, %c0_278, %c0_279] : memref<5x1x256xf32, #tpu.memory_space<vmem>>, vector<1x1x256xf32>
    %610 = vector.shape_cast %609 : vector<1x1x256xf32> to vector<1x256xf32>
    %611 = vector.broadcast %610 : vector<1x256xf32> to vector<8x256xf32>
    %612 = arith.addf %608, %611 : vector<8x256xf32>
    %c2_280 = arith.constant 2 : index
    %c0_281 = arith.constant 0 : index
    %c0_282 = arith.constant 0 : index
    %613 = vector.load %arg2[%c2_280, %c0_281, %c0_282] : memref<5x64x256xf32, #tpu.memory_space<vmem>>, vector<1x64x256xf32>
    %614 = vector.shape_cast %613 : vector<1x64x256xf32> to vector<64x256xf32>
    %cst_283 = arith.constant dense<0.000000e+00> : vector<8x256xf32>
    %615 = tpu.matmul %495, %614, %cst_283 {dimension_numbers = #tpu.dot_dimension_numbers<[1], [0], [0], [1], [0, 0, 1, 1], [], []>} : vector<8x64xf32>, vector<64x256xf32>, vector<8x256xf32> -> vector<8x256xf32>
    %616 = arith.addf %612, %615 : vector<8x256xf32>
    %617 = vector.extract_strided_slice %616 {offsets = [0, 0], sizes = [8, 192], strides = [1, 1]} : vector<8x256xf32> to vector<8x192xf32>
    %cst_284 = arith.constant 5.000000e-01 : f32
    %618 = vector.broadcast %cst_284 : f32 to vector<8x192xf32>
    %619 = arith.mulf %618, %617 : vector<8x192xf32>
    %620 = math.tanh %619 : vector<8x192xf32>
    %cst_285 = arith.constant 5.000000e-01 : f32
    %621 = vector.broadcast %cst_285 : f32 to vector<8x192xf32>
    %622 = arith.mulf %621, %620 : vector<8x192xf32>
    %cst_286 = arith.constant 5.000000e-01 : f32
    %623 = vector.broadcast %cst_286 : f32 to vector<8x192xf32>
    %624 = arith.addf %622, %623 : vector<8x192xf32>
    %625 = vector.extract_strided_slice %616 {offsets = [0, 192], sizes = [8, 64], strides = [1, 1]} : vector<8x256xf32> to vector<8x64xf32>
    %626 = math.tanh %625 : vector<8x64xf32>
    %627 = vector.extract_strided_slice %624 {offsets = [0, 0], sizes = [8, 64], strides = [1, 1]} : vector<8x192xf32> to vector<8x64xf32>
    %628 = vector.extract_strided_slice %624 {offsets = [0, 64], sizes = [8, 64], strides = [1, 1]} : vector<8x192xf32> to vector<8x64xf32>
    %629 = vector.extract_strided_slice %624 {offsets = [0, 128], sizes = [8, 64], strides = [1, 1]} : vector<8x192xf32> to vector<8x64xf32>
    %630 = arith.mulf %628, %493 : vector<8x64xf32>
    %631 = arith.mulf %627, %626 : vector<8x64xf32>
    %632 = arith.addf %630, %631 : vector<8x64xf32>
    %633 = math.tanh %632 : vector<8x64xf32>
    %634 = arith.mulf %629, %633 : vector<8x64xf32>
    %c3_287 = arith.constant 3 : index
    %c0_288 = arith.constant 0 : index
    %c0_289 = arith.constant 0 : index
    %635 = vector.load %arg1[%c3_287, %c0_288, %c0_289] : memref<5x64x256xf32, #tpu.memory_space<vmem>>, vector<1x64x256xf32>
    %636 = vector.shape_cast %635 : vector<1x64x256xf32> to vector<64x256xf32>
    %cst_290 = arith.constant dense<0.000000e+00> : vector<8x256xf32>
    %637 = tpu.matmul %495, %636, %cst_290 {dimension_numbers = #tpu.dot_dimension_numbers<[1], [0], [0], [1], [0, 0, 1, 1], [], []>} : vector<8x64xf32>, vector<64x256xf32>, vector<8x256xf32> -> vector<8x256xf32>
    %c3_291 = arith.constant 3 : index
    %c0_292 = arith.constant 0 : index
    %c0_293 = arith.constant 0 : index
    %638 = vector.load %arg3[%c3_291, %c0_292, %c0_293] : memref<5x1x256xf32, #tpu.memory_space<vmem>>, vector<1x1x256xf32>
    %639 = vector.shape_cast %638 : vector<1x1x256xf32> to vector<1x256xf32>
    %640 = vector.broadcast %639 : vector<1x256xf32> to vector<8x256xf32>
    %641 = arith.addf %637, %640 : vector<8x256xf32>
    %c3_294 = arith.constant 3 : index
    %c0_295 = arith.constant 0 : index
    %c0_296 = arith.constant 0 : index
    %642 = vector.load %arg2[%c3_294, %c0_295, %c0_296] : memref<5x64x256xf32, #tpu.memory_space<vmem>>, vector<1x64x256xf32>
    %643 = vector.shape_cast %642 : vector<1x64x256xf32> to vector<64x256xf32>
    %cst_297 = arith.constant dense<0.000000e+00> : vector<8x256xf32>
    %644 = tpu.matmul %524, %643, %cst_297 {dimension_numbers = #tpu.dot_dimension_numbers<[1], [0], [0], [1], [0, 0, 1, 1], [], []>} : vector<8x64xf32>, vector<64x256xf32>, vector<8x256xf32> -> vector<8x256xf32>
    %645 = arith.addf %641, %644 : vector<8x256xf32>
    %646 = vector.extract_strided_slice %645 {offsets = [0, 0], sizes = [8, 192], strides = [1, 1]} : vector<8x256xf32> to vector<8x192xf32>
    %cst_298 = arith.constant 5.000000e-01 : f32
    %647 = vector.broadcast %cst_298 : f32 to vector<8x192xf32>
    %648 = arith.mulf %647, %646 : vector<8x192xf32>
    %649 = math.tanh %648 : vector<8x192xf32>
    %cst_299 = arith.constant 5.000000e-01 : f32
    %650 = vector.broadcast %cst_299 : f32 to vector<8x192xf32>
    %651 = arith.mulf %650, %649 : vector<8x192xf32>
    %cst_300 = arith.constant 5.000000e-01 : f32
    %652 = vector.broadcast %cst_300 : f32 to vector<8x192xf32>
    %653 = arith.addf %651, %652 : vector<8x192xf32>
    %654 = vector.extract_strided_slice %645 {offsets = [0, 192], sizes = [8, 64], strides = [1, 1]} : vector<8x256xf32> to vector<8x64xf32>
    %655 = math.tanh %654 : vector<8x64xf32>
    %656 = vector.extract_strided_slice %653 {offsets = [0, 0], sizes = [8, 64], strides = [1, 1]} : vector<8x192xf32> to vector<8x64xf32>
    %657 = vector.extract_strided_slice %653 {offsets = [0, 64], sizes = [8, 64], strides = [1, 1]} : vector<8x192xf32> to vector<8x64xf32>
    %658 = vector.extract_strided_slice %653 {offsets = [0, 128], sizes = [8, 64], strides = [1, 1]} : vector<8x192xf32> to vector<8x64xf32>
    %659 = arith.mulf %657, %522 : vector<8x64xf32>
    %660 = arith.mulf %656, %655 : vector<8x64xf32>
    %661 = arith.addf %659, %660 : vector<8x64xf32>
    %662 = math.tanh %661 : vector<8x64xf32>
    %663 = arith.mulf %658, %662 : vector<8x64xf32>
    %c4_301 = arith.constant 4 : index
    %c0_302 = arith.constant 0 : index
    %c0_303 = arith.constant 0 : index
    %664 = vector.load %arg1[%c4_301, %c0_302, %c0_303] : memref<5x64x256xf32, #tpu.memory_space<vmem>>, vector<1x64x256xf32>
    %665 = vector.shape_cast %664 : vector<1x64x256xf32> to vector<64x256xf32>
    %cst_304 = arith.constant dense<0.000000e+00> : vector<8x256xf32>
    %666 = tpu.matmul %524, %665, %cst_304 {dimension_numbers = #tpu.dot_dimension_numbers<[1], [0], [0], [1], [0, 0, 1, 1], [], []>} : vector<8x64xf32>, vector<64x256xf32>, vector<8x256xf32> -> vector<8x256xf32>
    %c4_305 = arith.constant 4 : index
    %c0_306 = arith.constant 0 : index
    %c0_307 = arith.constant 0 : index
    %667 = vector.load %arg3[%c4_305, %c0_306, %c0_307] : memref<5x1x256xf32, #tpu.memory_space<vmem>>, vector<1x1x256xf32>
    %668 = vector.shape_cast %667 : vector<1x1x256xf32> to vector<1x256xf32>
    %669 = vector.broadcast %668 : vector<1x256xf32> to vector<8x256xf32>
    %670 = arith.addf %666, %669 : vector<8x256xf32>
    %c4_308 = arith.constant 4 : index
    %c0_309 = arith.constant 0 : index
    %c0_310 = arith.constant 0 : index
    %671 = vector.load %arg2[%c4_308, %c0_309, %c0_310] : memref<5x64x256xf32, #tpu.memory_space<vmem>>, vector<1x64x256xf32>
    %672 = vector.shape_cast %671 : vector<1x64x256xf32> to vector<64x256xf32>
    %cst_311 = arith.constant dense<0.000000e+00> : vector<8x256xf32>
    %673 = tpu.matmul %553, %672, %cst_311 {dimension_numbers = #tpu.dot_dimension_numbers<[1], [0], [0], [1], [0, 0, 1, 1], [], []>} : vector<8x64xf32>, vector<64x256xf32>, vector<8x256xf32> -> vector<8x256xf32>
    %674 = arith.addf %670, %673 : vector<8x256xf32>
    %675 = vector.extract_strided_slice %674 {offsets = [0, 0], sizes = [8, 192], strides = [1, 1]} : vector<8x256xf32> to vector<8x192xf32>
    %cst_312 = arith.constant 5.000000e-01 : f32
    %676 = vector.broadcast %cst_312 : f32 to vector<8x192xf32>
    %677 = arith.mulf %676, %675 : vector<8x192xf32>
    %678 = math.tanh %677 : vector<8x192xf32>
    %cst_313 = arith.constant 5.000000e-01 : f32
    %679 = vector.broadcast %cst_313 : f32 to vector<8x192xf32>
    %680 = arith.mulf %679, %678 : vector<8x192xf32>
    %cst_314 = arith.constant 5.000000e-01 : f32
    %681 = vector.broadcast %cst_314 : f32 to vector<8x192xf32>
    %682 = arith.addf %680, %681 : vector<8x192xf32>
    %683 = vector.extract_strided_slice %674 {offsets = [0, 192], sizes = [8, 64], strides = [1, 1]} : vector<8x256xf32> to vector<8x64xf32>
    %684 = math.tanh %683 : vector<8x64xf32>
    %685 = vector.extract_strided_slice %682 {offsets = [0, 0], sizes = [8, 64], strides = [1, 1]} : vector<8x192xf32> to vector<8x64xf32>
    %686 = vector.extract_strided_slice %682 {offsets = [0, 64], sizes = [8, 64], strides = [1, 1]} : vector<8x192xf32> to vector<8x64xf32>
    %687 = vector.extract_strided_slice %682 {offsets = [0, 128], sizes = [8, 64], strides = [1, 1]} : vector<8x192xf32> to vector<8x64xf32>
    %688 = arith.mulf %686, %551 : vector<8x64xf32>
    %689 = arith.mulf %685, %684 : vector<8x64xf32>
    %690 = arith.addf %688, %689 : vector<8x64xf32>
    %691 = math.tanh %690 : vector<8x64xf32>
    %692 = arith.mulf %687, %691 : vector<8x64xf32>
    %c56 = arith.constant 56 : index
    %c0_315 = arith.constant 0 : index
    %693 = vector.load %arg7[%c56, %c0_315] : memref<64x256xf32, #tpu.memory_space<vmem>>, vector<8x256xf32>
    %c0_316 = arith.constant 0 : index
    %c0_317 = arith.constant 0 : index
    %c0_318 = arith.constant 0 : index
    %694 = vector.load %arg2[%c0_316, %c0_317, %c0_318] : memref<5x64x256xf32, #tpu.memory_space<vmem>>, vector<1x64x256xf32>
    %695 = vector.shape_cast %694 : vector<1x64x256xf32> to vector<64x256xf32>
    %cst_319 = arith.constant dense<0.000000e+00> : vector<8x256xf32>
    %696 = tpu.matmul %576, %695, %cst_319 {dimension_numbers = #tpu.dot_dimension_numbers<[1], [0], [0], [1], [0, 0, 1, 1], [], []>} : vector<8x64xf32>, vector<64x256xf32>, vector<8x256xf32> -> vector<8x256xf32>
    %697 = arith.addf %693, %696 : vector<8x256xf32>
    %698 = vector.extract_strided_slice %697 {offsets = [0, 0], sizes = [8, 192], strides = [1, 1]} : vector<8x256xf32> to vector<8x192xf32>
    %cst_320 = arith.constant 5.000000e-01 : f32
    %699 = vector.broadcast %cst_320 : f32 to vector<8x192xf32>
    %700 = arith.mulf %699, %698 : vector<8x192xf32>
    %701 = math.tanh %700 : vector<8x192xf32>
    %cst_321 = arith.constant 5.000000e-01 : f32
    %702 = vector.broadcast %cst_321 : f32 to vector<8x192xf32>
    %703 = arith.mulf %702, %701 : vector<8x192xf32>
    %cst_322 = arith.constant 5.000000e-01 : f32
    %704 = vector.broadcast %cst_322 : f32 to vector<8x192xf32>
    %705 = arith.addf %703, %704 : vector<8x192xf32>
    %706 = vector.extract_strided_slice %697 {offsets = [0, 192], sizes = [8, 64], strides = [1, 1]} : vector<8x256xf32> to vector<8x64xf32>
    %707 = math.tanh %706 : vector<8x64xf32>
    %708 = vector.extract_strided_slice %705 {offsets = [0, 0], sizes = [8, 64], strides = [1, 1]} : vector<8x192xf32> to vector<8x64xf32>
    %709 = vector.extract_strided_slice %705 {offsets = [0, 64], sizes = [8, 64], strides = [1, 1]} : vector<8x192xf32> to vector<8x64xf32>
    %710 = vector.extract_strided_slice %705 {offsets = [0, 128], sizes = [8, 64], strides = [1, 1]} : vector<8x192xf32> to vector<8x64xf32>
    %711 = arith.mulf %709, %574 : vector<8x64xf32>
    %712 = arith.mulf %708, %707 : vector<8x64xf32>
    %713 = arith.addf %711, %712 : vector<8x64xf32>
    %714 = math.tanh %713 : vector<8x64xf32>
    %715 = arith.mulf %710, %714 : vector<8x64xf32>
    %c1_323 = arith.constant 1 : index
    %c0_324 = arith.constant 0 : index
    %c0_325 = arith.constant 0 : index
    %716 = vector.load %arg1[%c1_323, %c0_324, %c0_325] : memref<5x64x256xf32, #tpu.memory_space<vmem>>, vector<1x64x256xf32>
    %717 = vector.shape_cast %716 : vector<1x64x256xf32> to vector<64x256xf32>
    %cst_326 = arith.constant dense<0.000000e+00> : vector<8x256xf32>
    %718 = tpu.matmul %576, %717, %cst_326 {dimension_numbers = #tpu.dot_dimension_numbers<[1], [0], [0], [1], [0, 0, 1, 1], [], []>} : vector<8x64xf32>, vector<64x256xf32>, vector<8x256xf32> -> vector<8x256xf32>
    %c1_327 = arith.constant 1 : index
    %c0_328 = arith.constant 0 : index
    %c0_329 = arith.constant 0 : index
    %719 = vector.load %arg3[%c1_327, %c0_328, %c0_329] : memref<5x1x256xf32, #tpu.memory_space<vmem>>, vector<1x1x256xf32>
    %720 = vector.shape_cast %719 : vector<1x1x256xf32> to vector<1x256xf32>
    %721 = vector.broadcast %720 : vector<1x256xf32> to vector<8x256xf32>
    %722 = arith.addf %718, %721 : vector<8x256xf32>
    %c1_330 = arith.constant 1 : index
    %c0_331 = arith.constant 0 : index
    %c0_332 = arith.constant 0 : index
    %723 = vector.load %arg2[%c1_330, %c0_331, %c0_332] : memref<5x64x256xf32, #tpu.memory_space<vmem>>, vector<1x64x256xf32>
    %724 = vector.shape_cast %723 : vector<1x64x256xf32> to vector<64x256xf32>
    %cst_333 = arith.constant dense<0.000000e+00> : vector<8x256xf32>
    %725 = tpu.matmul %605, %724, %cst_333 {dimension_numbers = #tpu.dot_dimension_numbers<[1], [0], [0], [1], [0, 0, 1, 1], [], []>} : vector<8x64xf32>, vector<64x256xf32>, vector<8x256xf32> -> vector<8x256xf32>
    %726 = arith.addf %722, %725 : vector<8x256xf32>
    %727 = vector.extract_strided_slice %726 {offsets = [0, 0], sizes = [8, 192], strides = [1, 1]} : vector<8x256xf32> to vector<8x192xf32>
    %cst_334 = arith.constant 5.000000e-01 : f32
    %728 = vector.broadcast %cst_334 : f32 to vector<8x192xf32>
    %729 = arith.mulf %728, %727 : vector<8x192xf32>
    %730 = math.tanh %729 : vector<8x192xf32>
    %cst_335 = arith.constant 5.000000e-01 : f32
    %731 = vector.broadcast %cst_335 : f32 to vector<8x192xf32>
    %732 = arith.mulf %731, %730 : vector<8x192xf32>
    %cst_336 = arith.constant 5.000000e-01 : f32
    %733 = vector.broadcast %cst_336 : f32 to vector<8x192xf32>
    %734 = arith.addf %732, %733 : vector<8x192xf32>
    %735 = vector.extract_strided_slice %726 {offsets = [0, 192], sizes = [8, 64], strides = [1, 1]} : vector<8x256xf32> to vector<8x64xf32>
    %736 = math.tanh %735 : vector<8x64xf32>
    %737 = vector.extract_strided_slice %734 {offsets = [0, 0], sizes = [8, 64], strides = [1, 1]} : vector<8x192xf32> to vector<8x64xf32>
    %738 = vector.extract_strided_slice %734 {offsets = [0, 64], sizes = [8, 64], strides = [1, 1]} : vector<8x192xf32> to vector<8x64xf32>
    %739 = vector.extract_strided_slice %734 {offsets = [0, 128], sizes = [8, 64], strides = [1, 1]} : vector<8x192xf32> to vector<8x64xf32>
    %740 = arith.mulf %738, %603 : vector<8x64xf32>
    %741 = arith.mulf %737, %736 : vector<8x64xf32>
    %742 = arith.addf %740, %741 : vector<8x64xf32>
    %743 = math.tanh %742 : vector<8x64xf32>
    %744 = arith.mulf %739, %743 : vector<8x64xf32>
    %c2_337 = arith.constant 2 : index
    %c0_338 = arith.constant 0 : index
    %c0_339 = arith.constant 0 : index
    %745 = vector.load %arg1[%c2_337, %c0_338, %c0_339] : memref<5x64x256xf32, #tpu.memory_space<vmem>>, vector<1x64x256xf32>
    %746 = vector.shape_cast %745 : vector<1x64x256xf32> to vector<64x256xf32>
    %cst_340 = arith.constant dense<0.000000e+00> : vector<8x256xf32>
    %747 = tpu.matmul %605, %746, %cst_340 {dimension_numbers = #tpu.dot_dimension_numbers<[1], [0], [0], [1], [0, 0, 1, 1], [], []>} : vector<8x64xf32>, vector<64x256xf32>, vector<8x256xf32> -> vector<8x256xf32>
    %c2_341 = arith.constant 2 : index
    %c0_342 = arith.constant 0 : index
    %c0_343 = arith.constant 0 : index
    %748 = vector.load %arg3[%c2_341, %c0_342, %c0_343] : memref<5x1x256xf32, #tpu.memory_space<vmem>>, vector<1x1x256xf32>
    %749 = vector.shape_cast %748 : vector<1x1x256xf32> to vector<1x256xf32>
    %750 = vector.broadcast %749 : vector<1x256xf32> to vector<8x256xf32>
    %751 = arith.addf %747, %750 : vector<8x256xf32>
    %c2_344 = arith.constant 2 : index
    %c0_345 = arith.constant 0 : index
    %c0_346 = arith.constant 0 : index
    %752 = vector.load %arg2[%c2_344, %c0_345, %c0_346] : memref<5x64x256xf32, #tpu.memory_space<vmem>>, vector<1x64x256xf32>
    %753 = vector.shape_cast %752 : vector<1x64x256xf32> to vector<64x256xf32>
    %cst_347 = arith.constant dense<0.000000e+00> : vector<8x256xf32>
    %754 = tpu.matmul %634, %753, %cst_347 {dimension_numbers = #tpu.dot_dimension_numbers<[1], [0], [0], [1], [0, 0, 1, 1], [], []>} : vector<8x64xf32>, vector<64x256xf32>, vector<8x256xf32> -> vector<8x256xf32>
    %755 = arith.addf %751, %754 : vector<8x256xf32>
    %756 = vector.extract_strided_slice %755 {offsets = [0, 0], sizes = [8, 192], strides = [1, 1]} : vector<8x256xf32> to vector<8x192xf32>
    %cst_348 = arith.constant 5.000000e-01 : f32
    %757 = vector.broadcast %cst_348 : f32 to vector<8x192xf32>
    %758 = arith.mulf %757, %756 : vector<8x192xf32>
    %759 = math.tanh %758 : vector<8x192xf32>
    %cst_349 = arith.constant 5.000000e-01 : f32
    %760 = vector.broadcast %cst_349 : f32 to vector<8x192xf32>
    %761 = arith.mulf %760, %759 : vector<8x192xf32>
    %cst_350 = arith.constant 5.000000e-01 : f32
    %762 = vector.broadcast %cst_350 : f32 to vector<8x192xf32>
    %763 = arith.addf %761, %762 : vector<8x192xf32>
    %764 = vector.extract_strided_slice %755 {offsets = [0, 192], sizes = [8, 64], strides = [1, 1]} : vector<8x256xf32> to vector<8x64xf32>
    %765 = math.tanh %764 : vector<8x64xf32>
    %766 = vector.extract_strided_slice %763 {offsets = [0, 0], sizes = [8, 64], strides = [1, 1]} : vector<8x192xf32> to vector<8x64xf32>
    %767 = vector.extract_strided_slice %763 {offsets = [0, 64], sizes = [8, 64], strides = [1, 1]} : vector<8x192xf32> to vector<8x64xf32>
    %768 = vector.extract_strided_slice %763 {offsets = [0, 128], sizes = [8, 64], strides = [1, 1]} : vector<8x192xf32> to vector<8x64xf32>
    %769 = arith.mulf %767, %632 : vector<8x64xf32>
    %770 = arith.mulf %766, %765 : vector<8x64xf32>
    %771 = arith.addf %769, %770 : vector<8x64xf32>
    %772 = math.tanh %771 : vector<8x64xf32>
    %773 = arith.mulf %768, %772 : vector<8x64xf32>
    %c3_351 = arith.constant 3 : index
    %c0_352 = arith.constant 0 : index
    %c0_353 = arith.constant 0 : index
    %774 = vector.load %arg1[%c3_351, %c0_352, %c0_353] : memref<5x64x256xf32, #tpu.memory_space<vmem>>, vector<1x64x256xf32>
    %775 = vector.shape_cast %774 : vector<1x64x256xf32> to vector<64x256xf32>
    %cst_354 = arith.constant dense<0.000000e+00> : vector<8x256xf32>
    %776 = tpu.matmul %634, %775, %cst_354 {dimension_numbers = #tpu.dot_dimension_numbers<[1], [0], [0], [1], [0, 0, 1, 1], [], []>} : vector<8x64xf32>, vector<64x256xf32>, vector<8x256xf32> -> vector<8x256xf32>
    %c3_355 = arith.constant 3 : index
    %c0_356 = arith.constant 0 : index
    %c0_357 = arith.constant 0 : index
    %777 = vector.load %arg3[%c3_355, %c0_356, %c0_357] : memref<5x1x256xf32, #tpu.memory_space<vmem>>, vector<1x1x256xf32>
    %778 = vector.shape_cast %777 : vector<1x1x256xf32> to vector<1x256xf32>
    %779 = vector.broadcast %778 : vector<1x256xf32> to vector<8x256xf32>
    %780 = arith.addf %776, %779 : vector<8x256xf32>
    %c3_358 = arith.constant 3 : index
    %c0_359 = arith.constant 0 : index
    %c0_360 = arith.constant 0 : index
    %781 = vector.load %arg2[%c3_358, %c0_359, %c0_360] : memref<5x64x256xf32, #tpu.memory_space<vmem>>, vector<1x64x256xf32>
    %782 = vector.shape_cast %781 : vector<1x64x256xf32> to vector<64x256xf32>
    %cst_361 = arith.constant dense<0.000000e+00> : vector<8x256xf32>
    %783 = tpu.matmul %663, %782, %cst_361 {dimension_numbers = #tpu.dot_dimension_numbers<[1], [0], [0], [1], [0, 0, 1, 1], [], []>} : vector<8x64xf32>, vector<64x256xf32>, vector<8x256xf32> -> vector<8x256xf32>
    %784 = arith.addf %780, %783 : vector<8x256xf32>
    %785 = vector.extract_strided_slice %784 {offsets = [0, 0], sizes = [8, 192], strides = [1, 1]} : vector<8x256xf32> to vector<8x192xf32>
    %cst_362 = arith.constant 5.000000e-01 : f32
    %786 = vector.broadcast %cst_362 : f32 to vector<8x192xf32>
    %787 = arith.mulf %786, %785 : vector<8x192xf32>
    %788 = math.tanh %787 : vector<8x192xf32>
    %cst_363 = arith.constant 5.000000e-01 : f32
    %789 = vector.broadcast %cst_363 : f32 to vector<8x192xf32>
    %790 = arith.mulf %789, %788 : vector<8x192xf32>
    %cst_364 = arith.constant 5.000000e-01 : f32
    %791 = vector.broadcast %cst_364 : f32 to vector<8x192xf32>
    %792 = arith.addf %790, %791 : vector<8x192xf32>
    %793 = vector.extract_strided_slice %784 {offsets = [0, 192], sizes = [8, 64], strides = [1, 1]} : vector<8x256xf32> to vector<8x64xf32>
    %794 = math.tanh %793 : vector<8x64xf32>
    %795 = vector.extract_strided_slice %792 {offsets = [0, 0], sizes = [8, 64], strides = [1, 1]} : vector<8x192xf32> to vector<8x64xf32>
    %796 = vector.extract_strided_slice %792 {offsets = [0, 64], sizes = [8, 64], strides = [1, 1]} : vector<8x192xf32> to vector<8x64xf32>
    %797 = vector.extract_strided_slice %792 {offsets = [0, 128], sizes = [8, 64], strides = [1, 1]} : vector<8x192xf32> to vector<8x64xf32>
    %798 = arith.mulf %796, %661 : vector<8x64xf32>
    %799 = arith.mulf %795, %794 : vector<8x64xf32>
    %800 = arith.addf %798, %799 : vector<8x64xf32>
    %801 = math.tanh %800 : vector<8x64xf32>
    %802 = arith.mulf %797, %801 : vector<8x64xf32>
    %c4_365 = arith.constant 4 : index
    %c0_366 = arith.constant 0 : index
    %c0_367 = arith.constant 0 : index
    %803 = vector.load %arg1[%c4_365, %c0_366, %c0_367] : memref<5x64x256xf32, #tpu.memory_space<vmem>>, vector<1x64x256xf32>
    %804 = vector.shape_cast %803 : vector<1x64x256xf32> to vector<64x256xf32>
    %cst_368 = arith.constant dense<0.000000e+00> : vector<8x256xf32>
    %805 = tpu.matmul %663, %804, %cst_368 {dimension_numbers = #tpu.dot_dimension_numbers<[1], [0], [0], [1], [0, 0, 1, 1], [], []>} : vector<8x64xf32>, vector<64x256xf32>, vector<8x256xf32> -> vector<8x256xf32>
    %c4_369 = arith.constant 4 : index
    %c0_370 = arith.constant 0 : index
    %c0_371 = arith.constant 0 : index
    %806 = vector.load %arg3[%c4_369, %c0_370, %c0_371] : memref<5x1x256xf32, #tpu.memory_space<vmem>>, vector<1x1x256xf32>
    %807 = vector.shape_cast %806 : vector<1x1x256xf32> to vector<1x256xf32>
    %808 = vector.broadcast %807 : vector<1x256xf32> to vector<8x256xf32>
    %809 = arith.addf %805, %808 : vector<8x256xf32>
    %c4_372 = arith.constant 4 : index
    %c0_373 = arith.constant 0 : index
    %c0_374 = arith.constant 0 : index
    %810 = vector.load %arg2[%c4_372, %c0_373, %c0_374] : memref<5x64x256xf32, #tpu.memory_space<vmem>>, vector<1x64x256xf32>
    %811 = vector.shape_cast %810 : vector<1x64x256xf32> to vector<64x256xf32>
    %cst_375 = arith.constant dense<0.000000e+00> : vector<8x256xf32>
    %812 = tpu.matmul %692, %811, %cst_375 {dimension_numbers = #tpu.dot_dimension_numbers<[1], [0], [0], [1], [0, 0, 1, 1], [], []>} : vector<8x64xf32>, vector<64x256xf32>, vector<8x256xf32> -> vector<8x256xf32>
    %813 = arith.addf %809, %812 : vector<8x256xf32>
    %814 = vector.extract_strided_slice %813 {offsets = [0, 0], sizes = [8, 192], strides = [1, 1]} : vector<8x256xf32> to vector<8x192xf32>
    %cst_376 = arith.constant 5.000000e-01 : f32
    %815 = vector.broadcast %cst_376 : f32 to vector<8x192xf32>
    %816 = arith.mulf %815, %814 : vector<8x192xf32>
    %817 = math.tanh %816 : vector<8x192xf32>
    %cst_377 = arith.constant 5.000000e-01 : f32
    %818 = vector.broadcast %cst_377 : f32 to vector<8x192xf32>
    %819 = arith.mulf %818, %817 : vector<8x192xf32>
    %cst_378 = arith.constant 5.000000e-01 : f32
    %820 = vector.broadcast %cst_378 : f32 to vector<8x192xf32>
    %821 = arith.addf %819, %820 : vector<8x192xf32>
    %822 = vector.extract_strided_slice %813 {offsets = [0, 192], sizes = [8, 64], strides = [1, 1]} : vector<8x256xf32> to vector<8x64xf32>
    %823 = math.tanh %822 : vector<8x64xf32>
    %824 = vector.extract_strided_slice %821 {offsets = [0, 0], sizes = [8, 64], strides = [1, 1]} : vector<8x192xf32> to vector<8x64xf32>
    %825 = vector.extract_strided_slice %821 {offsets = [0, 64], sizes = [8, 64], strides = [1, 1]} : vector<8x192xf32> to vector<8x64xf32>
    %826 = vector.extract_strided_slice %821 {offsets = [0, 128], sizes = [8, 64], strides = [1, 1]} : vector<8x192xf32> to vector<8x64xf32>
    %827 = arith.mulf %825, %690 : vector<8x64xf32>
    %828 = arith.mulf %824, %823 : vector<8x64xf32>
    %829 = arith.addf %827, %828 : vector<8x64xf32>
    %830 = math.tanh %829 : vector<8x64xf32>
    %831 = arith.mulf %826, %830 : vector<8x64xf32>
    %c1_379 = arith.constant 1 : index
    %c0_380 = arith.constant 0 : index
    %c0_381 = arith.constant 0 : index
    %832 = vector.load %arg1[%c1_379, %c0_380, %c0_381] : memref<5x64x256xf32, #tpu.memory_space<vmem>>, vector<1x64x256xf32>
    %833 = vector.shape_cast %832 : vector<1x64x256xf32> to vector<64x256xf32>
    %cst_382 = arith.constant dense<0.000000e+00> : vector<8x256xf32>
    %834 = tpu.matmul %715, %833, %cst_382 {dimension_numbers = #tpu.dot_dimension_numbers<[1], [0], [0], [1], [0, 0, 1, 1], [], []>} : vector<8x64xf32>, vector<64x256xf32>, vector<8x256xf32> -> vector<8x256xf32>
    %c1_383 = arith.constant 1 : index
    %c0_384 = arith.constant 0 : index
    %c0_385 = arith.constant 0 : index
    %835 = vector.load %arg3[%c1_383, %c0_384, %c0_385] : memref<5x1x256xf32, #tpu.memory_space<vmem>>, vector<1x1x256xf32>
    %836 = vector.shape_cast %835 : vector<1x1x256xf32> to vector<1x256xf32>
    %837 = vector.broadcast %836 : vector<1x256xf32> to vector<8x256xf32>
    %838 = arith.addf %834, %837 : vector<8x256xf32>
    %c1_386 = arith.constant 1 : index
    %c0_387 = arith.constant 0 : index
    %c0_388 = arith.constant 0 : index
    %839 = vector.load %arg2[%c1_386, %c0_387, %c0_388] : memref<5x64x256xf32, #tpu.memory_space<vmem>>, vector<1x64x256xf32>
    %840 = vector.shape_cast %839 : vector<1x64x256xf32> to vector<64x256xf32>
    %cst_389 = arith.constant dense<0.000000e+00> : vector<8x256xf32>
    %841 = tpu.matmul %744, %840, %cst_389 {dimension_numbers = #tpu.dot_dimension_numbers<[1], [0], [0], [1], [0, 0, 1, 1], [], []>} : vector<8x64xf32>, vector<64x256xf32>, vector<8x256xf32> -> vector<8x256xf32>
    %842 = arith.addf %838, %841 : vector<8x256xf32>
    %843 = vector.extract_strided_slice %842 {offsets = [0, 0], sizes = [8, 192], strides = [1, 1]} : vector<8x256xf32> to vector<8x192xf32>
    %cst_390 = arith.constant 5.000000e-01 : f32
    %844 = vector.broadcast %cst_390 : f32 to vector<8x192xf32>
    %845 = arith.mulf %844, %843 : vector<8x192xf32>
    %846 = math.tanh %845 : vector<8x192xf32>
    %cst_391 = arith.constant 5.000000e-01 : f32
    %847 = vector.broadcast %cst_391 : f32 to vector<8x192xf32>
    %848 = arith.mulf %847, %846 : vector<8x192xf32>
    %cst_392 = arith.constant 5.000000e-01 : f32
    %849 = vector.broadcast %cst_392 : f32 to vector<8x192xf32>
    %850 = arith.addf %848, %849 : vector<8x192xf32>
    %851 = vector.extract_strided_slice %842 {offsets = [0, 192], sizes = [8, 64], strides = [1, 1]} : vector<8x256xf32> to vector<8x64xf32>
    %852 = math.tanh %851 : vector<8x64xf32>
    %853 = vector.extract_strided_slice %850 {offsets = [0, 0], sizes = [8, 64], strides = [1, 1]} : vector<8x192xf32> to vector<8x64xf32>
    %854 = vector.extract_strided_slice %850 {offsets = [0, 64], sizes = [8, 64], strides = [1, 1]} : vector<8x192xf32> to vector<8x64xf32>
    %855 = vector.extract_strided_slice %850 {offsets = [0, 128], sizes = [8, 64], strides = [1, 1]} : vector<8x192xf32> to vector<8x64xf32>
    %856 = arith.mulf %854, %742 : vector<8x64xf32>
    %857 = arith.mulf %853, %852 : vector<8x64xf32>
    %858 = arith.addf %856, %857 : vector<8x64xf32>
    %859 = math.tanh %858 : vector<8x64xf32>
    %860 = arith.mulf %855, %859 : vector<8x64xf32>
    %c2_393 = arith.constant 2 : index
    %c0_394 = arith.constant 0 : index
    %c0_395 = arith.constant 0 : index
    %861 = vector.load %arg1[%c2_393, %c0_394, %c0_395] : memref<5x64x256xf32, #tpu.memory_space<vmem>>, vector<1x64x256xf32>
    %862 = vector.shape_cast %861 : vector<1x64x256xf32> to vector<64x256xf32>
    %cst_396 = arith.constant dense<0.000000e+00> : vector<8x256xf32>
    %863 = tpu.matmul %744, %862, %cst_396 {dimension_numbers = #tpu.dot_dimension_numbers<[1], [0], [0], [1], [0, 0, 1, 1], [], []>} : vector<8x64xf32>, vector<64x256xf32>, vector<8x256xf32> -> vector<8x256xf32>
    %c2_397 = arith.constant 2 : index
    %c0_398 = arith.constant 0 : index
    %c0_399 = arith.constant 0 : index
    %864 = vector.load %arg3[%c2_397, %c0_398, %c0_399] : memref<5x1x256xf32, #tpu.memory_space<vmem>>, vector<1x1x256xf32>
    %865 = vector.shape_cast %864 : vector<1x1x256xf32> to vector<1x256xf32>
    %866 = vector.broadcast %865 : vector<1x256xf32> to vector<8x256xf32>
    %867 = arith.addf %863, %866 : vector<8x256xf32>
    %c2_400 = arith.constant 2 : index
    %c0_401 = arith.constant 0 : index
    %c0_402 = arith.constant 0 : index
    %868 = vector.load %arg2[%c2_400, %c0_401, %c0_402] : memref<5x64x256xf32, #tpu.memory_space<vmem>>, vector<1x64x256xf32>
    %869 = vector.shape_cast %868 : vector<1x64x256xf32> to vector<64x256xf32>
    %cst_403 = arith.constant dense<0.000000e+00> : vector<8x256xf32>
    %870 = tpu.matmul %773, %869, %cst_403 {dimension_numbers = #tpu.dot_dimension_numbers<[1], [0], [0], [1], [0, 0, 1, 1], [], []>} : vector<8x64xf32>, vector<64x256xf32>, vector<8x256xf32> -> vector<8x256xf32>
    %871 = arith.addf %867, %870 : vector<8x256xf32>
    %872 = vector.extract_strided_slice %871 {offsets = [0, 0], sizes = [8, 192], strides = [1, 1]} : vector<8x256xf32> to vector<8x192xf32>
    %cst_404 = arith.constant 5.000000e-01 : f32
    %873 = vector.broadcast %cst_404 : f32 to vector<8x192xf32>
    %874 = arith.mulf %873, %872 : vector<8x192xf32>
    %875 = math.tanh %874 : vector<8x192xf32>
    %cst_405 = arith.constant 5.000000e-01 : f32
    %876 = vector.broadcast %cst_405 : f32 to vector<8x192xf32>
    %877 = arith.mulf %876, %875 : vector<8x192xf32>
    %cst_406 = arith.constant 5.000000e-01 : f32
    %878 = vector.broadcast %cst_406 : f32 to vector<8x192xf32>
    %879 = arith.addf %877, %878 : vector<8x192xf32>
    %880 = vector.extract_strided_slice %871 {offsets = [0, 192], sizes = [8, 64], strides = [1, 1]} : vector<8x256xf32> to vector<8x64xf32>
    %881 = math.tanh %880 : vector<8x64xf32>
    %882 = vector.extract_strided_slice %879 {offsets = [0, 0], sizes = [8, 64], strides = [1, 1]} : vector<8x192xf32> to vector<8x64xf32>
    %883 = vector.extract_strided_slice %879 {offsets = [0, 64], sizes = [8, 64], strides = [1, 1]} : vector<8x192xf32> to vector<8x64xf32>
    %884 = vector.extract_strided_slice %879 {offsets = [0, 128], sizes = [8, 64], strides = [1, 1]} : vector<8x192xf32> to vector<8x64xf32>
    %885 = arith.mulf %883, %771 : vector<8x64xf32>
    %886 = arith.mulf %882, %881 : vector<8x64xf32>
    %887 = arith.addf %885, %886 : vector<8x64xf32>
    %888 = math.tanh %887 : vector<8x64xf32>
    %889 = arith.mulf %884, %888 : vector<8x64xf32>
    %c3_407 = arith.constant 3 : index
    %c0_408 = arith.constant 0 : index
    %c0_409 = arith.constant 0 : index
    %890 = vector.load %arg1[%c3_407, %c0_408, %c0_409] : memref<5x64x256xf32, #tpu.memory_space<vmem>>, vector<1x64x256xf32>
    %891 = vector.shape_cast %890 : vector<1x64x256xf32> to vector<64x256xf32>
    %cst_410 = arith.constant dense<0.000000e+00> : vector<8x256xf32>
    %892 = tpu.matmul %773, %891, %cst_410 {dimension_numbers = #tpu.dot_dimension_numbers<[1], [0], [0], [1], [0, 0, 1, 1], [], []>} : vector<8x64xf32>, vector<64x256xf32>, vector<8x256xf32> -> vector<8x256xf32>
    %c3_411 = arith.constant 3 : index
    %c0_412 = arith.constant 0 : index
    %c0_413 = arith.constant 0 : index
    %893 = vector.load %arg3[%c3_411, %c0_412, %c0_413] : memref<5x1x256xf32, #tpu.memory_space<vmem>>, vector<1x1x256xf32>
    %894 = vector.shape_cast %893 : vector<1x1x256xf32> to vector<1x256xf32>
    %895 = vector.broadcast %894 : vector<1x256xf32> to vector<8x256xf32>
    %896 = arith.addf %892, %895 : vector<8x256xf32>
    %c3_414 = arith.constant 3 : index
    %c0_415 = arith.constant 0 : index
    %c0_416 = arith.constant 0 : index
    %897 = vector.load %arg2[%c3_414, %c0_415, %c0_416] : memref<5x64x256xf32, #tpu.memory_space<vmem>>, vector<1x64x256xf32>
    %898 = vector.shape_cast %897 : vector<1x64x256xf32> to vector<64x256xf32>
    %cst_417 = arith.constant dense<0.000000e+00> : vector<8x256xf32>
    %899 = tpu.matmul %802, %898, %cst_417 {dimension_numbers = #tpu.dot_dimension_numbers<[1], [0], [0], [1], [0, 0, 1, 1], [], []>} : vector<8x64xf32>, vector<64x256xf32>, vector<8x256xf32> -> vector<8x256xf32>
    %900 = arith.addf %896, %899 : vector<8x256xf32>
    %901 = vector.extract_strided_slice %900 {offsets = [0, 0], sizes = [8, 192], strides = [1, 1]} : vector<8x256xf32> to vector<8x192xf32>
    %cst_418 = arith.constant 5.000000e-01 : f32
    %902 = vector.broadcast %cst_418 : f32 to vector<8x192xf32>
    %903 = arith.mulf %902, %901 : vector<8x192xf32>
    %904 = math.tanh %903 : vector<8x192xf32>
    %cst_419 = arith.constant 5.000000e-01 : f32
    %905 = vector.broadcast %cst_419 : f32 to vector<8x192xf32>
    %906 = arith.mulf %905, %904 : vector<8x192xf32>
    %cst_420 = arith.constant 5.000000e-01 : f32
    %907 = vector.broadcast %cst_420 : f32 to vector<8x192xf32>
    %908 = arith.addf %906, %907 : vector<8x192xf32>
    %909 = vector.extract_strided_slice %900 {offsets = [0, 192], sizes = [8, 64], strides = [1, 1]} : vector<8x256xf32> to vector<8x64xf32>
    %910 = math.tanh %909 : vector<8x64xf32>
    %911 = vector.extract_strided_slice %908 {offsets = [0, 0], sizes = [8, 64], strides = [1, 1]} : vector<8x192xf32> to vector<8x64xf32>
    %912 = vector.extract_strided_slice %908 {offsets = [0, 64], sizes = [8, 64], strides = [1, 1]} : vector<8x192xf32> to vector<8x64xf32>
    %913 = vector.extract_strided_slice %908 {offsets = [0, 128], sizes = [8, 64], strides = [1, 1]} : vector<8x192xf32> to vector<8x64xf32>
    %914 = arith.mulf %912, %800 : vector<8x64xf32>
    %915 = arith.mulf %911, %910 : vector<8x64xf32>
    %916 = arith.addf %914, %915 : vector<8x64xf32>
    %917 = math.tanh %916 : vector<8x64xf32>
    %918 = arith.mulf %913, %917 : vector<8x64xf32>
    %c4_421 = arith.constant 4 : index
    %c0_422 = arith.constant 0 : index
    %c0_423 = arith.constant 0 : index
    %919 = vector.load %arg1[%c4_421, %c0_422, %c0_423] : memref<5x64x256xf32, #tpu.memory_space<vmem>>, vector<1x64x256xf32>
    %920 = vector.shape_cast %919 : vector<1x64x256xf32> to vector<64x256xf32>
    %cst_424 = arith.constant dense<0.000000e+00> : vector<8x256xf32>
    %921 = tpu.matmul %802, %920, %cst_424 {dimension_numbers = #tpu.dot_dimension_numbers<[1], [0], [0], [1], [0, 0, 1, 1], [], []>} : vector<8x64xf32>, vector<64x256xf32>, vector<8x256xf32> -> vector<8x256xf32>
    %c4_425 = arith.constant 4 : index
    %c0_426 = arith.constant 0 : index
    %c0_427 = arith.constant 0 : index
    %922 = vector.load %arg3[%c4_425, %c0_426, %c0_427] : memref<5x1x256xf32, #tpu.memory_space<vmem>>, vector<1x1x256xf32>
    %923 = vector.shape_cast %922 : vector<1x1x256xf32> to vector<1x256xf32>
    %924 = vector.broadcast %923 : vector<1x256xf32> to vector<8x256xf32>
    %925 = arith.addf %921, %924 : vector<8x256xf32>
    %c4_428 = arith.constant 4 : index
    %c0_429 = arith.constant 0 : index
    %c0_430 = arith.constant 0 : index
    %926 = vector.load %arg2[%c4_428, %c0_429, %c0_430] : memref<5x64x256xf32, #tpu.memory_space<vmem>>, vector<1x64x256xf32>
    %927 = vector.shape_cast %926 : vector<1x64x256xf32> to vector<64x256xf32>
    %cst_431 = arith.constant dense<0.000000e+00> : vector<8x256xf32>
    %928 = tpu.matmul %831, %927, %cst_431 {dimension_numbers = #tpu.dot_dimension_numbers<[1], [0], [0], [1], [0, 0, 1, 1], [], []>} : vector<8x64xf32>, vector<64x256xf32>, vector<8x256xf32> -> vector<8x256xf32>
    %929 = arith.addf %925, %928 : vector<8x256xf32>
    %930 = vector.extract_strided_slice %929 {offsets = [0, 0], sizes = [8, 192], strides = [1, 1]} : vector<8x256xf32> to vector<8x192xf32>
    %cst_432 = arith.constant 5.000000e-01 : f32
    %931 = vector.broadcast %cst_432 : f32 to vector<8x192xf32>
    %932 = arith.mulf %931, %930 : vector<8x192xf32>
    %933 = math.tanh %932 : vector<8x192xf32>
    %cst_433 = arith.constant 5.000000e-01 : f32
    %934 = vector.broadcast %cst_433 : f32 to vector<8x192xf32>
    %935 = arith.mulf %934, %933 : vector<8x192xf32>
    %cst_434 = arith.constant 5.000000e-01 : f32
    %936 = vector.broadcast %cst_434 : f32 to vector<8x192xf32>
    %937 = arith.addf %935, %936 : vector<8x192xf32>
    %938 = vector.extract_strided_slice %929 {offsets = [0, 192], sizes = [8, 64], strides = [1, 1]} : vector<8x256xf32> to vector<8x64xf32>
    %939 = math.tanh %938 : vector<8x64xf32>
    %940 = vector.extract_strided_slice %937 {offsets = [0, 0], sizes = [8, 64], strides = [1, 1]} : vector<8x192xf32> to vector<8x64xf32>
    %941 = vector.extract_strided_slice %937 {offsets = [0, 64], sizes = [8, 64], strides = [1, 1]} : vector<8x192xf32> to vector<8x64xf32>
    %942 = vector.extract_strided_slice %937 {offsets = [0, 128], sizes = [8, 64], strides = [1, 1]} : vector<8x192xf32> to vector<8x64xf32>
    %943 = arith.mulf %941, %829 : vector<8x64xf32>
    %944 = arith.mulf %940, %939 : vector<8x64xf32>
    %945 = arith.addf %943, %944 : vector<8x64xf32>
    %946 = math.tanh %945 : vector<8x64xf32>
    %947 = arith.mulf %942, %946 : vector<8x64xf32>
    %c2_435 = arith.constant 2 : index
    %c0_436 = arith.constant 0 : index
    %c0_437 = arith.constant 0 : index
    %948 = vector.load %arg1[%c2_435, %c0_436, %c0_437] : memref<5x64x256xf32, #tpu.memory_space<vmem>>, vector<1x64x256xf32>
    %949 = vector.shape_cast %948 : vector<1x64x256xf32> to vector<64x256xf32>
    %cst_438 = arith.constant dense<0.000000e+00> : vector<8x256xf32>
    %950 = tpu.matmul %860, %949, %cst_438 {dimension_numbers = #tpu.dot_dimension_numbers<[1], [0], [0], [1], [0, 0, 1, 1], [], []>} : vector<8x64xf32>, vector<64x256xf32>, vector<8x256xf32> -> vector<8x256xf32>
    %c2_439 = arith.constant 2 : index
    %c0_440 = arith.constant 0 : index
    %c0_441 = arith.constant 0 : index
    %951 = vector.load %arg3[%c2_439, %c0_440, %c0_441] : memref<5x1x256xf32, #tpu.memory_space<vmem>>, vector<1x1x256xf32>
    %952 = vector.shape_cast %951 : vector<1x1x256xf32> to vector<1x256xf32>
    %953 = vector.broadcast %952 : vector<1x256xf32> to vector<8x256xf32>
    %954 = arith.addf %950, %953 : vector<8x256xf32>
    %c2_442 = arith.constant 2 : index
    %c0_443 = arith.constant 0 : index
    %c0_444 = arith.constant 0 : index
    %955 = vector.load %arg2[%c2_442, %c0_443, %c0_444] : memref<5x64x256xf32, #tpu.memory_space<vmem>>, vector<1x64x256xf32>
    %956 = vector.shape_cast %955 : vector<1x64x256xf32> to vector<64x256xf32>
    %cst_445 = arith.constant dense<0.000000e+00> : vector<8x256xf32>
    %957 = tpu.matmul %889, %956, %cst_445 {dimension_numbers = #tpu.dot_dimension_numbers<[1], [0], [0], [1], [0, 0, 1, 1], [], []>} : vector<8x64xf32>, vector<64x256xf32>, vector<8x256xf32> -> vector<8x256xf32>
    %958 = arith.addf %954, %957 : vector<8x256xf32>
    %959 = vector.extract_strided_slice %958 {offsets = [0, 0], sizes = [8, 192], strides = [1, 1]} : vector<8x256xf32> to vector<8x192xf32>
    %cst_446 = arith.constant 5.000000e-01 : f32
    %960 = vector.broadcast %cst_446 : f32 to vector<8x192xf32>
    %961 = arith.mulf %960, %959 : vector<8x192xf32>
    %962 = math.tanh %961 : vector<8x192xf32>
    %cst_447 = arith.constant 5.000000e-01 : f32
    %963 = vector.broadcast %cst_447 : f32 to vector<8x192xf32>
    %964 = arith.mulf %963, %962 : vector<8x192xf32>
    %cst_448 = arith.constant 5.000000e-01 : f32
    %965 = vector.broadcast %cst_448 : f32 to vector<8x192xf32>
    %966 = arith.addf %964, %965 : vector<8x192xf32>
    %967 = vector.extract_strided_slice %958 {offsets = [0, 192], sizes = [8, 64], strides = [1, 1]} : vector<8x256xf32> to vector<8x64xf32>
    %968 = math.tanh %967 : vector<8x64xf32>
    %969 = vector.extract_strided_slice %966 {offsets = [0, 0], sizes = [8, 64], strides = [1, 1]} : vector<8x192xf32> to vector<8x64xf32>
    %970 = vector.extract_strided_slice %966 {offsets = [0, 64], sizes = [8, 64], strides = [1, 1]} : vector<8x192xf32> to vector<8x64xf32>
    %971 = vector.extract_strided_slice %966 {offsets = [0, 128], sizes = [8, 64], strides = [1, 1]} : vector<8x192xf32> to vector<8x64xf32>
    %972 = arith.mulf %970, %887 : vector<8x64xf32>
    %973 = arith.mulf %969, %968 : vector<8x64xf32>
    %974 = arith.addf %972, %973 : vector<8x64xf32>
    %975 = math.tanh %974 : vector<8x64xf32>
    %976 = arith.mulf %971, %975 : vector<8x64xf32>
    %c3_449 = arith.constant 3 : index
    %c0_450 = arith.constant 0 : index
    %c0_451 = arith.constant 0 : index
    %977 = vector.load %arg1[%c3_449, %c0_450, %c0_451] : memref<5x64x256xf32, #tpu.memory_space<vmem>>, vector<1x64x256xf32>
    %978 = vector.shape_cast %977 : vector<1x64x256xf32> to vector<64x256xf32>
    %cst_452 = arith.constant dense<0.000000e+00> : vector<8x256xf32>
    %979 = tpu.matmul %889, %978, %cst_452 {dimension_numbers = #tpu.dot_dimension_numbers<[1], [0], [0], [1], [0, 0, 1, 1], [], []>} : vector<8x64xf32>, vector<64x256xf32>, vector<8x256xf32> -> vector<8x256xf32>
    %c3_453 = arith.constant 3 : index
    %c0_454 = arith.constant 0 : index
    %c0_455 = arith.constant 0 : index
    %980 = vector.load %arg3[%c3_453, %c0_454, %c0_455] : memref<5x1x256xf32, #tpu.memory_space<vmem>>, vector<1x1x256xf32>
    %981 = vector.shape_cast %980 : vector<1x1x256xf32> to vector<1x256xf32>
    %982 = vector.broadcast %981 : vector<1x256xf32> to vector<8x256xf32>
    %983 = arith.addf %979, %982 : vector<8x256xf32>
    %c3_456 = arith.constant 3 : index
    %c0_457 = arith.constant 0 : index
    %c0_458 = arith.constant 0 : index
    %984 = vector.load %arg2[%c3_456, %c0_457, %c0_458] : memref<5x64x256xf32, #tpu.memory_space<vmem>>, vector<1x64x256xf32>
    %985 = vector.shape_cast %984 : vector<1x64x256xf32> to vector<64x256xf32>
    %cst_459 = arith.constant dense<0.000000e+00> : vector<8x256xf32>
    %986 = tpu.matmul %918, %985, %cst_459 {dimension_numbers = #tpu.dot_dimension_numbers<[1], [0], [0], [1], [0, 0, 1, 1], [], []>} : vector<8x64xf32>, vector<64x256xf32>, vector<8x256xf32> -> vector<8x256xf32>
    %987 = arith.addf %983, %986 : vector<8x256xf32>
    %988 = vector.extract_strided_slice %987 {offsets = [0, 0], sizes = [8, 192], strides = [1, 1]} : vector<8x256xf32> to vector<8x192xf32>
    %cst_460 = arith.constant 5.000000e-01 : f32
    %989 = vector.broadcast %cst_460 : f32 to vector<8x192xf32>
    %990 = arith.mulf %989, %988 : vector<8x192xf32>
    %991 = math.tanh %990 : vector<8x192xf32>
    %cst_461 = arith.constant 5.000000e-01 : f32
    %992 = vector.broadcast %cst_461 : f32 to vector<8x192xf32>
    %993 = arith.mulf %992, %991 : vector<8x192xf32>
    %cst_462 = arith.constant 5.000000e-01 : f32
    %994 = vector.broadcast %cst_462 : f32 to vector<8x192xf32>
    %995 = arith.addf %993, %994 : vector<8x192xf32>
    %996 = vector.extract_strided_slice %987 {offsets = [0, 192], sizes = [8, 64], strides = [1, 1]} : vector<8x256xf32> to vector<8x64xf32>
    %997 = math.tanh %996 : vector<8x64xf32>
    %998 = vector.extract_strided_slice %995 {offsets = [0, 0], sizes = [8, 64], strides = [1, 1]} : vector<8x192xf32> to vector<8x64xf32>
    %999 = vector.extract_strided_slice %995 {offsets = [0, 64], sizes = [8, 64], strides = [1, 1]} : vector<8x192xf32> to vector<8x64xf32>
    %1000 = vector.extract_strided_slice %995 {offsets = [0, 128], sizes = [8, 64], strides = [1, 1]} : vector<8x192xf32> to vector<8x64xf32>
    %1001 = arith.mulf %999, %916 : vector<8x64xf32>
    %1002 = arith.mulf %998, %997 : vector<8x64xf32>
    %1003 = arith.addf %1001, %1002 : vector<8x64xf32>
    %1004 = math.tanh %1003 : vector<8x64xf32>
    %1005 = arith.mulf %1000, %1004 : vector<8x64xf32>
    %c4_463 = arith.constant 4 : index
    %c0_464 = arith.constant 0 : index
    %c0_465 = arith.constant 0 : index
    %1006 = vector.load %arg1[%c4_463, %c0_464, %c0_465] : memref<5x64x256xf32, #tpu.memory_space<vmem>>, vector<1x64x256xf32>
    %1007 = vector.shape_cast %1006 : vector<1x64x256xf32> to vector<64x256xf32>
    %cst_466 = arith.constant dense<0.000000e+00> : vector<8x256xf32>
    %1008 = tpu.matmul %918, %1007, %cst_466 {dimension_numbers = #tpu.dot_dimension_numbers<[1], [0], [0], [1], [0, 0, 1, 1], [], []>} : vector<8x64xf32>, vector<64x256xf32>, vector<8x256xf32> -> vector<8x256xf32>
    %c4_467 = arith.constant 4 : index
    %c0_468 = arith.constant 0 : index
    %c0_469 = arith.constant 0 : index
    %1009 = vector.load %arg3[%c4_467, %c0_468, %c0_469] : memref<5x1x256xf32, #tpu.memory_space<vmem>>, vector<1x1x256xf32>
    %1010 = vector.shape_cast %1009 : vector<1x1x256xf32> to vector<1x256xf32>
    %1011 = vector.broadcast %1010 : vector<1x256xf32> to vector<8x256xf32>
    %1012 = arith.addf %1008, %1011 : vector<8x256xf32>
    %c4_470 = arith.constant 4 : index
    %c0_471 = arith.constant 0 : index
    %c0_472 = arith.constant 0 : index
    %1013 = vector.load %arg2[%c4_470, %c0_471, %c0_472] : memref<5x64x256xf32, #tpu.memory_space<vmem>>, vector<1x64x256xf32>
    %1014 = vector.shape_cast %1013 : vector<1x64x256xf32> to vector<64x256xf32>
    %cst_473 = arith.constant dense<0.000000e+00> : vector<8x256xf32>
    %1015 = tpu.matmul %947, %1014, %cst_473 {dimension_numbers = #tpu.dot_dimension_numbers<[1], [0], [0], [1], [0, 0, 1, 1], [], []>} : vector<8x64xf32>, vector<64x256xf32>, vector<8x256xf32> -> vector<8x256xf32>
    %1016 = arith.addf %1012, %1015 : vector<8x256xf32>
    %1017 = vector.extract_strided_slice %1016 {offsets = [0, 0], sizes = [8, 192], strides = [1, 1]} : vector<8x256xf32> to vector<8x192xf32>
    %cst_474 = arith.constant 5.000000e-01 : f32
    %1018 = vector.broadcast %cst_474 : f32 to vector<8x192xf32>
    %1019 = arith.mulf %1018, %1017 : vector<8x192xf32>
    %1020 = math.tanh %1019 : vector<8x192xf32>
    %cst_475 = arith.constant 5.000000e-01 : f32
    %1021 = vector.broadcast %cst_475 : f32 to vector<8x192xf32>
    %1022 = arith.mulf %1021, %1020 : vector<8x192xf32>
    %cst_476 = arith.constant 5.000000e-01 : f32
    %1023 = vector.broadcast %cst_476 : f32 to vector<8x192xf32>
    %1024 = arith.addf %1022, %1023 : vector<8x192xf32>
    %1025 = vector.extract_strided_slice %1016 {offsets = [0, 192], sizes = [8, 64], strides = [1, 1]} : vector<8x256xf32> to vector<8x64xf32>
    %1026 = math.tanh %1025 : vector<8x64xf32>
    %1027 = vector.extract_strided_slice %1024 {offsets = [0, 0], sizes = [8, 64], strides = [1, 1]} : vector<8x192xf32> to vector<8x64xf32>
    %1028 = vector.extract_strided_slice %1024 {offsets = [0, 64], sizes = [8, 64], strides = [1, 1]} : vector<8x192xf32> to vector<8x64xf32>
    %1029 = vector.extract_strided_slice %1024 {offsets = [0, 128], sizes = [8, 64], strides = [1, 1]} : vector<8x192xf32> to vector<8x64xf32>
    %1030 = arith.mulf %1028, %945 : vector<8x64xf32>
    %1031 = arith.mulf %1027, %1026 : vector<8x64xf32>
    %1032 = arith.addf %1030, %1031 : vector<8x64xf32>
    %1033 = math.tanh %1032 : vector<8x64xf32>
    %1034 = arith.mulf %1029, %1033 : vector<8x64xf32>
    %c3_477 = arith.constant 3 : index
    %c0_478 = arith.constant 0 : index
    %c0_479 = arith.constant 0 : index
    %1035 = vector.load %arg1[%c3_477, %c0_478, %c0_479] : memref<5x64x256xf32, #tpu.memory_space<vmem>>, vector<1x64x256xf32>
    %1036 = vector.shape_cast %1035 : vector<1x64x256xf32> to vector<64x256xf32>
    %cst_480 = arith.constant dense<0.000000e+00> : vector<8x256xf32>
    %1037 = tpu.matmul %976, %1036, %cst_480 {dimension_numbers = #tpu.dot_dimension_numbers<[1], [0], [0], [1], [0, 0, 1, 1], [], []>} : vector<8x64xf32>, vector<64x256xf32>, vector<8x256xf32> -> vector<8x256xf32>
    %c3_481 = arith.constant 3 : index
    %c0_482 = arith.constant 0 : index
    %c0_483 = arith.constant 0 : index
    %1038 = vector.load %arg3[%c3_481, %c0_482, %c0_483] : memref<5x1x256xf32, #tpu.memory_space<vmem>>, vector<1x1x256xf32>
    %1039 = vector.shape_cast %1038 : vector<1x1x256xf32> to vector<1x256xf32>
    %1040 = vector.broadcast %1039 : vector<1x256xf32> to vector<8x256xf32>
    %1041 = arith.addf %1037, %1040 : vector<8x256xf32>
    %c3_484 = arith.constant 3 : index
    %c0_485 = arith.constant 0 : index
    %c0_486 = arith.constant 0 : index
    %1042 = vector.load %arg2[%c3_484, %c0_485, %c0_486] : memref<5x64x256xf32, #tpu.memory_space<vmem>>, vector<1x64x256xf32>
    %1043 = vector.shape_cast %1042 : vector<1x64x256xf32> to vector<64x256xf32>
    %cst_487 = arith.constant dense<0.000000e+00> : vector<8x256xf32>
    %1044 = tpu.matmul %1005, %1043, %cst_487 {dimension_numbers = #tpu.dot_dimension_numbers<[1], [0], [0], [1], [0, 0, 1, 1], [], []>} : vector<8x64xf32>, vector<64x256xf32>, vector<8x256xf32> -> vector<8x256xf32>
    %1045 = arith.addf %1041, %1044 : vector<8x256xf32>
    %1046 = vector.extract_strided_slice %1045 {offsets = [0, 0], sizes = [8, 192], strides = [1, 1]} : vector<8x256xf32> to vector<8x192xf32>
    %cst_488 = arith.constant 5.000000e-01 : f32
    %1047 = vector.broadcast %cst_488 : f32 to vector<8x192xf32>
    %1048 = arith.mulf %1047, %1046 : vector<8x192xf32>
    %1049 = math.tanh %1048 : vector<8x192xf32>
    %cst_489 = arith.constant 5.000000e-01 : f32
    %1050 = vector.broadcast %cst_489 : f32 to vector<8x192xf32>
    %1051 = arith.mulf %1050, %1049 : vector<8x192xf32>
    %cst_490 = arith.constant 5.000000e-01 : f32
    %1052 = vector.broadcast %cst_490 : f32 to vector<8x192xf32>
    %1053 = arith.addf %1051, %1052 : vector<8x192xf32>
    %1054 = vector.extract_strided_slice %1045 {offsets = [0, 192], sizes = [8, 64], strides = [1, 1]} : vector<8x256xf32> to vector<8x64xf32>
    %1055 = math.tanh %1054 : vector<8x64xf32>
    %1056 = vector.extract_strided_slice %1053 {offsets = [0, 0], sizes = [8, 64], strides = [1, 1]} : vector<8x192xf32> to vector<8x64xf32>
    %1057 = vector.extract_strided_slice %1053 {offsets = [0, 64], sizes = [8, 64], strides = [1, 1]} : vector<8x192xf32> to vector<8x64xf32>
    %1058 = vector.extract_strided_slice %1053 {offsets = [0, 128], sizes = [8, 64], strides = [1, 1]} : vector<8x192xf32> to vector<8x64xf32>
    %1059 = arith.mulf %1057, %1003 : vector<8x64xf32>
    %1060 = arith.mulf %1056, %1055 : vector<8x64xf32>
    %1061 = arith.addf %1059, %1060 : vector<8x64xf32>
    %1062 = math.tanh %1061 : vector<8x64xf32>
    %1063 = arith.mulf %1058, %1062 : vector<8x64xf32>
    %c4_491 = arith.constant 4 : index
    %c0_492 = arith.constant 0 : index
    %c0_493 = arith.constant 0 : index
    %1064 = vector.load %arg1[%c4_491, %c0_492, %c0_493] : memref<5x64x256xf32, #tpu.memory_space<vmem>>, vector<1x64x256xf32>
    %1065 = vector.shape_cast %1064 : vector<1x64x256xf32> to vector<64x256xf32>
    %cst_494 = arith.constant dense<0.000000e+00> : vector<8x256xf32>
    %1066 = tpu.matmul %1005, %1065, %cst_494 {dimension_numbers = #tpu.dot_dimension_numbers<[1], [0], [0], [1], [0, 0, 1, 1], [], []>} : vector<8x64xf32>, vector<64x256xf32>, vector<8x256xf32> -> vector<8x256xf32>
    %c4_495 = arith.constant 4 : index
    %c0_496 = arith.constant 0 : index
    %c0_497 = arith.constant 0 : index
    %1067 = vector.load %arg3[%c4_495, %c0_496, %c0_497] : memref<5x1x256xf32, #tpu.memory_space<vmem>>, vector<1x1x256xf32>
    %1068 = vector.shape_cast %1067 : vector<1x1x256xf32> to vector<1x256xf32>
    %1069 = vector.broadcast %1068 : vector<1x256xf32> to vector<8x256xf32>
    %1070 = arith.addf %1066, %1069 : vector<8x256xf32>
    %c4_498 = arith.constant 4 : index
    %c0_499 = arith.constant 0 : index
    %c0_500 = arith.constant 0 : index
    %1071 = vector.load %arg2[%c4_498, %c0_499, %c0_500] : memref<5x64x256xf32, #tpu.memory_space<vmem>>, vector<1x64x256xf32>
    %1072 = vector.shape_cast %1071 : vector<1x64x256xf32> to vector<64x256xf32>
    %cst_501 = arith.constant dense<0.000000e+00> : vector<8x256xf32>
    %1073 = tpu.matmul %1034, %1072, %cst_501 {dimension_numbers = #tpu.dot_dimension_numbers<[1], [0], [0], [1], [0, 0, 1, 1], [], []>} : vector<8x64xf32>, vector<64x256xf32>, vector<8x256xf32> -> vector<8x256xf32>
    %1074 = arith.addf %1070, %1073 : vector<8x256xf32>
    %1075 = vector.extract_strided_slice %1074 {offsets = [0, 0], sizes = [8, 192], strides = [1, 1]} : vector<8x256xf32> to vector<8x192xf32>
    %cst_502 = arith.constant 5.000000e-01 : f32
    %1076 = vector.broadcast %cst_502 : f32 to vector<8x192xf32>
    %1077 = arith.mulf %1076, %1075 : vector<8x192xf32>
    %1078 = math.tanh %1077 : vector<8x192xf32>
    %cst_503 = arith.constant 5.000000e-01 : f32
    %1079 = vector.broadcast %cst_503 : f32 to vector<8x192xf32>
    %1080 = arith.mulf %1079, %1078 : vector<8x192xf32>
    %cst_504 = arith.constant 5.000000e-01 : f32
    %1081 = vector.broadcast %cst_504 : f32 to vector<8x192xf32>
    %1082 = arith.addf %1080, %1081 : vector<8x192xf32>
    %1083 = vector.extract_strided_slice %1074 {offsets = [0, 192], sizes = [8, 64], strides = [1, 1]} : vector<8x256xf32> to vector<8x64xf32>
    %1084 = math.tanh %1083 : vector<8x64xf32>
    %1085 = vector.extract_strided_slice %1082 {offsets = [0, 0], sizes = [8, 64], strides = [1, 1]} : vector<8x192xf32> to vector<8x64xf32>
    %1086 = vector.extract_strided_slice %1082 {offsets = [0, 64], sizes = [8, 64], strides = [1, 1]} : vector<8x192xf32> to vector<8x64xf32>
    %1087 = vector.extract_strided_slice %1082 {offsets = [0, 128], sizes = [8, 64], strides = [1, 1]} : vector<8x192xf32> to vector<8x64xf32>
    %1088 = arith.mulf %1086, %1032 : vector<8x64xf32>
    %1089 = arith.mulf %1085, %1084 : vector<8x64xf32>
    %1090 = arith.addf %1088, %1089 : vector<8x64xf32>
    %1091 = math.tanh %1090 : vector<8x64xf32>
    %1092 = arith.mulf %1087, %1091 : vector<8x64xf32>
    %c4_505 = arith.constant 4 : index
    %c0_506 = arith.constant 0 : index
    %c0_507 = arith.constant 0 : index
    %1093 = vector.load %arg1[%c4_505, %c0_506, %c0_507] : memref<5x64x256xf32, #tpu.memory_space<vmem>>, vector<1x64x256xf32>
    %1094 = vector.shape_cast %1093 : vector<1x64x256xf32> to vector<64x256xf32>
    %cst_508 = arith.constant dense<0.000000e+00> : vector<8x256xf32>
    %1095 = tpu.matmul %1063, %1094, %cst_508 {dimension_numbers = #tpu.dot_dimension_numbers<[1], [0], [0], [1], [0, 0, 1, 1], [], []>} : vector<8x64xf32>, vector<64x256xf32>, vector<8x256xf32> -> vector<8x256xf32>
    %c4_509 = arith.constant 4 : index
    %c0_510 = arith.constant 0 : index
    %c0_511 = arith.constant 0 : index
    %1096 = vector.load %arg3[%c4_509, %c0_510, %c0_511] : memref<5x1x256xf32, #tpu.memory_space<vmem>>, vector<1x1x256xf32>
    %1097 = vector.shape_cast %1096 : vector<1x1x256xf32> to vector<1x256xf32>
    %1098 = vector.broadcast %1097 : vector<1x256xf32> to vector<8x256xf32>
    %1099 = arith.addf %1095, %1098 : vector<8x256xf32>
    %c4_512 = arith.constant 4 : index
    %c0_513 = arith.constant 0 : index
    %c0_514 = arith.constant 0 : index
    %1100 = vector.load %arg2[%c4_512, %c0_513, %c0_514] : memref<5x64x256xf32, #tpu.memory_space<vmem>>, vector<1x64x256xf32>
    %1101 = vector.shape_cast %1100 : vector<1x64x256xf32> to vector<64x256xf32>
    %cst_515 = arith.constant dense<0.000000e+00> : vector<8x256xf32>
    %1102 = tpu.matmul %1092, %1101, %cst_515 {dimension_numbers = #tpu.dot_dimension_numbers<[1], [0], [0], [1], [0, 0, 1, 1], [], []>} : vector<8x64xf32>, vector<64x256xf32>, vector<8x256xf32> -> vector<8x256xf32>
    %1103 = arith.addf %1099, %1102 : vector<8x256xf32>
    %1104 = vector.extract_strided_slice %1103 {offsets = [0, 0], sizes = [8, 192], strides = [1, 1]} : vector<8x256xf32> to vector<8x192xf32>
    %cst_516 = arith.constant 5.000000e-01 : f32
    %1105 = vector.broadcast %cst_516 : f32 to vector<8x192xf32>
    %1106 = arith.mulf %1105, %1104 : vector<8x192xf32>
    %1107 = math.tanh %1106 : vector<8x192xf32>
    %cst_517 = arith.constant 5.000000e-01 : f32
    %1108 = vector.broadcast %cst_517 : f32 to vector<8x192xf32>
    %1109 = arith.mulf %1108, %1107 : vector<8x192xf32>
    %cst_518 = arith.constant 5.000000e-01 : f32
    %1110 = vector.broadcast %cst_518 : f32 to vector<8x192xf32>
    %1111 = arith.addf %1109, %1110 : vector<8x192xf32>
    %1112 = vector.extract_strided_slice %1103 {offsets = [0, 192], sizes = [8, 64], strides = [1, 1]} : vector<8x256xf32> to vector<8x64xf32>
    %1113 = math.tanh %1112 : vector<8x64xf32>
    %1114 = vector.extract_strided_slice %1111 {offsets = [0, 0], sizes = [8, 64], strides = [1, 1]} : vector<8x192xf32> to vector<8x64xf32>
    %1115 = vector.extract_strided_slice %1111 {offsets = [0, 64], sizes = [8, 64], strides = [1, 1]} : vector<8x192xf32> to vector<8x64xf32>
    %1116 = vector.extract_strided_slice %1111 {offsets = [0, 128], sizes = [8, 64], strides = [1, 1]} : vector<8x192xf32> to vector<8x64xf32>
    %1117 = arith.mulf %1115, %1090 : vector<8x64xf32>
    %1118 = arith.mulf %1114, %1113 : vector<8x64xf32>
    %1119 = arith.addf %1117, %1118 : vector<8x64xf32>
    %1120 = math.tanh %1119 : vector<8x64xf32>
    %1121 = arith.mulf %1116, %1120 : vector<8x64xf32>
    %c0_519 = arith.constant 0 : index
    %c0_520 = arith.constant 0 : index
    %1122 = vector.load %arg4[%c0_519, %c0_520] : memref<64x128xf32, #tpu.memory_space<vmem>>, vector<64x128xf32>
    %cst_521 = arith.constant dense<0.000000e+00> : vector<8x128xf32>
    %1123 = tpu.matmul %1121, %1122, %cst_521 {dimension_numbers = #tpu.dot_dimension_numbers<[1], [0], [0], [1], [0, 0, 1, 1], [], []>} : vector<8x64xf32>, vector<64x128xf32>, vector<8x128xf32> -> vector<8x128xf32>
    %c0_522 = arith.constant 0 : index
    %c0_523 = arith.constant 0 : index
    %1124 = vector.load %arg5[%c0_522, %c0_523] : memref<1x128xf32, #tpu.memory_space<vmem>>, vector<1x128xf32>
    %1125 = vector.broadcast %1124 : vector<1x128xf32> to vector<8x128xf32>
    %1126 = arith.addf %1123, %1125 : vector<8x128xf32>
    %c0_524 = arith.constant 0 : index
    %c0_525 = arith.constant 0 : index
    %1127 = vector.load %arg6[%c0_524, %c0_525] : memref<8x128xf32, #tpu.memory_space<vmem>>, vector<8x128xf32>
    tpu.vector_store %arg6[%c0_524, %c0_525], %1126 {strides = array<i32>} : memref<8x128xf32, #tpu.memory_space<vmem>>, vector<8x128xf32>,
    return
  }
}

</mosaic_0001>

<bundles_post_ra>
// kernel: tpu_custom_call.1
= control target key start
LH: loop header
LB: loop body
LE: loop exit
PB: predicated region body
PF: predicated region fallthrough
CT: control target
= control target key end

     0   :  { %11 = vsyncpa [#allocation4], 0  ;;  %s10711_s0 = inlined_call_operand.hbm [shape: f32[64,64], index: 0, kind: input, shape index: {}]   ;;  %s10712_s1 = inlined_call_operand.hbm [shape: f32[5,64,256], index: 1, kind: input, shape index: {}]   ;;  %s10713_s2 = inlined_call_operand.hbm [shape: f32[5,64,256], index: 2, kind: input, shape index: {}]   ;;  %s10714_s3 = inlined_call_operand.hbm [shape: f32[5,1,256], index: 3, kind: input, shape index: {}]   ;;  %s10715_s4 = inlined_call_operand.hbm [shape: f32[64,128], index: 4, kind: input, shape index: {}]   ;;  %s10716_s5 = inlined_call_operand.vmem [shape: f32[1,128], index: 5, kind: input, shape index: {}]   ;;  %s10717_s6 = inlined_call_operand.hbm [shape: f32[8,128], index: 6, kind: output, shape index: {}]  }
   0x1   :  { %12 = vsyncpa [#allocation7], 0 }
   0x2   :  { %13 = vsyncpa [#allocation10], 0 }
   0x3   :  { %14 = vsyncpa [#allocation5], 0  ;;  %s7866_s21 = smov [#allocation6]  }
   0x4   :  { %s32_s22 = sshll.u32 %s7866_s21, 4  ;;  %s33_s22 = int_to_ptr.vmem [resolvable:$true] %s32_s22 }
   0x5   :  { %s7746_s23 = scalar_lea.vmem %s33_s22, 10240  ;;  %p7751_p1 = scmp.lt.s32.totalorder %s33_s22, %s33_s22 }
   0x6   :  { %p7747_p0 = scmp.ne.s32.totalorder %s33_s22, %s7746_s23  ;;  %p7752_p2 = scmp.lt.s32.totalorder %s7746_s23, %s7746_s23 }
   0x8   :  { %p7753_p3 = por %p7752_p2, %p7751_p1 }
   0xa   :  { %p7754_p4 = pnand %p7753_p3, %p7747_p0 }
   0xc   :  { %7757 = shalt.err (!%p7754_p4)
}
   0xd   :  { %s7867_s24 = smov 256   ;;  %s7868_s25 = smov 16  }
   0xe   :  { %38 = dma.hbm_to_vmem [thread:$0]  %s10712_s1, 10240, %s33_s22, [#allocation7], %s7867_s24, %s7867_s24, %s7868_s25  }
   0xf   :  { %s7869_s28 = smov [#allocation9]  }
  0x10   :  { %s56_s29 = sshll.u32 %s7869_s28, 4  ;;  %s57_s29 = int_to_ptr.vmem [resolvable:$true] %s56_s29 }
  0x11   :  { %s7766_s30 = scalar_lea.vmem %s57_s29, 160  ;;  %p7771_p6 = scmp.lt.s32.totalorder %s57_s29, %s57_s29 }
  0x12   :  { %p7767_p5 = scmp.ne.s32.totalorder %s57_s29, %s7766_s30  ;;  %p7772_p7 = scmp.lt.s32.totalorder %s7766_s30, %s7766_s30 }
  0x14   :  { %p7773_p8 = por %p7772_p7, %p7771_p6 }
  0x16   :  { %p7774_p9 = pnand %p7773_p8, %p7767_p5 }
  0x18   :  { %7777 = shalt.err (!%p7774_p9)
}
  0x19   :  { %s7870_s7 = smov 32   ;;  %s7871_s8 = smov 2  }
  0x1a   :  { %62 = dma.hbm_to_vmem [thread:$0]  %s10714_s3, 160, %s57_s29, [#allocation10], %s7870_s7, %s7870_s7, %s7871_s8  }
  0x1b   :  { %s7872_s11 = smov [#allocation3]  }
  0x1c   :  { %s20_s12 = sshll.u32 %s7872_s11, 4  ;;  %s21_s12 = int_to_ptr.vmem [resolvable:$true] %s20_s12 }
  0x1d   :  { %s7786_s1 = scalar_lea.vmem %s21_s12, 1024  ;;  %p7791_p11 = scmp.lt.s32.totalorder %s21_s12, %s21_s12 }
  0x1e   :  { %p7787_p10 = scmp.ne.s32.totalorder %s21_s12, %s7786_s1  ;;  %p7792_p12 = scmp.lt.s32.totalorder %s7786_s1, %s7786_s1 }
  0x20   :  { %p7793_p13 = por %p7792_p12, %p7791_p11 }
  0x22   :  { %p7794_p0 = pnand %p7793_p13, %p7787_p10 }
  0x24   :  { %7797 = shalt.err (!%p7794_p0)
}
  0x25   :  { %s7873_s13 = smov 128   ;;  %s7874_s14 = smov 8  }
  0x26   :  { %26 = dma.hbm_to_vmem [thread:$0]  %s10711_s0, 1024, %s21_s12, [#allocation4], %s7873_s13, %s7873_s13, %s7874_s14  }
  0x27   :  { %s7875_s17 = smov [#allocation8]   ;;  %s7876_s3 = smov [#allocation11]  }
  0x28   :  { %s44_s18 = sshll.u32 %s7875_s17, 4  ;;  %s68_s19 = sshll.u32 %s7876_s3, 4  ;;  %s45_s18 = int_to_ptr.vmem [resolvable:$true] %s44_s18  ;;  %s69_s19 = int_to_ptr.vmem [resolvable:$true] %s68_s19 }
  0x29   :  { %s7806_s20 = scalar_lea.vmem %s45_s18, 10240  ;;  %p7811_p2 = scmp.lt.s32.totalorder %s45_s18, %s45_s18 }
  0x2a   :  { %p7807_p1 = scmp.ne.s32.totalorder %s45_s18, %s7806_s20  ;;  %p7812_p3 = scmp.lt.s32.totalorder %s7806_s20, %s7806_s20 }
  0x2c   :  { %p7813_p4 = por %p7812_p3, %p7811_p2 }
  0x2e   :  { %p7814_p5 = pnand %p7813_p4, %p7807_p1 }
  0x30   :  { %7817 = shalt.err (!%p7814_p5)
}
  0x31   :  { %50 = dma.hbm_to_vmem [thread:$0]  %s10713_s2, 10240, %s45_s18, [#allocation7], %s7867_s24, %s7867_s24, %s7868_s25  }
  0x32   :  { %s7826_s0 = scalar_lea.vmem %s69_s19, 1024  ;;  %p7831_p7 = scmp.lt.s32.totalorder %s69_s19, %s69_s19 }
  0x33   :  { %p7827_p6 = scmp.ne.s32.totalorder %s69_s19, %s7826_s0  ;;  %p7832_p8 = scmp.lt.s32.totalorder %s7826_s0, %s7826_s0 }
  0x35   :  { %p7833_p9 = por %p7832_p8, %p7831_p7 }
  0x37   :  { %p7834_p10 = pnand %p7833_p9, %p7827_p6 }
  0x39   :  { %7837 = shalt.err (!%p7834_p10)
}
  0x3a   :  { %74 = dma.hbm_to_vmem [thread:$0]  %s10715_s4, 1024, %s69_s19, [#allocation10], %s7873_s13, %s7873_s13, %s7874_s14  }
  0x3b   :  { %7858 = dma.done.wait [#allocation4], 1024  }
  0x3c   :  { %7859 = vsyncadd [#allocation4], 4294966272 }
  0x3d   :  { %7860 = dma.done.wait [#allocation7], 20480  }
  0x3e   :  { %7861 = vsyncadd [#allocation7], 4294946816 }
  0x3f   :  { %7862 = dma.done.wait [#allocation10], 1184  }
  0x40   :  { %7863 = vsyncadd [#allocation10], 4294966112  ;;  %v10718_v0 = vmov 0.0   ;;  %v115_v1 = vld [vmem:[#allocation6 + $0x78] sm:$0xff]  ;;  %v114_v3 = vld [vmem:[#allocation6 + $0x70] sm:$0xff]  ;;  %vm128_vm0 = vcmask 523264   ;;  %v118_v34 = vlaneseq }
  0x41   :  { %217 = vmatprep.mubr.f32.mxu0 %v10718_v0  ;;  %367 = vmatprep.mubr.f32.mxu1 %v10718_v0  ;;  %v7939_v2 = vld [vmem:[#allocation8 + $0x78] sm:$0xff]  ;;  %v7942_v4 = vld [vmem:[#allocation8 + $0x70] sm:$0xff]  ;;  %v113_v5 = vld [vmem:[#allocation6 + $0x68] sm:$0xff]  ;;  %s7878_s2 = smov 64   ;;  %vm7879_vm1 = vmmov 0   ;;  %s7880_s25 = smov [#allocation12]  }
  0x42   :  { %169 = vmatprep.subr.mxu0 %v115_v1  ;;  %319 = vmatprep.subr.mxu1 %v7939_v2  ;;  %v7944_v6 = vld [vmem:[#allocation8 + $0x68] sm:$0xff]  ;;  %v112_v7 = vld [vmem:[#allocation6 + $0x60] sm:$0xff]  ;;  %v111_v9 = vld [vmem:[#allocation6 + $0x58] sm:$0xff]  ;;  %v119_v35 = vshrl.u32 %v118_v34, 7  ;;  %s6949_s27 = sshll.u32 %s7880_s25, 4  ;;  %s6950_s27 = int_to_ptr.vmem [resolvable:$true] %s6949_s27 }
  0x43   :  { %170 = vmatpush1.msra.mxu0 %v114_v3  ;;  %320 = vmatpush1.msra.mxu1 %v7942_v4  ;;  %v7947_v8 = vld [vmem:[#allocation8 + $0x60] sm:$0xff]  ;;  %v7950_v10 = vld [vmem:[#allocation8 + $0x58] sm:$0xff]  ;;  %v110_v11 = vld [vmem:[#allocation6 + $0x50] sm:$0xff]  ;;  %s7838_s28 = scalar_lea.vmem %s6950_s27, 128  ;;  %p7843_p12 = scmp.lt.s32.totalorder %s6950_s27, %s6950_s27 }
  0x44   :  { %171 = vmatprep.subr.mxu0 %v113_v5  ;;  %321 = vmatprep.subr.mxu1 %v7944_v6  ;;  %v7952_v12 = vld [vmem:[#allocation8 + $0x50] sm:$0xff]  ;;  %v109_v13 = vld [vmem:[#allocation6 + $0x48] sm:$0xff]  ;;  %v108_v15 = vld [vmem:[#allocation6 + $0x40] sm:$0xff]  ;;  %v8007_v36 = vsub.s32 0, %v119_v35  ;;  %v8009_v38 = vsub.s32 1, %v119_v35  ;;  %p7839_p11 = scmp.ne.s32.totalorder %s6950_s27, %s7838_s28  ;;  %p7844_p13 = scmp.lt.s32.totalorder %s7838_s28, %s7838_s28 }
  0x45   :  { %172 = vmatpush1.msra.mxu0 %v112_v7  ;;  %322 = vmatpush1.msra.mxu1 %v7947_v8  ;;  %v7955_v14 = vld [vmem:[#allocation8 + $0x48] sm:$0xff]  ;;  %v7958_v16 = vld [vmem:[#allocation8 + $0x40] sm:$0xff]  ;;  %v107_v17 = vld [vmem:[#allocation6 + $0x38] sm:$0xff] }
  0x46   :  { %173 = vmatprep.subr.mxu0 %v111_v9  ;;  %323 = vmatprep.subr.mxu1 %v7950_v10  ;;  %v7961_v18 = vld [vmem:[#allocation8 + $0x38] sm:$0xff]  ;;  %v106_v19 = vld [vmem:[#allocation6 + $0x30] sm:$0xff]  ;;  %v105_v21 = vld [vmem:[#allocation6 + $0x28] sm:$0xff]  ;;  %10989 = vst [vmem:[#allocation17_spill] sm:$0xff] %v8007_v36  ;;  %p7845_p0 = por %p7844_p13, %p7843_p12 }
  0x47   :  { %174 = vmatpush1.msra.mxu0 %v110_v11  ;;  %324 = vmatpush1.msra.mxu1 %v7952_v12  ;;  %v7964_v20 = vld [vmem:[#allocation8 + $0x30] sm:$0xff]  ;;  %v7967_v22 = vld [vmem:[#allocation8 + $0x28] sm:$0xff]  ;;  %v104_v23 = vld [vmem:[#allocation6 + $0x20] sm:$0xff]  ;;  %10990 = vst [vmem:[#allocation18_spill] sm:$0xff] %v8009_v38 }
  0x48   :  { %175 = vmatprep.subr.mxu0 %v109_v13  ;;  %325 = vmatprep.subr.mxu1 %v7955_v14  ;;  %v7970_v24 = vld [vmem:[#allocation8 + $0x20] sm:$0xff]  ;;  %v103_v25 = vld [vmem:[#allocation6 + $0x18] sm:$0xff]  ;;  %v102_v27 = vld [vmem:[#allocation6 + $0x10] sm:$0xff]  ;;  %p7846_p1 = pnand %p7845_p0, %p7839_p11 }
  0x49   :  { %176 = vmatpush1.msra.mxu0 %v108_v15  ;;  %326 = vmatpush1.msra.mxu1 %v7958_v16  ;;  %v7973_v26 = vld [vmem:[#allocation8 + $0x18] sm:$0xff]  ;;  %v7976_v28 = vld [vmem:[#allocation8 + $0x10] sm:$0xff]  ;;  %v101_v29 = vld [vmem:[#allocation6 + $0x8] sm:$0xff] }
  0x4a   :  { %177 = vmatprep.subr.mxu0 %v107_v17  ;;  %327 = vmatprep.subr.mxu1 %v7961_v18  ;;  %v7979_v30 = vld [vmem:[#allocation8 + $0x8] sm:$0xff]  ;;  %v100_v31 = vld [vmem:[#allocation6] sm:$0xff]  ;;  %v8025_v57 = vld [vmem:[#allocation6 + $0xf8] sm:$0xff] }
  0x4b   :  { %178 = vmatpush1.msra.mxu0 %v106_v19  ;;  %328 = vmatpush1.msra.mxu1 %v7964_v20  ;;  %v7982_v32 = vld [vmem:[#allocation8] sm:$0xff]  ;;  %v93_v56 = vld [vmem:[#allocation3 + $0x8] sm:$0xff]  ;;  %v8027_v58 = vld [vmem:[#allocation6 + $0xf0] sm:$0xff] }
  0x4c   :  { %179 = vmatprep.subr.mxu0 %v105_v21  ;;  %329 = vmatprep.subr.mxu1 %v7967_v22  ;;  %v92_v33 = vld [vmem:[#allocation3] sm:$0xff]  ;;  %v94_v59 = vld [vmem:[#allocation3 + $0x10] sm:$0xff]  ;;  %v8031_v60 = vld [vmem:[#allocation6 + $0xe8] sm:$0xff] }
  0x4d   :  { %180 = vmatpush1.msra.mxu0 %v104_v23  ;;  %330 = vmatpush1.msra.mxu1 %v7970_v24  ;;  %v116_v37 = vld [vmem:[#allocation9] sm:$0x3]  ;;  %v8037_v62 = vld [vmem:[#allocation6 + $0xd8] sm:$0xff]  ;;  %v8040_v63 = vld [vmem:[#allocation6 + $0xd0] sm:$0xff] }
  0x4e   :  { %181 = vmatprep.subr.mxu0 %v103_v25  ;;  %331 = vmatprep.subr.mxu1 %v7973_v26  ;;  %v8012_v39 = vrot.slane %v116_v37, %v8007_v36  ;;  %v8015_v40 = vrot.slane %v116_v37, %v8009_v38  ;;  %v8034_v61 = vld [vmem:[#allocation6 + $0xe0] sm:$0xff]  ;;  %v95_v1 = vld [vmem:[#allocation3 + $0x18] sm:$0xff]  ;;  %v8044_v3 = vld [vmem:[#allocation6 + $0xc8] sm:$0xff] }
  0x4f   :  { %182 = vmatpush1.msra.mxu0 %v102_v27  ;;  %332 = vmatpush1.msra.mxu1 %v7976_v28  ;;  %v8047_v5 = vld [vmem:[#allocation6 + $0xc0] sm:$0xff]  ;;  %v8050_v7 = vld [vmem:[#allocation6 + $0xb8] sm:$0xff]  ;;  %v8054_v9 = vld [vmem:[#allocation6 + $0xb0] sm:$0xff] }
  0x50   :  { %183 = vmatprep.subr.mxu0 %v101_v29  ;;  %333 = vmatprep.subr.mxu1 %v7979_v30  ;;  %10991 = vst [vmem:[#allocation19_spill] sm:$0xff] %v8012_v39  ;;  %10992 = vst [vmem:[#allocation20_spill] sm:$0xff] %v8015_v40  ;;  %v96_v11 = vld [vmem:[#allocation3 + $0x20] sm:$0xff]  ;;  %v8058_v13 = vld [vmem:[#allocation6 + $0xa8] sm:$0xff] }
  0x51   :  { %184 = vmatpush1.msra.mxu0 %v100_v31  ;;  %334 = vmatpush1.msra.mxu1 %v7982_v32  ;;  %v8061_v15 = vld [vmem:[#allocation6 + $0xa0] sm:$0xff]  ;;  %v8064_v17 = vld [vmem:[#allocation6 + $0x98] sm:$0xff]  ;;  %v8068_v19 = vld [vmem:[#allocation6 + $0x90] sm:$0xff] }
  0x52   :  { %6960 = vmatmul.mubr.msk.f32.vlgmr.msra.gmra.mxu0 %vm128_vm0, %v92_v33  ;;  %368 = vmatmul.mubr.f32.vlgmr.msra.gmra.mxu1 %v10718_v0  ;;  %10993 = vst [vmem:[#allocation21_spill] sm:$0xff] %v8064_v17  ;;  %10994 = vst [vmem:[#allocation22_spill] sm:$0xff] %v8068_v19  ;;  %v97_v21 = vld [vmem:[#allocation3 + $0x28] sm:$0xff]  ;;  %v98_v23 = vld [vmem:[#allocation3 + $0x30] sm:$0xff] }
  0x53   :  { %223 = vmatprep.mubr.f32.mxu0 %v10718_v0  ;;  %423 = vmatprep.subr.mxu1 %v7939_v2  ;;  %v99_v25 = vld [vmem:[#allocation3 + $0x38] sm:$0xff]  ;;  %v8083_v33 = vld [vmem:[#allocation6 + $0x88] sm:$0xff]  ;;  %v8086_v34 = vld [vmem:[#allocation6 + $0x80] sm:$0xff] }
  0x54   :  { %424 = vmatpush1.msra.mxu1 %v7942_v4  ;;  %471 = vmatprep.mubr.f32.mxu1 %v10718_v0  ;;  %10995 = vst [vmem:[#allocation23_spill] sm:$0xff] %v8083_v33  ;;  %10996 = vst [vmem:[#allocation24_spill] sm:$0xff] %v8086_v34  ;;  %v8088_v35 = vld [vmem:[#allocation8 + $0xf8] sm:$0xff] }
  0x55   :  { %425 = vmatprep.subr.mxu1 %v7944_v6  ;;  %552 = vmatprep.subr.mxu0 %v8025_v57 }
  0x56   :  { %426 = vmatpush1.msra.mxu1 %v7947_v8  ;;  %6961 = vmatmul.mubr.msk.f32.gmra.mxu0 %vm128_vm0, %v93_v56  ;;  %v8128_v56 = vld [vmem:[#allocation8 + $0xa8] sm:$0xff] }
  0x57   :  { %427 = vmatprep.subr.mxu1 %v7950_v10  ;;  %229 = vmatprep.mubr.f32.mxu0 %v10718_v0  ;;  %10997 = vst [vmem:[#allocation25_spill] sm:$0xff] %v8128_v56 }
  0x58   :  { %428 = vmatpush1.msra.mxu1 %v7952_v12  ;;  %553 = vmatpush1.msra.mxu0 %v8027_v58 }
  0x59   :  { %429 = vmatprep.subr.mxu1 %v7955_v14  ;;  %554 = vmatprep.subr.mxu0 %v8031_v60 }
  0x5a   :  { %430 = vmatpush1.msra.mxu1 %v7958_v16  ;;  %6962 = vmatmul.mubr.msk.f32.gmra.mxu0 %vm128_vm0, %v94_v59  ;;  %v8132_v59 = vld [vmem:[#allocation8 + $0xa0] sm:$0xff] }
  0x5b   :  { %431 = vmatprep.subr.mxu1 %v7961_v18  ;;  %235 = vmatprep.mubr.f32.mxu0 %v10718_v0 }
  0x5c   :  { %432 = vmatpush1.msra.mxu1 %v7964_v20  ;;  %555 = vmatpush1.msra.mxu0 %v8034_v61 }
  0x5d   :  { %433 = vmatprep.subr.mxu1 %v7967_v22  ;;  %556 = vmatprep.subr.mxu0 %v8037_v62 }
  0x5e   :  { %434 = vmatpush1.msra.mxu1 %v7970_v24  ;;  %557 = vmatpush1.msra.mxu0 %v8040_v63 }
  0x5f   :  { %435 = vmatprep.subr.mxu1 %v7973_v26  ;;  %6963 = vmatmul.mubr.msk.f32.gmra.mxu0 %vm128_vm0, %v95_v1  ;;  %v8136_v1 = vld [vmem:[#allocation8 + $0x98] sm:$0xff] }
  0x60   :  { %436 = vmatpush1.msra.mxu1 %v7976_v28  ;;  %558 = vmatprep.subr.mxu0 %v8044_v3  ;;  %10998 = vst [vmem:[#allocation26_spill] sm:$0xff] %v8136_v1 }
  0x61   :  { %437 = vmatprep.subr.mxu1 %v7979_v30  ;;  %241 = vmatprep.mubr.f32.mxu0 %v10718_v0 }
  0x62   :  { %438 = vmatpush1.msra.mxu1 %v7982_v32  ;;  %559 = vmatpush1.msra.mxu0 %v8047_v5 }
  0x63   :  { %560 = vmatprep.subr.mxu0 %v8050_v7  ;;  %6964 = vmatmul.mubr.msk.f32.gmra.mxu0 %vm128_vm0, %v96_v11  ;;  %v8140_v11 = vld [vmem:[#allocation8 + $0x90] sm:$0xff] }
  0x64   :  { %561 = vmatpush1.msra.mxu0 %v8054_v9  ;;  %247 = vmatprep.mubr.f32.mxu0 %v10718_v0 }
  0x65   :  { %562 = vmatprep.subr.mxu0 %v8058_v13  ;;  %640 = vmatprep.subr.mxu1 %v8088_v35 }
  0x66   :  { %563 = vmatpush1.msra.mxu0 %v8061_v15 }
  0x67   :  { %564 = vmatprep.subr.mxu0 %v8064_v17  ;;  %6965 = vmatmul.mubr.msk.f32.gmra.mxu0 %vm128_vm0, %v97_v21  ;;  %v8144_v21 = vld [vmem:[#allocation8 + $0x88] sm:$0xff] }
  0x68   :  { %565 = vmatpush1.msra.mxu0 %v8068_v19  ;;  %253 = vmatprep.mubr.f32.mxu0 %v10718_v0 }
  0x69   :  { %566 = vmatprep.subr.mxu0 %v8083_v33 }
  0x6a   :  { %567 = vmatpush1.msra.mxu0 %v8086_v34 }
  0x6b   :  { %6966 = vmatmul.mubr.msk.f32.gmra.mxu0 %vm128_vm0, %v98_v23  ;;  %744 = vmatprep.subr.mxu0 %v7939_v2  ;;  %v8148_v23 = vld [vmem:[#allocation8 + $0x80] sm:$0xff] }
  0x6c   :  { %259 = vmatprep.mubr.f32.mxu0 %v10718_v0  ;;  %10999 = vst [vmem:[#allocation27_spill] sm:$0xff] %v8148_v23 }
  0x6f   :  { %6967 = vmatmul.mubr.msk.f32.gmra.mxu0 %vm128_vm0, %v99_v25 }
  0x70   :  { %600 = vmatprep.mubr.f32.mxu0 %v10718_v0 }
 0x112   :  { %v219_v41 = vpop.f32.mrf.mxu0  ;;  %v369_v42 = vpop.f32.mrf.mxu1 }
 0x113   :  { %v220_v43 = vadd.f32 %v219_v41, %v8012_v39 }
 0x114   :  { %v221_v44 = vpop.f32.mrf.mxu0  ;;  %v371_v47 = vpop.f32.mrf.mxu1 }
 0x115   :  { %v374_v45 = vadd.f32 %v369_v42, %v220_v43  ;;  %v222_v46 = vadd.f32 %v221_v44, %v8015_v40 }
 0x116   :  { %v225_v25 = vpop.f32.mrf.mxu0 }
 0x117   :  { %v8019_v48 = vadd.f32 %v371_v47, %v222_v46  ;;  %v376_v50 = vmul.f32 0.5, %v374_v45  ;;  %v8095_v47 = vld [vmem:[#allocation8 + $0xf0] sm:$0xff] }
 0x119   :  { %7080 = vtanh.f32 %v8019_v48  ;;  %v377_v41 = vmul.f32 0.5, %v8019_v48  ;;  %v8108_v48 = vld [vmem:[#allocation8 + $0xd0] sm:$0xff] }
 0x11a   :  { %7082 = vtanh.f32 %v376_v50  ;;  %v8101_v50 = vld [vmem:[#allocation8 + $0xe0] sm:$0xff] }
 0x126   :  { %v7081_v49 = vpop.eup %7080 }
 0x127   :  { %387 = vrot.lane.b32.xlu0 %v7081_v49, %s7878_s2  ;;  %v7083_v51 = vpop.eup %7082  ;;  %v8097_v49 = vld [vmem:[#allocation8 + $0xe8] sm:$0xff] }
 0x128   :  { %v380_v52 = vmul.f32 0.5, %v7083_v51  ;;  %v8104_v51 = vld [vmem:[#allocation8 + $0xd8] sm:$0xff] }
 0x12a   :  { %v382_v53 = vadd.f32 0.5, %v380_v52  ;;  %v8112_v52 = vld [vmem:[#allocation8 + $0xc8] sm:$0xff] }
 0x12c   :  { %v385_v27 = vmul.f32 0.0, %v382_v53 }
 0x199   :  { %v388_v54 = vpop.permute.xlu0 %387 }
 0x19a   :  { %v390_v55 = vmul.f32 %v388_v54, %v382_v53  ;;  %v8116_v53 = vld [vmem:[#allocation8 + $0xc0] sm:$0xff]  ;;  %v8120_v54 = vld [vmem:[#allocation8 + $0xb8] sm:$0xff] }
 0x19c   :  { %392 = vrot.lane.b32.xlu0 %v390_v55, %s7878_s2  ;;  %v8124_v55 = vld [vmem:[#allocation8 + $0xb0] sm:$0xff] }
 0x20e   :  { %v393_v29 = vpop.permute.xlu0 %392 }
 0x20f   :  { %v8080_v31 = vadd.f32 %v393_v29, %v385_v27  ;;  %v227_v27 = vpop.f32.mrf.mxu0 }
 0x211   :  { %7084 = vtanh.f32 %v8080_v31  ;;  %v8178_v29 = vpop.f32.mrf.mxu0 }
 0x212   :  { %7086 = vtanh.f32 %v377_v41  ;;  %11000 = vst [vmem:[#allocation28_spill] sm:$0xff] %v8178_v29  ;;  %v226_v29 = vadd.f32 %v225_v25, %v8012_v39 }
 0x21e   :  { %v7085_v37 = vpop.eup %7084 }
 0x21f   :  { %398 = vrot.lane.b32.xlu1 %v7085_v37, %s7878_s2  ;;  %v7087_v42 = vpop.eup %7086  ;;  %v8180_v37 = vpop.f32.mrf.mxu0 }
 0x220   :  { %v381_v43 = vmul.f32 0.5, %v7087_v42  ;;  %11001 = vst [vmem:[#allocation29_spill] sm:$0xff] %v8180_v37  ;;  %v228_v37 = vadd.f32 %v227_v27, %v8015_v40 }
 0x221   :  { %v8182_v41 = vpop.f32.mrf.mxu0 }
 0x222   :  { %v383_v44 = vadd.f32 0.5, %v381_v43  ;;  %11002 = vst [vmem:[#allocation30_spill] sm:$0xff] %v8182_v41 }
 0x223   :  { %v8184_v42 = vpop.f32.mrf.mxu0 }
 0x224   :  { %11003 = vst [vmem:[#allocation31_spill] sm:$0xff] %v8184_v42 }
 0x225   :  { %v8186_v43 = vpop.f32.mrf.mxu0 }
 0x226   :  { %11004 = vst [vmem:[#allocation32_spill] sm:$0xff] %v8186_v43 }
 0x291   :  { %v399_v45 = vpop.permute.xlu1 %398 }
 0x292   :  { %v401_v46 = vmul.f32 %v399_v45, %v383_v44  ;;  %v8188_v44 = vpop.f32.mrf.mxu0 }
 0x293   :  { %11005 = vst [vmem:[#allocation33_spill] sm:$0xff] %v8188_v44 }
 0x294   :  { %6968 = vmatmul.mubr.msk.f32.vlgmr.msra.gmra.mxu1 %vm128_vm0, %v401_v46  ;;  %6969 = vmatmul.mubr.msk.f32.vlgmr.msra.gmra.mxu0 %vm128_vm0, %v401_v46  ;;  %v8190_v45 = vpop.f32.mrf.mxu0 }
 0x295   :  { %641 = vmatpush1.msra.mxu1 %v8095_v47  ;;  %688 = vmatprep.mubr.f32.mxu1 %v10718_v0  ;;  %11006 = vst [vmem:[#allocation34_spill] sm:$0xff] %v8190_v45  ;;  %v524_v45 = vld [vmem:[#allocation9 + $0x2] sm:$0x3] }
 0x296   :  { %642 = vmatprep.subr.mxu1 %v8097_v49  ;;  %745 = vmatpush1.msra.mxu0 %v7942_v4  ;;  %v8192_v46 = vpop.f32.mrf.mxu0 }
 0x297   :  { %643 = vmatpush1.msra.mxu1 %v8101_v50  ;;  %746 = vmatprep.subr.mxu0 %v7944_v6  ;;  %11007 = vst [vmem:[#allocation35_spill] sm:$0xff] %v8192_v46  ;;  %v8205_v46 = vrot.slane %v524_v45, %v8007_v36 }
 0x298   :  { %644 = vmatprep.subr.mxu1 %v8104_v51  ;;  %747 = vmatpush1.msra.mxu0 %v7947_v8 }
 0x299   :  { %645 = vmatpush1.msra.mxu1 %v8108_v48  ;;  %748 = vmatprep.subr.mxu0 %v7950_v10  ;;  %11012 = vst [vmem:[#allocation40_spill] sm:$0xff] %v8205_v46 }
 0x29a   :  { %646 = vmatprep.subr.mxu1 %v8112_v52  ;;  %749 = vmatpush1.msra.mxu0 %v7952_v12 }
 0x29b   :  { %647 = vmatpush1.msra.mxu1 %v8116_v53  ;;  %750 = vmatprep.subr.mxu0 %v7955_v14 }
 0x29c   :  { %648 = vmatprep.subr.mxu1 %v8120_v54  ;;  %751 = vmatpush1.msra.mxu0 %v7958_v16 }
 0x29d   :  { %649 = vmatpush1.msra.mxu1 %v8124_v55  ;;  %752 = vmatprep.subr.mxu0 %v7961_v18 }
 0x29e   :  { %650 = vmatprep.subr.mxu1 %v8128_v56  ;;  %753 = vmatpush1.msra.mxu0 %v7964_v20 }
 0x29f   :  { %651 = vmatpush1.msra.mxu1 %v8132_v59  ;;  %754 = vmatprep.subr.mxu0 %v7967_v22 }
 0x2a0   :  { %652 = vmatprep.subr.mxu1 %v8136_v1  ;;  %755 = vmatpush1.msra.mxu0 %v7970_v24 }
 0x2a1   :  { %653 = vmatpush1.msra.mxu1 %v8140_v11  ;;  %756 = vmatprep.subr.mxu0 %v7973_v26 }
 0x2a2   :  { %654 = vmatprep.subr.mxu1 %v8144_v21  ;;  %757 = vmatpush1.msra.mxu0 %v7976_v28 }
 0x2a3   :  { %655 = vmatpush1.msra.mxu1 %v8148_v23  ;;  %758 = vmatprep.subr.mxu0 %v7979_v30 }
 0x2a4   :  { %689 = vmatmul.mubr.f32.vlgmr.msra.gmra.mxu1 %v10718_v0  ;;  %843 = vmatprep.subr.mxu1 %v8025_v57 }
 0x2a5   :  { %844 = vmatpush1.msra.mxu1 %v8027_v58  ;;  %759 = vmatpush1.msra.mxu0 %v7982_v32 }
 0x2a6   :  { %845 = vmatprep.subr.mxu1 %v8031_v60  ;;  %792 = vmatprep.mubr.f32.mxu0 %v10718_v0 }
 0x2a7   :  { %846 = vmatpush1.msra.mxu1 %v8034_v61  ;;  %891 = vmatprep.mubr.f32.mxu1 %v10718_v0  ;;  %v8194_v0 = vpop.f32.mrf.mxu0 }
 0x2a8   :  { %847 = vmatprep.subr.mxu1 %v8037_v62  ;;  %917 = vmatprep.subr.mxu0 %v8088_v35  ;;  %11008 = vst [vmem:[#allocation36_spill] sm:$0xff] %v8194_v0 }
 0x2a9   :  { %848 = vmatpush1.msra.mxu1 %v8040_v63 }
 0x2aa   :  { %849 = vmatprep.subr.mxu1 %v8044_v3 }
 0x2ab   :  { %850 = vmatpush1.msra.mxu1 %v8047_v5 }
 0x2ac   :  { %851 = vmatprep.subr.mxu1 %v8050_v7 }
 0x2ad   :  { %852 = vmatpush1.msra.mxu1 %v8054_v9 }
 0x2ae   :  { %853 = vmatprep.subr.mxu1 %v8058_v13 }
 0x2af   :  { %854 = vmatpush1.msra.mxu1 %v8061_v15 }
 0x2b0   :  { %855 = vmatprep.subr.mxu1 %v8064_v17 }
 0x2b1   :  { %856 = vmatpush1.msra.mxu1 %v8068_v19 }
 0x2b2   :  { %857 = vmatprep.subr.mxu1 %v8083_v33 }
 0x2b3   :  { %858 = vmatpush1.msra.mxu1 %v8086_v34  ;;  %v8196_v34 = vpop.f32.mrf.mxu0 }
 0x2b4   :  { %11009 = vst [vmem:[#allocation37_spill] sm:$0xff] %v8196_v34  ;;  %v8208_v34 = vrot.slane %v524_v45, %v8009_v38 }
 0x2b5   :  { %v8200_v19 = vpop.f32.mrf.mxu0 }
 0x2b6   :  { %11010 = vst [vmem:[#allocation38_spill] sm:$0xff] %v8200_v19  ;;  %11013 = vst [vmem:[#allocation41_spill] sm:$0xff] %v8208_v34 }
 0x2b7   :  { %v8202_v17 = vpop.f32.mrf.mxu0 }
 0x2b8   :  { %11011 = vst [vmem:[#allocation39_spill] sm:$0xff] %v8202_v17 }
 0x354   :  { %v473_v33 = vpop.f32.mrf.mxu1  ;;  %v602_v44 = vpop.f32.mrf.mxu0 }
 0x355   :  { %v478_v41 = vadd.f32 %v473_v33, %v226_v29  ;;  %v603_v0 = vadd.f32 %v602_v44, %v8205_v46 }
 0x356   :  { %v475_v42 = vpop.f32.mrf.mxu1  ;;  %v604_v25 = vpop.f32.mrf.mxu0 }
 0x357   :  { %v479_v43 = vadd.f32 %v475_v42, %v228_v37  ;;  %v605_v33 = vadd.f32 %v604_v25, %v8208_v34  ;;  %v480_v36 = vmul.f32 0.5, %v478_v41 }
 0x359   :  { %7088 = vtanh.f32 %v479_v43 }
 0x364   :  { %v690_v27 = vpop.f32.mrf.mxu1 }
 0x365   :  { %v695_v29 = vadd.f32 %v690_v27, %v603_v0 }
 0x366   :  { %v692_v19 = vpop.f32.mrf.mxu1  ;;  %v7089_v37 = vpop.eup %7088 }
 0x367   :  { %v696_v42 = vadd.f32 %v692_v19, %v605_v33  ;;  %491 = vrot.lane.b32.xlu1 %v7089_v37, %s7878_s2  ;;  %v697_v45 = vmul.f32 0.5, %v695_v29 }
 0x369   :  { %7090 = vtanh.f32 %v696_v42 }
 0x36a   :  { %7092 = vtanh.f32 %v480_v36 }
 0x36b   :  { %7094 = vtanh.f32 %v697_v45  ;;  %v698_v45 = vmul.f32 0.5, %v696_v42  ;;  %v8242_v42 = vld [vmem:[#allocation6 + $0x150] sm:$0xff] }
 0x376   :  { %v7091_v17 = vpop.eup %7090 }
 0x377   :  { %708 = vrot.lane.b32.xlu0 %v7091_v17, %s7878_s2  ;;  %v7093_v38 = vpop.eup %7092 }
 0x378   :  { %v484_v40 = vmul.f32 0.5, %v7093_v38  ;;  %v7095_v0 = vpop.eup %7094  ;;  %v8220_v38 = vld [vmem:[#allocation6 + $0x178] sm:$0xff] }
 0x379   :  { %v701_v25 = vmul.f32 0.5, %v7095_v0  ;;  %1046 = vmatprep.subr.mxu1 %v8220_v38 }
 0x37a   :  { %v486_v44 = vadd.f32 0.5, %v484_v40 }
 0x37b   :  { %v703_v19 = vadd.f32 0.5, %v701_v25 }
 0x37c   :  { %v489_v17 = vmul.f32 %v486_v44, %v8080_v31  ;;  %v481_v31 = vmul.f32 0.5, %v479_v43  ;;  %v8238_v43 = vld [vmem:[#allocation6 + $0x158] sm:$0xff] }
 0x37d   :  { %v706_v40 = vmul.f32 0.0, %v703_v19 }
 0x3d9   :  { %v492_v46 = vpop.permute.xlu1 %491 }
 0x3da   :  { %v494_v39 = vmul.f32 %v492_v46, %v486_v44 }
 0x3dc   :  { %496 = vrot.lane.b32.xlu1 %v494_v39, %s7878_s2 }
 0x3e9   :  { %v709_v27 = vpop.permute.xlu0 %708 }
 0x3ea   :  { %v711_v33 = vmul.f32 %v709_v27, %v703_v19 }
 0x3ec   :  { %713 = vrot.lane.b32.xlu0 %v711_v33, %s7878_s2  ;;  %v8228_v33 = vld [vmem:[#allocation6 + $0x170] sm:$0xff] }
 0x44e   :  { %v497_v41 = vpop.permute.xlu1 %496 }
 0x44f   :  { %v8217_v36 = vadd.f32 %v497_v41, %v489_v17  ;;  %v8230_v17 = vld [vmem:[#allocation6 + $0x168] sm:$0xff]  ;;  %v8234_v41 = vld [vmem:[#allocation6 + $0x160] sm:$0xff] }
 0x451   :  { %7096 = vtanh.f32 %v8217_v36 }
 0x45e   :  { %v7097_v39 = vpop.eup %7096  ;;  %v714_v46 = vpop.permute.xlu0 %713 }
 0x45f   :  { %v8223_v29 = vadd.f32 %v714_v46, %v706_v40  ;;  %502 = vrot.lane.b32.xlu1 %v7097_v39, %s7878_s2  ;;  %v8246_v40 = vld [vmem:[#allocation6 + $0x148] sm:$0xff]  ;;  %v8250_v39 = vld [vmem:[#allocation6 + $0x140] sm:$0xff] }
 0x461   :  { %7098 = vtanh.f32 %v8223_v29 }
 0x462   :  { %7100 = vtanh.f32 %v481_v31  ;;  %v8258_v31 = vld [vmem:[#allocation6 + $0x130] sm:$0xff] }
 0x463   :  { %7102 = vtanh.f32 %v698_v45  ;;  %11014 = vst [vmem:[#allocation42_spill] sm:$0xff] %v8258_v31  ;;  %v8262_v45 = vld [vmem:[#allocation6 + $0x128] sm:$0xff] }
 0x464   :  { %11015 = vst [vmem:[#allocation43_spill] sm:$0xff] %v8262_v45 }
 0x46e   :  { %v7099_v37 = vpop.eup %7098 }
 0x46f   :  { %719 = vrot.lane.b32.xlu0 %v7099_v37, %s7878_s2  ;;  %v7101_v44 = vpop.eup %7100  ;;  %v8254_v37 = vld [vmem:[#allocation6 + $0x138] sm:$0xff] }
 0x470   :  { %v485_v0 = vmul.f32 0.5, %v7101_v44  ;;  %v7103_v46 = vpop.eup %7102  ;;  %v8266_v44 = vld [vmem:[#allocation6 + $0x120] sm:$0xff] }
 0x471   :  { %11016 = vst [vmem:[#allocation44_spill] sm:$0xff] %v8266_v44 }
 0x472   :  { %v487_v25 = vadd.f32 0.5, %v485_v0  ;;  %v702_v0 = vmul.f32 0.5, %v7103_v46 }
 0x474   :  { %v704_v46 = vadd.f32 0.5, %v702_v0  ;;  %v8294_v0 = vld [vmem:[#allocation8 + $0x170] sm:$0xff] }
 0x4d1   :  { %v503_v27 = vpop.permute.xlu1 %502 }
 0x4d2   :  { %v505_v19 = vmul.f32 %v503_v27, %v487_v25  ;;  %v8270_v25 = vld [vmem:[#allocation6 + $0x118] sm:$0xff]  ;;  %v8274_v27 = vld [vmem:[#allocation6 + $0x110] sm:$0xff] }
 0x4d4   :  { %6970 = vmatmul.mubr.msk.f32.vlgmr.msra.gmra.mxu0 %vm128_vm0, %v505_v19  ;;  %6971 = vmatmul.mubr.msk.f32.vlgmr.msra.gmra.mxu1 %vm128_vm0, %v505_v19  ;;  %v8278_v19 = vld [vmem:[#allocation6 + $0x108] sm:$0xff] }
 0x4d5   :  { %918 = vmatpush1.msra.mxu0 %v8095_v47  ;;  %1047 = vmatpush1.msra.mxu1 %v8228_v33 }
 0x4d6   :  { %919 = vmatprep.subr.mxu0 %v8097_v49  ;;  %1048 = vmatprep.subr.mxu1 %v8230_v17 }
 0x4d7   :  { %920 = vmatpush1.msra.mxu0 %v8101_v50  ;;  %1049 = vmatpush1.msra.mxu1 %v8234_v41 }
 0x4d8   :  { %921 = vmatprep.subr.mxu0 %v8104_v51  ;;  %1050 = vmatprep.subr.mxu1 %v8238_v43 }
 0x4d9   :  { %922 = vmatpush1.msra.mxu0 %v8108_v48  ;;  %1051 = vmatpush1.msra.mxu1 %v8242_v42 }
 0x4da   :  { %923 = vmatprep.subr.mxu0 %v8112_v52  ;;  %1052 = vmatprep.subr.mxu1 %v8246_v40 }
 0x4db   :  { %924 = vmatpush1.msra.mxu0 %v8116_v53  ;;  %1053 = vmatpush1.msra.mxu1 %v8250_v39 }
 0x4dc   :  { %925 = vmatprep.subr.mxu0 %v8120_v54  ;;  %1054 = vmatprep.subr.mxu1 %v8254_v37 }
 0x4dd   :  { %926 = vmatpush1.msra.mxu0 %v8124_v55  ;;  %1055 = vmatpush1.msra.mxu1 %v8258_v31 }
 0x4de   :  { %927 = vmatprep.subr.mxu0 %v8128_v56  ;;  %1056 = vmatprep.subr.mxu1 %v8262_v45  ;;  %v8284_v56 = vld [vmem:[#allocation6 + $0x100] sm:$0xff] }
 0x4df   :  { %928 = vmatpush1.msra.mxu0 %v8132_v59  ;;  %1057 = vmatpush1.msra.mxu1 %v8266_v44  ;;  %11017 = vst [vmem:[#allocation45_spill] sm:$0xff] %v8284_v56  ;;  %v11018_v44 = vmov 0.0  }
 0x4e0   :  { %929 = vmatprep.subr.mxu0 %v8136_v1  ;;  %1058 = vmatprep.subr.mxu1 %v8270_v25  ;;  %v8290_v1 = vld [vmem:[#allocation8 + $0x178] sm:$0xff] }
 0x4e1   :  { %v720_v31 = vpop.permute.xlu0 %719  ;;  %930 = vmatpush1.msra.mxu0 %v8140_v11  ;;  %1059 = vmatpush1.msra.mxu1 %v8274_v27  ;;  %11019 = vst [vmem:[#allocation46_spill] sm:$0xff] %v8290_v1 }
 0x4e2   :  { %v722_v45 = vmul.f32 %v720_v31, %v704_v46  ;;  %931 = vmatprep.subr.mxu0 %v8144_v21  ;;  %1060 = vmatprep.subr.mxu1 %v8278_v19  ;;  %v8298_v31 = vld [vmem:[#allocation8 + $0x168] sm:$0xff]  ;;  %v8301_v46 = vld [vmem:[#allocation8 + $0x160] sm:$0xff] }
 0x4e3   :  { %932 = vmatpush1.msra.mxu0 %v8148_v23  ;;  %965 = vmatprep.mubr.f32.mxu0 %v11018_v44  ;;  %v8305_v23 = vld [vmem:[#allocation8 + $0x158] sm:$0xff] }
 0x4e4   :  { %1061 = vmatpush1.msra.mxu1 %v8284_v56  ;;  %1094 = vmatprep.mubr.f32.mxu1 %v11018_v44  ;;  %v8309_v56 = vld [vmem:[#allocation8 + $0x150] sm:$0xff] }
 0x4e5   :  { %6972 = vmatmul.mubr.msk.f32.vlgmr.msra.gmra.mxu0 %vm128_vm0, %v722_v45  ;;  %6973 = vmatmul.mubr.msk.f32.vlgmr.msra.gmra.mxu1 %vm128_vm0, %v722_v45  ;;  %v8313_v45 = vld [vmem:[#allocation8 + $0x148] sm:$0xff] }
 0x4e6   :  { %1134 = vmatprep.subr.mxu0 %v8290_v1  ;;  %1182 = vmatprep.mubr.f32.mxu0 %v11018_v44  ;;  %v8317_v1 = vld [vmem:[#allocation8 + $0x140] sm:$0xff] }
 0x4e7   :  { %1135 = vmatpush1.msra.mxu0 %v8294_v0  ;;  %1238 = vmatprep.subr.mxu1 %v7939_v2  ;;  %v8321_v2 = vld [vmem:[#allocation8 + $0x138] sm:$0xff] }
 0x4e8   :  { %1136 = vmatprep.subr.mxu0 %v8298_v31  ;;  %1239 = vmatpush1.msra.mxu1 %v7942_v4  ;;  %v8325_v4 = vld [vmem:[#allocation8 + $0x130] sm:$0xff] }
 0x4e9   :  { %1137 = vmatpush1.msra.mxu0 %v8301_v46  ;;  %1240 = vmatprep.subr.mxu1 %v7944_v6  ;;  %v8329_v6 = vld [vmem:[#allocation8 + $0x128] sm:$0xff] }
 0x4ea   :  { %1138 = vmatprep.subr.mxu0 %v8305_v23  ;;  %1241 = vmatpush1.msra.mxu1 %v7947_v8  ;;  %v8333_v8 = vld [vmem:[#allocation8 + $0x120] sm:$0xff] }
 0x4eb   :  { %1139 = vmatpush1.msra.mxu0 %v8309_v56  ;;  %1242 = vmatprep.subr.mxu1 %v7950_v10  ;;  %v8337_v10 = vld [vmem:[#allocation8 + $0x118] sm:$0xff] }
 0x4ec   :  { %1140 = vmatprep.subr.mxu0 %v8313_v45  ;;  %1243 = vmatpush1.msra.mxu1 %v7952_v12  ;;  %11020 = vst [vmem:[#allocation47_spill] sm:$0xff] %v8337_v10  ;;  %v8341_v12 = vld [vmem:[#allocation8 + $0x110] sm:$0xff] }
 0x4ed   :  { %1141 = vmatpush1.msra.mxu0 %v8317_v1  ;;  %1244 = vmatprep.subr.mxu1 %v7955_v14  ;;  %11021 = vst [vmem:[#allocation48_spill] sm:$0xff] %v8341_v12  ;;  %v8345_v14 = vld [vmem:[#allocation8 + $0x108] sm:$0xff] }
 0x4ee   :  { %1142 = vmatprep.subr.mxu0 %v8321_v2  ;;  %1245 = vmatpush1.msra.mxu1 %v7958_v16  ;;  %11022 = vst [vmem:[#allocation49_spill] sm:$0xff] %v8345_v14  ;;  %v8349_v16 = vld [vmem:[#allocation8 + $0x100] sm:$0xff] }
 0x4ef   :  { %1143 = vmatpush1.msra.mxu0 %v8325_v4  ;;  %1246 = vmatprep.subr.mxu1 %v7961_v18  ;;  %11023 = vst [vmem:[#allocation50_spill] sm:$0xff] %v8349_v16  ;;  %v11024_v18 = vld [vmem:[#allocation21_spill] sm:$0xff] }
 0x4f0   :  { %1144 = vmatprep.subr.mxu0 %v8329_v6  ;;  %1247 = vmatpush1.msra.mxu1 %v7964_v20  ;;  %v11025_v20 = vld [vmem:[#allocation22_spill] sm:$0xff] }
 0x4f1   :  { %1145 = vmatpush1.msra.mxu0 %v8333_v8  ;;  %1248 = vmatprep.subr.mxu1 %v7967_v22  ;;  %v11026_v22 = vld [vmem:[#allocation23_spill] sm:$0xff] }
 0x4f2   :  { %1146 = vmatprep.subr.mxu0 %v8337_v10  ;;  %1249 = vmatpush1.msra.mxu1 %v7970_v24  ;;  %v11027_v24 = vld [vmem:[#allocation24_spill] sm:$0xff] }
 0x4f3   :  { %1147 = vmatpush1.msra.mxu0 %v8341_v12  ;;  %1250 = vmatprep.subr.mxu1 %v7973_v26  ;;  %v11028_v26 = vld [vmem:[#allocation19_spill] sm:$0xff] }
 0x4f4   :  { %1148 = vmatprep.subr.mxu0 %v8345_v14  ;;  %1251 = vmatpush1.msra.mxu1 %v7976_v28  ;;  %v11029_v28 = vld [vmem:[#allocation28_spill] sm:$0xff] }
 0x4f5   :  { %1149 = vmatpush1.msra.mxu0 %v8349_v16  ;;  %1252 = vmatprep.subr.mxu1 %v7979_v30  ;;  %v232_v30 = vadd.f32 %v11029_v28, %v11028_v26 }
 0x4f6   :  { %1183 = vmatmul.mubr.f32.vlgmr.msra.gmra.mxu0 %v11018_v44  ;;  %1337 = vmatprep.subr.mxu0 %v8025_v57  ;;  %v11030_v57 = vld [vmem:[#allocation20_spill] sm:$0xff] }
 0x4f7   :  { %1338 = vmatpush1.msra.mxu0 %v8027_v58  ;;  %1253 = vmatpush1.msra.mxu1 %v7982_v32  ;;  %v11031_v58 = vld [vmem:[#allocation29_spill] sm:$0xff] }
 0x4f8   :  { %1339 = vmatprep.subr.mxu0 %v8031_v60  ;;  %1286 = vmatprep.mubr.f32.mxu1 %v11018_v44  ;;  %v234_v60 = vadd.f32 %v11031_v58, %v11030_v57  ;;  %v11035_v58 = vld [vmem:[#allocation18_spill] sm:$0xff] }
 0x4f9   :  { %1340 = vmatpush1.msra.mxu0 %v8034_v61  ;;  %1385 = vmatprep.mubr.f32.mxu0 %v11018_v44 }
 0x4fa   :  { %1341 = vmatprep.subr.mxu0 %v8037_v62  ;;  %1411 = vmatprep.subr.mxu1 %v8088_v35 }
 0x4fb   :  { %1342 = vmatpush1.msra.mxu0 %v8040_v63 }
 0x4fc   :  { %1343 = vmatprep.subr.mxu0 %v8044_v3 }
 0x4fd   :  { %1344 = vmatpush1.msra.mxu0 %v8047_v5 }
 0x4fe   :  { %1345 = vmatprep.subr.mxu0 %v8050_v7  ;;  %v11032_v7 = vld [vmem:[#allocation40_spill] sm:$0xff] }
 0x4ff   :  { %1346 = vmatpush1.msra.mxu0 %v8054_v9 }
 0x500   :  { %1347 = vmatprep.subr.mxu0 %v8058_v13 }
 0x501   :  { %1348 = vmatpush1.msra.mxu0 %v8061_v15 }
 0x502   :  { %1349 = vmatprep.subr.mxu0 %v11024_v18 }
 0x503   :  { %1350 = vmatpush1.msra.mxu0 %v11025_v20 }
 0x504   :  { %1351 = vmatprep.subr.mxu0 %v11026_v22 }
 0x505   :  { %1352 = vmatpush1.msra.mxu0 %v11027_v24  ;;  %v1018_v24 = vld [vmem:[#allocation9 + $0x4] sm:$0x3] }
 0x506   :  { %1510 = vmatprep.subr.mxu0 %v8220_v38 }
 0x594   :  { %v794_v32 = vpop.f32.mrf.mxu0  ;;  %v893_v3 = vpop.f32.mrf.mxu1 }
 0x595   :  { %v799_v61 = vadd.f32 %v794_v32, %v232_v30  ;;  %v894_v9 = vadd.f32 %v893_v3, %v11032_v7  ;;  %v11033_v30 = vld [vmem:[#allocation17_spill] sm:$0xff] }
 0x596   :  { %v796_v62 = vpop.f32.mrf.mxu0  ;;  %v895_v5 = vpop.f32.mrf.mxu1  ;;  %v8394_v32 = vrot.slane %v1018_v24, %v11033_v30 }
 0x597   :  { %v8384_v63 = vadd.f32 %v796_v62, %v234_v60  ;;  %v896_v15 = vadd.f32 %v895_v5, %v8208_v34  ;;  %v8397_v60 = vrot.slane %v1018_v24, %v11035_v58  ;;  %v801_v24 = vmul.f32 0.5, %v799_v61 }
 0x598   :  { %11034 = vst [vmem:[#allocation21_spill] sm:$0xff] %v8394_v32 }
 0x599   :  { %7104 = vtanh.f32 %v8384_v63  ;;  %11036 = vst [vmem:[#allocation22_spill] sm:$0xff] %v8397_v60 }
 0x5a5   :  { %v967_v13 = vpop.f32.mrf.mxu0  ;;  %v1096_v28 = vpop.f32.mrf.mxu1 }
 0x5a6   :  { %v972_v35 = vadd.f32 %v967_v13, %v894_v9  ;;  %v7105_v18 = vpop.eup %7104  ;;  %v1097_v3 = vadd.f32 %v1096_v28, %v8394_v32 }
 0x5a7   :  { %v969_v20 = vpop.f32.mrf.mxu0  ;;  %812 = vrot.lane.b32.xlu1 %v7105_v18, %s7878_s2  ;;  %v1098_v62 = vpop.f32.mrf.mxu1 }
 0x5a8   :  { %v8389_v22 = vadd.f32 %v969_v20, %v896_v15  ;;  %v1099_v9 = vadd.f32 %v1098_v62, %v8397_v60  ;;  %v974_v34 = vmul.f32 0.5, %v972_v35 }
 0x5aa   :  { %7106 = vtanh.f32 %v8389_v22 }
 0x5b6   :  { %v1184_v5 = vpop.f32.mrf.mxu0 }
 0x5b7   :  { %v1189_v13 = vadd.f32 %v1184_v5, %v1097_v3  ;;  %v7107_v15 = vpop.eup %7106 }
 0x5b8   :  { %v1186_v20 = vpop.f32.mrf.mxu0  ;;  %985 = vrot.lane.b32.xlu0 %v7107_v15, %s7878_s2 }
 0x5b9   :  { %v8401_v18 = vadd.f32 %v1186_v20, %v1099_v9  ;;  %v1191_v9 = vmul.f32 0.5, %v1189_v13 }
 0x5bb   :  { %7108 = vtanh.f32 %v8401_v18 }
 0x5bc   :  { %7110 = vtanh.f32 %v801_v24 }
 0x5bd   :  { %7112 = vtanh.f32 %v974_v34 }
 0x5be   :  { %7114 = vtanh.f32 %v1191_v9 }
 0x5c8   :  { %v7109_v30 = vpop.eup %7108 }
 0x5c9   :  { %1202 = vrot.lane.b32.xlu1 %v7109_v30, %s7878_s2  ;;  %v7111_v58 = vpop.eup %7110 }
 0x5ca   :  { %v805_v28 = vmul.f32 0.5, %v7111_v58  ;;  %v7113_v5 = vpop.eup %7112 }
 0x5cb   :  { %v978_v20 = vmul.f32 0.5, %v7113_v5  ;;  %v7115_v61 = vpop.eup %7114 }
 0x5cc   :  { %v807_v32 = vadd.f32 0.5, %v805_v28  ;;  %v1195_v30 = vmul.f32 0.5, %v7115_v61  ;;  %v975_v61 = vmul.f32 0.5, %v8389_v22 }
 0x5cd   :  { %v980_v15 = vadd.f32 0.5, %v978_v20 }
 0x5ce   :  { %v1197_v24 = vadd.f32 0.5, %v1195_v30  ;;  %v810_v34 = vmul.f32 %v807_v32, %v8217_v36 }
 0x5d0   :  { %v1200_v9 = vmul.f32 0.0, %v1197_v24 }
 0x619   :  { %v813_v62 = vpop.permute.xlu1 %812 }
 0x61a   :  { %v815_v3 = vmul.f32 %v813_v62, %v807_v32 }
 0x61c   :  { %817 = vrot.lane.b32.xlu0 %v815_v3, %s7878_s2  ;;  %v983_v3 = vmul.f32 %v980_v15, %v8223_v29  ;;  %v802_v29 = vmul.f32 0.5, %v8384_v63 }
 0x62a   :  { %v986_v60 = vpop.permute.xlu0 %985 }
 0x62b   :  { %v988_v7 = vmul.f32 %v986_v60, %v980_v15 }
 0x62d   :  { %990 = vrot.lane.b32.xlu1 %v988_v7, %s7878_s2 }
 0x63b   :  { %v1203_v35 = vpop.permute.xlu1 %1202 }
 0x63c   :  { %v1205_v58 = vmul.f32 %v1203_v35, %v1197_v24 }
 0x63e   :  { %1207 = vrot.lane.b32.xlu0 %v1205_v58, %s7878_s2 }
 0x68e   :  { %v818_v28 = vpop.permute.xlu0 %817 }
 0x68f   :  { %v8410_v62 = vadd.f32 %v818_v28, %v810_v34  ;;  %v11043_v34 = vld [vmem:[#allocation45_spill] sm:$0xff] }
 0x690   :  { %v8462_v28 = vld [vmem:[#allocation6 + $0x1f0] sm:$0xff] }
 0x691   :  { %7116 = vtanh.f32 %v8410_v62 }
 0x69e   :  { %v7117_v13 = vpop.eup %7116 }
 0x69f   :  { %v991_v60 = vpop.permute.xlu1 %990  ;;  %823 = vrot.lane.b32.xlu1 %v7117_v13, %s7878_s2  ;;  %v8470_v13 = vld [vmem:[#allocation6 + $0x1e0] sm:$0xff] }
 0x6a0   :  { %v8415_v7 = vadd.f32 %v991_v60, %v983_v3  ;;  %v8474_v3 = vld [vmem:[#allocation6 + $0x1d8] sm:$0xff]  ;;  %v8478_v60 = vld [vmem:[#allocation6 + $0x1d0] sm:$0xff] }
 0x6a2   :  { %7118 = vtanh.f32 %v8415_v7 }
 0x6af   :  { %v7119_v5 = vpop.eup %7118 }
 0x6b0   :  { %v1208_v20 = vpop.permute.xlu0 %1207  ;;  %996 = vrot.lane.b32.xlu0 %v7119_v5, %s7878_s2  ;;  %v8482_v5 = vld [vmem:[#allocation6 + $0x1c8] sm:$0xff] }
 0x6b1   :  { %v8419_v36 = vadd.f32 %v1208_v20, %v1200_v9  ;;  %v8486_v9 = vld [vmem:[#allocation6 + $0x1c0] sm:$0xff] }
 0x6b3   :  { %7120 = vtanh.f32 %v8419_v36 }
 0x6b4   :  { %7122 = vtanh.f32 %v802_v29  ;;  %v8494_v29 = vld [vmem:[#allocation6 + $0x1b0] sm:$0xff] }
 0x6b5   :  { %7124 = vtanh.f32 %v975_v61  ;;  %v8502_v61 = vld [vmem:[#allocation6 + $0x1a0] sm:$0xff] }
 0x6b6   :  { %11045 = vst [vmem:[#allocation23_spill] sm:$0xff] %v8502_v61 }
 0x6c0   :  { %v7121_v32 = vpop.eup %7120 }
 0x6c1   :  { %1213 = vrot.lane.b32.xlu1 %v7121_v32, %s7878_s2  ;;  %v7123_v15 = vpop.eup %7122  ;;  %v8490_v32 = vld [vmem:[#allocation6 + $0x1b8] sm:$0xff] }
 0x6c2   :  { %v806_v30 = vmul.f32 0.5, %v7123_v15  ;;  %v7125_v63 = vpop.eup %7124  ;;  %v8498_v15 = vld [vmem:[#allocation6 + $0x1a8] sm:$0xff] }
 0x6c4   :  { %v808_v35 = vadd.f32 0.5, %v806_v30 }
 0x711   :  { %v824_v24 = vpop.permute.xlu1 %823 }
 0x712   :  { %v826_v58 = vmul.f32 %v824_v24, %v808_v35  ;;  %v8506_v35 = vld [vmem:[#allocation6 + $0x198] sm:$0xff]  ;;  %v8510_v24 = vld [vmem:[#allocation6 + $0x190] sm:$0xff] }
 0x713   :  { %11046 = vst [vmem:[#allocation24_spill] sm:$0xff] %v8506_v35  ;;  %11047 = vst [vmem:[#allocation28_spill] sm:$0xff] %v8510_v24 }
 0x714   :  { %6974 = vmatmul.mubr.msk.f32.vlgmr.msra.gmra.mxu1 %vm128_vm0, %v826_v58  ;;  %6975 = vmatmul.mubr.msk.f32.vlgmr.msra.gmra.mxu0 %vm128_vm0, %v826_v58  ;;  %v8514_v58 = vld [vmem:[#allocation6 + $0x188] sm:$0xff] }
 0x715   :  { %1412 = vmatpush1.msra.mxu1 %v8095_v47  ;;  %1511 = vmatpush1.msra.mxu0 %v8228_v33  ;;  %v1192_v47 = vmul.f32 0.5, %v8401_v18  ;;  %v11042_v18 = vld [vmem:[#allocation27_spill] sm:$0xff]  ;;  %11048 = vst [vmem:[#allocation29_spill] sm:$0xff] %v8514_v58 }
 0x716   :  { %1413 = vmatprep.subr.mxu1 %v8097_v49  ;;  %1512 = vmatprep.subr.mxu0 %v8230_v17  ;;  %v11037_v49 = vld [vmem:[#allocation42_spill] sm:$0xff] }
 0x717   :  { %1414 = vmatpush1.msra.mxu1 %v8101_v50  ;;  %1513 = vmatpush1.msra.mxu0 %v8234_v41  ;;  %v979_v50 = vmul.f32 0.5, %v7125_v63  ;;  %7126 = vtanh.f32 %v1192_v47 }
 0x718   :  { %1415 = vmatprep.subr.mxu1 %v8104_v51  ;;  %1514 = vmatprep.subr.mxu0 %v8238_v43  ;;  %v11038_v51 = vld [vmem:[#allocation25_spill] sm:$0xff] }
 0x719   :  { %1416 = vmatpush1.msra.mxu1 %v8108_v48  ;;  %1515 = vmatpush1.msra.mxu0 %v8242_v42  ;;  %v11039_v48 = vld [vmem:[#allocation43_spill] sm:$0xff] }
 0x71a   :  { %1417 = vmatprep.subr.mxu1 %v8112_v52  ;;  %1516 = vmatprep.subr.mxu0 %v8246_v40  ;;  %v11040_v52 = vld [vmem:[#allocation44_spill] sm:$0xff] }
 0x71b   :  { %1418 = vmatpush1.msra.mxu1 %v8116_v53  ;;  %1517 = vmatpush1.msra.mxu0 %v8250_v39  ;;  %v11041_v53 = vld [vmem:[#allocation26_spill] sm:$0xff] }
 0x71c   :  { %1419 = vmatprep.subr.mxu1 %v8120_v54  ;;  %1518 = vmatprep.subr.mxu0 %v8254_v37  ;;  %v981_v54 = vadd.f32 0.5, %v979_v50  ;;  %v8520_v50 = vld [vmem:[#allocation6 + $0x180] sm:$0xff] }
 0x71d   :  { %1420 = vmatpush1.msra.mxu1 %v8124_v55  ;;  %1519 = vmatpush1.msra.mxu0 %v11037_v49  ;;  %11049 = vst [vmem:[#allocation42_spill] sm:$0xff] %v8520_v50 }
 0x71e   :  { %1421 = vmatprep.subr.mxu1 %v11038_v51  ;;  %1520 = vmatprep.subr.mxu0 %v11039_v48 }
 0x71f   :  { %1422 = vmatpush1.msra.mxu1 %v8132_v59  ;;  %1521 = vmatpush1.msra.mxu0 %v11040_v52  ;;  %v8458_v59 = vld [vmem:[#allocation6 + $0x1f8] sm:$0xff] }
 0x720   :  { %1423 = vmatprep.subr.mxu1 %v11041_v53  ;;  %1522 = vmatprep.subr.mxu0 %v8270_v25  ;;  %v8526_v53 = vld [vmem:[#allocation8 + $0x1f8] sm:$0xff] }
 0x721   :  { %1424 = vmatpush1.msra.mxu1 %v8140_v11  ;;  %1523 = vmatpush1.msra.mxu0 %v8274_v27  ;;  %v8466_v11 = vld [vmem:[#allocation6 + $0x1e8] sm:$0xff]  ;;  %11050 = vst [vmem:[#allocation25_spill] sm:$0xff] %v8526_v53 }
 0x722   :  { %v997_v55 = vpop.permute.xlu0 %996  ;;  %1425 = vmatprep.subr.mxu1 %v8144_v21  ;;  %1524 = vmatprep.subr.mxu0 %v8278_v19  ;;  %v11044_v21 = vld [vmem:[#allocation46_spill] sm:$0xff] }
 0x723   :  { %v999_v22 = vmul.f32 %v997_v55, %v981_v54  ;;  %1426 = vmatpush1.msra.mxu1 %v11042_v18  ;;  %1459 = vmatprep.mubr.f32.mxu1 %v11018_v44  ;;  %v8530_v54 = vld [vmem:[#allocation8 + $0x1f0] sm:$0xff]  ;;  %v8534_v55 = vld [vmem:[#allocation8 + $0x1e8] sm:$0xff]  ;;  %v8541_v18 = vld [vmem:[#allocation8 + $0x1d8] sm:$0xff] }
 0x724   :  { %1525 = vmatpush1.msra.mxu0 %v11043_v34  ;;  %1558 = vmatprep.mubr.f32.mxu0 %v11018_v44  ;;  %v7127_v20 = vpop.eup %7126  ;;  %11051 = vst [vmem:[#allocation43_spill] sm:$0xff] %v8530_v54  ;;  %11052 = vst [vmem:[#allocation44_spill] sm:$0xff] %v8534_v55 }
 0x725   :  { %6976 = vmatmul.mubr.msk.f32.vlgmr.msra.gmra.mxu1 %vm128_vm0, %v999_v22  ;;  %6977 = vmatmul.mubr.msk.f32.vlgmr.msra.gmra.mxu0 %vm128_vm0, %v999_v22  ;;  %v1196_v30 = vmul.f32 0.5, %v7127_v20  ;;  %v8537_v22 = vld [vmem:[#allocation8 + $0x1e0] sm:$0xff]  ;;  %11054 = vst [vmem:[#allocation27_spill] sm:$0xff] %v8541_v18  ;;  %v8543_v20 = vld [vmem:[#allocation8 + $0x78] sm:$0xff] }
 0x726   :  { %1584 = vmatprep.subr.mxu1 %v11044_v21  ;;  %1713 = vmatprep.subr.mxu0 %v8458_v59  ;;  %11053 = vst [vmem:[#allocation26_spill] sm:$0xff] %v8537_v22  ;;  %11055 = vst [vmem:[#allocation45_spill] sm:$0xff] %v8543_v20 }
 0x727   :  { %1585 = vmatpush1.msra.mxu1 %v8294_v0  ;;  %1714 = vmatpush1.msra.mxu0 %v8462_v28  ;;  %v1198_v63 = vadd.f32 0.5, %v1196_v30  ;;  %v8547_v30 = vld [vmem:[#allocation8 + $0x1d0] sm:$0xff] }
 0x728   :  { %1586 = vmatprep.subr.mxu1 %v8298_v31  ;;  %1715 = vmatprep.subr.mxu0 %v8466_v11  ;;  %11056 = vst [vmem:[#allocation46_spill] sm:$0xff] %v8547_v30 }
 0x729   :  { %1587 = vmatpush1.msra.mxu1 %v8301_v46  ;;  %1716 = vmatpush1.msra.mxu0 %v8470_v13 }
 0x72a   :  { %1588 = vmatprep.subr.mxu1 %v8305_v23  ;;  %1717 = vmatprep.subr.mxu0 %v8474_v3 }
 0x72b   :  { %1589 = vmatpush1.msra.mxu1 %v8309_v56  ;;  %1718 = vmatpush1.msra.mxu0 %v8478_v60 }
 0x72c   :  { %1590 = vmatprep.subr.mxu1 %v8313_v45  ;;  %1719 = vmatprep.subr.mxu0 %v8482_v5 }
 0x72d   :  { %1591 = vmatpush1.msra.mxu1 %v8317_v1  ;;  %1720 = vmatpush1.msra.mxu0 %v8486_v9 }
 0x72e   :  { %1592 = vmatprep.subr.mxu1 %v8321_v2  ;;  %1721 = vmatprep.subr.mxu0 %v8490_v32 }
 0x72f   :  { %1593 = vmatpush1.msra.mxu1 %v8325_v4  ;;  %1722 = vmatpush1.msra.mxu0 %v8494_v29 }
 0x730   :  { %1594 = vmatprep.subr.mxu1 %v8329_v6  ;;  %1723 = vmatprep.subr.mxu0 %v8498_v15 }
 0x731   :  { %1595 = vmatpush1.msra.mxu1 %v8333_v8  ;;  %1724 = vmatpush1.msra.mxu0 %v8502_v61 }
 0x732   :  { %1596 = vmatprep.subr.mxu1 %v8337_v10  ;;  %1725 = vmatprep.subr.mxu0 %v8506_v35  ;;  %v11104_v35 = vld [vmem:[#allocation22_spill] sm:$0xff] }
 0x733   :  { %v1214_v47 = vpop.permute.xlu1 %1213  ;;  %1597 = vmatpush1.msra.mxu1 %v8341_v12  ;;  %1726 = vmatpush1.msra.mxu0 %v8510_v24 }
 0x734   :  { %v1216_v51 = vmul.f32 %v1214_v47, %v1198_v63  ;;  %1598 = vmatprep.subr.mxu1 %v8345_v14  ;;  %1727 = vmatprep.subr.mxu0 %v8514_v58  ;;  %v8549_v63 = vld [vmem:[#allocation8 + $0x70] sm:$0xff]  ;;  %v8553_v47 = vld [vmem:[#allocation8 + $0x1c8] sm:$0xff] }
 0x735   :  { %1599 = vmatpush1.msra.mxu1 %v8349_v16  ;;  %1632 = vmatprep.mubr.f32.mxu1 %v11018_v44  ;;  %11057 = vst [vmem:[#allocation51_spill] sm:$0xff] %v8549_v63  ;;  %11058 = vst [vmem:[#allocation52_spill] sm:$0xff] %v8553_v47  ;;  %v11101_v16 = vld [vmem:[#allocation40_spill] sm:$0xff]  ;;  %v11102_v14 = vld [vmem:[#allocation41_spill] sm:$0xff] }
 0x736   :  { %1728 = vmatpush1.msra.mxu0 %v8520_v50  ;;  %1761 = vmatprep.mubr.f32.mxu0 %v11018_v44 }
 0x737   :  { %6978 = vmatmul.mubr.msk.f32.vlgmr.msra.gmra.mxu1 %vm128_vm0, %v1216_v51  ;;  %6979 = vmatmul.mubr.msk.f32.vlgmr.msra.gmra.mxu0 %vm128_vm0, %v1216_v51  ;;  %v8555_v51 = vld [vmem:[#allocation8 + $0x68] sm:$0xff] }
 0x738   :  { %1801 = vmatprep.subr.mxu1 %v8526_v53  ;;  %1849 = vmatprep.mubr.f32.mxu1 %v11018_v44  ;;  %11059 = vst [vmem:[#allocation53_spill] sm:$0xff] %v8555_v51 }
 0x739   :  { %1802 = vmatpush1.msra.mxu1 %v8530_v54  ;;  %1905 = vmatprep.subr.mxu0 %v8543_v20  ;;  %v8559_v54 = vld [vmem:[#allocation8 + $0x1c0] sm:$0xff] }
 0x73a   :  { %1803 = vmatprep.subr.mxu1 %v8534_v55  ;;  %1906 = vmatpush1.msra.mxu0 %v8549_v63  ;;  %11060 = vst [vmem:[#allocation54_spill] sm:$0xff] %v8559_v54  ;;  %v8561_v20 = vld [vmem:[#allocation8 + $0x60] sm:$0xff]  ;;  %v8565_v55 = vld [vmem:[#allocation8 + $0x1b8] sm:$0xff] }
 0x73b   :  { %1804 = vmatpush1.msra.mxu1 %v8537_v22  ;;  %1907 = vmatprep.subr.mxu0 %v8555_v51  ;;  %11061 = vst [vmem:[#allocation55_spill] sm:$0xff] %v8561_v20  ;;  %11062 = vst [vmem:[#allocation56_spill] sm:$0xff] %v8565_v55  ;;  %v8567_v63 = vld [vmem:[#allocation8 + $0x58] sm:$0xff]  ;;  %v8571_v22 = vld [vmem:[#allocation8 + $0x1b0] sm:$0xff] }
 0x73c   :  { %1805 = vmatprep.subr.mxu1 %v8541_v18  ;;  %1908 = vmatpush1.msra.mxu0 %v8561_v20  ;;  %11063 = vst [vmem:[#allocation57_spill] sm:$0xff] %v8567_v63  ;;  %11064 = vst [vmem:[#allocation58_spill] sm:$0xff] %v8571_v22  ;;  %v8573_v51 = vld [vmem:[#allocation8 + $0x50] sm:$0xff]  ;;  %v8577_v18 = vld [vmem:[#allocation8 + $0x1a8] sm:$0xff] }
 0x73d   :  { %1806 = vmatpush1.msra.mxu1 %v8547_v30  ;;  %1909 = vmatprep.subr.mxu0 %v8567_v63  ;;  %11065 = vst [vmem:[#allocation59_spill] sm:$0xff] %v8573_v51  ;;  %11066 = vst [vmem:[#allocation60_spill] sm:$0xff] %v8577_v18  ;;  %v8579_v20 = vld [vmem:[#allocation8 + $0x48] sm:$0xff]  ;;  %v8583_v30 = vld [vmem:[#allocation8 + $0x1a0] sm:$0xff] }
 0x73e   :  { %1807 = vmatprep.subr.mxu1 %v8553_v47  ;;  %1910 = vmatpush1.msra.mxu0 %v8573_v51  ;;  %11067 = vst [vmem:[#allocation61_spill] sm:$0xff] %v8579_v20  ;;  %11068 = vst [vmem:[#allocation62_spill] sm:$0xff] %v8583_v30  ;;  %v8585_v63 = vld [vmem:[#allocation8 + $0x40] sm:$0xff]  ;;  %v8589_v47 = vld [vmem:[#allocation8 + $0x198] sm:$0xff] }
 0x73f   :  { %1808 = vmatpush1.msra.mxu1 %v8559_v54  ;;  %1911 = vmatprep.subr.mxu0 %v8579_v20  ;;  %11069 = vst [vmem:[#allocation63_spill] sm:$0xff] %v8585_v63  ;;  %11070 = vst [vmem:[#allocation64_spill] sm:$0xff] %v8589_v47  ;;  %v8591_v51 = vld [vmem:[#allocation8 + $0x38] sm:$0xff]  ;;  %v8595_v54 = vld [vmem:[#allocation8 + $0x190] sm:$0xff] }
 0x740   :  { %1809 = vmatprep.subr.mxu1 %v8565_v55  ;;  %1912 = vmatpush1.msra.mxu0 %v8585_v63  ;;  %11071 = vst [vmem:[#allocation65_spill] sm:$0xff] %v8591_v51  ;;  %11072 = vst [vmem:[#allocation66_spill] sm:$0xff] %v8595_v54  ;;  %v8597_v20 = vld [vmem:[#allocation8 + $0x30] sm:$0xff]  ;;  %v8601_v55 = vld [vmem:[#allocation8 + $0x188] sm:$0xff] }
 0x741   :  { %1810 = vmatpush1.msra.mxu1 %v8571_v22  ;;  %1913 = vmatprep.subr.mxu0 %v8591_v51  ;;  %11073 = vst [vmem:[#allocation67_spill] sm:$0xff] %v8597_v20  ;;  %11074 = vst [vmem:[#allocation68_spill] sm:$0xff] %v8601_v55  ;;  %v8603_v63 = vld [vmem:[#allocation8 + $0x28] sm:$0xff]  ;;  %v8607_v22 = vld [vmem:[#allocation8 + $0x180] sm:$0xff] }
 0x742   :  { %1811 = vmatprep.subr.mxu1 %v8577_v18  ;;  %1914 = vmatpush1.msra.mxu0 %v8597_v20  ;;  %11075 = vst [vmem:[#allocation69_spill] sm:$0xff] %v8603_v63  ;;  %11076 = vst [vmem:[#allocation70_spill] sm:$0xff] %v8607_v22  ;;  %v8609_v51 = vld [vmem:[#allocation8 + $0x20] sm:$0xff]  ;;  %v8613_v18 = vld [vmem:[#allocation8 + $0x18] sm:$0xff] }
 0x743   :  { %1812 = vmatpush1.msra.mxu1 %v8583_v30  ;;  %1915 = vmatprep.subr.mxu0 %v8603_v63  ;;  %11077 = vst [vmem:[#allocation71_spill] sm:$0xff] %v8609_v51  ;;  %11078 = vst [vmem:[#allocation72_spill] sm:$0xff] %v8613_v18  ;;  %v8617_v20 = vld [vmem:[#allocation8 + $0x10] sm:$0xff]  ;;  %v8621_v63 = vld [vmem:[#allocation8 + $0x8] sm:$0xff] }
 0x744   :  { %1813 = vmatprep.subr.mxu1 %v8589_v47  ;;  %1916 = vmatpush1.msra.mxu0 %v8609_v51  ;;  %11079 = vst [vmem:[#allocation73_spill] sm:$0xff] %v8617_v20  ;;  %11080 = vst [vmem:[#allocation74_spill] sm:$0xff] %v8621_v63  ;;  %v8625_v51 = vld [vmem:[#allocation6 + $0xf8] sm:$0xff] }
 0x745   :  { %1814 = vmatpush1.msra.mxu1 %v8595_v54  ;;  %1917 = vmatprep.subr.mxu0 %v8613_v18  ;;  %11081 = vst [vmem:[#allocation75_spill] sm:$0xff] %v8625_v51  ;;  %v8628_v54 = vld [vmem:[#allocation6 + $0xf0] sm:$0xff]  ;;  %v8631_v18 = vld [vmem:[#allocation8] sm:$0xff] }
 0x746   :  { %1815 = vmatprep.subr.mxu1 %v8601_v55  ;;  %1918 = vmatpush1.msra.mxu0 %v8617_v20  ;;  %11082 = vst [vmem:[#allocation76_spill] sm:$0xff] %v8628_v54  ;;  %11083 = vst [vmem:[#allocation77_spill] sm:$0xff] %v8631_v18  ;;  %v8634_v20 = vld [vmem:[#allocation6 + $0xe8] sm:$0xff] }
 0x747   :  { %1816 = vmatpush1.msra.mxu1 %v8607_v22  ;;  %1919 = vmatprep.subr.mxu0 %v8621_v63  ;;  %11084 = vst [vmem:[#allocation78_spill] sm:$0xff] %v8634_v20  ;;  %v8638_v63 = vld [vmem:[#allocation6 + $0xe0] sm:$0xff] }
 0x748   :  { %1850 = vmatmul.mubr.f32.vlgmr.msra.gmra.mxu1 %v11018_v44  ;;  %2004 = vmatprep.subr.mxu1 %v8625_v51  ;;  %11085 = vst [vmem:[#allocation79_spill] sm:$0xff] %v8638_v63  ;;  %v8642_v51 = vld [vmem:[#allocation6 + $0xd8] sm:$0xff]  ;;  %v8654_v22 = vld [vmem:[#allocation6 + $0xc0] sm:$0xff] }
 0x749   :  { %2005 = vmatpush1.msra.mxu1 %v8628_v54  ;;  %1920 = vmatpush1.msra.mxu0 %v8631_v18  ;;  %11086 = vst [vmem:[#allocation80_spill] sm:$0xff] %v8642_v51  ;;  %v8645_v54 = vld [vmem:[#allocation8 + $0xf8] sm:$0xff]  ;;  %v8648_v18 = vld [vmem:[#allocation6 + $0xd0] sm:$0xff]  ;;  %11090 = vst [vmem:[#allocation84_spill] sm:$0xff] %v8654_v22 }
 0x74a   :  { %2006 = vmatprep.subr.mxu1 %v8634_v20  ;;  %1953 = vmatprep.mubr.f32.mxu0 %v11018_v44  ;;  %11087 = vst [vmem:[#allocation81_spill] sm:$0xff] %v8645_v54  ;;  %11088 = vst [vmem:[#allocation82_spill] sm:$0xff] %v8648_v18  ;;  %v8651_v20 = vld [vmem:[#allocation6 + $0xc8] sm:$0xff] }
 0x74b   :  { %2007 = vmatpush1.msra.mxu1 %v8638_v63  ;;  %2052 = vmatprep.mubr.f32.mxu1 %v11018_v44  ;;  %11089 = vst [vmem:[#allocation83_spill] sm:$0xff] %v8651_v20  ;;  %v8657_v63 = vld [vmem:[#allocation6 + $0xb8] sm:$0xff] }
 0x74c   :  { %2008 = vmatprep.subr.mxu1 %v8642_v51  ;;  %2078 = vmatprep.subr.mxu0 %v8645_v54  ;;  %11091 = vst [vmem:[#allocation85_spill] sm:$0xff] %v8657_v63  ;;  %v8660_v51 = vld [vmem:[#allocation6 + $0xb0] sm:$0xff]  ;;  %v8663_v54 = vld [vmem:[#allocation6 + $0xa8] sm:$0xff] }
 0x74d   :  { %2009 = vmatpush1.msra.mxu1 %v8648_v18  ;;  %11092 = vst [vmem:[#allocation86_spill] sm:$0xff] %v8660_v51  ;;  %11093 = vst [vmem:[#allocation87_spill] sm:$0xff] %v8663_v54  ;;  %v8666_v18 = vld [vmem:[#allocation6 + $0xa0] sm:$0xff] }
 0x74e   :  { %2010 = vmatprep.subr.mxu1 %v8651_v20  ;;  %11094 = vst [vmem:[#allocation88_spill] sm:$0xff] %v8666_v18  ;;  %v8669_v20 = vld [vmem:[#allocation6 + $0x98] sm:$0xff] }
 0x74f   :  { %2011 = vmatpush1.msra.mxu1 %v8654_v22  ;;  %11095 = vst [vmem:[#allocation89_spill] sm:$0xff] %v8669_v20  ;;  %v8672_v22 = vld [vmem:[#allocation6 + $0x90] sm:$0xff] }
 0x750   :  { %2012 = vmatprep.subr.mxu1 %v8657_v63  ;;  %11096 = vst [vmem:[#allocation90_spill] sm:$0xff] %v8672_v22  ;;  %v8675_v63 = vld [vmem:[#allocation6 + $0x88] sm:$0xff] }
 0x751   :  { %2013 = vmatpush1.msra.mxu1 %v8660_v51  ;;  %11097 = vst [vmem:[#allocation91_spill] sm:$0xff] %v8675_v63  ;;  %v8678_v51 = vld [vmem:[#allocation6 + $0x80] sm:$0xff] }
 0x752   :  { %2014 = vmatprep.subr.mxu1 %v8663_v54  ;;  %11098 = vst [vmem:[#allocation92_spill] sm:$0xff] %v8678_v51 }
 0x753   :  { %2015 = vmatpush1.msra.mxu1 %v8666_v18  ;;  %v11099_v18 = vld [vmem:[#allocation30_spill] sm:$0xff] }
 0x754   :  { %2016 = vmatprep.subr.mxu1 %v8669_v20  ;;  %v238_v54 = vadd.f32 %v11099_v18, %v11028_v26  ;;  %v11100_v20 = vld [vmem:[#allocation31_spill] sm:$0xff] }
 0x755   :  { %2017 = vmatpush1.msra.mxu1 %v8672_v22  ;;  %v240_v47 = vadd.f32 %v11100_v20, %v11030_v57 }
 0x756   :  { %2018 = vmatprep.subr.mxu1 %v8675_v63 }
 0x757   :  { %2019 = vmatpush1.msra.mxu1 %v8678_v51 }
 0x758   :  { %2177 = vmatprep.subr.mxu1 %v8220_v38 }
 0x7d4   :  { %v1288_v55 = vpop.f32.mrf.mxu1  ;;  %v1387_v63 = vpop.f32.mrf.mxu0 }
 0x7d5   :  { %v1293_v30 = vadd.f32 %v1288_v55, %v238_v54  ;;  %v1388_v58 = vadd.f32 %v1387_v63, %v11101_v16  ;;  %v11103_v55 = vld [vmem:[#allocation21_spill] sm:$0xff] }
 0x7d6   :  { %v1290_v53 = vpop.f32.mrf.mxu1  ;;  %v1389_v50 = vpop.f32.mrf.mxu0 }
 0x7d7   :  { %v8686_v22 = vadd.f32 %v1290_v53, %v240_v47  ;;  %v1390_v38 = vadd.f32 %v1389_v50, %v11102_v14  ;;  %v1685_v50 = vld [vmem:[#allocation9 + $0x6] sm:$0x3] }
 0x7d9   :  { %7128 = vtanh.f32 %v8686_v22 }
 0x7e5   :  { %v1461_v51 = vpop.f32.mrf.mxu1  ;;  %v1560_v53 = vpop.f32.mrf.mxu0 }
 0x7e6   :  { %v1466_v24 = vadd.f32 %v1461_v51, %v1388_v58  ;;  %v7129_v12 = vpop.eup %7128  ;;  %v1561_v20 = vadd.f32 %v1560_v53, %v11103_v55  ;;  %v11105_v51 = vld [vmem:[#allocation17_spill] sm:$0xff] }
 0x7e7   :  { %v1463_v18 = vpop.f32.mrf.mxu1  ;;  %1306 = vrot.lane.b32.xlu0 %v7129_v12, %s7878_s2  ;;  %v1562_v54 = vpop.f32.mrf.mxu0 }
 0x7e8   :  { %v8691_v26 = vadd.f32 %v1463_v18, %v1390_v38  ;;  %v1563_v63 = vadd.f32 %v1562_v54, %v11104_v35  ;;  %v8702_v38 = vrot.slane %v1685_v50, %v11105_v51  ;;  %v11107_v18 = vld [vmem:[#allocation18_spill] sm:$0xff]  ;;  %v1468_v35 = vmul.f32 0.5, %v1466_v24 }
 0x7e9   :  { %v8705_v14 = vrot.slane %v1685_v50, %v11107_v18  ;;  %v1295_v50 = vmul.f32 0.5, %v1293_v30 }
 0x7ea   :  { %7130 = vtanh.f32 %v8691_v26  ;;  %11106 = vst [vmem:[#allocation30_spill] sm:$0xff] %v8702_v38 }
 0x7eb   :  { %11108 = vst [vmem:[#allocation31_spill] sm:$0xff] %v8705_v14 }
 0x7f7   :  { %v1634_v47 = vpop.f32.mrf.mxu1  ;;  %v7131_v57 = vpop.eup %7130 }
 0x7f8   :  { %v1639_v16 = vadd.f32 %v1634_v47, %v1561_v20  ;;  %1479 = vrot.lane.b32.xlu1 %v7131_v57, %s7878_s2  ;;  %v1763_v12 = vpop.f32.mrf.mxu0 }
 0x7f9   :  { %v1636_v10 = vpop.f32.mrf.mxu1  ;;  %v1764_v55 = vadd.f32 %v1763_v12, %v8702_v38 }
 0x7fa   :  { %v8698_v58 = vadd.f32 %v1636_v10, %v1563_v63  ;;  %v1765_v53 = vpop.f32.mrf.mxu0 }
 0x7fb   :  { %v1766_v20 = vadd.f32 %v1765_v53, %v8705_v14 }
 0x7fc   :  { %7132 = vtanh.f32 %v8698_v58 }
 0x808   :  { %v1851_v54 = vpop.f32.mrf.mxu1 }
 0x809   :  { %v1856_v47 = vadd.f32 %v1851_v54, %v1764_v55  ;;  %v7133_v57 = vpop.eup %7132 }
 0x80a   :  { %v1853_v10 = vpop.f32.mrf.mxu1  ;;  %1652 = vrot.lane.b32.xlu0 %v7133_v57, %s7878_s2 }
 0x80b   :  { %v8709_v63 = vadd.f32 %v1853_v10, %v1766_v20  ;;  %v1641_v20 = vmul.f32 0.5, %v1639_v16 }
 0x80d   :  { %7134 = vtanh.f32 %v8709_v63 }
 0x80e   :  { %7136 = vtanh.f32 %v1295_v50 }
 0x80f   :  { %7138 = vtanh.f32 %v1468_v35 }
 0x810   :  { %7140 = vtanh.f32 %v1641_v20 }
 0x81a   :  { %v7135_v51 = vpop.eup %7134 }
 0x81b   :  { %1869 = vrot.lane.b32.xlu1 %v7135_v51, %s7878_s2  ;;  %v7137_v18 = vpop.eup %7136  ;;  %v1858_v51 = vmul.f32 0.5, %v1856_v47 }
 0x81c   :  { %v1299_v12 = vmul.f32 0.5, %v7137_v18  ;;  %v7139_v54 = vpop.eup %7138 }
 0x81d   :  { %v1472_v10 = vmul.f32 0.5, %v7139_v54  ;;  %v7141_v30 = vpop.eup %7140  ;;  %7142 = vtanh.f32 %v1858_v51 }
 0x81e   :  { %v1301_v38 = vadd.f32 0.5, %v1299_v12  ;;  %v1645_v50 = vmul.f32 0.5, %v7141_v30 }
 0x81f   :  { %v1474_v57 = vadd.f32 0.5, %v1472_v10 }
 0x820   :  { %v1647_v24 = vadd.f32 0.5, %v1645_v50 }
 0x821   :  { %v1477_v10 = vmul.f32 %v1474_v57, %v8415_v7 }
 0x82a   :  { %v7143_v12 = vpop.eup %7142 }
 0x859   :  { %v1307_v53 = vpop.permute.xlu0 %1306 }
 0x85a   :  { %v1309_v55 = vmul.f32 %v1307_v53, %v1301_v38  ;;  %v1862_v53 = vmul.f32 0.5, %v7143_v12 }
 0x85c   :  { %1311 = vrot.lane.b32.xlu0 %v1309_v55, %s7878_s2  ;;  %v1864_v55 = vadd.f32 0.5, %v1862_v53 }
 0x85e   :  { %v1867_v12 = vmul.f32 0.0, %v1864_v55 }
 0x86a   :  { %v1480_v14 = vpop.permute.xlu1 %1479 }
 0x86b   :  { %v1482_v61 = vmul.f32 %v1480_v14, %v1474_v57  ;;  %v1304_v14 = vmul.f32 %v1301_v38, %v8410_v62 }
 0x86d   :  { %1484 = vrot.lane.b32.xlu1 %v1482_v61, %s7878_s2 }
 0x87c   :  { %v1653_v35 = vpop.permute.xlu0 %1652 }
 0x87d   :  { %v1655_v18 = vmul.f32 %v1653_v35, %v1647_v24  ;;  %v1650_v35 = vmul.f32 %v1647_v24, %v8419_v36  ;;  %v1296_v36 = vmul.f32 0.5, %v8686_v22  ;;  %v8745_v22 = vld [vmem:[#allocation8 + $0xe8] sm:$0xff] }
 0x87f   :  { %1657 = vrot.lane.b32.xlu0 %v1655_v18, %s7878_s2 }
 0x88d   :  { %v1870_v16 = vpop.permute.xlu1 %1869 }
 0x88e   :  { %v1872_v54 = vmul.f32 %v1870_v16, %v1864_v55  ;;  %v1469_v16 = vmul.f32 0.5, %v8691_v26  ;;  %v8749_v26 = vld [vmem:[#allocation8 + $0xe0] sm:$0xff] }
 0x890   :  { %1874 = vrot.lane.b32.xlu1 %v1872_v54, %s7878_s2 }
 0x8ce   :  { %v1312_v20 = vpop.permute.xlu0 %1311 }
 0x8cf   :  { %v8719_v61 = vadd.f32 %v1312_v20, %v1304_v14 }
 0x8d1   :  { %7144 = vtanh.f32 %v8719_v61 }
 0x8de   :  { %v7145_v47 = vpop.eup %7144 }
 0x8df   :  { %v1485_v30 = vpop.permute.xlu1 %1484  ;;  %1317 = vrot.lane.b32.xlu0 %v7145_v47, %s7878_s2  ;;  %v8741_v47 = vld [vmem:[#allocation8 + $0xf0] sm:$0xff] }
 0x8e0   :  { %v8724_v51 = vadd.f32 %v1485_v30, %v1477_v10  ;;  %v8753_v10 = vld [vmem:[#allocation8 + $0xd8] sm:$0xff]  ;;  %v8757_v30 = vld [vmem:[#allocation8 + $0xd0] sm:$0xff] }
 0x8e2   :  { %7146 = vtanh.f32 %v8724_v51 }
 0x8ef   :  { %v7147_v50 = vpop.eup %7146 }
 0x8f0   :  { %1490 = vrot.lane.b32.xlu1 %v7147_v50, %s7878_s2  ;;  %v8766_v50 = vld [vmem:[#allocation8 + $0xc0] sm:$0xff] }
 0x8f1   :  { %v1658_v62 = vpop.permute.xlu0 %1657 }
 0x8f2   :  { %v8729_v38 = vadd.f32 %v1658_v62, %v1650_v35  ;;  %v8790_v35 = vld [vmem:[#allocation8 + $0x90] sm:$0xff]  ;;  %v8794_v62 = vld [vmem:[#allocation8 + $0x88] sm:$0xff] }
 0x8f4   :  { %7148 = vtanh.f32 %v8729_v38 }
 0x901   :  { %v7149_v18 = vpop.eup %7148 }
 0x902   :  { %v1875_v7 = vpop.permute.xlu1 %1874  ;;  %1663 = vrot.lane.b32.xlu0 %v7149_v18, %s7878_s2  ;;  %v8798_v18 = vld [vmem:[#allocation8 + $0x80] sm:$0xff] }
 0x903   :  { %v8733_v57 = vadd.f32 %v1875_v7, %v1867_v12  ;;  %v11123_v7 = vld [vmem:[#allocation46_spill] sm:$0xff] }
 0x905   :  { %7150 = vtanh.f32 %v8733_v57 }
 0x906   :  { %7152 = vtanh.f32 %v1296_v36  ;;  %v11124_v36 = vld [vmem:[#allocation52_spill] sm:$0xff] }
 0x907   :  { %7154 = vtanh.f32 %v1469_v16  ;;  %v11125_v16 = vld [vmem:[#allocation54_spill] sm:$0xff] }
 0x912   :  { %v7151_v53 = vpop.eup %7150 }
 0x913   :  { %1880 = vrot.lane.b32.xlu1 %v7151_v53, %s7878_s2  ;;  %v7153_v24 = vpop.eup %7152  ;;  %v8871_v53 = vld [vmem:[#allocation6 + $0x238] sm:$0xff] }
 0x914   :  { %v1300_v54 = vmul.f32 0.5, %v7153_v24  ;;  %v8875_v24 = vld [vmem:[#allocation6 + $0x230] sm:$0xff] }
 0x916   :  { %v1302_v14 = vadd.f32 0.5, %v1300_v54  ;;  %v8879_v54 = vld [vmem:[#allocation6 + $0x228] sm:$0xff] }
 0x951   :  { %v1318_v55 = vpop.permute.xlu0 %1317 }
 0x952   :  { %v1320_v20 = vmul.f32 %v1318_v55, %v1302_v14  ;;  %v11126_v14 = vld [vmem:[#allocation56_spill] sm:$0xff]  ;;  %v8883_v55 = vld [vmem:[#allocation6 + $0x220] sm:$0xff] }
 0x954   :  { %6980 = vmatmul.mubr.msk.f32.vlgmr.msra.gmra.mxu0 %vm128_vm0, %v1320_v20  ;;  %6981 = vmatmul.mubr.msk.f32.vlgmr.msra.gmra.mxu1 %vm128_vm0, %v1320_v20 }
 0x955   :  { %2079 = vmatpush1.msra.mxu0 %v8741_v47  ;;  %2178 = vmatpush1.msra.mxu1 %v8228_v33  ;;  %v7155_v33 = vpop.eup %7154 }
 0x956   :  { %2080 = vmatprep.subr.mxu0 %v8745_v22  ;;  %2179 = vmatprep.subr.mxu1 %v8230_v17  ;;  %v8761_v17 = vld [vmem:[#allocation8 + $0xc8] sm:$0xff] }
 0x957   :  { %2081 = vmatpush1.msra.mxu0 %v8749_v26  ;;  %2180 = vmatpush1.msra.mxu1 %v8234_v41  ;;  %v1642_v41 = vmul.f32 0.5, %v8698_v58  ;;  %v8778_v58 = vld [vmem:[#allocation8 + $0xa8] sm:$0xff] }
 0x958   :  { %2082 = vmatprep.subr.mxu0 %v8753_v10  ;;  %2181 = vmatprep.subr.mxu1 %v8238_v43  ;;  %v8770_v43 = vld [vmem:[#allocation8 + $0xb8] sm:$0xff] }
 0x959   :  { %2083 = vmatpush1.msra.mxu0 %v8757_v30  ;;  %2182 = vmatpush1.msra.mxu1 %v8242_v42  ;;  %v8774_v42 = vld [vmem:[#allocation8 + $0xb0] sm:$0xff]  ;;  %7156 = vtanh.f32 %v1642_v41  ;;  %v8887_v41 = vld [vmem:[#allocation6 + $0x218] sm:$0xff] }
 0x95a   :  { %2084 = vmatprep.subr.mxu0 %v8761_v17  ;;  %2183 = vmatprep.subr.mxu1 %v8246_v40  ;;  %v1473_v40 = vmul.f32 0.5, %v7155_v33  ;;  %v11127_v33 = vld [vmem:[#allocation58_spill] sm:$0xff] }
 0x95b   :  { %2085 = vmatpush1.msra.mxu0 %v8766_v50  ;;  %2184 = vmatpush1.msra.mxu1 %v8250_v39  ;;  %v8782_v39 = vld [vmem:[#allocation8 + $0xa0] sm:$0xff] }
 0x95c   :  { %2086 = vmatprep.subr.mxu0 %v8770_v43  ;;  %2185 = vmatprep.subr.mxu1 %v8254_v37  ;;  %v8786_v37 = vld [vmem:[#allocation8 + $0x98] sm:$0xff] }
 0x95d   :  { %2087 = vmatpush1.msra.mxu0 %v8774_v42  ;;  %2186 = vmatpush1.msra.mxu1 %v11037_v49  ;;  %v1475_v49 = vadd.f32 0.5, %v1473_v40  ;;  %v11128_v40 = vld [vmem:[#allocation60_spill] sm:$0xff] }
 0x95e   :  { %2088 = vmatprep.subr.mxu0 %v8778_v58  ;;  %2187 = vmatprep.subr.mxu1 %v11039_v48 }
 0x95f   :  { %2089 = vmatpush1.msra.mxu0 %v8782_v39  ;;  %2188 = vmatpush1.msra.mxu1 %v11040_v52 }
 0x960   :  { %2090 = vmatprep.subr.mxu0 %v8786_v37  ;;  %2189 = vmatprep.subr.mxu1 %v8270_v25 }
 0x961   :  { %2091 = vmatpush1.msra.mxu0 %v8790_v35  ;;  %2190 = vmatpush1.msra.mxu1 %v8274_v27  ;;  %v1859_v27 = vmul.f32 0.5, %v8709_v63  ;;  %v8867_v63 = vld [vmem:[#allocation6 + $0x240] sm:$0xff] }
 0x962   :  { %v1491_v48 = vpop.permute.xlu1 %1490  ;;  %2092 = vmatprep.subr.mxu0 %v8794_v62  ;;  %2191 = vmatprep.subr.mxu1 %v8278_v19  ;;  %v11111_v19 = vld [vmem:[#allocation24_spill] sm:$0xff] }
 0x963   :  { %v1493_v52 = vmul.f32 %v1491_v48, %v1475_v49  ;;  %2093 = vmatpush1.msra.mxu0 %v8798_v18  ;;  %2126 = vmatprep.mubr.f32.mxu0 %v11018_v44  ;;  %7158 = vtanh.f32 %v1859_v27  ;;  %v8891_v49 = vld [vmem:[#allocation6 + $0x210] sm:$0xff]  ;;  %v11129_v48 = vld [vmem:[#allocation62_spill] sm:$0xff] }
 0x964   :  { %2192 = vmatpush1.msra.mxu1 %v11043_v34  ;;  %2225 = vmatprep.mubr.f32.mxu1 %v11018_v44  ;;  %v11117_v34 = vld [vmem:[#allocation42_spill] sm:$0xff] }
 0x965   :  { %6982 = vmatmul.mubr.msk.f32.vlgmr.msra.gmra.mxu0 %vm128_vm0, %v1493_v52  ;;  %6983 = vmatmul.mubr.msk.f32.vlgmr.msra.gmra.mxu1 %vm128_vm0, %v1493_v52  ;;  %v8895_v52 = vld [vmem:[#allocation6 + $0x208] sm:$0xff] }
 0x966   :  { %2251 = vmatprep.subr.mxu0 %v11044_v21  ;;  %2350 = vmatprep.subr.mxu1 %v8458_v59  ;;  %v7157_v25 = vpop.eup %7156  ;;  %v11116_v59 = vld [vmem:[#allocation50_spill] sm:$0xff]  ;;  %v11118_v21 = vld [vmem:[#allocation25_spill] sm:$0xff] }
 0x967   :  { %2252 = vmatpush1.msra.mxu0 %v8294_v0  ;;  %2351 = vmatpush1.msra.mxu1 %v8462_v28  ;;  %v8843_v28 = vld [vmem:[#allocation6 + $0x270] sm:$0xff] }
 0x968   :  { %2253 = vmatprep.subr.mxu0 %v8298_v31  ;;  %2352 = vmatprep.subr.mxu1 %v8466_v11  ;;  %v11112_v31 = vld [vmem:[#allocation48_spill] sm:$0xff] }
 0x969   :  { %2254 = vmatpush1.msra.mxu0 %v8301_v46  ;;  %2353 = vmatpush1.msra.mxu1 %v8470_v13  ;;  %v11113_v46 = vld [vmem:[#allocation28_spill] sm:$0xff]  ;;  %v8851_v13 = vld [vmem:[#allocation6 + $0x260] sm:$0xff] }
 0x96a   :  { %2255 = vmatprep.subr.mxu0 %v8305_v23  ;;  %2354 = vmatprep.subr.mxu1 %v8474_v3  ;;  %v11109_v23 = vld [vmem:[#allocation23_spill] sm:$0xff] }
 0x96b   :  { %2256 = vmatpush1.msra.mxu0 %v8309_v56  ;;  %2355 = vmatpush1.msra.mxu1 %v8478_v60  ;;  %v1646_v56 = vmul.f32 0.5, %v7157_v25  ;;  %v8847_v11 = vld [vmem:[#allocation6 + $0x268] sm:$0xff]  ;;  %v8855_v60 = vld [vmem:[#allocation6 + $0x258] sm:$0xff] }
 0x96c   :  { %2257 = vmatprep.subr.mxu0 %v8313_v45  ;;  %2356 = vmatprep.subr.mxu1 %v8482_v5  ;;  %v11119_v3 = vld [vmem:[#allocation43_spill] sm:$0xff]  ;;  %v11120_v5 = vld [vmem:[#allocation44_spill] sm:$0xff] }
 0x96d   :  { %2258 = vmatpush1.msra.mxu0 %v8317_v1  ;;  %2357 = vmatpush1.msra.mxu1 %v8486_v9  ;;  %v11110_v1 = vld [vmem:[#allocation47_spill] sm:$0xff]  ;;  %v1648_v0 = vadd.f32 0.5, %v1646_v56  ;;  %v8859_v9 = vld [vmem:[#allocation6 + $0x250] sm:$0xff] }
 0x96e   :  { %2259 = vmatprep.subr.mxu0 %v8321_v2  ;;  %2358 = vmatprep.subr.mxu1 %v8490_v32  ;;  %v11114_v2 = vld [vmem:[#allocation49_spill] sm:$0xff]  ;;  %v11121_v32 = vld [vmem:[#allocation26_spill] sm:$0xff]  ;;  %v11130_v25 = vld [vmem:[#allocation64_spill] sm:$0xff] }
 0x96f   :  { %2260 = vmatpush1.msra.mxu0 %v8325_v4  ;;  %2359 = vmatpush1.msra.mxu1 %v8494_v29  ;;  %v11115_v4 = vld [vmem:[#allocation29_spill] sm:$0xff]  ;;  %v8863_v29 = vld [vmem:[#allocation6 + $0x248] sm:$0xff] }
 0x970   :  { %2261 = vmatprep.subr.mxu0 %v8329_v6  ;;  %2360 = vmatprep.subr.mxu1 %v8498_v15  ;;  %v11122_v15 = vld [vmem:[#allocation27_spill] sm:$0xff]  ;;  %v7159_v12 = vpop.eup %7158 }
 0x971   :  { %2262 = vmatpush1.msra.mxu0 %v8333_v8  ;;  %2361 = vmatpush1.msra.mxu1 %v11109_v23  ;;  %v8839_v8 = vld [vmem:[#allocation6 + $0x278] sm:$0xff]  ;;  %v1863_v20 = vmul.f32 0.5, %v7159_v12 }
 0x972   :  { %2263 = vmatprep.subr.mxu0 %v11110_v1  ;;  %2362 = vmatprep.subr.mxu1 %v11111_v19  ;;  %v11131_v23 = vld [vmem:[#allocation66_spill] sm:$0xff] }
 0x973   :  { %2264 = vmatpush1.msra.mxu0 %v11112_v31  ;;  %2363 = vmatpush1.msra.mxu1 %v11113_v46  ;;  %v1865_v27 = vadd.f32 0.5, %v1863_v20  ;;  %v8901_v1 = vld [vmem:[#allocation6 + $0x200] sm:$0xff]  ;;  %v8907_v46 = vld [vmem:[#allocation8 + $0x278] sm:$0xff] }
 0x974   :  { %v1664_v45 = vpop.permute.xlu0 %1663  ;;  %2265 = vmatprep.subr.mxu0 %v11114_v2  ;;  %2364 = vmatprep.subr.mxu1 %v11115_v4  ;;  %v11133_v31 = vld [vmem:[#allocation70_spill] sm:$0xff]  ;;  %v8915_v2 = vld [vmem:[#allocation8 + $0x268] sm:$0xff]  ;;  %v11147_v20 = vld [vmem:[#allocation61_spill] sm:$0xff] }
 0x975   :  { %v1666_v6 = vmul.f32 %v1664_v45, %v1648_v0  ;;  %2266 = vmatpush1.msra.mxu0 %v11116_v59  ;;  %2299 = vmatprep.mubr.f32.mxu0 %v11018_v44  ;;  %v11132_v0 = vld [vmem:[#allocation68_spill] sm:$0xff]  ;;  %v8918_v4 = vld [vmem:[#allocation8 + $0x260] sm:$0xff]  ;;  %v11135_v59 = vld [vmem:[#allocation45_spill] sm:$0xff] }
 0x976   :  { %2365 = vmatpush1.msra.mxu1 %v11117_v34  ;;  %2398 = vmatprep.mubr.f32.mxu1 %v11018_v44  ;;  %v8911_v45 = vld [vmem:[#allocation8 + $0x270] sm:$0xff]  ;;  %v8938_v12 = vld [vmem:[#allocation8 + $0x238] sm:$0xff] }
 0x977   :  { %6984 = vmatmul.mubr.msk.f32.vlgmr.msra.gmra.mxu0 %vm128_vm0, %v1666_v6  ;;  %6985 = vmatmul.mubr.msk.f32.vlgmr.msra.gmra.mxu1 %vm128_vm0, %v1666_v6  ;;  %v8922_v6 = vld [vmem:[#allocation8 + $0x258] sm:$0xff]  ;;  %v8926_v34 = vld [vmem:[#allocation8 + $0x250] sm:$0xff]  ;;  %11142 = vst [vmem:[#allocation28_spill] sm:$0xff] %v8938_v12 }
 0x978   :  { %2424 = vmatprep.subr.mxu0 %v11118_v21  ;;  %2553 = vmatprep.subr.mxu1 %v8839_v8  ;;  %11134 = vst [vmem:[#allocation23_spill] sm:$0xff] %v8922_v6  ;;  %11136 = vst [vmem:[#allocation47_spill] sm:$0xff] %v8926_v34  ;;  %v11137_v21 = vld [vmem:[#allocation51_spill] sm:$0xff] }
 0x979   :  { %2425 = vmatpush1.msra.mxu0 %v11119_v3  ;;  %2554 = vmatpush1.msra.mxu1 %v8843_v28  ;;  %v8930_v3 = vld [vmem:[#allocation8 + $0x248] sm:$0xff] }
 0x97a   :  { %2426 = vmatprep.subr.mxu0 %v11120_v5  ;;  %2555 = vmatprep.subr.mxu1 %v8847_v11  ;;  %11138 = vst [vmem:[#allocation24_spill] sm:$0xff] %v8930_v3  ;;  %v11139_v5 = vld [vmem:[#allocation53_spill] sm:$0xff] }
 0x97b   :  { %2427 = vmatpush1.msra.mxu0 %v11121_v32  ;;  %2556 = vmatpush1.msra.mxu1 %v8851_v13  ;;  %v8934_v32 = vld [vmem:[#allocation8 + $0x240] sm:$0xff] }
 0x97c   :  { %2428 = vmatprep.subr.mxu0 %v11122_v15  ;;  %2557 = vmatprep.subr.mxu1 %v8855_v60  ;;  %11140 = vst [vmem:[#allocation48_spill] sm:$0xff] %v8934_v32  ;;  %v11141_v15 = vld [vmem:[#allocation55_spill] sm:$0xff] }
 0x97d   :  { %2429 = vmatpush1.msra.mxu0 %v11123_v7  ;;  %2558 = vmatpush1.msra.mxu1 %v8859_v9  ;;  %v11143_v7 = vld [vmem:[#allocation57_spill] sm:$0xff] }
 0x97e   :  { %2430 = vmatprep.subr.mxu0 %v11124_v36  ;;  %2559 = vmatprep.subr.mxu1 %v8863_v29  ;;  %v8942_v36 = vld [vmem:[#allocation8 + $0x230] sm:$0xff] }
 0x97f   :  { %2431 = vmatpush1.msra.mxu0 %v11125_v16  ;;  %2560 = vmatpush1.msra.mxu1 %v8867_v63  ;;  %11144 = vst [vmem:[#allocation49_spill] sm:$0xff] %v8942_v36  ;;  %v11145_v16 = vld [vmem:[#allocation59_spill] sm:$0xff] }
 0x980   :  { %2432 = vmatprep.subr.mxu0 %v11126_v14  ;;  %2561 = vmatprep.subr.mxu1 %v8871_v53  ;;  %v8946_v14 = vld [vmem:[#allocation8 + $0x228] sm:$0xff] }
 0x981   :  { %2433 = vmatpush1.msra.mxu0 %v11127_v33  ;;  %2562 = vmatpush1.msra.mxu1 %v8875_v24  ;;  %11146 = vst [vmem:[#allocation29_spill] sm:$0xff] %v8946_v14  ;;  %v8950_v33 = vld [vmem:[#allocation8 + $0x220] sm:$0xff] }
 0x982   :  { %2434 = vmatprep.subr.mxu0 %v11128_v40  ;;  %2563 = vmatprep.subr.mxu1 %v8879_v54  ;;  %11148 = vst [vmem:[#allocation50_spill] sm:$0xff] %v8950_v33  ;;  %v11149_v40 = vld [vmem:[#allocation63_spill] sm:$0xff] }
 0x983   :  { %2435 = vmatpush1.msra.mxu0 %v11129_v48  ;;  %2564 = vmatpush1.msra.mxu1 %v8883_v55  ;;  %v8954_v48 = vld [vmem:[#allocation8 + $0x218] sm:$0xff] }
 0x984   :  { %2436 = vmatprep.subr.mxu0 %v11130_v25  ;;  %2565 = vmatprep.subr.mxu1 %v8887_v41  ;;  %11150 = vst [vmem:[#allocation42_spill] sm:$0xff] %v8954_v48  ;;  %v11151_v25 = vld [vmem:[#allocation65_spill] sm:$0xff] }
 0x985   :  { %v1881_v56 = vpop.permute.xlu1 %1880  ;;  %2437 = vmatpush1.msra.mxu0 %v11131_v23  ;;  %2566 = vmatpush1.msra.mxu1 %v8891_v49  ;;  %v8962_v23 = vld [vmem:[#allocation8 + $0x208] sm:$0xff] }
 0x986   :  { %v1883_v19 = vmul.f32 %v1881_v56, %v1865_v27  ;;  %2438 = vmatprep.subr.mxu0 %v11132_v0  ;;  %2567 = vmatprep.subr.mxu1 %v8895_v52  ;;  %v8958_v27 = vld [vmem:[#allocation8 + $0x210] sm:$0xff]  ;;  %v11153_v56 = vld [vmem:[#allocation67_spill] sm:$0xff]  ;;  %11154 = vst [vmem:[#allocation43_spill] sm:$0xff] %v8962_v23 }
 0x987   :  { %2439 = vmatpush1.msra.mxu0 %v11133_v31  ;;  %2472 = vmatprep.mubr.f32.mxu0 %v11018_v44  ;;  %11152 = vst [vmem:[#allocation25_spill] sm:$0xff] %v8958_v27  ;;  %v8966_v0 = vld [vmem:[#allocation8 + $0x200] sm:$0xff] }
 0x988   :  { %2568 = vmatpush1.msra.mxu1 %v8901_v1  ;;  %2601 = vmatprep.mubr.f32.mxu1 %v11018_v44  ;;  %11156 = vst [vmem:[#allocation44_spill] sm:$0xff] %v8966_v0  ;;  %v11157_v31 = vld [vmem:[#allocation71_spill] sm:$0xff] }
 0x989   :  { %6986 = vmatmul.mubr.msk.f32.vlgmr.msra.gmra.mxu0 %vm128_vm0, %v1883_v19  ;;  %6987 = vmatmul.mubr.msk.f32.vlgmr.msra.gmra.mxu1 %vm128_vm0, %v1883_v19  ;;  %v11155_v19 = vld [vmem:[#allocation69_spill] sm:$0xff] }
 0x98a   :  { %2641 = vmatprep.subr.mxu0 %v8907_v46  ;;  %2689 = vmatprep.mubr.f32.mxu0 %v11018_v44 }
 0x98b   :  { %2642 = vmatpush1.msra.mxu0 %v8911_v45  ;;  %2745 = vmatprep.subr.mxu1 %v11135_v59  ;;  %v11158_v59 = vld [vmem:[#allocation72_spill] sm:$0xff] }
 0x98c   :  { %2643 = vmatprep.subr.mxu0 %v8915_v2  ;;  %2746 = vmatpush1.msra.mxu1 %v11137_v21  ;;  %v11159_v21 = vld [vmem:[#allocation73_spill] sm:$0xff] }
 0x98d   :  { %2644 = vmatpush1.msra.mxu0 %v8918_v4  ;;  %2747 = vmatprep.subr.mxu1 %v11139_v5  ;;  %v11160_v5 = vld [vmem:[#allocation74_spill] sm:$0xff] }
 0x98e   :  { %2645 = vmatprep.subr.mxu0 %v8922_v6  ;;  %2748 = vmatpush1.msra.mxu1 %v11141_v15  ;;  %v11161_v15 = vld [vmem:[#allocation75_spill] sm:$0xff] }
 0x98f   :  { %2646 = vmatpush1.msra.mxu0 %v8926_v34  ;;  %2749 = vmatprep.subr.mxu1 %v11143_v7  ;;  %v11162_v7 = vld [vmem:[#allocation76_spill] sm:$0xff] }
 0x990   :  { %2647 = vmatprep.subr.mxu0 %v8930_v3  ;;  %2750 = vmatpush1.msra.mxu1 %v11145_v16  ;;  %v11163_v16 = vld [vmem:[#allocation77_spill] sm:$0xff]  ;;  %v11189_v3 = vld [vmem:[#allocation31_spill] sm:$0xff] }
 0x991   :  { %2648 = vmatpush1.msra.mxu0 %v8934_v32  ;;  %2751 = vmatprep.subr.mxu1 %v11147_v20  ;;  %v11164_v20 = vld [vmem:[#allocation78_spill] sm:$0xff] }
 0x992   :  { %2649 = vmatprep.subr.mxu0 %v8938_v12  ;;  %2752 = vmatpush1.msra.mxu1 %v11149_v40  ;;  %v11165_v40 = vld [vmem:[#allocation79_spill] sm:$0xff]  ;;  %v11187_v12 = vld [vmem:[#allocation22_spill] sm:$0xff] }
 0x993   :  { %2650 = vmatpush1.msra.mxu0 %v8942_v36  ;;  %2753 = vmatprep.subr.mxu1 %v11151_v25  ;;  %v11166_v25 = vld [vmem:[#allocation80_spill] sm:$0xff] }
 0x994   :  { %2651 = vmatprep.subr.mxu0 %v8946_v14  ;;  %2754 = vmatpush1.msra.mxu1 %v11153_v56  ;;  %v11167_v56 = vld [vmem:[#allocation81_spill] sm:$0xff] }
 0x995   :  { %2652 = vmatpush1.msra.mxu0 %v8950_v33  ;;  %2755 = vmatprep.subr.mxu1 %v11155_v19  ;;  %v11168_v19 = vld [vmem:[#allocation82_spill] sm:$0xff]  ;;  %v11185_v33 = vld [vmem:[#allocation41_spill] sm:$0xff] }
 0x996   :  { %2653 = vmatprep.subr.mxu0 %v8954_v48  ;;  %2756 = vmatpush1.msra.mxu1 %v11157_v31  ;;  %v11169_v31 = vld [vmem:[#allocation83_spill] sm:$0xff] }
 0x997   :  { %2654 = vmatpush1.msra.mxu0 %v8958_v27  ;;  %2757 = vmatprep.subr.mxu1 %v11158_v59  ;;  %v11170_v59 = vld [vmem:[#allocation84_spill] sm:$0xff] }
 0x998   :  { %2655 = vmatprep.subr.mxu0 %v8962_v23  ;;  %2758 = vmatpush1.msra.mxu1 %v11159_v21  ;;  %v11171_v21 = vld [vmem:[#allocation85_spill] sm:$0xff] }
 0x999   :  { %2656 = vmatpush1.msra.mxu0 %v8966_v0  ;;  %2759 = vmatprep.subr.mxu1 %v11160_v5  ;;  %v11172_v5 = vld [vmem:[#allocation86_spill] sm:$0xff] }
 0x99a   :  { %2690 = vmatmul.mubr.f32.vlgmr.msra.gmra.mxu0 %v11018_v44  ;;  %2844 = vmatprep.subr.mxu0 %v11161_v15  ;;  %v11173_v15 = vld [vmem:[#allocation87_spill] sm:$0xff] }
 0x99b   :  { %2845 = vmatpush1.msra.mxu0 %v11162_v7  ;;  %2760 = vmatpush1.msra.mxu1 %v11163_v16  ;;  %v11174_v7 = vld [vmem:[#allocation88_spill] sm:$0xff]  ;;  %v11175_v16 = vld [vmem:[#allocation89_spill] sm:$0xff] }
 0x99c   :  { %2846 = vmatprep.subr.mxu0 %v11164_v20  ;;  %2793 = vmatprep.mubr.f32.mxu1 %v11018_v44  ;;  %v11176_v20 = vld [vmem:[#allocation90_spill] sm:$0xff] }
 0x99d   :  { %2847 = vmatpush1.msra.mxu0 %v11165_v40  ;;  %2892 = vmatprep.mubr.f32.mxu0 %v11018_v44  ;;  %v11177_v40 = vld [vmem:[#allocation91_spill] sm:$0xff] }
 0x99e   :  { %2848 = vmatprep.subr.mxu0 %v11166_v25  ;;  %2918 = vmatprep.subr.mxu1 %v11167_v56  ;;  %v11178_v25 = vld [vmem:[#allocation92_spill] sm:$0xff]  ;;  %v8996_v56 = vld [vmem:[#allocation6 + $0x178] sm:$0xff] }
 0x99f   :  { %2849 = vmatpush1.msra.mxu0 %v11168_v19  ;;  %11179 = vst [vmem:[#allocation26_spill] sm:$0xff] %v8996_v56  ;;  %v11180_v19 = vld [vmem:[#allocation19_spill] sm:$0xff] }
 0x9a0   :  { %2850 = vmatprep.subr.mxu0 %v11169_v31  ;;  %v11181_v31 = vld [vmem:[#allocation32_spill] sm:$0xff] }
 0x9a1   :  { %2851 = vmatpush1.msra.mxu0 %v11170_v59  ;;  %v244_v59 = vadd.f32 %v11181_v31, %v11180_v19 }
 0x9a2   :  { %2852 = vmatprep.subr.mxu0 %v11171_v21 }
 0x9a3   :  { %2853 = vmatpush1.msra.mxu0 %v11172_v5  ;;  %v11182_v5 = vld [vmem:[#allocation20_spill] sm:$0xff] }
 0x9a4   :  { %2854 = vmatprep.subr.mxu0 %v11173_v15  ;;  %v11183_v15 = vld [vmem:[#allocation33_spill] sm:$0xff] }
 0x9a5   :  { %2855 = vmatpush1.msra.mxu0 %v11174_v7  ;;  %v246_v0 = vadd.f32 %v11183_v15, %v11182_v5 }
 0x9a6   :  { %2856 = vmatprep.subr.mxu0 %v11175_v16 }
 0x9a7   :  { %2857 = vmatpush1.msra.mxu0 %v11176_v20 }
 0x9a8   :  { %2858 = vmatprep.subr.mxu0 %v11177_v40 }
 0x9a9   :  { %2859 = vmatpush1.msra.mxu0 %v11178_v25  ;;  %v11184_v25 = vld [vmem:[#allocation40_spill] sm:$0xff] }
 0x9aa   :  { %3017 = vmatprep.subr.mxu0 %v8996_v56 }
 0xa14   :  { %v1955_v21 = vpop.f32.mrf.mxu0  ;;  %v2054_v20 = vpop.f32.mrf.mxu1 }
 0xa15   :  { %v1960_v7 = vadd.f32 %v1955_v21, %v244_v59  ;;  %v2055_v27 = vadd.f32 %v2054_v20, %v11184_v25  ;;  %v11186_v59 = vld [vmem:[#allocation21_spill] sm:$0xff] }
 0xa16   :  { %v1957_v23 = vpop.f32.mrf.mxu0  ;;  %v2056_v40 = vpop.f32.mrf.mxu1 }
 0xa17   :  { %v9003_v16 = vadd.f32 %v1957_v23, %v246_v0  ;;  %v2057_v56 = vadd.f32 %v2056_v40, %v11185_v33 }
 0xa19   :  { %7160 = vtanh.f32 %v9003_v16 }
 0xa25   :  { %v2128_v48 = vpop.f32.mrf.mxu0  ;;  %v2227_v23 = vpop.f32.mrf.mxu1 }
 0xa26   :  { %v2133_v14 = vadd.f32 %v2128_v48, %v2055_v27  ;;  %v7161_v36 = vpop.eup %7160  ;;  %v2228_v21 = vadd.f32 %v2227_v23, %v11186_v59 }
 0xa27   :  { %v2130_v31 = vpop.f32.mrf.mxu0  ;;  %1973 = vrot.lane.b32.xlu0 %v7161_v36, %s7878_s2  ;;  %v2229_v0 = vpop.f32.mrf.mxu1 }
 0xa28   :  { %v9008_v19 = vadd.f32 %v2130_v31, %v2057_v56  ;;  %v2230_v20 = vadd.f32 %v2229_v0, %v11187_v12  ;;  %v11188_v56 = vld [vmem:[#allocation30_spill] sm:$0xff] }
 0xa2a   :  { %7162 = vtanh.f32 %v9008_v19 }
 0xa37   :  { %v2301_v15 = vpop.f32.mrf.mxu0  ;;  %v7163_v5 = vpop.eup %7162 }
 0xa38   :  { %v2306_v25 = vadd.f32 %v2301_v15, %v2228_v21  ;;  %2146 = vrot.lane.b32.xlu1 %v7163_v5, %s7878_s2  ;;  %v2400_v27 = vpop.f32.mrf.mxu1  ;;  %v11190_v21 = vld [vmem:[#allocation17_spill] sm:$0xff] }
 0xa39   :  { %v2303_v32 = vpop.f32.mrf.mxu0  ;;  %v2401_v40 = vadd.f32 %v2400_v27, %v11188_v56 }
 0xa3a   :  { %v9015_v48 = vadd.f32 %v2303_v32, %v2230_v20  ;;  %v2402_v36 = vpop.f32.mrf.mxu1  ;;  %v2525_v32 = vld [vmem:[#allocation9 + $0x8] sm:$0x3]  ;;  %v11192_v20 = vld [vmem:[#allocation18_spill] sm:$0xff] }
 0xa3b   :  { %v2403_v23 = vadd.f32 %v2402_v36, %v11189_v3  ;;  %v9025_v15 = vrot.slane %v2525_v32, %v11190_v21  ;;  %v9028_v12 = vrot.slane %v2525_v32, %v11192_v20  ;;  %v1962_v32 = vmul.f32 0.5, %v1960_v7 }
 0xa3c   :  { %7164 = vtanh.f32 %v9015_v48  ;;  %v2135_v3 = vmul.f32 0.5, %v2133_v14 }
 0xa3d   :  { %11191 = vst [vmem:[#allocation27_spill] sm:$0xff] %v9025_v15  ;;  %11193 = vst [vmem:[#allocation46_spill] sm:$0xff] %v9028_v12 }
 0xa49   :  { %v2474_v31 = vpop.f32.mrf.mxu0  ;;  %v7165_v33 = vpop.eup %7164 }
 0xa4a   :  { %v2479_v59 = vadd.f32 %v2474_v31, %v2401_v40  ;;  %2319 = vrot.lane.b32.xlu0 %v7165_v33, %s7878_s2  ;;  %v2603_v5 = vpop.f32.mrf.mxu1 }
 0xa4b   :  { %v2476_v34 = vpop.f32.mrf.mxu0  ;;  %v2604_v56 = vadd.f32 %v2603_v5, %v9025_v15 }
 0xa4c   :  { %v9021_v0 = vadd.f32 %v2476_v34, %v2403_v23  ;;  %v2605_v27 = vpop.f32.mrf.mxu1 }
 0xa4d   :  { %v2606_v40 = vadd.f32 %v2605_v27, %v9028_v12 }
 0xa4e   :  { %7166 = vtanh.f32 %v9021_v0 }
 0xa5a   :  { %v2691_v36 = vpop.f32.mrf.mxu0 }
 0xa5b   :  { %v2696_v31 = vadd.f32 %v2691_v36, %v2604_v56  ;;  %v7167_v33 = vpop.eup %7166 }
 0xa5c   :  { %v2693_v34 = vpop.f32.mrf.mxu0  ;;  %2492 = vrot.lane.b32.xlu1 %v7167_v33, %s7878_s2 }
 0xa5d   :  { %v9032_v23 = vadd.f32 %v2693_v34, %v2606_v40  ;;  %v2308_v40 = vmul.f32 0.5, %v2306_v25 }
 0xa5f   :  { %7168 = vtanh.f32 %v9032_v23 }
 0xa60   :  { %7170 = vtanh.f32 %v1962_v32 }
 0xa61   :  { %7172 = vtanh.f32 %v2135_v3 }
 0xa62   :  { %7174 = vtanh.f32 %v2308_v40 }
 0xa6c   :  { %v7169_v21 = vpop.eup %7168 }
 0xa6d   :  { %2709 = vrot.lane.b32.xlu1 %v7169_v21, %s7878_s2  ;;  %v7171_v20 = vpop.eup %7170  ;;  %v2481_v21 = vmul.f32 0.5, %v2479_v59 }
 0xa6e   :  { %v1966_v5 = vmul.f32 0.5, %v7171_v20  ;;  %v7173_v36 = vpop.eup %7172 }
 0xa6f   :  { %v2139_v34 = vmul.f32 0.5, %v7173_v36  ;;  %v7175_v7 = vpop.eup %7174  ;;  %7176 = vtanh.f32 %v2481_v21 }
 0xa70   :  { %v1968_v15 = vadd.f32 0.5, %v1966_v5  ;;  %v2312_v32 = vmul.f32 0.5, %v7175_v7 }
 0xa71   :  { %v2141_v33 = vadd.f32 0.5, %v2139_v34 }
 0xa72   :  { %v2314_v14 = vadd.f32 0.5, %v2312_v32  ;;  %v1971_v21 = vmul.f32 %v1968_v15, %v8719_v61 }
 0xa7c   :  { %v7177_v5 = vpop.eup %7176 }
 0xa99   :  { %v1974_v27 = vpop.permute.xlu0 %1973 }
 0xa9a   :  { %v1976_v56 = vmul.f32 %v1974_v27, %v1968_v15  ;;  %v2698_v27 = vmul.f32 0.5, %v2696_v31 }
 0xa9c   :  { %1978 = vrot.lane.b32.xlu0 %v1976_v56, %s7878_s2  ;;  %v2485_v56 = vmul.f32 0.5, %v7177_v5  ;;  %7178 = vtanh.f32 %v2698_v27 }
 0xa9e   :  { %v2487_v25 = vadd.f32 0.5, %v2485_v56 }
 0xaaa   :  { %v2147_v12 = vpop.permute.xlu1 %2146 }
 0xaab   :  { %v2149_v6 = vmul.f32 %v2147_v12, %v2141_v33  ;;  %v7179_v12 = vpop.eup %7178 }
 0xaad   :  { %2151 = vrot.lane.b32.xlu0 %v2149_v6, %s7878_s2  ;;  %v2702_v6 = vmul.f32 0.5, %v7179_v12 }
 0xaaf   :  { %v2704_v34 = vadd.f32 0.5, %v2702_v6 }
 0xabc   :  { %v2320_v3 = vpop.permute.xlu0 %2319 }
 0xabd   :  { %v2322_v20 = vmul.f32 %v2320_v3, %v2314_v14 }
 0xabf   :  { %2324 = vrot.lane.b32.xlu1 %v2322_v20, %s7878_s2  ;;  %v2144_v20 = vmul.f32 %v2141_v33, %v8724_v51  ;;  %v2490_v51 = vmul.f32 %v2487_v25, %v8733_v57  ;;  %v1963_v57 = vmul.f32 0.5, %v9003_v16  ;;  %v9075_v16 = vld [vmem:[#allocation6 + $0x168] sm:$0xff] }
 0xace   :  { %v2493_v36 = vpop.permute.xlu1 %2492 }
 0xacf   :  { %v2495_v40 = vmul.f32 %v2493_v36, %v2487_v25  ;;  %v2317_v36 = vmul.f32 %v2314_v14, %v8729_v38 }
 0xad1   :  { %2497 = vrot.lane.b32.xlu0 %v2495_v40, %s7878_s2 }
 0xadf   :  { %v2710_v59 = vpop.permute.xlu1 %2709 }
 0xae0   :  { %v2712_v7 = vmul.f32 %v2710_v59, %v2704_v34  ;;  %v2707_v59 = vmul.f32 0.0, %v2704_v34 }
 0xae2   :  { %2714 = vrot.lane.b32.xlu1 %v2712_v7, %s7878_s2 }
 0xb0e   :  { %v1979_v32 = vpop.permute.xlu0 %1978 }
 0xb0f   :  { %v9043_v3 = vadd.f32 %v1979_v32, %v1971_v21  ;;  %v2136_v21 = vmul.f32 0.5, %v9008_v19  ;;  %v9079_v19 = vld [vmem:[#allocation6 + $0x160] sm:$0xff] }
 0xb11   :  { %7180 = vtanh.f32 %v9043_v3 }
 0xb1e   :  { %v7181_v31 = vpop.eup %7180 }
 0xb1f   :  { %v2152_v5 = vpop.permute.xlu0 %2151  ;;  %1984 = vrot.lane.b32.xlu0 %v7181_v31, %s7878_s2 }
 0xb20   :  { %v9048_v27 = vadd.f32 %v2152_v5, %v2144_v20  ;;  %v9071_v5 = vld [vmem:[#allocation6 + $0x170] sm:$0xff] }
 0xb22   :  { %7182 = vtanh.f32 %v9048_v27 }
 0xb2f   :  { %v7183_v56 = vpop.eup %7182 }
 0xb30   :  { %2157 = vrot.lane.b32.xlu1 %v7183_v56, %s7878_s2  ;;  %v9083_v56 = vld [vmem:[#allocation6 + $0x158] sm:$0xff] }
 0xb31   :  { %v2325_v61 = vpop.permute.xlu1 %2324 }
 0xb32   :  { %v9053_v15 = vadd.f32 %v2325_v61, %v2317_v36  ;;  %v2309_v36 = vmul.f32 0.5, %v9015_v48 }
 0xb34   :  { %7184 = vtanh.f32 %v9053_v15 }
 0xb41   :  { %v7185_v40 = vpop.eup %7184 }
 0xb42   :  { %2330 = vrot.lane.b32.xlu0 %v7185_v40, %s7878_s2 }
 0xb43   :  { %v2498_v33 = vpop.permute.xlu0 %2497 }
 0xb44   :  { %v9058_v12 = vadd.f32 %v2498_v33, %v2490_v51  ;;  %v9144_v33 = vld [vmem:[#allocation6 + $0x1f0] sm:$0xff] }
 0xb46   :  { %7186 = vtanh.f32 %v9058_v12 }
 0xb53   :  { %v7187_v6 = vpop.eup %7186 }
 0xb54   :  { %v2715_v38 = vpop.permute.xlu1 %2714  ;;  %2503 = vrot.lane.b32.xlu1 %v7187_v6, %s7878_s2  ;;  %v9147_v6 = vld [vmem:[#allocation8 + $0x168] sm:$0xff] }
 0xb55   :  { %v9062_v14 = vadd.f32 %v2715_v38, %v2707_v59  ;;  %v9150_v59 = vld [vmem:[#allocation6 + $0x1e8] sm:$0xff]  ;;  %v9153_v38 = vld [vmem:[#allocation8 + $0x160] sm:$0xff] }
 0xb57   :  { %7188 = vtanh.f32 %v9062_v14 }
 0xb58   :  { %7190 = vtanh.f32 %v1963_v57  ;;  %v9159_v57 = vld [vmem:[#allocation8 + $0x158] sm:$0xff] }
 0xb59   :  { %7192 = vtanh.f32 %v2136_v21  ;;  %v9165_v21 = vld [vmem:[#allocation8 + $0x150] sm:$0xff] }
 0xb5a   :  { %7194 = vtanh.f32 %v2309_v36  ;;  %v9178_v36 = vld [vmem:[#allocation8 + $0x140] sm:$0xff] }
 0xb5b   :  { %11195 = vst [vmem:[#allocation54_spill] sm:$0xff] %v9178_v36 }
 0xb64   :  { %v7189_v7 = vpop.eup %7188 }
 0xb65   :  { %2720 = vrot.lane.b32.xlu0 %v7189_v7, %s7878_s2  ;;  %v7191_v25 = vpop.eup %7190  ;;  %v9156_v7 = vld [vmem:[#allocation6 + $0x1e0] sm:$0xff] }
 0xb66   :  { %v1967_v32 = vmul.f32 0.5, %v7191_v25  ;;  %v9162_v25 = vld [vmem:[#allocation6 + $0x1d8] sm:$0xff] }
 0xb68   :  { %v1969_v31 = vadd.f32 0.5, %v1967_v32  ;;  %v9168_v32 = vld [vmem:[#allocation6 + $0x1d0] sm:$0xff] }
 0xb91   :  { %v1985_v34 = vpop.permute.xlu0 %1984 }
 0xb92   :  { %v1987_v20 = vmul.f32 %v1985_v34, %v1969_v31  ;;  %v9171_v34 = vld [vmem:[#allocation8 + $0x148] sm:$0xff] }
 0xb94   :  { %6988 = vmatmul.mubr.msk.f32.vlgmr.msra.gmra.mxu1 %vm128_vm0, %v1987_v20  ;;  %6989 = vmatmul.mubr.msk.f32.vlgmr.msra.gmra.mxu0 %vm128_vm0, %v1987_v20  ;;  %v9174_v20 = vld [vmem:[#allocation6 + $0x1c8] sm:$0xff] }
 0xb95   :  { %2919 = vmatpush1.msra.mxu1 %v8741_v47  ;;  %3018 = vmatpush1.msra.mxu0 %v9071_v5  ;;  %v9087_v47 = vld [vmem:[#allocation6 + $0x150] sm:$0xff]  ;;  %11194 = vst [vmem:[#allocation52_spill] sm:$0xff] %v9174_v20 }
 0xb96   :  { %2920 = vmatprep.subr.mxu1 %v8745_v22  ;;  %3019 = vmatprep.subr.mxu0 %v9075_v16  ;;  %v7193_v22 = vpop.eup %7192 }
 0xb97   :  { %2921 = vmatpush1.msra.mxu1 %v8749_v26  ;;  %3020 = vmatpush1.msra.mxu0 %v9079_v19  ;;  %v9091_v26 = vld [vmem:[#allocation6 + $0x148] sm:$0xff]  ;;  %v2140_v61 = vmul.f32 0.5, %v7193_v22  ;;  %v7195_v31 = vpop.eup %7194  ;;  %v2482_v22 = vmul.f32 0.5, %v9021_v0  ;;  %v9193_v0 = vld [vmem:[#allocation6 + $0x1b0] sm:$0xff] }
 0xb98   :  { %2922 = vmatprep.subr.mxu1 %v8753_v10  ;;  %3021 = vmatprep.subr.mxu0 %v9083_v56  ;;  %v9096_v10 = vld [vmem:[#allocation6 + $0x140] sm:$0xff]  ;;  %11200 = vst [vmem:[#allocation64_spill] sm:$0xff] %v9193_v0 }
 0xb99   :  { %2923 = vmatpush1.msra.mxu1 %v8757_v30  ;;  %3022 = vmatpush1.msra.mxu0 %v9087_v47  ;;  %v9100_v30 = vld [vmem:[#allocation6 + $0x138] sm:$0xff]  ;;  %v2142_v48 = vadd.f32 0.5, %v2140_v61  ;;  %v9181_v61 = vld [vmem:[#allocation6 + $0x1c0] sm:$0xff]  ;;  %7196 = vtanh.f32 %v2482_v22  ;;  %v9217_v22 = vld [vmem:[#allocation6 + $0x190] sm:$0xff] }
 0xb9a   :  { %2924 = vmatprep.subr.mxu1 %v8761_v17  ;;  %3023 = vmatprep.subr.mxu0 %v9091_v26  ;;  %v9104_v17 = vld [vmem:[#allocation6 + $0x130] sm:$0xff]  ;;  %11196 = vst [vmem:[#allocation56_spill] sm:$0xff] %v9181_v61 }
 0xb9b   :  { %2925 = vmatpush1.msra.mxu1 %v8766_v50  ;;  %3024 = vmatpush1.msra.mxu0 %v9096_v10  ;;  %v9108_v50 = vld [vmem:[#allocation6 + $0x128] sm:$0xff] }
 0xb9c   :  { %2926 = vmatprep.subr.mxu1 %v8770_v43  ;;  %3025 = vmatprep.subr.mxu0 %v9100_v30  ;;  %v9112_v43 = vld [vmem:[#allocation6 + $0x120] sm:$0xff] }
 0xb9d   :  { %2927 = vmatpush1.msra.mxu1 %v8774_v42  ;;  %3026 = vmatpush1.msra.mxu0 %v9104_v17  ;;  %v9116_v42 = vld [vmem:[#allocation6 + $0x118] sm:$0xff] }
 0xb9e   :  { %2928 = vmatprep.subr.mxu1 %v8778_v58  ;;  %3027 = vmatprep.subr.mxu0 %v9108_v50  ;;  %v9120_v58 = vld [vmem:[#allocation6 + $0x110] sm:$0xff] }
 0xb9f   :  { %2929 = vmatpush1.msra.mxu1 %v8782_v39  ;;  %3028 = vmatpush1.msra.mxu0 %v9112_v43  ;;  %v9124_v39 = vld [vmem:[#allocation6 + $0x108] sm:$0xff] }
 0xba0   :  { %2930 = vmatprep.subr.mxu1 %v8786_v37  ;;  %3029 = vmatprep.subr.mxu0 %v9116_v42  ;;  %v9129_v37 = vld [vmem:[#allocation6 + $0x100] sm:$0xff] }
 0xba1   :  { %2931 = vmatpush1.msra.mxu1 %v8790_v35  ;;  %3030 = vmatpush1.msra.mxu0 %v9120_v58  ;;  %v9135_v35 = vld [vmem:[#allocation8 + $0x178] sm:$0xff] }
 0xba2   :  { %v2158_v40 = vpop.permute.xlu1 %2157  ;;  %2932 = vmatprep.subr.mxu1 %v8794_v62  ;;  %3031 = vmatprep.subr.mxu0 %v9124_v39  ;;  %v9138_v62 = vld [vmem:[#allocation6 + $0x1f8] sm:$0xff] }
 0xba3   :  { %v2160_v51 = vmul.f32 %v2158_v40, %v2142_v48  ;;  %2933 = vmatpush1.msra.mxu1 %v8798_v18  ;;  %2966 = vmatprep.mubr.f32.mxu1 %v11018_v44  ;;  %v9141_v18 = vld [vmem:[#allocation8 + $0x170] sm:$0xff]  ;;  %v9184_v48 = vld [vmem:[#allocation8 + $0x138] sm:$0xff] }
 0xba4   :  { %3032 = vmatpush1.msra.mxu0 %v9129_v37  ;;  %3065 = vmatprep.mubr.f32.mxu0 %v11018_v44  ;;  %11197 = vst [vmem:[#allocation58_spill] sm:$0xff] %v9184_v48  ;;  %v9187_v40 = vld [vmem:[#allocation6 + $0x1b8] sm:$0xff] }
 0xba5   :  { %6990 = vmatmul.mubr.msk.f32.vlgmr.msra.gmra.mxu1 %vm128_vm0, %v2160_v51  ;;  %6991 = vmatmul.mubr.msk.f32.vlgmr.msra.gmra.mxu0 %vm128_vm0, %v2160_v51  ;;  %11198 = vst [vmem:[#allocation60_spill] sm:$0xff] %v9187_v40  ;;  %v9190_v51 = vld [vmem:[#allocation8 + $0x130] sm:$0xff] }
 0xba6   :  { %3091 = vmatprep.subr.mxu1 %v9135_v35  ;;  %3190 = vmatprep.subr.mxu0 %v9138_v62  ;;  %11199 = vst [vmem:[#allocation62_spill] sm:$0xff] %v9190_v51 }
 0xba7   :  { %3092 = vmatpush1.msra.mxu1 %v9141_v18  ;;  %3191 = vmatpush1.msra.mxu0 %v9144_v33 }
 0xba8   :  { %3093 = vmatprep.subr.mxu1 %v9147_v6  ;;  %3192 = vmatprep.subr.mxu0 %v9150_v59 }
 0xba9   :  { %3094 = vmatpush1.msra.mxu1 %v9153_v38  ;;  %3193 = vmatpush1.msra.mxu0 %v9156_v7 }
 0xbaa   :  { %3095 = vmatprep.subr.mxu1 %v9159_v57  ;;  %3194 = vmatprep.subr.mxu0 %v9162_v25 }
 0xbab   :  { %3096 = vmatpush1.msra.mxu1 %v9165_v21  ;;  %3195 = vmatpush1.msra.mxu0 %v9168_v32 }
 0xbac   :  { %3097 = vmatprep.subr.mxu1 %v9171_v34  ;;  %3196 = vmatprep.subr.mxu0 %v9174_v20  ;;  %v9196_v20 = vld [vmem:[#allocation8 + $0x128] sm:$0xff] }
 0xbad   :  { %3098 = vmatpush1.msra.mxu1 %v9178_v36  ;;  %3197 = vmatpush1.msra.mxu0 %v9181_v61  ;;  %v2313_v36 = vmul.f32 0.5, %v7195_v31  ;;  %11201 = vst [vmem:[#allocation66_spill] sm:$0xff] %v9196_v20  ;;  %v9199_v61 = vld [vmem:[#allocation6 + $0x1a8] sm:$0xff]  ;;  %v9211_v31 = vld [vmem:[#allocation6 + $0x198] sm:$0xff] }
 0xbae   :  { %3099 = vmatprep.subr.mxu1 %v9184_v48  ;;  %3198 = vmatprep.subr.mxu0 %v9187_v40  ;;  %11202 = vst [vmem:[#allocation68_spill] sm:$0xff] %v9199_v61  ;;  %v9202_v48 = vld [vmem:[#allocation8 + $0x120] sm:$0xff]  ;;  %11206 = vst [vmem:[#allocation53_spill] sm:$0xff] %v9211_v31 }
 0xbaf   :  { %3100 = vmatpush1.msra.mxu1 %v9190_v51  ;;  %3199 = vmatpush1.msra.mxu0 %v9193_v0  ;;  %11203 = vst [vmem:[#allocation70_spill] sm:$0xff] %v9202_v48  ;;  %v9205_v40 = vld [vmem:[#allocation6 + $0x1a0] sm:$0xff]  ;;  %v9208_v51 = vld [vmem:[#allocation8 + $0x118] sm:$0xff]  ;;  %v9214_v0 = vld [vmem:[#allocation8 + $0x110] sm:$0xff] }
 0xbb0   :  { %3101 = vmatprep.subr.mxu1 %v9196_v20  ;;  %3200 = vmatprep.subr.mxu0 %v9199_v61  ;;  %11204 = vst [vmem:[#allocation45_spill] sm:$0xff] %v9205_v40  ;;  %11205 = vst [vmem:[#allocation51_spill] sm:$0xff] %v9208_v51  ;;  %v2315_v20 = vadd.f32 0.5, %v2313_v36  ;;  %v9220_v61 = vld [vmem:[#allocation8 + $0x108] sm:$0xff]  ;;  %v9230_v36 = vld [vmem:[#allocation6 + $0x180] sm:$0xff] }
 0xbb1   :  { %3102 = vmatpush1.msra.mxu1 %v9202_v48  ;;  %3201 = vmatpush1.msra.mxu0 %v9205_v40  ;;  %11207 = vst [vmem:[#allocation55_spill] sm:$0xff] %v9220_v61  ;;  %v9223_v40 = vld [vmem:[#allocation6 + $0x188] sm:$0xff]  ;;  %11208 = vst [vmem:[#allocation57_spill] sm:$0xff] %v9230_v36 }
 0xbb2   :  { %3103 = vmatprep.subr.mxu1 %v9208_v51  ;;  %3202 = vmatprep.subr.mxu0 %v9211_v31  ;;  %v9226_v31 = vld [vmem:[#allocation8 + $0x100] sm:$0xff] }
 0xbb3   :  { %3104 = vmatpush1.msra.mxu1 %v9214_v0  ;;  %3203 = vmatpush1.msra.mxu0 %v9217_v22 }
 0xbb4   :  { %v2331_v48 = vpop.permute.xlu0 %2330  ;;  %3105 = vmatprep.subr.mxu1 %v9220_v61  ;;  %3204 = vmatprep.subr.mxu0 %v9223_v40  ;;  %v9236_v61 = vld [vmem:[#allocation8 + $0x1f8] sm:$0xff] }
 0xbb5   :  { %v2333_v51 = vmul.f32 %v2331_v48, %v2315_v20  ;;  %3106 = vmatpush1.msra.mxu1 %v9226_v31  ;;  %3139 = vmatprep.mubr.f32.mxu1 %v11018_v44  ;;  %11209 = vst [vmem:[#allocation59_spill] sm:$0xff] %v9236_v61  ;;  %v9240_v20 = vld [vmem:[#allocation8 + $0x1f0] sm:$0xff]  ;;  %v9244_v48 = vld [vmem:[#allocation8 + $0x1e8] sm:$0xff] }
 0xbb6   :  { %3205 = vmatpush1.msra.mxu0 %v9230_v36  ;;  %3238 = vmatprep.mubr.f32.mxu0 %v11018_v44  ;;  %11210 = vst [vmem:[#allocation61_spill] sm:$0xff] %v9240_v20  ;;  %11211 = vst [vmem:[#allocation63_spill] sm:$0xff] %v9244_v48  ;;  %v9248_v36 = vld [vmem:[#allocation8 + $0x1e0] sm:$0xff] }
 0xbb7   :  { %6992 = vmatmul.mubr.msk.f32.vlgmr.msra.gmra.mxu1 %vm128_vm0, %v2333_v51  ;;  %6993 = vmatmul.mubr.msk.f32.vlgmr.msra.gmra.mxu0 %vm128_vm0, %v2333_v51  ;;  %11212 = vst [vmem:[#allocation65_spill] sm:$0xff] %v9248_v36  ;;  %v9252_v51 = vld [vmem:[#allocation8 + $0x1d8] sm:$0xff] }
 0xbb8   :  { %3264 = vmatprep.subr.mxu1 %v9236_v61  ;;  %3363 = vmatprep.subr.mxu0 %v8839_v8  ;;  %11213 = vst [vmem:[#allocation67_spill] sm:$0xff] %v9252_v51  ;;  %v9256_v8 = vld [vmem:[#allocation8 + $0x1d0] sm:$0xff] }
 0xbb9   :  { %3265 = vmatpush1.msra.mxu1 %v9240_v20  ;;  %3364 = vmatpush1.msra.mxu0 %v8843_v28  ;;  %11214 = vst [vmem:[#allocation69_spill] sm:$0xff] %v9256_v8  ;;  %v7197_v28 = vpop.eup %7196 }
 0xbba   :  { %3266 = vmatprep.subr.mxu1 %v9244_v48  ;;  %3365 = vmatprep.subr.mxu0 %v8847_v11  ;;  %v2699_v11 = vmul.f32 0.5, %v9032_v23  ;;  %v9261_v48 = vld [vmem:[#allocation8 + $0x1c8] sm:$0xff]  ;;  %v2486_v23 = vmul.f32 0.5, %v7197_v28  ;;  %v9289_v28 = vld [vmem:[#allocation8 + $0x190] sm:$0xff] }
 0xbbb   :  { %3267 = vmatpush1.msra.mxu1 %v9248_v36  ;;  %3366 = vmatpush1.msra.mxu0 %v8851_v13  ;;  %11215 = vst [vmem:[#allocation71_spill] sm:$0xff] %v9261_v48  ;;  %v9265_v13 = vld [vmem:[#allocation8 + $0x1c0] sm:$0xff]  ;;  %11222 = vst [vmem:[#allocation78_spill] sm:$0xff] %v9289_v28 }
 0xbbc   :  { %3268 = vmatprep.subr.mxu1 %v9252_v51  ;;  %3367 = vmatprep.subr.mxu0 %v8855_v60  ;;  %11216 = vst [vmem:[#allocation72_spill] sm:$0xff] %v9265_v13  ;;  %v9269_v60 = vld [vmem:[#allocation8 + $0x1b8] sm:$0xff]  ;;  %7198 = vtanh.f32 %v2699_v11  ;;  %v9293_v11 = vld [vmem:[#allocation8 + $0x188] sm:$0xff] }
 0xbbd   :  { %3269 = vmatpush1.msra.mxu1 %v9256_v8  ;;  %3368 = vmatpush1.msra.mxu0 %v8859_v9  ;;  %11217 = vst [vmem:[#allocation73_spill] sm:$0xff] %v9269_v60  ;;  %v9273_v9 = vld [vmem:[#allocation8 + $0x1b0] sm:$0xff]  ;;  %11223 = vst [vmem:[#allocation79_spill] sm:$0xff] %v9293_v11  ;;  %v11280_v8 = vld [vmem:[#allocation31_spill] sm:$0xff] }
 0xbbe   :  { %3270 = vmatprep.subr.mxu1 %v9261_v48  ;;  %3369 = vmatprep.subr.mxu0 %v8863_v29  ;;  %11218 = vst [vmem:[#allocation74_spill] sm:$0xff] %v9273_v9  ;;  %v9277_v29 = vld [vmem:[#allocation8 + $0x1a8] sm:$0xff] }
 0xbbf   :  { %3271 = vmatpush1.msra.mxu1 %v9265_v13  ;;  %3370 = vmatpush1.msra.mxu0 %v8867_v63  ;;  %11219 = vst [vmem:[#allocation75_spill] sm:$0xff] %v9277_v29  ;;  %v9281_v63 = vld [vmem:[#allocation8 + $0x1a0] sm:$0xff] }
 0xbc0   :  { %3272 = vmatprep.subr.mxu1 %v9269_v60  ;;  %3371 = vmatprep.subr.mxu0 %v8871_v53  ;;  %11220 = vst [vmem:[#allocation76_spill] sm:$0xff] %v9281_v63  ;;  %v9285_v53 = vld [vmem:[#allocation8 + $0x198] sm:$0xff] }
 0xbc1   :  { %3273 = vmatpush1.msra.mxu1 %v9273_v9  ;;  %3372 = vmatpush1.msra.mxu0 %v8875_v24  ;;  %11221 = vst [vmem:[#allocation77_spill] sm:$0xff] %v9285_v53  ;;  %v2488_v24 = vadd.f32 0.5, %v2486_v23  ;;  %v11230_v23 = vld [vmem:[#allocation47_spill] sm:$0xff]  ;;  %v11278_v13 = vld [vmem:[#allocation22_spill] sm:$0xff] }
 0xbc2   :  { %3274 = vmatprep.subr.mxu1 %v9277_v29  ;;  %3373 = vmatprep.subr.mxu0 %v8879_v54  ;;  %v11276_v29 = vld [vmem:[#allocation41_spill] sm:$0xff] }
 0xbc3   :  { %3275 = vmatpush1.msra.mxu1 %v9281_v63  ;;  %3374 = vmatpush1.msra.mxu0 %v8883_v55  ;;  %v9297_v63 = vld [vmem:[#allocation8 + $0x180] sm:$0xff] }
 0xbc4   :  { %3276 = vmatprep.subr.mxu1 %v9285_v53  ;;  %3375 = vmatprep.subr.mxu0 %v8887_v41  ;;  %11224 = vst [vmem:[#allocation80_spill] sm:$0xff] %v9297_v63  ;;  %v9308_v41 = vld [vmem:[#allocation8 + $0x78] sm:$0xff] }
 0xbc5   :  { %3277 = vmatpush1.msra.mxu1 %v9289_v28  ;;  %3376 = vmatpush1.msra.mxu0 %v8891_v49  ;;  %11225 = vst [vmem:[#allocation81_spill] sm:$0xff] %v9308_v41  ;;  %v9312_v49 = vld [vmem:[#allocation8 + $0x70] sm:$0xff] }
 0xbc6   :  { %v2504_v54 = vpop.permute.xlu1 %2503  ;;  %3278 = vmatprep.subr.mxu1 %v9293_v11  ;;  %3377 = vmatprep.subr.mxu0 %v8895_v52  ;;  %11226 = vst [vmem:[#allocation82_spill] sm:$0xff] %v9312_v49  ;;  %v9316_v52 = vld [vmem:[#allocation8 + $0x68] sm:$0xff] }
 0xbc7   :  { %v2506_v55 = vmul.f32 %v2504_v54, %v2488_v24  ;;  %3279 = vmatpush1.msra.mxu1 %v9297_v63  ;;  %3312 = vmatprep.mubr.f32.mxu1 %v11018_v44  ;;  %11227 = vst [vmem:[#allocation83_spill] sm:$0xff] %v9316_v52  ;;  %v11232_v24 = vld [vmem:[#allocation24_spill] sm:$0xff] }
 0xbc8   :  { %3378 = vmatpush1.msra.mxu0 %v8901_v1  ;;  %3411 = vmatprep.mubr.f32.mxu0 %v11018_v44  ;;  %v11228_v1 = vld [vmem:[#allocation23_spill] sm:$0xff]  ;;  %v11234_v54 = vld [vmem:[#allocation48_spill] sm:$0xff] }
 0xbc9   :  { %6994 = vmatmul.mubr.msk.f32.vlgmr.msra.gmra.mxu1 %vm128_vm0, %v2506_v55  ;;  %6995 = vmatmul.mubr.msk.f32.vlgmr.msra.gmra.mxu0 %vm128_vm0, %v2506_v55  ;;  %v9332_v55 = vld [vmem:[#allocation8 + $0x48] sm:$0xff] }
 0xbca   :  { %3437 = vmatprep.subr.mxu1 %v8907_v46  ;;  %3485 = vmatprep.mubr.f32.mxu1 %v11018_v44  ;;  %v9320_v46 = vld [vmem:[#allocation8 + $0x60] sm:$0xff]  ;;  %11235 = vst [vmem:[#allocation87_spill] sm:$0xff] %v9332_v55  ;;  %v11275_v28 = vld [vmem:[#allocation40_spill] sm:$0xff] }
 0xbcb   :  { %3438 = vmatpush1.msra.mxu1 %v8911_v45  ;;  %3541 = vmatprep.subr.mxu0 %v9308_v41  ;;  %11229 = vst [vmem:[#allocation84_spill] sm:$0xff] %v9320_v46  ;;  %v7199_v45 = vpop.eup %7198 }
 0xbcc   :  { %3439 = vmatprep.subr.mxu1 %v8915_v2  ;;  %3542 = vmatpush1.msra.mxu0 %v9312_v49  ;;  %v9324_v2 = vld [vmem:[#allocation8 + $0x58] sm:$0xff]  ;;  %v9360_v49 = vld [vmem:[#allocation8 + $0x10] sm:$0xff] }
 0xbcd   :  { %3440 = vmatpush1.msra.mxu1 %v8918_v4  ;;  %3543 = vmatprep.subr.mxu0 %v9316_v52  ;;  %11231 = vst [vmem:[#allocation85_spill] sm:$0xff] %v9324_v2  ;;  %v9328_v4 = vld [vmem:[#allocation8 + $0x50] sm:$0xff]  ;;  %11249 = vst [vmem:[#allocation33_spill] sm:$0xff] %v9360_v49 }
 0xbce   :  { %3441 = vmatprep.subr.mxu1 %v11228_v1  ;;  %3544 = vmatpush1.msra.mxu0 %v9320_v46  ;;  %11233 = vst [vmem:[#allocation86_spill] sm:$0xff] %v9328_v4  ;;  %v11236_v1 = vld [vmem:[#allocation28_spill] sm:$0xff]  ;;  %v2703_v46 = vmul.f32 0.5, %v7199_v45  ;;  %v11244_v45 = vld [vmem:[#allocation42_spill] sm:$0xff]  ;;  %v11246_v52 = vld [vmem:[#allocation25_spill] sm:$0xff] }
 0xbcf   :  { %3442 = vmatpush1.msra.mxu1 %v11230_v23  ;;  %3545 = vmatprep.subr.mxu0 %v9324_v2  ;;  %v9336_v23 = vld [vmem:[#allocation8 + $0x40] sm:$0xff]  ;;  %v11238_v2 = vld [vmem:[#allocation49_spill] sm:$0xff] }
 0xbd0   :  { %3443 = vmatprep.subr.mxu1 %v11232_v24  ;;  %3546 = vmatpush1.msra.mxu0 %v9328_v4  ;;  %11237 = vst [vmem:[#allocation88_spill] sm:$0xff] %v9336_v23  ;;  %v9340_v24 = vld [vmem:[#allocation8 + $0x38] sm:$0xff] }
 0xbd1   :  { %3444 = vmatpush1.msra.mxu1 %v11234_v54  ;;  %3547 = vmatprep.subr.mxu0 %v9332_v55  ;;  %11239 = vst [vmem:[#allocation89_spill] sm:$0xff] %v9340_v24  ;;  %v11240_v4 = vld [vmem:[#allocation29_spill] sm:$0xff]  ;;  %v11242_v55 = vld [vmem:[#allocation50_spill] sm:$0xff] }
 0xbd2   :  { %3445 = vmatprep.subr.mxu1 %v11236_v1  ;;  %3548 = vmatpush1.msra.mxu0 %v9336_v23  ;;  %v9344_v54 = vld [vmem:[#allocation8 + $0x30] sm:$0xff]  ;;  %v9348_v1 = vld [vmem:[#allocation8 + $0x28] sm:$0xff]  ;;  %v2705_v23 = vadd.f32 0.5, %v2703_v46 }
 0xbd3   :  { %3446 = vmatpush1.msra.mxu1 %v11238_v2  ;;  %3549 = vmatprep.subr.mxu0 %v9340_v24  ;;  %11241 = vst [vmem:[#allocation90_spill] sm:$0xff] %v9344_v54  ;;  %11243 = vst [vmem:[#allocation91_spill] sm:$0xff] %v9348_v1  ;;  %v9352_v2 = vld [vmem:[#allocation8 + $0x20] sm:$0xff]  ;;  %v9364_v46 = vld [vmem:[#allocation8 + $0x8] sm:$0xff] }
 0xbd4   :  { %3447 = vmatprep.subr.mxu1 %v11240_v4  ;;  %3550 = vmatpush1.msra.mxu0 %v9344_v54  ;;  %11245 = vst [vmem:[#allocation92_spill] sm:$0xff] %v9352_v2  ;;  %v9356_v4 = vld [vmem:[#allocation8 + $0x18] sm:$0xff]  ;;  %11251 = vst [vmem:[#allocation17_spill] sm:$0xff] %v9364_v46 }
 0xbd5   :  { %3448 = vmatpush1.msra.mxu1 %v11242_v55  ;;  %3551 = vmatprep.subr.mxu0 %v9348_v1  ;;  %11247 = vst [vmem:[#allocation32_spill] sm:$0xff] %v9356_v4  ;;  %v11248_v55 = vld [vmem:[#allocation43_spill] sm:$0xff] }
 0xbd6   :  { %3449 = vmatprep.subr.mxu1 %v11244_v45  ;;  %3552 = vmatpush1.msra.mxu0 %v9352_v2  ;;  %v11250_v45 = vld [vmem:[#allocation44_spill] sm:$0xff] }
 0xbd7   :  { %v2721_v24 = vpop.permute.xlu0 %2720  ;;  %3450 = vmatpush1.msra.mxu1 %v11246_v52  ;;  %3553 = vmatprep.subr.mxu0 %v9356_v4  ;;  %v9368_v52 = vld [vmem:[#allocation6 + $0xf8] sm:$0xff]  ;;  %v9371_v4 = vld [vmem:[#allocation6 + $0xf0] sm:$0xff] }
 0xbd8   :  { %v2723_v54 = vmul.f32 %v2721_v24, %v2705_v23  ;;  %3451 = vmatprep.subr.mxu1 %v11248_v55  ;;  %3554 = vmatpush1.msra.mxu0 %v9360_v49  ;;  %11252 = vst [vmem:[#allocation18_spill] sm:$0xff] %v9368_v52  ;;  %11253 = vst [vmem:[#allocation23_spill] sm:$0xff] %v9371_v4  ;;  %v9374_v23 = vld [vmem:[#allocation8] sm:$0xff]  ;;  %v9377_v24 = vld [vmem:[#allocation6 + $0xe8] sm:$0xff] }
 0xbd9   :  { %3452 = vmatpush1.msra.mxu1 %v11250_v45  ;;  %3555 = vmatprep.subr.mxu0 %v9364_v46  ;;  %11254 = vst [vmem:[#allocation47_spill] sm:$0xff] %v9374_v23  ;;  %11255 = vst [vmem:[#allocation24_spill] sm:$0xff] %v9377_v24  ;;  %v9381_v55 = vld [vmem:[#allocation6 + $0xe0] sm:$0xff]  ;;  %v9388_v45 = vld [vmem:[#allocation8 + $0xf8] sm:$0xff] }
 0xbda   :  { %6996 = vmatmul.mubr.msk.f32.vlgmr.msra.gmra.mxu1 %vm128_vm0, %v2723_v54  ;;  %3640 = vmatprep.subr.mxu1 %v9368_v52  ;;  %11256 = vst [vmem:[#allocation48_spill] sm:$0xff] %v9381_v55  ;;  %v9385_v54 = vld [vmem:[#allocation6 + $0xd8] sm:$0xff]  ;;  %11258 = vst [vmem:[#allocation49_spill] sm:$0xff] %v9388_v45  ;;  %v11271_v52 = vld [vmem:[#allocation19_spill] sm:$0xff] }
 0xbdb   :  { %3641 = vmatpush1.msra.mxu1 %v9371_v4  ;;  %3556 = vmatpush1.msra.mxu0 %v9374_v23  ;;  %11257 = vst [vmem:[#allocation28_spill] sm:$0xff] %v9385_v54  ;;  %v9391_v23 = vld [vmem:[#allocation6 + $0xd0] sm:$0xff]  ;;  %v9397_v4 = vld [vmem:[#allocation6 + $0xc0] sm:$0xff] }
 0xbdc   :  { %3642 = vmatprep.subr.mxu1 %v9377_v24  ;;  %3589 = vmatprep.mubr.f32.mxu0 %v11018_v44  ;;  %11259 = vst [vmem:[#allocation29_spill] sm:$0xff] %v9391_v23  ;;  %v9394_v24 = vld [vmem:[#allocation6 + $0xc8] sm:$0xff]  ;;  %11261 = vst [vmem:[#allocation42_spill] sm:$0xff] %v9397_v4 }
 0xbdd   :  { %3643 = vmatpush1.msra.mxu1 %v9381_v55  ;;  %3688 = vmatprep.mubr.f32.mxu1 %v11018_v44  ;;  %11260 = vst [vmem:[#allocation50_spill] sm:$0xff] %v9394_v24  ;;  %v9400_v55 = vld [vmem:[#allocation6 + $0xb8] sm:$0xff]  ;;  %v11273_v2 = vld [vmem:[#allocation20_spill] sm:$0xff] }
 0xbde   :  { %3644 = vmatprep.subr.mxu1 %v9385_v54  ;;  %3714 = vmatprep.subr.mxu0 %v9388_v45  ;;  %11262 = vst [vmem:[#allocation25_spill] sm:$0xff] %v9400_v55  ;;  %v9403_v54 = vld [vmem:[#allocation6 + $0xb0] sm:$0xff]  ;;  %v9406_v45 = vld [vmem:[#allocation6 + $0xa8] sm:$0xff] }
 0xbdf   :  { %3645 = vmatpush1.msra.mxu1 %v9391_v23  ;;  %11263 = vst [vmem:[#allocation43_spill] sm:$0xff] %v9403_v54  ;;  %11264 = vst [vmem:[#allocation44_spill] sm:$0xff] %v9406_v45  ;;  %v9409_v23 = vld [vmem:[#allocation6 + $0xa0] sm:$0xff] }
 0xbe0   :  { %3646 = vmatprep.subr.mxu1 %v9394_v24  ;;  %11265 = vst [vmem:[#allocation93_spill] sm:$0xff] %v9409_v23  ;;  %v9412_v24 = vld [vmem:[#allocation6 + $0x98] sm:$0xff] }
 0xbe1   :  { %3647 = vmatpush1.msra.mxu1 %v9397_v4  ;;  %11266 = vst [vmem:[#allocation94_spill] sm:$0xff] %v9412_v24  ;;  %v9415_v4 = vld [vmem:[#allocation6 + $0x90] sm:$0xff] }
 0xbe2   :  { %3648 = vmatprep.subr.mxu1 %v9400_v55  ;;  %11267 = vst [vmem:[#allocation95_spill] sm:$0xff] %v9415_v4  ;;  %v9418_v55 = vld [vmem:[#allocation6 + $0x88] sm:$0xff] }
 0xbe3   :  { %3649 = vmatpush1.msra.mxu1 %v9403_v54  ;;  %11268 = vst [vmem:[#allocation96_spill] sm:$0xff] %v9418_v55  ;;  %v9421_v54 = vld [vmem:[#allocation6 + $0x80] sm:$0xff] }
 0xbe4   :  { %3650 = vmatprep.subr.mxu1 %v9406_v45  ;;  %11269 = vst [vmem:[#allocation97_spill] sm:$0xff] %v9421_v54  ;;  %v11270_v45 = vld [vmem:[#allocation26_spill] sm:$0xff] }
 0xbe5   :  { %3651 = vmatpush1.msra.mxu1 %v9409_v23  ;;  %v11272_v23 = vld [vmem:[#allocation34_spill] sm:$0xff] }
 0xbe6   :  { %3652 = vmatprep.subr.mxu1 %v9412_v24  ;;  %v250_v46 = vadd.f32 %v11272_v23, %v11271_v52  ;;  %v11274_v24 = vld [vmem:[#allocation35_spill] sm:$0xff] }
 0xbe7   :  { %3653 = vmatpush1.msra.mxu1 %v9415_v4  ;;  %v252_v1 = vadd.f32 %v11274_v24, %v11273_v2 }
 0xbe8   :  { %3654 = vmatprep.subr.mxu1 %v9418_v55 }
 0xbe9   :  { %3655 = vmatpush1.msra.mxu1 %v9421_v54 }
 0xbea   :  { %3813 = vmatprep.subr.mxu1 %v11270_v45 }
 0xc54   :  { %v2795_v49 = vpop.f32.mrf.mxu1  ;;  %v2894_v55 = vpop.f32.mrf.mxu0 }
 0xc55   :  { %v2800_v41 = vadd.f32 %v2795_v49, %v250_v46  ;;  %v2895_v53 = vadd.f32 %v2894_v55, %v11275_v28 }
 0xc56   :  { %v2797_v63 = vpop.f32.mrf.mxu1  ;;  %v2896_v11 = vpop.f32.mrf.mxu0 }
 0xc57   :  { %v9429_v4 = vadd.f32 %v2797_v63, %v252_v1  ;;  %v2897_v45 = vadd.f32 %v2896_v11, %v11276_v29  ;;  %v11277_v1 = vld [vmem:[#allocation21_spill] sm:$0xff] }
 0xc59   :  { %7200 = vtanh.f32 %v9429_v4 }
 0xc65   :  { %v2968_v54 = vpop.f32.mrf.mxu1  ;;  %v3067_v63 = vpop.f32.mrf.mxu0 }
 0xc66   :  { %v2973_v9 = vadd.f32 %v2968_v54, %v2895_v53  ;;  %v7201_v60 = vpop.eup %7200  ;;  %v3068_v46 = vadd.f32 %v3067_v63, %v11277_v1  ;;  %v11279_v54 = vld [vmem:[#allocation30_spill] sm:$0xff] }
 0xc67   :  { %v2970_v23 = vpop.f32.mrf.mxu1  ;;  %2813 = vrot.lane.b32.xlu1 %v7201_v60, %s7878_s2  ;;  %v3069_v49 = vpop.f32.mrf.mxu0 }
 0xc68   :  { %v9434_v52 = vadd.f32 %v2970_v23, %v2897_v45  ;;  %v3070_v55 = vadd.f32 %v3069_v49, %v11278_v13  ;;  %v11282_v13 = vld [vmem:[#allocation46_spill] sm:$0xff] }
 0xc6a   :  { %7202 = vtanh.f32 %v9434_v52 }
 0xc77   :  { %v3141_v24 = vpop.f32.mrf.mxu1  ;;  %v7203_v2 = vpop.eup %7202 }
 0xc78   :  { %v3146_v28 = vadd.f32 %v3141_v24, %v3068_v46  ;;  %2986 = vrot.lane.b32.xlu0 %v7203_v2, %s7878_s2  ;;  %v3240_v11 = vpop.f32.mrf.mxu0  ;;  %v11281_v46 = vld [vmem:[#allocation27_spill] sm:$0xff] }
 0xc79   :  { %v3143_v48 = vpop.f32.mrf.mxu1  ;;  %v3241_v45 = vadd.f32 %v3240_v11, %v11279_v54 }
 0xc7a   :  { %v9441_v53 = vadd.f32 %v3143_v48, %v3070_v55  ;;  %v3242_v60 = vpop.f32.mrf.mxu0 }
 0xc7b   :  { %v3243_v63 = vadd.f32 %v3242_v60, %v11280_v8 }
 0xc7c   :  { %7204 = vtanh.f32 %v9441_v53 }
 0xc89   :  { %v3314_v23 = vpop.f32.mrf.mxu1  ;;  %v7205_v29 = vpop.eup %7204 }
 0xc8a   :  { %v3319_v1 = vadd.f32 %v3314_v23, %v3241_v45  ;;  %3159 = vrot.lane.b32.xlu1 %v7205_v29, %s7878_s2  ;;  %v3413_v48 = vpop.f32.mrf.mxu0  ;;  %v2802_v29 = vmul.f32 0.5, %v2800_v41  ;;  %v2975_v45 = vmul.f32 0.5, %v2973_v9 }
 0xc8b   :  { %v3316_v51 = vpop.f32.mrf.mxu1  ;;  %v3414_v24 = vadd.f32 %v3413_v48, %v11281_v46 }
 0xc8c   :  { %v9447_v49 = vadd.f32 %v3316_v51, %v3243_v63  ;;  %v3415_v2 = vpop.f32.mrf.mxu0 }
 0xc8d   :  { %v3416_v36 = vadd.f32 %v3415_v2, %v11282_v13 }
 0xc8e   :  { %7206 = vtanh.f32 %v9447_v49 }
 0xc9a   :  { %v3487_v55 = vpop.f32.mrf.mxu1 }
 0xc9b   :  { %v3492_v11 = vadd.f32 %v3487_v55, %v3414_v24  ;;  %v7207_v54 = vpop.eup %7206 }
 0xc9c   :  { %v3489_v20 = vpop.f32.mrf.mxu1  ;;  %3332 = vrot.lane.b32.xlu0 %v7207_v54, %s7878_s2 }
 0xc9d   :  { %v9452_v61 = vadd.f32 %v3489_v20, %v3416_v36  ;;  %v3148_v20 = vmul.f32 0.5, %v3146_v28 }
 0xc9f   :  { %7208 = vtanh.f32 %v9452_v61 }
 0xca0   :  { %7210 = vtanh.f32 %v2802_v29 }
 0xca1   :  { %7212 = vtanh.f32 %v2975_v45 }
 0xca2   :  { %7214 = vtanh.f32 %v3148_v20 }
 0xcac   :  { %v7209_v51 = vpop.eup %7208 }
 0xcad   :  { %3505 = vrot.lane.b32.xlu0 %v7209_v51, %s7878_s2  ;;  %v7211_v60 = vpop.eup %7210  ;;  %v3321_v51 = vmul.f32 0.5, %v3319_v1 }
 0xcae   :  { %v2806_v23 = vmul.f32 0.5, %v7211_v60  ;;  %v7213_v36 = vpop.eup %7212 }
 0xcaf   :  { %v2979_v24 = vmul.f32 0.5, %v7213_v36  ;;  %v7215_v41 = vpop.eup %7214  ;;  %7216 = vtanh.f32 %v3321_v51 }
 0xcb0   :  { %v2808_v63 = vadd.f32 0.5, %v2806_v23  ;;  %v3152_v29 = vmul.f32 0.5, %v7215_v41 }
 0xcb1   :  { %v2981_v54 = vadd.f32 0.5, %v2979_v24 }
 0xcb2   :  { %v3154_v9 = vadd.f32 0.5, %v3152_v29  ;;  %v2811_v51 = vmul.f32 %v2808_v63, %v9043_v3 }
 0xcbc   :  { %v7217_v23 = vpop.eup %7216 }
 0xcd9   :  { %v2814_v48 = vpop.permute.xlu1 %2813 }
 0xcda   :  { %v2816_v2 = vmul.f32 %v2814_v48, %v2808_v63  ;;  %v3494_v48 = vmul.f32 0.5, %v3492_v11 }
 0xcdc   :  { %2818 = vrot.lane.b32.xlu1 %v2816_v2, %s7878_s2  ;;  %v3325_v2 = vmul.f32 0.5, %v7217_v23  ;;  %7218 = vtanh.f32 %v3494_v48 }
 0xcde   :  { %v3327_v28 = vadd.f32 0.5, %v3325_v2 }
 0xce9   :  { %v7219_v24 = vpop.eup %7218 }
 0xcea   :  { %v2987_v55 = vpop.permute.xlu0 %2986 }
 0xceb   :  { %v2989_v13 = vmul.f32 %v2987_v55, %v2981_v54 }
 0xced   :  { %2991 = vrot.lane.b32.xlu1 %v2989_v13, %s7878_s2  ;;  %v3498_v13 = vmul.f32 0.5, %v7219_v24 }
 0xcef   :  { %v3500_v55 = vadd.f32 0.5, %v3498_v13 }
 0xcfc   :  { %v3160_v60 = vpop.permute.xlu1 %3159 }
 0xcfd   :  { %v3162_v45 = vmul.f32 %v3160_v60, %v3154_v9 }
 0xcff   :  { %3164 = vrot.lane.b32.xlu0 %v3162_v45, %s7878_s2  ;;  %v2984_v45 = vmul.f32 %v2981_v54, %v9048_v27  ;;  %v3330_v27 = vmul.f32 %v3327_v28, %v9058_v12  ;;  %v2803_v12 = vmul.f32 0.5, %v9429_v4  ;;  %v9495_v4 = vld [vmem:[#allocation8 + $0xe8] sm:$0xff] }
 0xd0e   :  { %v3333_v36 = vpop.permute.xlu0 %3332 }
 0xd0f   :  { %v3335_v20 = vmul.f32 %v3333_v36, %v3327_v28  ;;  %v3157_v36 = vmul.f32 %v3154_v9, %v9053_v15  ;;  %v3503_v15 = vmul.f32 %v3500_v55, %v9062_v14 }
 0xd11   :  { %3337 = vrot.lane.b32.xlu1 %v3335_v20, %s7878_s2 }
 0xd1f   :  { %v3506_v1 = vpop.permute.xlu0 %3505 }
 0xd20   :  { %v3508_v41 = vmul.f32 %v3506_v1, %v3500_v55 }
 0xd22   :  { %3510 = vrot.lane.b32.xlu0 %v3508_v41, %s7878_s2 }
 0xd4e   :  { %v2819_v29 = vpop.permute.xlu1 %2818 }
 0xd4f   :  { %v9463_v60 = vadd.f32 %v2819_v29, %v2811_v51  ;;  %v2976_v51 = vmul.f32 0.5, %v9434_v52  ;;  %v9499_v52 = vld [vmem:[#allocation8 + $0xe0] sm:$0xff] }
 0xd51   :  { %7220 = vtanh.f32 %v9463_v60 }
 0xd5e   :  { %v7221_v11 = vpop.eup %7220 }
 0xd5f   :  { %v2992_v23 = vpop.permute.xlu1 %2991  ;;  %2824 = vrot.lane.b32.xlu1 %v7221_v11, %s7878_s2 }
 0xd60   :  { %v9468_v48 = vadd.f32 %v2992_v23, %v2984_v45  ;;  %v9491_v45 = vld [vmem:[#allocation8 + $0xf0] sm:$0xff]  ;;  %v9503_v23 = vld [vmem:[#allocation8 + $0xd8] sm:$0xff] }
 0xd62   :  { %7222 = vtanh.f32 %v9468_v48 }
 0xd6f   :  { %v7223_v2 = vpop.eup %7222 }
 0xd70   :  { %2997 = vrot.lane.b32.xlu0 %v7223_v2, %s7878_s2  ;;  %v9507_v2 = vld [vmem:[#allocation8 + $0xd0] sm:$0xff] }
 0xd71   :  { %v3165_v3 = vpop.permute.xlu0 %3164 }
 0xd72   :  { %v9473_v63 = vadd.f32 %v3165_v3, %v3157_v36  ;;  %v9516_v36 = vld [vmem:[#allocation8 + $0xc0] sm:$0xff]  ;;  %v9540_v3 = vld [vmem:[#allocation8 + $0x90] sm:$0xff] }
 0xd74   :  { %7224 = vtanh.f32 %v9473_v63 }
 0xd81   :  { %v7225_v20 = vpop.eup %7224 }
 0xd82   :  { %3170 = vrot.lane.b32.xlu1 %v7225_v20, %s7878_s2  ;;  %v9544_v20 = vld [vmem:[#allocation8 + $0x88] sm:$0xff] }
 0xd83   :  { %v3338_v54 = vpop.permute.xlu1 %3337 }
 0xd84   :  { %v9478_v24 = vadd.f32 %v3338_v54, %v3330_v27  ;;  %v9548_v27 = vld [vmem:[#allocation8 + $0x80] sm:$0xff] }
 0xd85   :  { %v11296_v54 = vld [vmem:[#allocation55_spill] sm:$0xff] }
 0xd86   :  { %7226 = vtanh.f32 %v9478_v24 }
 0xd93   :  { %v7227_v13 = vpop.eup %7226 }
 0xd94   :  { %v3511_v9 = vpop.permute.xlu0 %3510  ;;  %3343 = vrot.lane.b32.xlu0 %v7227_v13, %s7878_s2 }
 0xd95   :  { %v9483_v1 = vadd.f32 %v3511_v9, %v3503_v15  ;;  %v11297_v15 = vld [vmem:[#allocation57_spill] sm:$0xff] }
 0xd96   :  { %v9598_v9 = vld [vmem:[#allocation6 + $0x270] sm:$0xff] }
 0xd97   :  { %7228 = vtanh.f32 %v9483_v1 }
 0xd98   :  { %7230 = vtanh.f32 %v2803_v12  ;;  %v11301_v12 = vld [vmem:[#allocation65_spill] sm:$0xff] }
 0xd99   :  { %7232 = vtanh.f32 %v2976_v51  ;;  %v11302_v51 = vld [vmem:[#allocation67_spill] sm:$0xff] }
 0xda4   :  { %v7229_v41 = vpop.eup %7228 }
 0xda5   :  { %3516 = vrot.lane.b32.xlu1 %v7229_v41, %s7878_s2  ;;  %v7231_v28 = vpop.eup %7230  ;;  %v9602_v41 = vld [vmem:[#allocation6 + $0x268] sm:$0xff] }
 0xda6   :  { %v2807_v29 = vmul.f32 0.5, %v7231_v28  ;;  %v9606_v28 = vld [vmem:[#allocation6 + $0x260] sm:$0xff] }
 0xda8   :  { %v2809_v11 = vadd.f32 0.5, %v2807_v29  ;;  %v9610_v29 = vld [vmem:[#allocation6 + $0x258] sm:$0xff] }
 0xdd1   :  { %v2825_v14 = vpop.permute.xlu1 %2824 }
 0xdd2   :  { %v2827_v55 = vmul.f32 %v2825_v14, %v2809_v11  ;;  %v11303_v11 = vld [vmem:[#allocation69_spill] sm:$0xff] }
 0xdd3   :  { %v9614_v14 = vld [vmem:[#allocation6 + $0x250] sm:$0xff] }
 0xdd4   :  { %6997 = vmatmul.mubr.msk.f32.vlgmr.msra.gmra.mxu0 %vm128_vm0, %v2827_v55  ;;  %6998 = vmatmul.mubr.msk.f32.vlgmr.msra.gmra.mxu1 %vm128_vm0, %v2827_v55 }
 0xdd5   :  { %3715 = vmatpush1.msra.mxu0 %v9491_v45  ;;  %3814 = vmatpush1.msra.mxu1 %v9071_v5  ;;  %v7233_v5 = vpop.eup %7232 }
 0xdd6   :  { %3716 = vmatprep.subr.mxu0 %v9495_v4  ;;  %3815 = vmatprep.subr.mxu1 %v9075_v16  ;;  %v9511_v16 = vld [vmem:[#allocation8 + $0xc8] sm:$0xff] }
 0xdd7   :  { %3717 = vmatpush1.msra.mxu0 %v9499_v52  ;;  %3816 = vmatpush1.msra.mxu1 %v9079_v19  ;;  %v3149_v19 = vmul.f32 0.5, %v9441_v53  ;;  %v9528_v53 = vld [vmem:[#allocation8 + $0xa8] sm:$0xff] }
 0xdd8   :  { %3718 = vmatprep.subr.mxu0 %v9503_v23  ;;  %3817 = vmatprep.subr.mxu1 %v9083_v56  ;;  %v9520_v56 = vld [vmem:[#allocation8 + $0xb8] sm:$0xff] }
 0xdd9   :  { %3719 = vmatpush1.msra.mxu0 %v9507_v2  ;;  %3818 = vmatpush1.msra.mxu1 %v9087_v47  ;;  %v9524_v47 = vld [vmem:[#allocation8 + $0xb0] sm:$0xff]  ;;  %7234 = vtanh.f32 %v3149_v19  ;;  %v11304_v19 = vld [vmem:[#allocation71_spill] sm:$0xff] }
 0xdda   :  { %3720 = vmatprep.subr.mxu0 %v9511_v16  ;;  %3819 = vmatprep.subr.mxu1 %v9091_v26  ;;  %v2980_v26 = vmul.f32 0.5, %v7233_v5  ;;  %v3495_v5 = vmul.f32 0.5, %v9452_v61  ;;  %v9631_v61 = vld [vmem:[#allocation6 + $0x230] sm:$0xff] }
 0xddb   :  { %3721 = vmatpush1.msra.mxu0 %v9516_v36  ;;  %3820 = vmatpush1.msra.mxu1 %v9096_v10  ;;  %v9532_v10 = vld [vmem:[#allocation8 + $0xa0] sm:$0xff] }
 0xddc   :  { %3722 = vmatprep.subr.mxu0 %v9520_v56  ;;  %3821 = vmatprep.subr.mxu1 %v9100_v30  ;;  %v9536_v30 = vld [vmem:[#allocation8 + $0x98] sm:$0xff] }
 0xddd   :  { %3723 = vmatpush1.msra.mxu0 %v9524_v47  ;;  %3822 = vmatpush1.msra.mxu1 %v9104_v17  ;;  %v2982_v17 = vadd.f32 0.5, %v2980_v26  ;;  %v9619_v26 = vld [vmem:[#allocation6 + $0x248] sm:$0xff] }
 0xdde   :  { %3724 = vmatprep.subr.mxu0 %v9528_v53  ;;  %3823 = vmatprep.subr.mxu1 %v9108_v50 }
 0xddf   :  { %3725 = vmatpush1.msra.mxu0 %v9532_v10  ;;  %3824 = vmatpush1.msra.mxu1 %v9112_v43 }
 0xde0   :  { %3726 = vmatprep.subr.mxu0 %v9536_v30  ;;  %3825 = vmatprep.subr.mxu1 %v9116_v42 }
 0xde1   :  { %3727 = vmatpush1.msra.mxu0 %v9540_v3  ;;  %3826 = vmatpush1.msra.mxu1 %v9120_v58  ;;  %v11283_v58 = vld [vmem:[#allocation52_spill] sm:$0xff] }
 0xde2   :  { %v2998_v50 = vpop.permute.xlu0 %2997  ;;  %3728 = vmatprep.subr.mxu0 %v9544_v20  ;;  %3827 = vmatprep.subr.mxu1 %v9124_v39  ;;  %v3322_v39 = vmul.f32 0.5, %v9447_v49 }
 0xde3   :  { %v3000_v43 = vmul.f32 %v2998_v50, %v2982_v17  ;;  %3729 = vmatpush1.msra.mxu0 %v9548_v27  ;;  %3762 = vmatprep.mubr.f32.mxu0 %v11018_v44  ;;  %v11305_v17 = vld [vmem:[#allocation72_spill] sm:$0xff]  ;;  %v9623_v50 = vld [vmem:[#allocation6 + $0x240] sm:$0xff] }
 0xde4   :  { %3828 = vmatpush1.msra.mxu1 %v9129_v37  ;;  %3861 = vmatprep.mubr.f32.mxu1 %v11018_v44  ;;  %v11284_v37 = vld [vmem:[#allocation54_spill] sm:$0xff]  ;;  %7236 = vtanh.f32 %v3322_v39 }
 0xde5   :  { %6999 = vmatmul.mubr.msk.f32.vlgmr.msra.gmra.mxu0 %vm128_vm0, %v3000_v43  ;;  %7000 = vmatmul.mubr.msk.f32.vlgmr.msra.gmra.mxu1 %vm128_vm0, %v3000_v43  ;;  %v11306_v43 = vld [vmem:[#allocation73_spill] sm:$0xff]  ;;  %7238 = vtanh.f32 %v3495_v5 }
 0xde6   :  { %3887 = vmatprep.subr.mxu0 %v9135_v35  ;;  %3986 = vmatprep.subr.mxu1 %v9138_v62  ;;  %v7235_v42 = vpop.eup %7234  ;;  %v11285_v35 = vld [vmem:[#allocation56_spill] sm:$0xff]  ;;  %v11286_v62 = vld [vmem:[#allocation58_spill] sm:$0xff] }
 0xde7   :  { %3888 = vmatpush1.msra.mxu0 %v9141_v18  ;;  %3987 = vmatpush1.msra.mxu1 %v9144_v33  ;;  %v11287_v18 = vld [vmem:[#allocation60_spill] sm:$0xff]  ;;  %v11288_v33 = vld [vmem:[#allocation62_spill] sm:$0xff] }
 0xde8   :  { %3889 = vmatprep.subr.mxu0 %v9147_v6  ;;  %3988 = vmatprep.subr.mxu1 %v9150_v59  ;;  %v11289_v6 = vld [vmem:[#allocation64_spill] sm:$0xff]  ;;  %v3153_v59 = vmul.f32 0.5, %v7235_v42  ;;  %v9627_v42 = vld [vmem:[#allocation6 + $0x238] sm:$0xff] }
 0xde9   :  { %3890 = vmatpush1.msra.mxu0 %v9153_v38  ;;  %3989 = vmatpush1.msra.mxu1 %v9156_v7  ;;  %v11290_v38 = vld [vmem:[#allocation66_spill] sm:$0xff]  ;;  %v11291_v7 = vld [vmem:[#allocation68_spill] sm:$0xff] }
 0xdea   :  { %3891 = vmatprep.subr.mxu0 %v9159_v57  ;;  %3990 = vmatprep.subr.mxu1 %v9162_v25  ;;  %v11292_v57 = vld [vmem:[#allocation70_spill] sm:$0xff]  ;;  %v11293_v25 = vld [vmem:[#allocation45_spill] sm:$0xff] }
 0xdeb   :  { %3892 = vmatpush1.msra.mxu0 %v9165_v21  ;;  %3991 = vmatpush1.msra.mxu1 %v9168_v32  ;;  %v11294_v21 = vld [vmem:[#allocation51_spill] sm:$0xff]  ;;  %v11295_v32 = vld [vmem:[#allocation53_spill] sm:$0xff] }
 0xdec   :  { %3893 = vmatprep.subr.mxu0 %v9171_v34  ;;  %3992 = vmatprep.subr.mxu1 %v11283_v58  ;;  %v3155_v34 = vadd.f32 0.5, %v3153_v59  ;;  %v11307_v58 = vld [vmem:[#allocation74_spill] sm:$0xff]  ;;  %v9682_v5 = vld [vmem:[#allocation8 + $0x250] sm:$0xff] }
 0xded   :  { %3894 = vmatpush1.msra.mxu0 %v11284_v37  ;;  %3993 = vmatpush1.msra.mxu1 %v11285_v35  ;;  %v11308_v37 = vld [vmem:[#allocation75_spill] sm:$0xff]  ;;  %11322 = vst [vmem:[#allocation27_spill] sm:$0xff] %v9682_v5 }
 0xdee   :  { %3895 = vmatprep.subr.mxu0 %v11286_v62  ;;  %3994 = vmatprep.subr.mxu1 %v11287_v18  ;;  %v9635_v35 = vld [vmem:[#allocation6 + $0x228] sm:$0xff]  ;;  %v9639_v18 = vld [vmem:[#allocation6 + $0x220] sm:$0xff] }
 0xdef   :  { %3896 = vmatpush1.msra.mxu0 %v11288_v33  ;;  %3995 = vmatpush1.msra.mxu1 %v11289_v6  ;;  %v11309_v62 = vld [vmem:[#allocation76_spill] sm:$0xff]  ;;  %v11310_v33 = vld [vmem:[#allocation77_spill] sm:$0xff] }
 0xdf0   :  { %3897 = vmatprep.subr.mxu0 %v11290_v38  ;;  %3996 = vmatprep.subr.mxu1 %v11291_v7  ;;  %v9643_v6 = vld [vmem:[#allocation6 + $0x218] sm:$0xff]  ;;  %v9647_v7 = vld [vmem:[#allocation6 + $0x210] sm:$0xff] }
 0xdf1   :  { %3898 = vmatpush1.msra.mxu0 %v11292_v57  ;;  %3997 = vmatpush1.msra.mxu1 %v11293_v25  ;;  %v7237_v55 = vpop.eup %7236  ;;  %v11311_v38 = vld [vmem:[#allocation78_spill] sm:$0xff]  ;;  %v11312_v25 = vld [vmem:[#allocation79_spill] sm:$0xff] }
 0xdf2   :  { %3899 = vmatprep.subr.mxu0 %v11294_v21  ;;  %3998 = vmatprep.subr.mxu1 %v11295_v32  ;;  %v3326_v39 = vmul.f32 0.5, %v7237_v55  ;;  %v9651_v21 = vld [vmem:[#allocation6 + $0x208] sm:$0xff]  ;;  %v7239_v55 = vpop.eup %7238 }
 0xdf3   :  { %3900 = vmatpush1.msra.mxu0 %v9214_v0  ;;  %3999 = vmatpush1.msra.mxu1 %v9217_v22  ;;  %v11298_v0 = vld [vmem:[#allocation59_spill] sm:$0xff]  ;;  %v9594_v22 = vld [vmem:[#allocation6 + $0x278] sm:$0xff] }
 0xdf4   :  { %v3171_v49 = vpop.permute.xlu1 %3170  ;;  %3901 = vmatprep.subr.mxu0 %v11296_v54  ;;  %4000 = vmatprep.subr.mxu1 %v9223_v40  ;;  %v11299_v40 = vld [vmem:[#allocation61_spill] sm:$0xff]  ;;  %v3328_v59 = vadd.f32 0.5, %v3326_v39  ;;  %v11327_v39 = vld [vmem:[#allocation87_spill] sm:$0xff] }
 0xdf5   :  { %v3173_v13 = vmul.f32 %v3171_v49, %v3155_v34  ;;  %3902 = vmatpush1.msra.mxu0 %v9226_v31  ;;  %3935 = vmatprep.mubr.f32.mxu0 %v11018_v44  ;;  %v11300_v31 = vld [vmem:[#allocation63_spill] sm:$0xff]  ;;  %v11313_v34 = vld [vmem:[#allocation80_spill] sm:$0xff]  ;;  %v9662_v54 = vld [vmem:[#allocation8 + $0x278] sm:$0xff] }
 0xdf6   :  { %4001 = vmatpush1.msra.mxu1 %v11297_v15  ;;  %4034 = vmatprep.mubr.f32.mxu1 %v11018_v44  ;;  %v9656_v49 = vld [vmem:[#allocation6 + $0x200] sm:$0xff]  ;;  %v11315_v15 = vld [vmem:[#allocation81_spill] sm:$0xff] }
 0xdf7   :  { %7001 = vmatmul.mubr.msk.f32.vlgmr.msra.gmra.mxu0 %vm128_vm0, %v3173_v13  ;;  %7002 = vmatmul.mubr.msk.f32.vlgmr.msra.gmra.mxu1 %vm128_vm0, %v3173_v13  ;;  %v9666_v13 = vld [vmem:[#allocation8 + $0x270] sm:$0xff] }
 0xdf8   :  { %4060 = vmatprep.subr.mxu0 %v11298_v0  ;;  %4159 = vmatprep.subr.mxu1 %v9594_v22  ;;  %11314 = vst [vmem:[#allocation26_spill] sm:$0xff] %v9666_v13  ;;  %v9670_v0 = vld [vmem:[#allocation8 + $0x268] sm:$0xff] }
 0xdf9   :  { %4061 = vmatpush1.msra.mxu0 %v11299_v40  ;;  %4160 = vmatpush1.msra.mxu1 %v9598_v9  ;;  %11316 = vst [vmem:[#allocation34_spill] sm:$0xff] %v9670_v0  ;;  %v11317_v40 = vld [vmem:[#allocation82_spill] sm:$0xff] }
 0xdfa   :  { %4062 = vmatprep.subr.mxu0 %v11300_v31  ;;  %4161 = vmatprep.subr.mxu1 %v9602_v41  ;;  %v9674_v31 = vld [vmem:[#allocation8 + $0x260] sm:$0xff] }
 0xdfb   :  { %4063 = vmatpush1.msra.mxu0 %v11301_v12  ;;  %4162 = vmatpush1.msra.mxu1 %v9606_v28  ;;  %11318 = vst [vmem:[#allocation35_spill] sm:$0xff] %v9674_v31  ;;  %v11319_v12 = vld [vmem:[#allocation83_spill] sm:$0xff] }
 0xdfc   :  { %4064 = vmatprep.subr.mxu0 %v11302_v51  ;;  %4163 = vmatprep.subr.mxu1 %v9610_v29  ;;  %v9678_v51 = vld [vmem:[#allocation8 + $0x258] sm:$0xff] }
 0xdfd   :  { %4065 = vmatpush1.msra.mxu0 %v11303_v11  ;;  %4164 = vmatpush1.msra.mxu1 %v9614_v14  ;;  %11320 = vst [vmem:[#allocation31_spill] sm:$0xff] %v9678_v51  ;;  %v11321_v11 = vld [vmem:[#allocation84_spill] sm:$0xff] }
 0xdfe   :  { %4066 = vmatprep.subr.mxu0 %v11304_v19  ;;  %4165 = vmatprep.subr.mxu1 %v9619_v26  ;;  %v11323_v19 = vld [vmem:[#allocation85_spill] sm:$0xff] }
 0xdff   :  { %4067 = vmatpush1.msra.mxu0 %v11305_v17  ;;  %4166 = vmatpush1.msra.mxu1 %v9623_v50  ;;  %v9686_v17 = vld [vmem:[#allocation8 + $0x248] sm:$0xff] }
 0xe00   :  { %4068 = vmatprep.subr.mxu0 %v11306_v43  ;;  %4167 = vmatprep.subr.mxu1 %v9627_v42  ;;  %11324 = vst [vmem:[#allocation52_spill] sm:$0xff] %v9686_v17  ;;  %v11325_v43 = vld [vmem:[#allocation86_spill] sm:$0xff] }
 0xe01   :  { %4069 = vmatpush1.msra.mxu0 %v11307_v58  ;;  %4168 = vmatpush1.msra.mxu1 %v9631_v61  ;;  %v9690_v58 = vld [vmem:[#allocation8 + $0x240] sm:$0xff] }
 0xe02   :  { %4070 = vmatprep.subr.mxu0 %v11308_v37  ;;  %4169 = vmatprep.subr.mxu1 %v9635_v35  ;;  %11326 = vst [vmem:[#allocation54_spill] sm:$0xff] %v9690_v58  ;;  %v9694_v37 = vld [vmem:[#allocation8 + $0x238] sm:$0xff] }
 0xe03   :  { %4071 = vmatpush1.msra.mxu0 %v11309_v62  ;;  %4170 = vmatpush1.msra.mxu1 %v9639_v18  ;;  %11328 = vst [vmem:[#allocation56_spill] sm:$0xff] %v9694_v37  ;;  %v3499_v62 = vmul.f32 0.5, %v7239_v55  ;;  %v9714_v55 = vld [vmem:[#allocation8 + $0x210] sm:$0xff] }
 0xe04   :  { %4072 = vmatprep.subr.mxu0 %v11310_v33  ;;  %4171 = vmatprep.subr.mxu1 %v9643_v6  ;;  %v11329_v33 = vld [vmem:[#allocation88_spill] sm:$0xff]  ;;  %11338 = vst [vmem:[#allocation66_spill] sm:$0xff] %v9714_v55 }
 0xe05   :  { %4073 = vmatpush1.msra.mxu0 %v11311_v38  ;;  %4172 = vmatpush1.msra.mxu1 %v9647_v7  ;;  %v11331_v38 = vld [vmem:[#allocation89_spill] sm:$0xff] }
 0xe06   :  { %v3344_v57 = vpop.permute.xlu0 %3343  ;;  %4074 = vmatprep.subr.mxu0 %v11312_v25  ;;  %4173 = vmatprep.subr.mxu1 %v9651_v21  ;;  %v11333_v25 = vld [vmem:[#allocation90_spill] sm:$0xff] }
 0xe07   :  { %v3346_v32 = vmul.f32 %v3344_v57, %v3328_v59  ;;  %4075 = vmatpush1.msra.mxu0 %v11313_v34  ;;  %4108 = vmatprep.mubr.f32.mxu0 %v11018_v44  ;;  %v9698_v59 = vld [vmem:[#allocation8 + $0x230] sm:$0xff]  ;;  %v9702_v57 = vld [vmem:[#allocation8 + $0x228] sm:$0xff] }
 0xe08   :  { %4174 = vmatpush1.msra.mxu1 %v9656_v49  ;;  %4207 = vmatprep.mubr.f32.mxu1 %v11018_v44  ;;  %11330 = vst [vmem:[#allocation58_spill] sm:$0xff] %v9698_v59  ;;  %11332 = vst [vmem:[#allocation60_spill] sm:$0xff] %v9702_v57  ;;  %v11335_v34 = vld [vmem:[#allocation91_spill] sm:$0xff] }
 0xe09   :  { %7003 = vmatmul.mubr.msk.f32.vlgmr.msra.gmra.mxu0 %vm128_vm0, %v3346_v32  ;;  %7004 = vmatmul.mubr.msk.f32.vlgmr.msra.gmra.mxu1 %vm128_vm0, %v3346_v32  ;;  %v9706_v32 = vld [vmem:[#allocation8 + $0x220] sm:$0xff] }
 0xe0a   :  { %4233 = vmatprep.subr.mxu0 %v9662_v54  ;;  %4281 = vmatprep.mubr.f32.mxu0 %v11018_v44  ;;  %11334 = vst [vmem:[#allocation62_spill] sm:$0xff] %v9706_v32 }
 0xe0b   :  { %4234 = vmatpush1.msra.mxu0 %v9666_v13  ;;  %4337 = vmatprep.subr.mxu1 %v11315_v15  ;;  %v9710_v15 = vld [vmem:[#allocation8 + $0x218] sm:$0xff] }
 0xe0c   :  { %4235 = vmatprep.subr.mxu0 %v9670_v0  ;;  %4338 = vmatpush1.msra.mxu1 %v11317_v40  ;;  %11336 = vst [vmem:[#allocation64_spill] sm:$0xff] %v9710_v15  ;;  %v3501_v40 = vadd.f32 0.5, %v3499_v62  ;;  %v11343_v62 = vld [vmem:[#allocation17_spill] sm:$0xff] }
 0xe0d   :  { %4236 = vmatpush1.msra.mxu0 %v9674_v31  ;;  %4339 = vmatprep.subr.mxu1 %v11319_v12  ;;  %v11337_v12 = vld [vmem:[#allocation92_spill] sm:$0xff] }
 0xe0e   :  { %4237 = vmatprep.subr.mxu0 %v9678_v51  ;;  %4340 = vmatpush1.msra.mxu1 %v11321_v11 }
 0xe0f   :  { %4238 = vmatpush1.msra.mxu0 %v9682_v5  ;;  %4341 = vmatprep.subr.mxu1 %v11323_v19  ;;  %v11339_v19 = vld [vmem:[#allocation32_spill] sm:$0xff]  ;;  %v11370_v5 = vld [vmem:[#allocation22_spill] sm:$0xff] }
 0xe10   :  { %4239 = vmatprep.subr.mxu0 %v9686_v17  ;;  %4342 = vmatpush1.msra.mxu1 %v11325_v43 }
 0xe11   :  { %4240 = vmatpush1.msra.mxu0 %v9690_v58  ;;  %4343 = vmatprep.subr.mxu1 %v11327_v39  ;;  %v9718_v39 = vld [vmem:[#allocation8 + $0x208] sm:$0xff] }
 0xe12   :  { %4241 = vmatprep.subr.mxu0 %v9694_v37  ;;  %4344 = vmatpush1.msra.mxu1 %v11329_v33  ;;  %11340 = vst [vmem:[#allocation68_spill] sm:$0xff] %v9718_v39  ;;  %v11341_v33 = vld [vmem:[#allocation33_spill] sm:$0xff] }
 0xe13   :  { %4242 = vmatpush1.msra.mxu0 %v9698_v59  ;;  %4345 = vmatprep.subr.mxu1 %v11331_v38  ;;  %v9722_v38 = vld [vmem:[#allocation8 + $0x200] sm:$0xff]  ;;  %v11368_v37 = vld [vmem:[#allocation41_spill] sm:$0xff] }
 0xe14   :  { %4243 = vmatprep.subr.mxu0 %v9702_v57  ;;  %4346 = vmatpush1.msra.mxu1 %v11333_v25  ;;  %11342 = vst [vmem:[#allocation70_spill] sm:$0xff] %v9722_v38  ;;  %v11344_v25 = vld [vmem:[#allocation18_spill] sm:$0xff] }
 0xe15   :  { %4244 = vmatpush1.msra.mxu0 %v9706_v32  ;;  %4347 = vmatprep.subr.mxu1 %v11335_v34  ;;  %v11345_v34 = vld [vmem:[#allocation23_spill] sm:$0xff] }
 0xe16   :  { %4245 = vmatprep.subr.mxu0 %v9710_v15  ;;  %4348 = vmatpush1.msra.mxu1 %v11337_v12  ;;  %v11346_v12 = vld [vmem:[#allocation47_spill] sm:$0xff] }
 0xe17   :  { %v3517_v11 = vpop.permute.xlu1 %3516  ;;  %4246 = vmatpush1.msra.mxu0 %v9714_v55  ;;  %4349 = vmatprep.subr.mxu1 %v11339_v19  ;;  %v11349_v19 = vld [vmem:[#allocation28_spill] sm:$0xff] }
 0xe18   :  { %v3519_v43 = vmul.f32 %v3517_v11, %v3501_v40  ;;  %4247 = vmatprep.subr.mxu0 %v9718_v39  ;;  %4350 = vmatpush1.msra.mxu1 %v11341_v33  ;;  %v11347_v40 = vld [vmem:[#allocation24_spill] sm:$0xff]  ;;  %v11350_v33 = vld [vmem:[#allocation49_spill] sm:$0xff]  ;;  %v11359_v39 = vld [vmem:[#allocation95_spill] sm:$0xff] }
 0xe19   :  { %4248 = vmatpush1.msra.mxu0 %v9722_v38  ;;  %4351 = vmatprep.subr.mxu1 %v11343_v62  ;;  %v11348_v11 = vld [vmem:[#allocation48_spill] sm:$0xff]  ;;  %v11351_v62 = vld [vmem:[#allocation29_spill] sm:$0xff] }
 0xe1a   :  { %7005 = vmatmul.mubr.msk.f32.vlgmr.msra.gmra.mxu0 %vm128_vm0, %v3519_v43  ;;  %4436 = vmatprep.subr.mxu0 %v11344_v25  ;;  %v11352_v43 = vld [vmem:[#allocation50_spill] sm:$0xff]  ;;  %v11357_v38 = vld [vmem:[#allocation93_spill] sm:$0xff]  ;;  %v11365_v55 = vld [vmem:[#allocation20_spill] sm:$0xff] }
 0xe1b   :  { %4437 = vmatpush1.msra.mxu0 %v11345_v34  ;;  %4352 = vmatpush1.msra.mxu1 %v11346_v12  ;;  %v11353_v25 = vld [vmem:[#allocation42_spill] sm:$0xff]  ;;  %v11354_v34 = vld [vmem:[#allocation25_spill] sm:$0xff]  ;;  %v11355_v12 = vld [vmem:[#allocation43_spill] sm:$0xff] }
 0xe1c   :  { %4438 = vmatprep.subr.mxu0 %v11347_v40  ;;  %4385 = vmatprep.mubr.f32.mxu1 %v11018_v44  ;;  %v11356_v40 = vld [vmem:[#allocation44_spill] sm:$0xff] }
 0xe1d   :  { %4439 = vmatpush1.msra.mxu0 %v11348_v11  ;;  %4484 = vmatprep.mubr.f32.mxu0 %v11018_v44  ;;  %v11358_v11 = vld [vmem:[#allocation94_spill] sm:$0xff] }
 0xe1e   :  { %4440 = vmatprep.subr.mxu0 %v11349_v19  ;;  %4510 = vmatprep.subr.mxu1 %v11350_v33  ;;  %v11360_v19 = vld [vmem:[#allocation96_spill] sm:$0xff]  ;;  %v11361_v33 = vld [vmem:[#allocation97_spill] sm:$0xff] }
 0xe1f   :  { %4441 = vmatpush1.msra.mxu0 %v11351_v62  ;;  %v9747_v62 = vld [vmem:[#allocation6 + $0x178] sm:$0xff] }
 0xe20   :  { %4442 = vmatprep.subr.mxu0 %v11352_v43  ;;  %11362 = vst [vmem:[#allocation45_spill] sm:$0xff] %v9747_v62  ;;  %v11363_v43 = vld [vmem:[#allocation19_spill] sm:$0xff] }
 0xe21   :  { %4443 = vmatpush1.msra.mxu0 %v11353_v25  ;;  %v11364_v25 = vld [vmem:[#allocation36_spill] sm:$0xff] }
 0xe22   :  { %4444 = vmatprep.subr.mxu0 %v11354_v34  ;;  %v256_v34 = vadd.f32 %v11364_v25, %v11363_v43 }
 0xe23   :  { %4445 = vmatpush1.msra.mxu0 %v11355_v12 }
 0xe24   :  { %4446 = vmatprep.subr.mxu0 %v11356_v40  ;;  %v11366_v40 = vld [vmem:[#allocation37_spill] sm:$0xff] }
 0xe25   :  { %4447 = vmatpush1.msra.mxu0 %v11357_v38  ;;  %v258_v15 = vadd.f32 %v11366_v40, %v11365_v55 }
 0xe26   :  { %4448 = vmatprep.subr.mxu0 %v11358_v11 }
 0xe27   :  { %4449 = vmatpush1.msra.mxu0 %v11359_v39 }
 0xe28   :  { %4450 = vmatprep.subr.mxu0 %v11360_v19 }
 0xe29   :  { %4451 = vmatpush1.msra.mxu0 %v11361_v33  ;;  %v11367_v33 = vld [vmem:[#allocation40_spill] sm:$0xff] }
 0xe2a   :  { %4609 = vmatprep.subr.mxu0 %v9747_v62 }
 0xe94   :  { %v3591_v12 = vpop.f32.mrf.mxu0  ;;  %v3690_v39 = vpop.f32.mrf.mxu1 }
 0xe95   :  { %v3596_v38 = vadd.f32 %v3591_v12, %v256_v34  ;;  %v3691_v57 = vadd.f32 %v3690_v39, %v11367_v33  ;;  %v11369_v34 = vld [vmem:[#allocation21_spill] sm:$0xff] }
 0xe96   :  { %v3593_v32 = vpop.f32.mrf.mxu0  ;;  %v3692_v19 = vpop.f32.mrf.mxu1 }
 0xe97   :  { %v9754_v11 = vadd.f32 %v3593_v32, %v258_v15  ;;  %v3693_v62 = vadd.f32 %v3692_v19, %v11368_v37 }
 0xe99   :  { %7240 = vtanh.f32 %v9754_v11 }
 0xea5   :  { %v3764_v59 = vpop.f32.mrf.mxu0  ;;  %v3863_v32 = vpop.f32.mrf.mxu1 }
 0xea6   :  { %v3769_v58 = vadd.f32 %v3764_v59, %v3691_v57  ;;  %v7241_v17 = vpop.eup %7240  ;;  %v3864_v12 = vadd.f32 %v3863_v32, %v11369_v34 }
 0xea7   :  { %v3766_v25 = vpop.f32.mrf.mxu0  ;;  %3609 = vrot.lane.b32.xlu0 %v7241_v17, %s7878_s2  ;;  %v3865_v15 = vpop.f32.mrf.mxu1 }
 0xea8   :  { %v9759_v43 = vadd.f32 %v3766_v25, %v3693_v62  ;;  %v3866_v39 = vadd.f32 %v3865_v15, %v11370_v5  ;;  %v11371_v62 = vld [vmem:[#allocation30_spill] sm:$0xff] }
 0xeaa   :  { %7242 = vtanh.f32 %v9759_v43 }
 0xeb7   :  { %v3937_v40 = vpop.f32.mrf.mxu0  ;;  %v7243_v55 = vpop.eup %7242 }
 0xeb8   :  { %v3942_v33 = vadd.f32 %v3937_v40, %v3864_v12  ;;  %3782 = vrot.lane.b32.xlu1 %v7243_v55, %s7878_s2  ;;  %v4036_v57 = vpop.f32.mrf.mxu1 }
 0xeb9   :  { %v3939_v51 = vpop.f32.mrf.mxu0  ;;  %v4037_v19 = vadd.f32 %v4036_v57, %v11371_v62 }
 0xeba   :  { %v9766_v59 = vadd.f32 %v3939_v51, %v3866_v39  ;;  %v4038_v17 = vpop.f32.mrf.mxu1  ;;  %v11372_v39 = vld [vmem:[#allocation46_spill] sm:$0xff] }
 0xebb   :  { %v4039_v32 = vadd.f32 %v4038_v17, %v11280_v8 }
 0xebc   :  { %7244 = vtanh.f32 %v9766_v59 }
 0xec9   :  { %v4110_v25 = vpop.f32.mrf.mxu0  ;;  %v7245_v37 = vpop.eup %7244 }
 0xeca   :  { %v4115_v34 = vadd.f32 %v4110_v25, %v4037_v19  ;;  %3955 = vrot.lane.b32.xlu0 %v7245_v37, %s7878_s2  ;;  %v4209_v51 = vpop.f32.mrf.mxu1  ;;  %v3598_v37 = vmul.f32 0.5, %v3596_v38  ;;  %v3771_v19 = vmul.f32 0.5, %v3769_v58 }
 0xecb   :  { %v4112_v31 = vpop.f32.mrf.mxu0  ;;  %v4210_v12 = vadd.f32 %v4209_v51, %v11281_v46 }
 0xecc   :  { %v9772_v15 = vadd.f32 %v4112_v31, %v4039_v32  ;;  %v4211_v55 = vpop.f32.mrf.mxu1 }
 0xecd   :  { %v4212_v5 = vadd.f32 %v4211_v55, %v11372_v39 }
 0xece   :  { %7246 = vtanh.f32 %v9772_v15 }
 0xeda   :  { %v4283_v40 = vpop.f32.mrf.mxu0 }
 0xedb   :  { %v4288_v57 = vadd.f32 %v4283_v40, %v4210_v12  ;;  %v7247_v62 = vpop.eup %7246 }
 0xedc   :  { %v4285_v0 = vpop.f32.mrf.mxu0  ;;  %4128 = vrot.lane.b32.xlu1 %v7247_v62, %s7878_s2 }
 0xedd   :  { %v9777_v13 = vadd.f32 %v4285_v0, %v4212_v5  ;;  %v3944_v5 = vmul.f32 0.5, %v3942_v33 }
 0xedf   :  { %7248 = vtanh.f32 %v9777_v13 }
 0xee0   :  { %7250 = vtanh.f32 %v3598_v37 }
 0xee1   :  { %7252 = vtanh.f32 %v3771_v19 }
 0xee2   :  { %7254 = vtanh.f32 %v3944_v5 }
 0xeec   :  { %v7249_v31 = vpop.eup %7248 }
 0xeed   :  { %4301 = vrot.lane.b32.xlu1 %v7249_v31, %s7878_s2  ;;  %v7251_v17 = vpop.eup %7250  ;;  %v4117_v31 = vmul.f32 0.5, %v4115_v34 }
 0xeee   :  { %v3602_v25 = vmul.f32 0.5, %v7251_v17  ;;  %v7253_v0 = vpop.eup %7252 }
 0xeef   :  { %v3775_v12 = vmul.f32 0.5, %v7253_v0  ;;  %v7255_v38 = vpop.eup %7254  ;;  %7256 = vtanh.f32 %v4117_v31 }
 0xef0   :  { %v3604_v32 = vadd.f32 0.5, %v3602_v25  ;;  %v3948_v37 = vmul.f32 0.5, %v7255_v38 }
 0xef1   :  { %v3777_v62 = vadd.f32 0.5, %v3775_v12 }
 0xef2   :  { %v3950_v58 = vadd.f32 0.5, %v3948_v37  ;;  %v3607_v31 = vmul.f32 %v3604_v32, %v9463_v60 }
 0xefc   :  { %v7257_v25 = vpop.eup %7256 }
 0xf19   :  { %v3610_v51 = vpop.permute.xlu0 %3609 }
 0xf1a   :  { %v3612_v55 = vmul.f32 %v3610_v51, %v3604_v32  ;;  %v4290_v51 = vmul.f32 0.5, %v4288_v57 }
 0xf1c   :  { %3614 = vrot.lane.b32.xlu0 %v3612_v55, %s7878_s2  ;;  %v4121_v55 = vmul.f32 0.5, %v7257_v25  ;;  %7258 = vtanh.f32 %v4290_v51 }
 0xf1e   :  { %v4123_v33 = vadd.f32 0.5, %v4121_v55 }
 0xf29   :  { %v7259_v12 = vpop.eup %7258 }
 0xf2a   :  { %v3783_v40 = vpop.permute.xlu1 %3782 }
 0xf2b   :  { %v3785_v39 = vmul.f32 %v3783_v40, %v3777_v62 }
 0xf2d   :  { %3787 = vrot.lane.b32.xlu0 %v3785_v39, %s7878_s2  ;;  %v4294_v39 = vmul.f32 0.5, %v7259_v12 }
 0xf2f   :  { %v4296_v40 = vadd.f32 0.5, %v4294_v39 }
 0xf3c   :  { %v3956_v17 = vpop.permute.xlu0 %3955 }
 0xf3d   :  { %v3958_v19 = vmul.f32 %v3956_v17, %v3950_v58 }
 0xf3f   :  { %3960 = vrot.lane.b32.xlu1 %v3958_v19, %s7878_s2  ;;  %v3780_v19 = vmul.f32 %v3777_v62, %v9468_v48  ;;  %v4126_v48 = vmul.f32 %v4123_v33, %v9478_v24  ;;  %v3599_v24 = vmul.f32 0.5, %v9754_v11  ;;  %v9821_v11 = vld [vmem:[#allocation6 + $0x168] sm:$0xff] }
 0xf4e   :  { %v4129_v0 = vpop.permute.xlu1 %4128 }
 0xf4f   :  { %v4131_v5 = vmul.f32 %v4129_v0, %v4123_v33  ;;  %v3953_v0 = vmul.f32 %v3950_v58, %v9473_v63  ;;  %v4299_v63 = vmul.f32 %v4296_v40, %v9483_v1 }
 0xf51   :  { %4133 = vrot.lane.b32.xlu0 %v4131_v5, %s7878_s2 }
 0xf5f   :  { %v4302_v34 = vpop.permute.xlu1 %4301 }
 0xf60   :  { %v4304_v38 = vmul.f32 %v4302_v34, %v4296_v40 }
 0xf62   :  { %4306 = vrot.lane.b32.xlu1 %v4304_v38, %s7878_s2 }
 0xf8e   :  { %v3615_v37 = vpop.permute.xlu0 %3614 }
 0xf8f   :  { %v9788_v17 = vadd.f32 %v3615_v37, %v3607_v31  ;;  %v3772_v31 = vmul.f32 0.5, %v9759_v43  ;;  %v9825_v43 = vld [vmem:[#allocation6 + $0x160] sm:$0xff] }
 0xf91   :  { %7260 = vtanh.f32 %v9788_v17 }
 0xf9e   :  { %v7261_v57 = vpop.eup %7260 }
 0xf9f   :  { %v3788_v25 = vpop.permute.xlu0 %3787  ;;  %3620 = vrot.lane.b32.xlu0 %v7261_v57, %s7878_s2 }
 0xfa0   :  { %v9793_v51 = vadd.f32 %v3788_v25, %v3780_v19  ;;  %v9817_v19 = vld [vmem:[#allocation6 + $0x170] sm:$0xff]  ;;  %v9829_v25 = vld [vmem:[#allocation6 + $0x158] sm:$0xff] }
 0xfa2   :  { %7262 = vtanh.f32 %v9793_v51 }
 0xfaf   :  { %v7263_v55 = vpop.eup %7262 }
 0xfb0   :  { %3793 = vrot.lane.b32.xlu1 %v7263_v55, %s7878_s2  ;;  %v9833_v55 = vld [vmem:[#allocation6 + $0x150] sm:$0xff] }
 0xfb1   :  { %v3961_v60 = vpop.permute.xlu1 %3960 }
 0xfb2   :  { %v9798_v32 = vadd.f32 %v3961_v60, %v3953_v0  ;;  %v9837_v60 = vld [vmem:[#allocation6 + $0x148] sm:$0xff] }
 0xfb4   :  { %7264 = vtanh.f32 %v9798_v32 }
 0xfc1   :  { %v7265_v5 = vpop.eup %7264 }
 0xfc2   :  { %3966 = vrot.lane.b32.xlu0 %v7265_v5, %s7878_s2  ;;  %v3945_v5 = vmul.f32 0.5, %v9766_v59  ;;  %v9854_v59 = vld [vmem:[#allocation6 + $0x128] sm:$0xff] }
 0xfc3   :  { %v4134_v62 = vpop.permute.xlu0 %4133 }
 0xfc4   :  { %v9803_v12 = vadd.f32 %v4134_v62, %v4126_v48  ;;  %v9842_v48 = vld [vmem:[#allocation6 + $0x140] sm:$0xff]  ;;  %v9846_v62 = vld [vmem:[#allocation6 + $0x138] sm:$0xff] }
 0xfc6   :  { %7266 = vtanh.f32 %v9803_v12 }
 0xfd3   :  { %v7267_v39 = vpop.eup %7266 }
 0xfd4   :  { %v4307_v58 = vpop.permute.xlu1 %4306  ;;  %4139 = vrot.lane.b32.xlu1 %v7267_v39, %s7878_s2  ;;  %v9850_v39 = vld [vmem:[#allocation6 + $0x130] sm:$0xff] }
 0xfd5   :  { %v9808_v34 = vadd.f32 %v4307_v58, %v4299_v63  ;;  %v9858_v58 = vld [vmem:[#allocation6 + $0x120] sm:$0xff] }
 0xfd7   :  { %7268 = vtanh.f32 %v9808_v34 }
 0xfd8   :  { %7270 = vtanh.f32 %v3599_v24 }
 0xfd9   :  { %7272 = vtanh.f32 %v3772_v31 }
 0xfda   :  { %7274 = vtanh.f32 %v3945_v5  ;;  %v9887_v5 = vld [vmem:[#allocation8 + $0x170] sm:$0xff] }
 0xfdb   :  { %11376 = vst [vmem:[#allocation57_spill] sm:$0xff] %v9887_v5 }
 0xfe4   :  { %v7269_v38 = vpop.eup %7268 }
 0xfe5   :  { %4312 = vrot.lane.b32.xlu0 %v7269_v38, %s7878_s2  ;;  %v7271_v33 = vpop.eup %7270  ;;  %v9862_v38 = vld [vmem:[#allocation6 + $0x118] sm:$0xff] }
 0xfe6   :  { %v3603_v37 = vmul.f32 0.5, %v7271_v33  ;;  %v7273_v0 = vpop.eup %7272  ;;  %v9866_v33 = vld [vmem:[#allocation6 + $0x110] sm:$0xff] }
 0xfe7   :  { %v3776_v63 = vmul.f32 0.5, %v7273_v0  ;;  %v9884_v0 = vld [vmem:[#allocation6 + $0x1f8] sm:$0xff] }
 0xfe8   :  { %v3605_v57 = vadd.f32 0.5, %v3603_v37  ;;  %v9870_v37 = vld [vmem:[#allocation6 + $0x108] sm:$0xff]  ;;  %11375 = vst [vmem:[#allocation55_spill] sm:$0xff] %v9884_v0 }
 0xfe9   :  { %v3778_v24 = vadd.f32 0.5, %v3776_v63  ;;  %11373 = vst [vmem:[#allocation51_spill] sm:$0xff] %v9870_v37  ;;  %v9890_v63 = vld [vmem:[#allocation6 + $0x1f0] sm:$0xff] }
 0xfea   :  { %11377 = vst [vmem:[#allocation59_spill] sm:$0xff] %v9890_v63 }
0x1011   :  { %v3621_v1 = vpop.permute.xlu0 %3620 }
0x1012   :  { %v3623_v40 = vmul.f32 %v3621_v1, %v3605_v57  ;;  %v9875_v1 = vld [vmem:[#allocation6 + $0x100] sm:$0xff] }
0x1013   :  { %11374 = vst [vmem:[#allocation53_spill] sm:$0xff] %v9875_v1 }
0x1014   :  { %7006 = vmatmul.mubr.msk.f32.vlgmr.msra.gmra.mxu1 %vm128_vm0, %v3623_v40  ;;  %7007 = vmatmul.mubr.msk.f32.vlgmr.msra.gmra.mxu0 %vm128_vm0, %v3623_v40  ;;  %v9881_v40 = vld [vmem:[#allocation8 + $0x178] sm:$0xff] }
0x1015   :  { %4511 = vmatpush1.msra.mxu1 %v9491_v45  ;;  %4610 = vmatpush1.msra.mxu0 %v9817_v19 }
0x1016   :  { %4512 = vmatprep.subr.mxu1 %v9495_v4  ;;  %4611 = vmatprep.subr.mxu0 %v9821_v11 }
0x1017   :  { %4513 = vmatpush1.msra.mxu1 %v9499_v52  ;;  %4612 = vmatpush1.msra.mxu0 %v9825_v43 }
0x1018   :  { %4514 = vmatprep.subr.mxu1 %v9503_v23  ;;  %4613 = vmatprep.subr.mxu0 %v9829_v25 }
0x1019   :  { %4515 = vmatpush1.msra.mxu1 %v9507_v2  ;;  %4614 = vmatpush1.msra.mxu0 %v9833_v55 }
0x101a   :  { %4516 = vmatprep.subr.mxu1 %v9511_v16  ;;  %4615 = vmatprep.subr.mxu0 %v9837_v60 }
0x101b   :  { %4517 = vmatpush1.msra.mxu1 %v9516_v36  ;;  %4616 = vmatpush1.msra.mxu0 %v9842_v48 }
0x101c   :  { %4518 = vmatprep.subr.mxu1 %v9520_v56  ;;  %4617 = vmatprep.subr.mxu0 %v9846_v62 }
0x101d   :  { %4519 = vmatpush1.msra.mxu1 %v9524_v47  ;;  %4618 = vmatpush1.msra.mxu0 %v9850_v39 }
0x101e   :  { %4520 = vmatprep.subr.mxu1 %v9528_v53  ;;  %4619 = vmatprep.subr.mxu0 %v9854_v59 }
0x101f   :  { %4521 = vmatpush1.msra.mxu1 %v9532_v10  ;;  %4620 = vmatpush1.msra.mxu0 %v9858_v58 }
0x1020   :  { %4522 = vmatprep.subr.mxu1 %v9536_v30  ;;  %4621 = vmatprep.subr.mxu0 %v9862_v38 }
0x1021   :  { %4523 = vmatpush1.msra.mxu1 %v9540_v3  ;;  %4622 = vmatpush1.msra.mxu0 %v9866_v33 }
0x1022   :  { %v3794_v31 = vpop.permute.xlu1 %3793  ;;  %4524 = vmatprep.subr.mxu1 %v9544_v20  ;;  %4623 = vmatprep.subr.mxu0 %v9870_v37  ;;  %v9933_v37 = vld [vmem:[#allocation6 + $0x1b8] sm:$0xff] }
0x1023   :  { %v3796_v57 = vmul.f32 %v3794_v31, %v3778_v24  ;;  %4525 = vmatpush1.msra.mxu1 %v9548_v27  ;;  %4558 = vmatprep.mubr.f32.mxu1 %v11018_v44  ;;  %v9893_v24 = vld [vmem:[#allocation8 + $0x168] sm:$0xff]  ;;  %11391 = vst [vmem:[#allocation79_spill] sm:$0xff] %v9933_v37 }
0x1024   :  { %4624 = vmatpush1.msra.mxu0 %v9875_v1  ;;  %4657 = vmatprep.mubr.f32.mxu0 %v11018_v44  ;;  %11378 = vst [vmem:[#allocation61_spill] sm:$0xff] %v9893_v24  ;;  %v9896_v31 = vld [vmem:[#allocation6 + $0x1e8] sm:$0xff] }
0x1025   :  { %7008 = vmatmul.mubr.msk.f32.vlgmr.msra.gmra.mxu1 %vm128_vm0, %v3796_v57  ;;  %7009 = vmatmul.mubr.msk.f32.vlgmr.msra.gmra.mxu0 %vm128_vm0, %v3796_v57  ;;  %11379 = vst [vmem:[#allocation63_spill] sm:$0xff] %v9896_v31  ;;  %v9899_v57 = vld [vmem:[#allocation8 + $0x160] sm:$0xff]  ;;  %v9917_v1 = vld [vmem:[#allocation8 + $0x148] sm:$0xff] }
0x1026   :  { %4683 = vmatprep.subr.mxu1 %v9881_v40  ;;  %4782 = vmatprep.subr.mxu0 %v9884_v0  ;;  %11380 = vst [vmem:[#allocation65_spill] sm:$0xff] %v9899_v57  ;;  %v9902_v0 = vld [vmem:[#allocation6 + $0x1e0] sm:$0xff]  ;;  %11386 = vst [vmem:[#allocation74_spill] sm:$0xff] %v9917_v1 }
0x1027   :  { %4684 = vmatpush1.msra.mxu1 %v9887_v5  ;;  %4783 = vmatpush1.msra.mxu0 %v9890_v63  ;;  %11381 = vst [vmem:[#allocation67_spill] sm:$0xff] %v9902_v0  ;;  %v9905_v5 = vld [vmem:[#allocation8 + $0x158] sm:$0xff] }
0x1028   :  { %4685 = vmatprep.subr.mxu1 %v9893_v24  ;;  %4784 = vmatprep.subr.mxu0 %v9896_v31  ;;  %11382 = vst [vmem:[#allocation69_spill] sm:$0xff] %v9905_v5  ;;  %v9908_v63 = vld [vmem:[#allocation6 + $0x1d8] sm:$0xff]  ;;  %v9911_v24 = vld [vmem:[#allocation8 + $0x150] sm:$0xff] }
0x1029   :  { %4686 = vmatpush1.msra.mxu1 %v9899_v57  ;;  %4785 = vmatpush1.msra.mxu0 %v9902_v0  ;;  %11383 = vst [vmem:[#allocation71_spill] sm:$0xff] %v9908_v63  ;;  %11384 = vst [vmem:[#allocation72_spill] sm:$0xff] %v9911_v24  ;;  %v9914_v31 = vld [vmem:[#allocation6 + $0x1d0] sm:$0xff]  ;;  %v7275_v57 = vpop.eup %7274  ;;  %v9920_v0 = vld [vmem:[#allocation6 + $0x1c8] sm:$0xff] }
0x102a   :  { %4687 = vmatprep.subr.mxu1 %v9905_v5  ;;  %4786 = vmatprep.subr.mxu0 %v9908_v63  ;;  %11385 = vst [vmem:[#allocation73_spill] sm:$0xff] %v9914_v31  ;;  %11387 = vst [vmem:[#allocation75_spill] sm:$0xff] %v9920_v0  ;;  %v4118_v5 = vmul.f32 0.5, %v9772_v15  ;;  %v9924_v63 = vld [vmem:[#allocation8 + $0x140] sm:$0xff]  ;;  %v9939_v15 = vld [vmem:[#allocation6 + $0x1b0] sm:$0xff] }
0x102b   :  { %4688 = vmatpush1.msra.mxu1 %v9911_v24  ;;  %4787 = vmatpush1.msra.mxu0 %v9914_v31  ;;  %11388 = vst [vmem:[#allocation76_spill] sm:$0xff] %v9924_v63  ;;  %v9927_v24 = vld [vmem:[#allocation6 + $0x1c0] sm:$0xff]  ;;  %v9930_v31 = vld [vmem:[#allocation8 + $0x138] sm:$0xff]  ;;  %11393 = vst [vmem:[#allocation81_spill] sm:$0xff] %v9939_v15 }
0x102c   :  { %4689 = vmatprep.subr.mxu1 %v9917_v1  ;;  %4788 = vmatprep.subr.mxu0 %v9920_v0  ;;  %11389 = vst [vmem:[#allocation77_spill] sm:$0xff] %v9927_v24  ;;  %11390 = vst [vmem:[#allocation78_spill] sm:$0xff] %v9930_v31  ;;  %v9936_v1 = vld [vmem:[#allocation8 + $0x130] sm:$0xff]  ;;  %v9942_v0 = vld [vmem:[#allocation8 + $0x128] sm:$0xff]  ;;  %7276 = vtanh.f32 %v4118_v5 }
0x102d   :  { %4690 = vmatpush1.msra.mxu1 %v9924_v63  ;;  %4789 = vmatpush1.msra.mxu0 %v9927_v24  ;;  %11392 = vst [vmem:[#allocation80_spill] sm:$0xff] %v9936_v1  ;;  %v3949_v63 = vmul.f32 0.5, %v7275_v57  ;;  %11394 = vst [vmem:[#allocation82_spill] sm:$0xff] %v9942_v0  ;;  %v9945_v24 = vld [vmem:[#allocation6 + $0x1a8] sm:$0xff]  ;;  %v9957_v57 = vld [vmem:[#allocation6 + $0x198] sm:$0xff] }
0x102e   :  { %4691 = vmatprep.subr.mxu1 %v9930_v31  ;;  %4790 = vmatprep.subr.mxu0 %v9933_v37  ;;  %11395 = vst [vmem:[#allocation83_spill] sm:$0xff] %v9945_v24  ;;  %v9948_v31 = vld [vmem:[#allocation8 + $0x120] sm:$0xff]  ;;  %11399 = vst [vmem:[#allocation87_spill] sm:$0xff] %v9957_v57  ;;  %v9963_v5 = vld [vmem:[#allocation6 + $0x190] sm:$0xff] }
0x102f   :  { %4692 = vmatpush1.msra.mxu1 %v9936_v1  ;;  %4791 = vmatpush1.msra.mxu0 %v9939_v15  ;;  %11396 = vst [vmem:[#allocation84_spill] sm:$0xff] %v9948_v31  ;;  %v9951_v37 = vld [vmem:[#allocation6 + $0x1a0] sm:$0xff]  ;;  %v9954_v1 = vld [vmem:[#allocation8 + $0x118] sm:$0xff]  ;;  %v9960_v15 = vld [vmem:[#allocation8 + $0x110] sm:$0xff] }
0x1030   :  { %4693 = vmatprep.subr.mxu1 %v9942_v0  ;;  %4792 = vmatprep.subr.mxu0 %v9945_v24  ;;  %11397 = vst [vmem:[#allocation85_spill] sm:$0xff] %v9951_v37  ;;  %11398 = vst [vmem:[#allocation86_spill] sm:$0xff] %v9954_v1  ;;  %v3951_v0 = vadd.f32 0.5, %v3949_v63  ;;  %v9966_v24 = vld [vmem:[#allocation8 + $0x108] sm:$0xff]  ;;  %v9976_v63 = vld [vmem:[#allocation6 + $0x180] sm:$0xff] }
0x1031   :  { %4694 = vmatpush1.msra.mxu1 %v9948_v31  ;;  %4793 = vmatpush1.msra.mxu0 %v9951_v37  ;;  %11400 = vst [vmem:[#allocation88_spill] sm:$0xff] %v9966_v24  ;;  %v9969_v37 = vld [vmem:[#allocation6 + $0x188] sm:$0xff]  ;;  %11401 = vst [vmem:[#allocation89_spill] sm:$0xff] %v9976_v63 }
0x1032   :  { %4695 = vmatprep.subr.mxu1 %v9954_v1  ;;  %4794 = vmatprep.subr.mxu0 %v9957_v57  ;;  %v9972_v57 = vld [vmem:[#allocation8 + $0x100] sm:$0xff] }
0x1033   :  { %4696 = vmatpush1.msra.mxu1 %v9960_v15  ;;  %4795 = vmatpush1.msra.mxu0 %v9963_v5 }
0x1034   :  { %v3967_v31 = vpop.permute.xlu0 %3966  ;;  %4697 = vmatprep.subr.mxu1 %v9966_v24  ;;  %4796 = vmatprep.subr.mxu0 %v9969_v37  ;;  %v9982_v24 = vld [vmem:[#allocation8 + $0x1f8] sm:$0xff] }
0x1035   :  { %v3969_v1 = vmul.f32 %v3967_v31, %v3951_v0  ;;  %4698 = vmatpush1.msra.mxu1 %v9972_v57  ;;  %4731 = vmatprep.mubr.f32.mxu1 %v11018_v44  ;;  %v9986_v0 = vld [vmem:[#allocation8 + $0x1f0] sm:$0xff]  ;;  %v9990_v31 = vld [vmem:[#allocation8 + $0x1e8] sm:$0xff] }
0x1036   :  { %4797 = vmatpush1.msra.mxu0 %v9976_v63  ;;  %4830 = vmatprep.mubr.f32.mxu0 %v11018_v44  ;;  %11402 = vst [vmem:[#allocation90_spill] sm:$0xff] %v9990_v31  ;;  %v9994_v63 = vld [vmem:[#allocation8 + $0x1e0] sm:$0xff] }
0x1037   :  { %7010 = vmatmul.mubr.msk.f32.vlgmr.msra.gmra.mxu1 %vm128_vm0, %v3969_v1  ;;  %7011 = vmatmul.mubr.msk.f32.vlgmr.msra.gmra.mxu0 %vm128_vm0, %v3969_v1  ;;  %v9998_v1 = vld [vmem:[#allocation8 + $0x1d8] sm:$0xff] }
0x1038   :  { %4856 = vmatprep.subr.mxu1 %v9982_v24  ;;  %4955 = vmatprep.subr.mxu0 %v9594_v22  ;;  %v10002_v22 = vld [vmem:[#allocation8 + $0x1d0] sm:$0xff] }
0x1039   :  { %4857 = vmatpush1.msra.mxu1 %v9986_v0  ;;  %4956 = vmatpush1.msra.mxu0 %v9598_v9  ;;  %v7277_v9 = vpop.eup %7276 }
0x103a   :  { %4858 = vmatprep.subr.mxu1 %v9990_v31  ;;  %4957 = vmatprep.subr.mxu0 %v9602_v41  ;;  %v4291_v41 = vmul.f32 0.5, %v9777_v13  ;;  %v10007_v31 = vld [vmem:[#allocation8 + $0x1c8] sm:$0xff]  ;;  %v4122_v13 = vmul.f32 0.5, %v7277_v9  ;;  %v10035_v9 = vld [vmem:[#allocation8 + $0x190] sm:$0xff] }
0x103b   :  { %4859 = vmatpush1.msra.mxu1 %v9994_v63  ;;  %4958 = vmatpush1.msra.mxu0 %v9606_v28  ;;  %v10011_v28 = vld [vmem:[#allocation8 + $0x1c0] sm:$0xff]  ;;  %11405 = vst [vmem:[#allocation32_spill] sm:$0xff] %v10035_v9 }
0x103c   :  { %4860 = vmatprep.subr.mxu1 %v9998_v1  ;;  %4959 = vmatprep.subr.mxu0 %v9610_v29  ;;  %v10015_v29 = vld [vmem:[#allocation8 + $0x1b8] sm:$0xff]  ;;  %7278 = vtanh.f32 %v4291_v41  ;;  %v10039_v41 = vld [vmem:[#allocation8 + $0x188] sm:$0xff] }
0x103d   :  { %4861 = vmatpush1.msra.mxu1 %v10002_v22  ;;  %4960 = vmatpush1.msra.mxu0 %v9614_v14  ;;  %v10019_v14 = vld [vmem:[#allocation8 + $0x1b0] sm:$0xff]  ;;  %11406 = vst [vmem:[#allocation33_spill] sm:$0xff] %v10039_v41 }
0x103e   :  { %4862 = vmatprep.subr.mxu1 %v10007_v31  ;;  %4961 = vmatprep.subr.mxu0 %v9619_v26  ;;  %v10023_v26 = vld [vmem:[#allocation8 + $0x1a8] sm:$0xff] }
0x103f   :  { %4863 = vmatpush1.msra.mxu1 %v10011_v28  ;;  %4962 = vmatpush1.msra.mxu0 %v9623_v50  ;;  %v10027_v50 = vld [vmem:[#allocation8 + $0x1a0] sm:$0xff] }
0x1040   :  { %4864 = vmatprep.subr.mxu1 %v10015_v29  ;;  %4963 = vmatprep.subr.mxu0 %v9627_v42  ;;  %11403 = vst [vmem:[#allocation91_spill] sm:$0xff] %v10027_v50  ;;  %v10031_v42 = vld [vmem:[#allocation8 + $0x198] sm:$0xff] }
0x1041   :  { %4865 = vmatpush1.msra.mxu1 %v10019_v14  ;;  %4964 = vmatpush1.msra.mxu0 %v9631_v61  ;;  %11404 = vst [vmem:[#allocation92_spill] sm:$0xff] %v10031_v42  ;;  %v4124_v61 = vadd.f32 0.5, %v4122_v13  ;;  %v7657_v13 = vld [vmem:[#allocation6 + $0xf0] sm:$0xff] }
0x1042   :  { %4866 = vmatprep.subr.mxu1 %v10023_v26  ;;  %4965 = vmatprep.subr.mxu0 %v9635_v35 }
0x1043   :  { %4867 = vmatpush1.msra.mxu1 %v10027_v50  ;;  %4966 = vmatpush1.msra.mxu0 %v9639_v18  ;;  %v10043_v50 = vld [vmem:[#allocation8 + $0x180] sm:$0xff] }
0x1044   :  { %4868 = vmatprep.subr.mxu1 %v10031_v42  ;;  %4967 = vmatprep.subr.mxu0 %v9643_v6  ;;  %11407 = vst [vmem:[#allocation17_spill] sm:$0xff] %v10043_v50  ;;  %v11408_v6 = vld [vmem:[#allocation26_spill] sm:$0xff] }
0x1045   :  { %4869 = vmatpush1.msra.mxu1 %v10035_v9  ;;  %4968 = vmatpush1.msra.mxu0 %v9647_v7  ;;  %v7656_v7 = vld [vmem:[#allocation6 + $0xf8] sm:$0xff]  ;;  %v7663_v9 = vld [vmem:[#allocation6 + $0xc0] sm:$0xff] }
0x1046   :  { %v4140_v35 = vpop.permute.xlu1 %4139  ;;  %4870 = vmatprep.subr.mxu1 %v10039_v41  ;;  %4969 = vmatprep.subr.mxu0 %v9651_v21  ;;  %v11409_v21 = vld [vmem:[#allocation34_spill] sm:$0xff] }
0x1047   :  { %v4142_v18 = vmul.f32 %v4140_v35, %v4124_v61  ;;  %4871 = vmatpush1.msra.mxu1 %v10043_v50  ;;  %4904 = vmatprep.mubr.f32.mxu1 %v11018_v44  ;;  %v11410_v61 = vld [vmem:[#allocation35_spill] sm:$0xff]  ;;  %v7660_v41 = vld [vmem:[#allocation6 + $0xd8] sm:$0xff] }
0x1048   :  { %4970 = vmatpush1.msra.mxu0 %v9656_v49  ;;  %5003 = vmatprep.mubr.f32.mxu0 %v11018_v44  ;;  %v7658_v49 = vld [vmem:[#allocation6 + $0xe8] sm:$0xff]  ;;  %v7659_v50 = vld [vmem:[#allocation6 + $0xe0] sm:$0xff] }
0x1049   :  { %7012 = vmatmul.mubr.msk.f32.vlgmr.msra.gmra.mxu1 %vm128_vm0, %v4142_v18  ;;  %7013 = vmatmul.mubr.msk.f32.vlgmr.msra.gmra.mxu0 %vm128_vm0, %v4142_v18  ;;  %v11411_v35 = vld [vmem:[#allocation31_spill] sm:$0xff]  ;;  %v7279_v18 = vpop.eup %7278 }
0x104a   :  { %5029 = vmatprep.subr.mxu1 %v9662_v54  ;;  %5077 = vmatprep.mubr.f32.mxu1 %v11018_v44  ;;  %v11412_v54 = vld [vmem:[#allocation27_spill] sm:$0xff] }
0x104b   :  { %5030 = vmatpush1.msra.mxu1 %v11408_v6  ;;  %5131 = vmatprep.subr.mxu0 %v7656_v7  ;;  %v11413_v6 = vld [vmem:[#allocation52_spill] sm:$0xff]  ;;  %v7667_v42 = vld [vmem:[#allocation6 + $0xa0] sm:$0xff] }
0x104c   :  { %5031 = vmatprep.subr.mxu1 %v11409_v21  ;;  %5132 = vmatpush1.msra.mxu0 %v7657_v13  ;;  %v7661_v7 = vld [vmem:[#allocation6 + $0xd0] sm:$0xff]  ;;  %v11414_v21 = vld [vmem:[#allocation54_spill] sm:$0xff]  ;;  %v7662_v13 = vld [vmem:[#allocation6 + $0xc8] sm:$0xff] }
0x104d   :  { %5032 = vmatpush1.msra.mxu1 %v11410_v61  ;;  %5133 = vmatprep.subr.mxu0 %v7658_v49  ;;  %v11415_v61 = vld [vmem:[#allocation56_spill] sm:$0xff]  ;;  %v4295_v49 = vmul.f32 0.5, %v7279_v18 }
0x104e   :  { %5033 = vmatprep.subr.mxu1 %v11411_v35  ;;  %5134 = vmatpush1.msra.mxu0 %v7659_v50  ;;  %v11416_v35 = vld [vmem:[#allocation58_spill] sm:$0xff] }
0x104f   :  { %5034 = vmatpush1.msra.mxu1 %v11412_v54  ;;  %5135 = vmatprep.subr.mxu0 %v7660_v41  ;;  %v7664_v50 = vld [vmem:[#allocation6 + $0xb8] sm:$0xff]  ;;  %v11417_v54 = vld [vmem:[#allocation60_spill] sm:$0xff] }
0x1050   :  { %5035 = vmatprep.subr.mxu1 %v11413_v6  ;;  %5136 = vmatpush1.msra.mxu0 %v7661_v7  ;;  %v7665_v41 = vld [vmem:[#allocation6 + $0xb0] sm:$0xff]  ;;  %v11418_v6 = vld [vmem:[#allocation62_spill] sm:$0xff]  ;;  %v7666_v7 = vld [vmem:[#allocation6 + $0xa8] sm:$0xff] }
0x1051   :  { %5036 = vmatpush1.msra.mxu1 %v11414_v21  ;;  %5137 = vmatprep.subr.mxu0 %v7662_v13  ;;  %v11419_v21 = vld [vmem:[#allocation64_spill] sm:$0xff]  ;;  %v4297_v13 = vadd.f32 0.5, %v4295_v49  ;;  %v11423_v49 = vld [vmem:[#allocation45_spill] sm:$0xff] }
0x1052   :  { %5037 = vmatprep.subr.mxu1 %v11415_v61  ;;  %5138 = vmatpush1.msra.mxu0 %v7663_v9  ;;  %v11420_v61 = vld [vmem:[#allocation66_spill] sm:$0xff] }
0x1053   :  { %5038 = vmatpush1.msra.mxu1 %v11416_v35  ;;  %5139 = vmatprep.subr.mxu0 %v7664_v50  ;;  %v7668_v9 = vld [vmem:[#allocation6 + $0x98] sm:$0xff]  ;;  %v11421_v50 = vld [vmem:[#allocation68_spill] sm:$0xff] }
0x1054   :  { %5039 = vmatprep.subr.mxu1 %v11417_v54  ;;  %5140 = vmatpush1.msra.mxu0 %v7665_v41  ;;  %v7669_v54 = vld [vmem:[#allocation6 + $0x90] sm:$0xff]  ;;  %v11422_v41 = vld [vmem:[#allocation70_spill] sm:$0xff] }
0x1055   :  { %5040 = vmatpush1.msra.mxu1 %v11418_v6  ;;  %5141 = vmatprep.subr.mxu0 %v7666_v7  ;;  %v7670_v6 = vld [vmem:[#allocation6 + $0x88] sm:$0xff]  ;;  %v7671_v7 = vld [vmem:[#allocation6 + $0x80] sm:$0xff] }
0x1056   :  { %5041 = vmatprep.subr.mxu1 %v11419_v21  ;;  %5142 = vmatpush1.msra.mxu0 %v7667_v42  ;;  %v7672_v42 = vld [vmem:[#allocation8 + $0xf8] sm:$0xff] }
0x1057   :  { %v4313_v18 = vpop.permute.xlu0 %4312  ;;  %5042 = vmatpush1.msra.mxu1 %v11420_v61  ;;  %5143 = vmatprep.subr.mxu0 %v7668_v9  ;;  %v11429_v21 = vld [vmem:[#allocation41_spill] sm:$0xff] }
0x1058   :  { %v4315_v35 = vmul.f32 %v4313_v18, %v4297_v13  ;;  %5043 = vmatprep.subr.mxu1 %v11421_v50  ;;  %5144 = vmatpush1.msra.mxu0 %v7669_v54 }
0x1059   :  { %5044 = vmatpush1.msra.mxu1 %v11422_v41  ;;  %5145 = vmatprep.subr.mxu0 %v7670_v6  ;;  %v11430_v41 = vld [vmem:[#allocation21_spill] sm:$0xff] }
0x105a   :  { %7014 = vmatmul.mubr.msk.f32.vlgmr.msra.gmra.mxu1 %vm128_vm0, %v4315_v35  ;;  %5146 = vmatpush1.msra.mxu0 %v7671_v7 }
0x105b   :  { %5179 = vmatprep.mubr.f32.mxu0 %v11018_v44  ;;  %5205 = vmatprep.subr.mxu1 %v7672_v42 }
0x105c   :  { %5304 = vmatprep.subr.mxu0 %v11423_v49  ;;  %5206 = vmatpush1.msra.mxu1 %v9491_v45  ;;  %v11424_v45 = vld [vmem:[#allocation19_spill] sm:$0xff]  ;;  %v11431_v49 = vld [vmem:[#allocation22_spill] sm:$0xff] }
0x105d   :  { %5207 = vmatprep.subr.mxu1 %v9495_v4  ;;  %5253 = vmatprep.mubr.f32.mxu1 %v11018_v44  ;;  %v11425_v4 = vld [vmem:[#allocation38_spill] sm:$0xff] }
0x105e   :  { %5208 = vmatpush1.msra.mxu1 %v9499_v52  ;;  %v262_v52 = vadd.f32 %v11425_v4, %v11424_v45 }
0x105f   :  { %5209 = vmatprep.subr.mxu1 %v9503_v23 }
0x1060   :  { %5210 = vmatpush1.msra.mxu1 %v9507_v2  ;;  %v11426_v2 = vld [vmem:[#allocation20_spill] sm:$0xff] }
0x1061   :  { %5211 = vmatprep.subr.mxu1 %v9511_v16  ;;  %v11427_v16 = vld [vmem:[#allocation39_spill] sm:$0xff] }
0x1062   :  { %5212 = vmatpush1.msra.mxu1 %v9516_v36  ;;  %v264_v36 = vadd.f32 %v11427_v16, %v11426_v2 }
0x1063   :  { %5213 = vmatprep.subr.mxu1 %v9520_v56 }
0x1064   :  { %5214 = vmatpush1.msra.mxu1 %v9524_v47 }
0x1065   :  { %5215 = vmatprep.subr.mxu1 %v9528_v53 }
0x1066   :  { %5216 = vmatpush1.msra.mxu1 %v9532_v10 }
0x1067   :  { %5217 = vmatprep.subr.mxu1 %v9536_v30 }
0x1068   :  { %5218 = vmatpush1.msra.mxu1 %v9540_v3  ;;  %v11428_v3 = vld [vmem:[#allocation40_spill] sm:$0xff] }
0x1069   :  { %5219 = vmatprep.subr.mxu1 %v9544_v20 }
0x106a   :  { %5220 = vmatpush1.msra.mxu1 %v9548_v27 }
0x106b   :  { %5378 = vmatprep.subr.mxu1 %v9881_v40 }
0x10d4   :  { %v4387_v23 = vpop.f32.mrf.mxu1  ;;  %v4486_v10 = vpop.f32.mrf.mxu0 }
0x10d5   :  { %v4392_v56 = vadd.f32 %v4387_v23, %v262_v52  ;;  %v4487_v20 = vadd.f32 %v4486_v10, %v11428_v3 }
0x10d6   :  { %v4389_v47 = vpop.f32.mrf.mxu1  ;;  %v4488_v30 = vpop.f32.mrf.mxu0 }
0x10d7   :  { %v10092_v53 = vadd.f32 %v4389_v47, %v264_v36  ;;  %v4489_v13 = vadd.f32 %v4488_v30, %v11429_v21  ;;  %v11432_v36 = vld [vmem:[#allocation30_spill] sm:$0xff] }
0x10d9   :  { %7280 = vtanh.f32 %v10092_v53 }
0x10e5   :  { %v4560_v27 = vpop.f32.mrf.mxu1  ;;  %v4659_v50 = vpop.f32.mrf.mxu0 }
0x10e6   :  { %v4565_v18 = vadd.f32 %v4560_v27, %v4487_v20  ;;  %v7281_v61 = vpop.eup %7280  ;;  %v4660_v6 = vadd.f32 %v4659_v50, %v11430_v41 }
0x10e7   :  { %v4562_v9 = vpop.f32.mrf.mxu1  ;;  %4405 = vrot.lane.b32.xlu1 %v7281_v61, %s7878_s2  ;;  %v4661_v54 = vpop.f32.mrf.mxu0 }
0x10e8   :  { %v10097_v35 = vadd.f32 %v4562_v9, %v4489_v13  ;;  %v4662_v45 = vadd.f32 %v4661_v54, %v11431_v49 }
0x10ea   :  { %7282 = vtanh.f32 %v10097_v35 }
0x10f7   :  { %v4733_v7 = vpop.f32.mrf.mxu1  ;;  %v7283_v42 = vpop.eup %7282 }
0x10f8   :  { %v4738_v4 = vadd.f32 %v4733_v7, %v4660_v6  ;;  %4578 = vrot.lane.b32.xlu0 %v7283_v42, %s7878_s2  ;;  %v4832_v2 = vpop.f32.mrf.mxu0  ;;  %v11433_v7 = vld [vmem:[#allocation46_spill] sm:$0xff] }
0x10f9   :  { %v4735_v52 = vpop.f32.mrf.mxu1  ;;  %v4833_v47 = vadd.f32 %v4832_v2, %v11432_v36 }
0x10fa   :  { %v10104_v23 = vadd.f32 %v4735_v52, %v4662_v45  ;;  %v4834_v16 = vpop.f32.mrf.mxu0 }
0x10fb   :  { %v4835_v20 = vadd.f32 %v4834_v16, %v11280_v8 }
0x10fc   :  { %7284 = vtanh.f32 %v10104_v23 }
0x1109   :  { %v4906_v10 = vpop.f32.mrf.mxu1  ;;  %v7285_v30 = vpop.eup %7284 }
0x110a   :  { %v4911_v27 = vadd.f32 %v4906_v10, %v4833_v47  ;;  %4751 = vrot.lane.b32.xlu1 %v7285_v30, %s7878_s2  ;;  %v5005_v9 = vpop.f32.mrf.mxu0  ;;  %v4394_v47 = vmul.f32 0.5, %v4392_v56  ;;  %v4567_v30 = vmul.f32 0.5, %v4565_v18 }
0x110b   :  { %v4908_v13 = vpop.f32.mrf.mxu1  ;;  %v5006_v54 = vadd.f32 %v5005_v9, %v11281_v46 }
0x110c   :  { %v10110_v61 = vadd.f32 %v4908_v13, %v4835_v20  ;;  %v5007_v50 = vpop.f32.mrf.mxu0 }
0x110d   :  { %v5008_v42 = vadd.f32 %v5007_v50, %v11433_v7 }
0x110e   :  { %7286 = vtanh.f32 %v10110_v61 }
0x111a   :  { %v5079_v6 = vpop.f32.mrf.mxu1 }
0x111b   :  { %v5084_v45 = vadd.f32 %v5079_v6, %v5006_v54  ;;  %v7287_v52 = vpop.eup %7286  ;;  %v4740_v6 = vmul.f32 0.5, %v4738_v4 }
0x111c   :  { %v5081_v2 = vpop.f32.mrf.mxu1  ;;  %4924 = vrot.lane.b32.xlu0 %v7287_v52, %s7878_s2 }
0x111d   :  { %v10115_v36 = vadd.f32 %v5081_v2, %v5008_v42 }
0x111f   :  { %7288 = vtanh.f32 %v10115_v36 }
0x1120   :  { %7290 = vtanh.f32 %v4394_v47 }
0x1121   :  { %7292 = vtanh.f32 %v4567_v30 }
0x1122   :  { %7294 = vtanh.f32 %v4740_v6 }
0x112c   :  { %v7289_v16 = vpop.eup %7288 }
0x112d   :  { %5097 = vrot.lane.b32.xlu1 %v7289_v16, %s7878_s2  ;;  %v7291_v10 = vpop.eup %7290  ;;  %v4913_v16 = vmul.f32 0.5, %v4911_v27 }
0x112e   :  { %v4398_v20 = vmul.f32 0.5, %v7291_v10  ;;  %v7293_v54 = vpop.eup %7292 }
0x112f   :  { %v4571_v42 = vmul.f32 0.5, %v7293_v54  ;;  %v7295_v56 = vpop.eup %7294  ;;  %7296 = vtanh.f32 %v4913_v16 }
0x1130   :  { %v4400_v13 = vadd.f32 0.5, %v4398_v20  ;;  %v4744_v47 = vmul.f32 0.5, %v7295_v56 }
0x1131   :  { %v4573_v52 = vadd.f32 0.5, %v4571_v42 }
0x1132   :  { %v4746_v18 = vadd.f32 0.5, %v4744_v47  ;;  %v4403_v16 = vmul.f32 %v4400_v13, %v9788_v17 }
0x113c   :  { %v7297_v20 = vpop.eup %7296 }
0x1159   :  { %v4406_v9 = vpop.permute.xlu1 %4405 }
0x115a   :  { %v4408_v50 = vmul.f32 %v4406_v9, %v4400_v13  ;;  %v5086_v9 = vmul.f32 0.5, %v5084_v45 }
0x115c   :  { %4410 = vrot.lane.b32.xlu0 %v4408_v50, %s7878_s2  ;;  %v4917_v50 = vmul.f32 0.5, %v7297_v20  ;;  %7298 = vtanh.f32 %v5086_v9 }
0x115e   :  { %v4919_v4 = vadd.f32 0.5, %v4917_v50 }
0x1169   :  { %v7299_v42 = vpop.eup %7298 }
0x116a   :  { %v4579_v2 = vpop.permute.xlu0 %4578 }
0x116b   :  { %v4581_v7 = vmul.f32 %v4579_v2, %v4573_v52 }
0x116d   :  { %4583 = vrot.lane.b32.xlu1 %v4581_v7, %s7878_s2  ;;  %v5090_v7 = vmul.f32 0.5, %v7299_v42 }
0x116f   :  { %v5092_v2 = vadd.f32 0.5, %v5090_v7 }
0x117c   :  { %v4752_v10 = vpop.permute.xlu1 %4751 }
0x117d   :  { %v4754_v30 = vmul.f32 %v4752_v10, %v4746_v18 }
0x117f   :  { %4756 = vrot.lane.b32.xlu0 %v4754_v30, %s7878_s2  ;;  %v4576_v30 = vmul.f32 %v4573_v52, %v9793_v51  ;;  %v4922_v51 = vmul.f32 %v4919_v4, %v9803_v12  ;;  %v4395_v12 = vmul.f32 0.5, %v10092_v53 }
0x118e   :  { %v4925_v54 = vpop.permute.xlu0 %4924 }
0x118f   :  { %v4927_v6 = vmul.f32 %v4925_v54, %v4919_v4  ;;  %v4749_v54 = vmul.f32 %v4746_v18, %v9798_v32  ;;  %v5095_v32 = vmul.f32 %v5092_v2, %v9808_v34 }
0x1191   :  { %4929 = vrot.lane.b32.xlu1 %v4927_v6, %s7878_s2 }
0x119f   :  { %v5098_v27 = vpop.permute.xlu1 %5097 }
0x11a0   :  { %v5100_v56 = vmul.f32 %v5098_v27, %v5092_v2 }
0x11a2   :  { %5102 = vrot.lane.b32.xlu0 %v5100_v56, %s7878_s2 }
0x11ce   :  { %v4411_v47 = vpop.permute.xlu0 %4410 }
0x11cf   :  { %v4413_v10 = vadd.f32 %v4411_v47, %v4403_v16  ;;  %v4568_v16 = vmul.f32 0.5, %v10097_v35  ;;  %v4741_v35 = vmul.f32 0.5, %v10104_v23 }
0x11d1   :  { %7300 = vtanh.f32 %v4413_v10 }
0x11de   :  { %v7301_v45 = vpop.eup %7300 }
0x11df   :  { %v4584_v20 = vpop.permute.xlu1 %4583  ;;  %4416 = vrot.lane.b32.xlu1 %v7301_v45, %s7878_s2 }
0x11e0   :  { %v10128_v9 = vadd.f32 %v4584_v20, %v4576_v30 }
0x11e2   :  { %7302 = vtanh.f32 %v10128_v9 }
0x11ef   :  { %v7303_v50 = vpop.eup %7302 }
0x11f0   :  { %4589 = vrot.lane.b32.xlu0 %v7303_v50, %s7878_s2  ;;  %v11434_v50 = vld [vmem:[#allocation51_spill] sm:$0xff] }
0x11f1   :  { %v4757_v6 = vpop.permute.xlu0 %4756 }
0x11f2   :  { %v10133_v17 = vadd.f32 %v4757_v6, %v4749_v54  ;;  %v11435_v54 = vld [vmem:[#allocation53_spill] sm:$0xff]  ;;  %v11436_v6 = vld [vmem:[#allocation55_spill] sm:$0xff] }
0x11f4   :  { %7304 = vtanh.f32 %v10133_v17 }
0x1201   :  { %v7305_v13 = vpop.eup %7304 }
0x1202   :  { %4762 = vrot.lane.b32.xlu1 %v7305_v13, %s7878_s2  ;;  %v11437_v13 = vld [vmem:[#allocation57_spill] sm:$0xff] }
0x1203   :  { %v4930_v52 = vpop.permute.xlu1 %4929 }
0x1204   :  { %v10138_v42 = vadd.f32 %v4930_v52, %v4922_v51  ;;  %v11438_v51 = vld [vmem:[#allocation59_spill] sm:$0xff]  ;;  %v11439_v52 = vld [vmem:[#allocation61_spill] sm:$0xff] }
0x1206   :  { %7306 = vtanh.f32 %v10138_v42 }
0x1213   :  { %v7307_v7 = vpop.eup %7306 }
0x1214   :  { %v5103_v18 = vpop.permute.xlu0 %5102  ;;  %4935 = vrot.lane.b32.xlu0 %v7307_v7, %s7878_s2  ;;  %v11440_v7 = vld [vmem:[#allocation63_spill] sm:$0xff] }
0x1215   :  { %v10143_v27 = vadd.f32 %v5103_v18, %v5095_v32  ;;  %v11441_v32 = vld [vmem:[#allocation65_spill] sm:$0xff]  ;;  %v11442_v18 = vld [vmem:[#allocation67_spill] sm:$0xff] }
0x1217   :  { %7308 = vtanh.f32 %v10143_v27 }
0x1218   :  { %7310 = vtanh.f32 %v4395_v12  ;;  %v11444_v12 = vld [vmem:[#allocation71_spill] sm:$0xff] }
0x1219   :  { %7312 = vtanh.f32 %v4568_v16  ;;  %v11446_v16 = vld [vmem:[#allocation73_spill] sm:$0xff] }
0x121a   :  { %7314 = vtanh.f32 %v4741_v35  ;;  %v4914_v35 = vmul.f32 0.5, %v10110_v61  ;;  %v11460_v61 = vld [vmem:[#allocation87_spill] sm:$0xff] }
0x121c   :  { %7316 = vtanh.f32 %v4914_v35  ;;  %v11462_v35 = vld [vmem:[#allocation89_spill] sm:$0xff] }
0x1224   :  { %v7309_v56 = vpop.eup %7308 }
0x1225   :  { %5108 = vrot.lane.b32.xlu1 %v7309_v56, %s7878_s2  ;;  %v7311_v4 = vpop.eup %7310  ;;  %v11443_v56 = vld [vmem:[#allocation69_spill] sm:$0xff] }
0x1226   :  { %v4399_v47 = vmul.f32 0.5, %v7311_v4  ;;  %v7313_v53 = vpop.eup %7312  ;;  %v11445_v4 = vld [vmem:[#allocation72_spill] sm:$0xff] }
0x1227   :  { %v4572_v45 = vmul.f32 0.5, %v7313_v53  ;;  %v11450_v53 = vld [vmem:[#allocation77_spill] sm:$0xff] }
0x1228   :  { %v4401_v10 = vadd.f32 0.5, %v4399_v47  ;;  %v11447_v47 = vld [vmem:[#allocation74_spill] sm:$0xff] }
0x1229   :  { %v4574_v30 = vadd.f32 0.5, %v4572_v45  ;;  %v11451_v45 = vld [vmem:[#allocation78_spill] sm:$0xff] }
0x1251   :  { %v4417_v34 = vpop.permute.xlu1 %4416 }
0x1252   :  { %v4419_v2 = vmul.f32 %v4417_v34, %v4401_v10  ;;  %v11448_v10 = vld [vmem:[#allocation75_spill] sm:$0xff]  ;;  %v7315_v34 = vpop.eup %7314 }
0x1254   :  { %7015 = vmatmul.mubr.msk.f32.vlgmr.msra.gmra.mxu0 %vm128_vm0, %v4419_v2  ;;  %v11449_v2 = vld [vmem:[#allocation76_spill] sm:$0xff] }
0x1255   :  { %5305 = vmatpush1.msra.mxu0 %v9817_v19  ;;  %5352 = vmatprep.mubr.f32.mxu0 %v11018_v44 }
0x1256   :  { %5306 = vmatprep.subr.mxu0 %v9821_v11 }
0x1257   :  { %5307 = vmatpush1.msra.mxu0 %v9825_v43 }
0x1258   :  { %5308 = vmatprep.subr.mxu0 %v9829_v25 }
0x1259   :  { %5309 = vmatpush1.msra.mxu0 %v9833_v55 }
0x125a   :  { %5310 = vmatprep.subr.mxu0 %v9837_v60 }
0x125b   :  { %5311 = vmatpush1.msra.mxu0 %v9842_v48 }
0x125c   :  { %5312 = vmatprep.subr.mxu0 %v9846_v62 }
0x125d   :  { %5313 = vmatpush1.msra.mxu0 %v9850_v39 }
0x125e   :  { %5314 = vmatprep.subr.mxu0 %v9854_v59 }
0x125f   :  { %5315 = vmatpush1.msra.mxu0 %v9858_v58 }
0x1260   :  { %5316 = vmatprep.subr.mxu0 %v9862_v38 }
0x1261   :  { %5317 = vmatpush1.msra.mxu0 %v9866_v33 }
0x1262   :  { %v4590_v20 = vpop.permute.xlu0 %4589  ;;  %5318 = vmatprep.subr.mxu0 %v11434_v50 }
0x1263   :  { %v4592_v23 = vmul.f32 %v4590_v20, %v4574_v30  ;;  %5319 = vmatpush1.msra.mxu0 %v11435_v54  ;;  %v11452_v30 = vld [vmem:[#allocation79_spill] sm:$0xff]  ;;  %v11453_v20 = vld [vmem:[#allocation80_spill] sm:$0xff] }
0x1264   :  { %5477 = vmatprep.subr.mxu0 %v11436_v6 }
0x1265   :  { %7016 = vmatmul.mubr.msk.f32.vlgmr.msra.gmra.mxu1 %vm128_vm0, %v4592_v23  ;;  %7017 = vmatmul.mubr.msk.f32.vlgmr.msra.gmra.mxu0 %vm128_vm0, %v4592_v23  ;;  %v11454_v23 = vld [vmem:[#allocation81_spill] sm:$0xff] }
0x1266   :  { %5379 = vmatpush1.msra.mxu1 %v11437_v13  ;;  %5478 = vmatpush1.msra.mxu0 %v11438_v51  ;;  %v11455_v51 = vld [vmem:[#allocation82_spill] sm:$0xff] }
0x1267   :  { %5380 = vmatprep.subr.mxu1 %v11439_v52  ;;  %5479 = vmatprep.subr.mxu0 %v11440_v7  ;;  %v11456_v7 = vld [vmem:[#allocation83_spill] sm:$0xff] }
0x1268   :  { %5381 = vmatpush1.msra.mxu1 %v11441_v32  ;;  %5480 = vmatpush1.msra.mxu0 %v11442_v18  ;;  %v4745_v18 = vmul.f32 0.5, %v7315_v34 }
0x1269   :  { %5382 = vmatprep.subr.mxu1 %v11443_v56  ;;  %5481 = vmatprep.subr.mxu0 %v11444_v12  ;;  %v11457_v12 = vld [vmem:[#allocation84_spill] sm:$0xff] }
0x126a   :  { %5383 = vmatpush1.msra.mxu1 %v11445_v4  ;;  %5482 = vmatpush1.msra.mxu0 %v11446_v16  ;;  %v11458_v16 = vld [vmem:[#allocation85_spill] sm:$0xff] }
0x126b   :  { %5384 = vmatprep.subr.mxu1 %v11447_v47  ;;  %5483 = vmatprep.subr.mxu0 %v11448_v10  ;;  %v11459_v10 = vld [vmem:[#allocation86_spill] sm:$0xff] }
0x126c   :  { %5385 = vmatpush1.msra.mxu1 %v11449_v2  ;;  %5484 = vmatpush1.msra.mxu0 %v11450_v53  ;;  %v4747_v53 = vadd.f32 0.5, %v4745_v18  ;;  %v10214_v18 = vld [vmem:[#allocation6 + $0x268] sm:$0xff] }
0x126d   :  { %5386 = vmatprep.subr.mxu1 %v11451_v45  ;;  %5485 = vmatprep.subr.mxu0 %v11452_v30  ;;  %v11461_v30 = vld [vmem:[#allocation88_spill] sm:$0xff] }
0x126e   :  { %5387 = vmatpush1.msra.mxu1 %v11453_v20  ;;  %5486 = vmatpush1.msra.mxu0 %v11454_v23 }
0x126f   :  { %5388 = vmatprep.subr.mxu1 %v11455_v51  ;;  %5487 = vmatprep.subr.mxu0 %v11456_v7  ;;  %v10204_v7 = vld [vmem:[#allocation6 + $0x278] sm:$0xff] }
0x1270   :  { %5389 = vmatpush1.msra.mxu1 %v11457_v12  ;;  %5488 = vmatpush1.msra.mxu0 %v11458_v16  ;;  %v10218_v16 = vld [vmem:[#allocation6 + $0x260] sm:$0xff] }
0x1271   :  { %5390 = vmatprep.subr.mxu1 %v11459_v10  ;;  %5489 = vmatprep.subr.mxu0 %v11460_v61  ;;  %v10222_v61 = vld [vmem:[#allocation6 + $0x258] sm:$0xff] }
0x1272   :  { %5391 = vmatpush1.msra.mxu1 %v9960_v15  ;;  %5490 = vmatpush1.msra.mxu0 %v9963_v5  ;;  %v11463_v5 = vld [vmem:[#allocation90_spill] sm:$0xff]  ;;  %11464 = vst [vmem:[#allocation18_spill] sm:$0xff] %v10222_v61 }
0x1273   :  { %5392 = vmatprep.subr.mxu1 %v11461_v30  ;;  %5491 = vmatprep.subr.mxu0 %v9969_v37  ;;  %v10210_v37 = vld [vmem:[#allocation6 + $0x270] sm:$0xff] }
0x1274   :  { %v4763_v23 = vpop.permute.xlu1 %4762  ;;  %5393 = vmatpush1.msra.mxu1 %v9972_v57  ;;  %5426 = vmatprep.mubr.f32.mxu1 %v11018_v44 }
0x1275   :  { %v4765_v34 = vmul.f32 %v4763_v23, %v4747_v53  ;;  %5492 = vmatpush1.msra.mxu0 %v11462_v35  ;;  %5525 = vmatprep.mubr.f32.mxu0 %v11018_v44  ;;  %v10230_v53 = vld [vmem:[#allocation6 + $0x248] sm:$0xff]  ;;  %v5087_v23 = vmul.f32 0.5, %v10115_v36 }
0x1276   :  { %5551 = vmatprep.subr.mxu1 %v9982_v24  ;;  %5650 = vmatprep.subr.mxu0 %v10204_v7  ;;  %11466 = vst [vmem:[#allocation47_spill] sm:$0xff] %v10230_v53  ;;  %v10247_v36 = vld [vmem:[#allocation6 + $0x228] sm:$0xff] }
0x1277   :  { %7018 = vmatmul.mubr.msk.f32.vlgmr.msra.gmra.mxu1 %vm128_vm0, %v4765_v34  ;;  %7019 = vmatmul.mubr.msk.f32.vlgmr.msra.gmra.mxu0 %vm128_vm0, %v4765_v34  ;;  %11470 = vst [vmem:[#allocation49_spill] sm:$0xff] %v10247_v36  ;;  %7318 = vtanh.f32 %v5087_v23  ;;  %v11471_v34 = vld [vmem:[#allocation91_spill] sm:$0xff]  ;;  %v11473_v35 = vld [vmem:[#allocation92_spill] sm:$0xff]  ;;  %v11476_v23 = vld [vmem:[#allocation33_spill] sm:$0xff] }
0x1278   :  { %5552 = vmatpush1.msra.mxu1 %v9986_v0  ;;  %5651 = vmatpush1.msra.mxu0 %v10210_v37  ;;  %v10226_v0 = vld [vmem:[#allocation6 + $0x250] sm:$0xff] }
0x1279   :  { %5553 = vmatprep.subr.mxu1 %v11463_v5  ;;  %5652 = vmatprep.subr.mxu0 %v10214_v18  ;;  %11465 = vst [vmem:[#allocation23_spill] sm:$0xff] %v10226_v0  ;;  %v11475_v5 = vld [vmem:[#allocation32_spill] sm:$0xff] }
0x127a   :  { %5554 = vmatpush1.msra.mxu1 %v9994_v63  ;;  %5653 = vmatpush1.msra.mxu0 %v10218_v16  ;;  %v7317_v63 = vpop.eup %7316 }
0x127b   :  { %5555 = vmatprep.subr.mxu1 %v9998_v1  ;;  %5654 = vmatprep.subr.mxu0 %v10222_v61  ;;  %v10235_v1 = vld [vmem:[#allocation6 + $0x240] sm:$0xff] }
0x127c   :  { %5556 = vmatpush1.msra.mxu1 %v10002_v22  ;;  %5655 = vmatpush1.msra.mxu0 %v10226_v0  ;;  %11467 = vst [vmem:[#allocation24_spill] sm:$0xff] %v10235_v1  ;;  %v10239_v22 = vld [vmem:[#allocation6 + $0x238] sm:$0xff] }
0x127d   :  { %5557 = vmatprep.subr.mxu1 %v10007_v31  ;;  %5656 = vmatprep.subr.mxu0 %v10230_v53  ;;  %11468 = vst [vmem:[#allocation48_spill] sm:$0xff] %v10239_v22  ;;  %v10243_v31 = vld [vmem:[#allocation6 + $0x230] sm:$0xff] }
0x127e   :  { %5558 = vmatpush1.msra.mxu1 %v10011_v28  ;;  %5657 = vmatpush1.msra.mxu0 %v10235_v1  ;;  %11469 = vst [vmem:[#allocation28_spill] sm:$0xff] %v10243_v31  ;;  %v4918_v28 = vmul.f32 0.5, %v7317_v63 }
0x127f   :  { %5559 = vmatprep.subr.mxu1 %v10015_v29  ;;  %5658 = vmatprep.subr.mxu0 %v10239_v22  ;;  %v10251_v29 = vld [vmem:[#allocation6 + $0x220] sm:$0xff] }
0x1280   :  { %5560 = vmatpush1.msra.mxu1 %v10019_v14  ;;  %5659 = vmatpush1.msra.mxu0 %v10243_v31  ;;  %11472 = vst [vmem:[#allocation29_spill] sm:$0xff] %v10251_v29  ;;  %v10255_v14 = vld [vmem:[#allocation6 + $0x218] sm:$0xff]  ;;  %v4920_v63 = vadd.f32 0.5, %v4918_v28 }
0x1281   :  { %5561 = vmatprep.subr.mxu1 %v10023_v26  ;;  %5660 = vmatprep.subr.mxu0 %v10247_v36  ;;  %11474 = vst [vmem:[#allocation50_spill] sm:$0xff] %v10255_v14  ;;  %v10259_v26 = vld [vmem:[#allocation6 + $0x210] sm:$0xff]  ;;  %v7690_v28 = vld [vmem:[#allocation6 + $0x178] sm:$0xff] }
0x1282   :  { %5562 = vmatpush1.msra.mxu1 %v11471_v34  ;;  %5661 = vmatpush1.msra.mxu0 %v10251_v29  ;;  %v10263_v34 = vld [vmem:[#allocation6 + $0x208] sm:$0xff]  ;;  %v11477_v36 = vld [vmem:[#allocation17_spill] sm:$0xff] }
0x1283   :  { %5563 = vmatprep.subr.mxu1 %v11473_v35  ;;  %5662 = vmatprep.subr.mxu0 %v10255_v14  ;;  %v10268_v14 = vld [vmem:[#allocation6 + $0x200] sm:$0xff] }
0x1284   :  { %5564 = vmatpush1.msra.mxu1 %v11475_v5  ;;  %5663 = vmatpush1.msra.mxu0 %v10259_v26  ;;  %v10272_v5 = vld [vmem:[#allocation8 + $0x278] sm:$0xff] }
0x1285   :  { %5565 = vmatprep.subr.mxu1 %v11476_v23  ;;  %5664 = vmatprep.subr.mxu0 %v10263_v34  ;;  %v10289_v23 = vld [vmem:[#allocation8 + $0x258] sm:$0xff] }
0x1286   :  { %v4936_v29 = vpop.permute.xlu0 %4935  ;;  %5566 = vmatpush1.msra.mxu1 %v11477_v36  ;;  %5599 = vmatprep.mubr.f32.mxu1 %v11018_v44  ;;  %v10277_v36 = vld [vmem:[#allocation8 + $0x270] sm:$0xff] }
0x1287   :  { %v4938_v35 = vmul.f32 %v4936_v29, %v4920_v63  ;;  %5665 = vmatpush1.msra.mxu0 %v10268_v14  ;;  %5698 = vmatprep.mubr.f32.mxu0 %v11018_v44  ;;  %v10281_v29 = vld [vmem:[#allocation8 + $0x268] sm:$0xff]  ;;  %v10285_v63 = vld [vmem:[#allocation8 + $0x260] sm:$0xff] }
0x1288   :  { %5724 = vmatprep.subr.mxu1 %v10272_v5  ;;  %5826 = vmatprep.subr.mxu0 %v7690_v28  ;;  %v7319_v28 = vpop.eup %7318 }
0x1289   :  { %7020 = vmatmul.mubr.msk.f32.vlgmr.msra.gmra.mxu1 %vm128_vm0, %v4938_v35  ;;  %7021 = vmatmul.mubr.msk.f32.vlgmr.msra.gmra.mxu0 %vm128_vm0, %v4938_v35  ;;  %v10293_v35 = vld [vmem:[#allocation8 + $0x250] sm:$0xff] }
0x128a   :  { %5725 = vmatpush1.msra.mxu1 %v10277_v36  ;;  %5772 = vmatprep.mubr.f32.mxu1 %v11018_v44  ;;  %11478 = vst [vmem:[#allocation42_spill] sm:$0xff] %v10293_v35 }
0x128b   :  { %5726 = vmatprep.subr.mxu1 %v10281_v29  ;;  %5827 = vmatpush1.msra.mxu0 %v9817_v19  ;;  %v10297_v19 = vld [vmem:[#allocation8 + $0x248] sm:$0xff] }
0x128c   :  { %5727 = vmatpush1.msra.mxu1 %v10285_v63  ;;  %5828 = vmatprep.subr.mxu0 %v9821_v11  ;;  %v10301_v11 = vld [vmem:[#allocation8 + $0x240] sm:$0xff] }
0x128d   :  { %5728 = vmatprep.subr.mxu1 %v10289_v23  ;;  %5829 = vmatpush1.msra.mxu0 %v9825_v43  ;;  %v10305_v43 = vld [vmem:[#allocation8 + $0x238] sm:$0xff] }
0x128e   :  { %5729 = vmatpush1.msra.mxu1 %v10293_v35  ;;  %5830 = vmatprep.subr.mxu0 %v9829_v25  ;;  %v10309_v25 = vld [vmem:[#allocation8 + $0x230] sm:$0xff]  ;;  %v5091_v35 = vmul.f32 0.5, %v7319_v28 }
0x128f   :  { %5730 = vmatprep.subr.mxu1 %v10297_v19  ;;  %5831 = vmatpush1.msra.mxu0 %v9833_v55  ;;  %v10313_v55 = vld [vmem:[#allocation8 + $0x228] sm:$0xff]  ;;  %v10325_v28 = vld [vmem:[#allocation8 + $0x210] sm:$0xff] }
0x1290   :  { %5731 = vmatpush1.msra.mxu1 %v10301_v11  ;;  %5832 = vmatprep.subr.mxu0 %v9837_v60  ;;  %11479 = vst [vmem:[#allocation25_spill] sm:$0xff] %v10313_v55  ;;  %v10317_v60 = vld [vmem:[#allocation8 + $0x220] sm:$0xff] }
0x1291   :  { %5732 = vmatprep.subr.mxu1 %v10305_v43  ;;  %5833 = vmatpush1.msra.mxu0 %v9842_v48  ;;  %11480 = vst [vmem:[#allocation43_spill] sm:$0xff] %v10317_v60  ;;  %v10321_v48 = vld [vmem:[#allocation8 + $0x218] sm:$0xff] }
0x1292   :  { %5733 = vmatpush1.msra.mxu1 %v10309_v25  ;;  %5834 = vmatprep.subr.mxu0 %v9846_v62  ;;  %v5093_v62 = vadd.f32 0.5, %v5091_v35 }
0x1293   :  { %5734 = vmatprep.subr.mxu1 %v10313_v55  ;;  %5835 = vmatpush1.msra.mxu0 %v9850_v39  ;;  %v10329_v55 = vld [vmem:[#allocation8 + $0x208] sm:$0xff] }
0x1294   :  { %5735 = vmatpush1.msra.mxu1 %v10317_v60  ;;  %5836 = vmatprep.subr.mxu0 %v9854_v59  ;;  %v10333_v60 = vld [vmem:[#allocation8 + $0x200] sm:$0xff] }
0x1295   :  { %5736 = vmatprep.subr.mxu1 %v10321_v48  ;;  %5837 = vmatpush1.msra.mxu0 %v9858_v58 }
0x1296   :  { %5737 = vmatpush1.msra.mxu1 %v10325_v28  ;;  %5838 = vmatprep.subr.mxu0 %v9862_v38 }
0x1297   :  { %v5109_v39 = vpop.permute.xlu1 %5108  ;;  %5738 = vmatprep.subr.mxu1 %v10329_v55  ;;  %5839 = vmatpush1.msra.mxu0 %v9866_v33 }
0x1298   :  { %v5111_v59 = vmul.f32 %v5109_v39, %v5093_v62  ;;  %5739 = vmatpush1.msra.mxu1 %v10333_v60  ;;  %5840 = vmatprep.subr.mxu0 %v11434_v50 }
0x1299   :  { %5841 = vmatpush1.msra.mxu0 %v11435_v54  ;;  %5874 = vmatprep.mubr.f32.mxu0 %v11018_v44 }
0x129a   :  { %7022 = vmatmul.mubr.msk.f32.vlgmr.msra.gmra.mxu1 %vm128_vm0, %v5111_v59  ;;  %5900 = vmatprep.subr.mxu1 %v9881_v40 }
0x129b   :  { %5999 = vmatprep.subr.mxu0 %v11436_v6  ;;  %5901 = vmatpush1.msra.mxu1 %v11437_v13 }
0x129c   :  { %5902 = vmatprep.subr.mxu1 %v11439_v52  ;;  %5948 = vmatprep.mubr.f32.mxu1 %v11018_v44 }
0x129d   :  { %5903 = vmatpush1.msra.mxu1 %v11441_v32 }
0x129e   :  { %5904 = vmatprep.subr.mxu1 %v11443_v56 }
0x129f   :  { %5905 = vmatpush1.msra.mxu1 %v11445_v4 }
0x12a0   :  { %5906 = vmatprep.subr.mxu1 %v11447_v47 }
0x12a1   :  { %5907 = vmatpush1.msra.mxu1 %v11449_v2 }
0x12a2   :  { %5908 = vmatprep.subr.mxu1 %v11451_v45  ;;  %v11481_v45 = vld [vmem:[#allocation30_spill] sm:$0xff] }
0x12a3   :  { %5909 = vmatpush1.msra.mxu1 %v11453_v20 }
0x12a4   :  { %5910 = vmatprep.subr.mxu1 %v11455_v51 }
0x12a5   :  { %5911 = vmatpush1.msra.mxu1 %v11457_v12 }
0x12a6   :  { %5912 = vmatprep.subr.mxu1 %v11459_v10 }
0x12a7   :  { %5913 = vmatpush1.msra.mxu1 %v9960_v15 }
0x12a8   :  { %5914 = vmatprep.subr.mxu1 %v11461_v30 }
0x12a9   :  { %5915 = vmatpush1.msra.mxu1 %v9972_v57 }
0x12aa   :  { %6073 = vmatprep.subr.mxu1 %v9982_v24 }
0x1314   :  { %v5181_v58 = vpop.f32.mrf.mxu0 }
0x1315   :  { %v5182_v33 = vadd.f32 %v5181_v58, %v11428_v3 }
0x1316   :  { %v5183_v38 = vpop.f32.mrf.mxu0 }
0x1317   :  { %v5184_v50 = vadd.f32 %v5183_v38, %v11429_v21 }
0x1325   :  { %v5255_v40 = vpop.f32.mrf.mxu1  ;;  %v5354_v15 = vpop.f32.mrf.mxu0 }
0x1326   :  { %v5260_v54 = vadd.f32 %v5255_v40, %v5182_v33  ;;  %v5355_v32 = vadd.f32 %v5354_v15, %v11430_v41  ;;  %v11482_v33 = vld [vmem:[#allocation46_spill] sm:$0xff] }
0x1327   :  { %v5257_v6 = vpop.f32.mrf.mxu1  ;;  %v5356_v52 = vpop.f32.mrf.mxu0 }
0x1328   :  { %v10361_v13 = vadd.f32 %v5257_v6, %v5184_v50  ;;  %v5357_v24 = vadd.f32 %v5356_v52, %v11431_v49 }
0x132a   :  { %7320 = vtanh.f32 %v10361_v13 }
0x1337   :  { %v5428_v57 = vpop.f32.mrf.mxu1  ;;  %v7321_v56 = vpop.eup %7320 }
0x1338   :  { %v5433_v4 = vadd.f32 %v5428_v57, %v5355_v32  ;;  %5273 = vrot.lane.b32.xlu0 %v7321_v56, %s7878_s2  ;;  %v5527_v21 = vpop.f32.mrf.mxu0  ;;  %v5262_v57 = vmul.f32 0.5, %v5260_v54 }
0x1339   :  { %v5430_v47 = vpop.f32.mrf.mxu1  ;;  %v5528_v20 = vadd.f32 %v5527_v21, %v11481_v45 }
0x133a   :  { %v10367_v3 = vadd.f32 %v5430_v47, %v5357_v24  ;;  %v5529_v2 = vpop.f32.mrf.mxu0  ;;  %v5435_v24 = vmul.f32 0.5, %v5433_v4 }
0x133b   :  { %v5530_v10 = vadd.f32 %v5529_v2, %v11280_v8 }
0x133c   :  { %7322 = vtanh.f32 %v10367_v3 }
0x1349   :  { %v5601_v51 = vpop.f32.mrf.mxu1  ;;  %v7323_v12 = vpop.eup %7322 }
0x134a   :  { %v5606_v30 = vadd.f32 %v5601_v51, %v5528_v20  ;;  %5446 = vrot.lane.b32.xlu1 %v7323_v12, %s7878_s2  ;;  %v5700_v39 = vpop.f32.mrf.mxu0 }
0x134b   :  { %v5603_v35 = vpop.f32.mrf.mxu1  ;;  %v5701_v58 = vadd.f32 %v5700_v39, %v11281_v46 }
0x134c   :  { %v10373_v62 = vadd.f32 %v5603_v35, %v5530_v10  ;;  %v5702_v59 = vpop.f32.mrf.mxu0  ;;  %v5608_v12 = vmul.f32 0.5, %v5606_v30 }
0x134d   :  { %v5703_v40 = vadd.f32 %v5702_v59, %v11482_v33 }
0x134e   :  { %7324 = vtanh.f32 %v10373_v62 }
0x135a   :  { %v5774_v38 = vpop.f32.mrf.mxu1 }
0x135b   :  { %v5779_v50 = vadd.f32 %v5774_v38, %v5701_v58  ;;  %v7325_v6 = vpop.eup %7324 }
0x135c   :  { %v5776_v15 = vpop.f32.mrf.mxu1  ;;  %5619 = vrot.lane.b32.xlu0 %v7325_v6, %s7878_s2 }
0x135d   :  { %v10378_v52 = vadd.f32 %v5776_v15, %v5703_v40  ;;  %v5781_v58 = vmul.f32 0.5, %v5779_v50 }
0x135f   :  { %7326 = vtanh.f32 %v10378_v52 }
0x1360   :  { %7328 = vtanh.f32 %v5262_v57 }
0x1361   :  { %7330 = vtanh.f32 %v5435_v24 }
0x1362   :  { %7332 = vtanh.f32 %v5608_v12 }
0x1363   :  { %7334 = vtanh.f32 %v5781_v58 }
0x136c   :  { %v7327_v32 = vpop.eup %7326 }
0x136d   :  { %5792 = vrot.lane.b32.xlu1 %v7327_v32, %s7878_s2  ;;  %v7329_v56 = vpop.eup %7328 }
0x136e   :  { %v5266_v47 = vmul.f32 0.5, %v7329_v56  ;;  %v7331_v51 = vpop.eup %7330 }
0x136f   :  { %v5439_v10 = vmul.f32 0.5, %v7331_v51  ;;  %v7333_v54 = vpop.eup %7332 }
0x1370   :  { %v5268_v21 = vadd.f32 0.5, %v5266_v47  ;;  %v5612_v38 = vmul.f32 0.5, %v7333_v54  ;;  %v7335_v15 = vpop.eup %7334 }
0x1371   :  { %v5441_v35 = vadd.f32 0.5, %v5439_v10  ;;  %v5785_v32 = vmul.f32 0.5, %v7335_v15 }
0x1372   :  { %v5614_v4 = vadd.f32 0.5, %v5612_v38  ;;  %v5271_v24 = vmul.f32 %v5268_v21, %v10128_v9 }
0x1373   :  { %v5787_v57 = vadd.f32 0.5, %v5785_v32  ;;  %v10407_v32 = vld [vmem:[#allocation6 + $0x1f0] sm:$0xff] }
0x13aa   :  { %v5274_v2 = vpop.permute.xlu0 %5273 }
0x13ab   :  { %v5276_v20 = vmul.f32 %v5274_v2, %v5268_v21 }
0x13ad   :  { %5278 = vrot.lane.b32.xlu0 %v5276_v20, %s7878_s2  ;;  %v5444_v20 = vmul.f32 %v5441_v35, %v10133_v17  ;;  %v5790_v17 = vmul.f32 %v5787_v57, %v10143_v27 }
0x13bc   :  { %v5447_v39 = vpop.permute.xlu1 %5446 }
0x13bd   :  { %v5449_v59 = vmul.f32 %v5447_v39, %v5441_v35  ;;  %v5617_v39 = vmul.f32 %v5614_v4, %v10138_v42  ;;  %v5263_v42 = vmul.f32 0.5, %v10361_v13  ;;  %v10414_v13 = vld [vmem:[#allocation6 + $0x1e0] sm:$0xff] }
0x13bf   :  { %5451 = vrot.lane.b32.xlu1 %v5449_v59, %s7878_s2 }
0x13ce   :  { %v5620_v40 = vpop.permute.xlu0 %5619 }
0x13cf   :  { %v5622_v6 = vmul.f32 %v5620_v40, %v5614_v4  ;;  %v5436_v4 = vmul.f32 0.5, %v10367_v3  ;;  %v10417_v3 = vld [vmem:[#allocation6 + $0x1d8] sm:$0xff] }
0x13d1   :  { %5624 = vrot.lane.b32.xlu0 %v5622_v6, %s7878_s2 }
0x13df   :  { %v5793_v30 = vpop.permute.xlu1 %5792 }
0x13e0   :  { %v5795_v56 = vmul.f32 %v5793_v30, %v5787_v57  ;;  %v10411_v57 = vld [vmem:[#allocation6 + $0x1e8] sm:$0xff]  ;;  %v10420_v30 = vld [vmem:[#allocation6 + $0x1d0] sm:$0xff] }
0x13e2   :  { %5797 = vrot.lane.b32.xlu1 %v5795_v56, %s7878_s2  ;;  %v10423_v56 = vld [vmem:[#allocation6 + $0x1c8] sm:$0xff] }
0x141f   :  { %v5279_v47 = vpop.permute.xlu0 %5278 }
0x1420   :  { %v5281_v2 = vadd.f32 %v5279_v47, %v5271_v24  ;;  %v10426_v47 = vld [vmem:[#allocation6 + $0x1c0] sm:$0xff] }
0x1422   :  { %7336 = vtanh.f32 %v5281_v2  ;;  %v5609_v2 = vmul.f32 0.5, %v10373_v62  ;;  %v10445_v62 = vld [vmem:[#allocation6 + $0x190] sm:$0xff] }
0x142f   :  { %v7337_v50 = vpop.eup %7336 }
0x1430   :  { %5284 = vrot.lane.b32.xlu0 %v7337_v50, %s7878_s2  ;;  %v10430_v50 = vld [vmem:[#allocation6 + $0x1b8] sm:$0xff] }
0x1431   :  { %v5452_v51 = vpop.permute.xlu1 %5451 }
0x1432   :  { %v10390_v12 = vadd.f32 %v5452_v51, %v5444_v20  ;;  %v10433_v20 = vld [vmem:[#allocation6 + $0x1b0] sm:$0xff]  ;;  %v10436_v51 = vld [vmem:[#allocation6 + $0x1a8] sm:$0xff] }
0x1434   :  { %7338 = vtanh.f32 %v10390_v12 }
0x1441   :  { %v7339_v10 = vpop.eup %7338 }
0x1442   :  { %5457 = vrot.lane.b32.xlu1 %v7339_v10, %s7878_s2 }
0x1443   :  { %v5625_v59 = vpop.permute.xlu0 %5624 }
0x1444   :  { %v10395_v9 = vadd.f32 %v5625_v59, %v5617_v39  ;;  %v10439_v39 = vld [vmem:[#allocation6 + $0x1a0] sm:$0xff]  ;;  %v10442_v59 = vld [vmem:[#allocation6 + $0x198] sm:$0xff] }
0x1446   :  { %7340 = vtanh.f32 %v10395_v9 }
0x1453   :  { %v7341_v21 = vpop.eup %7340 }
0x1454   :  { %v5798_v35 = vpop.permute.xlu1 %5797  ;;  %5630 = vrot.lane.b32.xlu0 %v7341_v21, %s7878_s2 }
0x1455   :  { %v10400_v54 = vadd.f32 %v5798_v35, %v5790_v17  ;;  %v10448_v17 = vld [vmem:[#allocation6 + $0x188] sm:$0xff] }
0x1457   :  { %7342 = vtanh.f32 %v10400_v54 }
0x1458   :  { %7344 = vtanh.f32 %v5263_v42 }
0x1459   :  { %7346 = vtanh.f32 %v5436_v4  ;;  %v10461_v4 = vld [vmem:[#allocation8 + $0x1e8] sm:$0xff] }
0x145a   :  { %7348 = vtanh.f32 %v5609_v2  ;;  %v5782_v2 = vmul.f32 0.5, %v10378_v52  ;;  %v11483_v52 = vld [vmem:[#allocation49_spill] sm:$0xff] }
0x145c   :  { %7350 = vtanh.f32 %v5782_v2  ;;  %v10510_v2 = vld [vmem:[#allocation8 + $0x188] sm:$0xff] }
0x1464   :  { %v7343_v58 = vpop.eup %7342 }
0x1465   :  { %5803 = vrot.lane.b32.xlu1 %v7343_v58, %s7878_s2  ;;  %v7345_v38 = vpop.eup %7344  ;;  %v10451_v58 = vld [vmem:[#allocation6 + $0x180] sm:$0xff] }
0x1466   :  { %v5267_v40 = vmul.f32 0.5, %v7345_v38  ;;  %v7347_v24 = vpop.eup %7346  ;;  %v10457_v38 = vld [vmem:[#allocation8 + $0x1f0] sm:$0xff] }
0x1467   :  { %v5440_v10 = vmul.f32 0.5, %v7347_v24  ;;  %v7349_v24 = vpop.eup %7348 }
0x1468   :  { %v5269_v6 = vadd.f32 0.5, %v5267_v40  ;;  %v10465_v40 = vld [vmem:[#allocation8 + $0x1e0] sm:$0xff] }
0x1469   :  { %v5442_v21 = vadd.f32 0.5, %v5440_v10  ;;  %v10482_v10 = vld [vmem:[#allocation8 + $0x1c0] sm:$0xff] }
0x14a2   :  { %v5285_v27 = vpop.permute.xlu0 %5284 }
0x14a3   :  { %v5287_v15 = vmul.f32 %v5285_v27, %v5269_v6  ;;  %v10469_v6 = vld [vmem:[#allocation8 + $0x1d8] sm:$0xff]  ;;  %v10473_v27 = vld [vmem:[#allocation8 + $0x1d0] sm:$0xff] }
0x14a5   :  { %7023 = vmatmul.mubr.msk.f32.vlgmr.msra.gmra.mxu0 %vm128_vm0, %v5287_v15  ;;  %v10477_v15 = vld [vmem:[#allocation8 + $0x1c8] sm:$0xff] }
0x14a6   :  { %6000 = vmatpush1.msra.mxu0 %v10407_v32  ;;  %6047 = vmatprep.mubr.f32.mxu0 %v11018_v44 }
0x14a7   :  { %6001 = vmatprep.subr.mxu0 %v10411_v57 }
0x14a8   :  { %6002 = vmatpush1.msra.mxu0 %v10414_v13 }
0x14a9   :  { %6003 = vmatprep.subr.mxu0 %v10417_v3 }
0x14aa   :  { %6004 = vmatpush1.msra.mxu0 %v10420_v30 }
0x14ab   :  { %6005 = vmatprep.subr.mxu0 %v10423_v56 }
0x14ac   :  { %6006 = vmatpush1.msra.mxu0 %v10426_v47 }
0x14ad   :  { %6007 = vmatprep.subr.mxu0 %v10430_v50 }
0x14ae   :  { %6008 = vmatpush1.msra.mxu0 %v10433_v20 }
0x14af   :  { %6009 = vmatprep.subr.mxu0 %v10436_v51 }
0x14b0   :  { %6010 = vmatpush1.msra.mxu0 %v10439_v39 }
0x14b1   :  { %6011 = vmatprep.subr.mxu0 %v10442_v59 }
0x14b2   :  { %6012 = vmatpush1.msra.mxu0 %v10445_v62 }
0x14b3   :  { %6013 = vmatprep.subr.mxu0 %v10448_v17 }
0x14b4   :  { %v5458_v35 = vpop.permute.xlu1 %5457  ;;  %6014 = vmatpush1.msra.mxu0 %v10451_v58 }
0x14b5   :  { %v5460_v42 = vmul.f32 %v5458_v35, %v5442_v21  ;;  %6172 = vmatprep.subr.mxu0 %v10204_v7  ;;  %v10486_v21 = vld [vmem:[#allocation8 + $0x1b8] sm:$0xff]  ;;  %v10490_v35 = vld [vmem:[#allocation8 + $0x1b0] sm:$0xff] }
0x14b7   :  { %7024 = vmatmul.mubr.msk.f32.vlgmr.msra.gmra.mxu1 %vm128_vm0, %v5460_v42  ;;  %7025 = vmatmul.mubr.msk.f32.vlgmr.msra.gmra.mxu0 %vm128_vm0, %v5460_v42  ;;  %v10494_v42 = vld [vmem:[#allocation8 + $0x1a8] sm:$0xff] }
0x14b8   :  { %6074 = vmatpush1.msra.mxu1 %v10457_v38  ;;  %6173 = vmatpush1.msra.mxu0 %v10210_v37 }
0x14b9   :  { %6075 = vmatprep.subr.mxu1 %v10461_v4  ;;  %6174 = vmatprep.subr.mxu0 %v10214_v18 }
0x14ba   :  { %6076 = vmatpush1.msra.mxu1 %v10465_v40  ;;  %6175 = vmatpush1.msra.mxu0 %v10218_v16 }
0x14bb   :  { %6077 = vmatprep.subr.mxu1 %v10469_v6  ;;  %6176 = vmatprep.subr.mxu0 %v10222_v61  ;;  %v11485_v61 = vld [vmem:[#allocation50_spill] sm:$0xff] }
0x14bc   :  { %6078 = vmatpush1.msra.mxu1 %v10473_v27  ;;  %6177 = vmatpush1.msra.mxu0 %v10226_v0  ;;  %v11484_v0 = vld [vmem:[#allocation29_spill] sm:$0xff] }
0x14bd   :  { %6079 = vmatprep.subr.mxu1 %v10477_v15  ;;  %6178 = vmatprep.subr.mxu0 %v10230_v53  ;;  %v5613_v53 = vmul.f32 0.5, %v7349_v24 }
0x14be   :  { %6080 = vmatpush1.msra.mxu1 %v10482_v10  ;;  %6179 = vmatpush1.msra.mxu0 %v10235_v1  ;;  %v10498_v1 = vld [vmem:[#allocation8 + $0x1a0] sm:$0xff] }
0x14bf   :  { %6081 = vmatprep.subr.mxu1 %v10486_v21  ;;  %6180 = vmatprep.subr.mxu0 %v10239_v22  ;;  %v10502_v22 = vld [vmem:[#allocation8 + $0x198] sm:$0xff]  ;;  %v5615_v24 = vadd.f32 0.5, %v5613_v53 }
0x14c0   :  { %6082 = vmatpush1.msra.mxu1 %v10490_v35  ;;  %6181 = vmatpush1.msra.mxu0 %v10243_v31  ;;  %v10506_v31 = vld [vmem:[#allocation8 + $0x190] sm:$0xff]  ;;  %v7736_v53 = vld [vmem:[#allocation6 + $0x1f8] sm:$0xff] }
0x14c1   :  { %6083 = vmatprep.subr.mxu1 %v10494_v42  ;;  %6182 = vmatprep.subr.mxu0 %v11483_v52  ;;  %v10514_v52 = vld [vmem:[#allocation8 + $0x180] sm:$0xff] }
0x14c2   :  { %6084 = vmatpush1.msra.mxu1 %v10498_v1  ;;  %6183 = vmatpush1.msra.mxu0 %v11484_v0 }
0x14c3   :  { %6085 = vmatprep.subr.mxu1 %v10502_v22  ;;  %6184 = vmatprep.subr.mxu0 %v11485_v61 }
0x14c4   :  { %6086 = vmatpush1.msra.mxu1 %v10506_v31  ;;  %6185 = vmatpush1.msra.mxu0 %v10259_v26 }
0x14c5   :  { %6087 = vmatprep.subr.mxu1 %v10510_v2  ;;  %6186 = vmatprep.subr.mxu0 %v10263_v34 }
0x14c6   :  { %v5631_v0 = vpop.permute.xlu0 %5630  ;;  %6088 = vmatpush1.msra.mxu1 %v10514_v52  ;;  %6121 = vmatprep.mubr.f32.mxu1 %v11018_v44 }
0x14c7   :  { %v5633_v61 = vmul.f32 %v5631_v0, %v5615_v24  ;;  %6187 = vmatpush1.msra.mxu0 %v10268_v14  ;;  %6220 = vmatprep.mubr.f32.mxu0 %v11018_v44  ;;  %v11486_v0 = vld [vmem:[#allocation42_spill] sm:$0xff] }
0x14c8   :  { %6246 = vmatprep.subr.mxu1 %v10272_v5  ;;  %6348 = vmatprep.subr.mxu0 %v7736_v53 }
0x14c9   :  { %7026 = vmatmul.mubr.msk.f32.vlgmr.msra.gmra.mxu1 %vm128_vm0, %v5633_v61  ;;  %7027 = vmatmul.mubr.msk.f32.vlgmr.msra.gmra.mxu0 %vm128_vm0, %v5633_v61  ;;  %v7351_v61 = vpop.eup %7350 }
0x14ca   :  { %6247 = vmatpush1.msra.mxu1 %v10277_v36  ;;  %6294 = vmatprep.mubr.f32.mxu1 %v11018_v44 }
0x14cb   :  { %6248 = vmatprep.subr.mxu1 %v10281_v29  ;;  %6349 = vmatpush1.msra.mxu0 %v10407_v32  ;;  %v5786_v32 = vmul.f32 0.5, %v7351_v61 }
0x14cc   :  { %6249 = vmatpush1.msra.mxu1 %v10285_v63  ;;  %6350 = vmatprep.subr.mxu0 %v10411_v57  ;;  %v11487_v57 = vld [vmem:[#allocation25_spill] sm:$0xff] }
0x14cd   :  { %6250 = vmatprep.subr.mxu1 %v10289_v23  ;;  %6351 = vmatpush1.msra.mxu0 %v10414_v13  ;;  %v11488_v13 = vld [vmem:[#allocation43_spill] sm:$0xff] }
0x14ce   :  { %6251 = vmatpush1.msra.mxu1 %v11486_v0  ;;  %6352 = vmatprep.subr.mxu0 %v10417_v3  ;;  %v5788_v3 = vadd.f32 0.5, %v5786_v32 }
0x14cf   :  { %6252 = vmatprep.subr.mxu1 %v10297_v19  ;;  %6353 = vmatpush1.msra.mxu0 %v10420_v30 }
0x14d0   :  { %6253 = vmatpush1.msra.mxu1 %v10301_v11  ;;  %6354 = vmatprep.subr.mxu0 %v10423_v56 }
0x14d1   :  { %6254 = vmatprep.subr.mxu1 %v10305_v43  ;;  %6355 = vmatpush1.msra.mxu0 %v10426_v47  ;;  %v7737_v47 = vld [vmem:[#allocation8 + $0x1f8] sm:$0xff] }
0x14d2   :  { %6255 = vmatpush1.msra.mxu1 %v10309_v25  ;;  %6356 = vmatprep.subr.mxu0 %v10430_v50 }
0x14d3   :  { %6256 = vmatprep.subr.mxu1 %v11487_v57  ;;  %6357 = vmatpush1.msra.mxu0 %v10433_v20 }
0x14d4   :  { %6257 = vmatpush1.msra.mxu1 %v11488_v13  ;;  %6358 = vmatprep.subr.mxu0 %v10436_v51 }
0x14d5   :  { %6258 = vmatprep.subr.mxu1 %v10321_v48  ;;  %6359 = vmatpush1.msra.mxu0 %v10439_v39 }
0x14d6   :  { %6259 = vmatpush1.msra.mxu1 %v10325_v28  ;;  %6360 = vmatprep.subr.mxu0 %v10442_v59 }
0x14d7   :  { %v5804_v30 = vpop.permute.xlu1 %5803  ;;  %6260 = vmatprep.subr.mxu1 %v10329_v55  ;;  %6361 = vmatpush1.msra.mxu0 %v10445_v62 }
0x14d8   :  { %v5806_v56 = vmul.f32 %v5804_v30, %v5788_v3  ;;  %6261 = vmatpush1.msra.mxu1 %v10333_v60  ;;  %6362 = vmatprep.subr.mxu0 %v10448_v17 }
0x14d9   :  { %6363 = vmatpush1.msra.mxu0 %v10451_v58  ;;  %6396 = vmatprep.mubr.f32.mxu0 %v11018_v44 }
0x14da   :  { %7028 = vmatmul.mubr.msk.f32.vlgmr.msra.gmra.mxu1 %vm128_vm0, %v5806_v56  ;;  %6422 = vmatprep.subr.mxu1 %v7737_v47 }
0x14db   :  { %6521 = vmatprep.subr.mxu0 %v10204_v7  ;;  %6423 = vmatpush1.msra.mxu1 %v10457_v38 }
0x14dc   :  { %6424 = vmatprep.subr.mxu1 %v10461_v4  ;;  %6470 = vmatprep.mubr.f32.mxu1 %v11018_v44 }
0x14dd   :  { %6425 = vmatpush1.msra.mxu1 %v10465_v40 }
0x14de   :  { %6426 = vmatprep.subr.mxu1 %v10469_v6 }
0x14df   :  { %6427 = vmatpush1.msra.mxu1 %v10473_v27 }
0x14e0   :  { %6428 = vmatprep.subr.mxu1 %v10477_v15 }
0x14e1   :  { %6429 = vmatpush1.msra.mxu1 %v10482_v10 }
0x14e2   :  { %6430 = vmatprep.subr.mxu1 %v10486_v21 }
0x14e3   :  { %6431 = vmatpush1.msra.mxu1 %v10490_v35 }
0x14e4   :  { %6432 = vmatprep.subr.mxu1 %v10494_v42 }
0x14e5   :  { %6433 = vmatpush1.msra.mxu1 %v10498_v1 }
0x14e6   :  { %6434 = vmatprep.subr.mxu1 %v10502_v22 }
0x14e7   :  { %6435 = vmatpush1.msra.mxu1 %v10506_v31 }
0x14e8   :  { %6436 = vmatprep.subr.mxu1 %v10510_v2 }
0x14e9   :  { %6437 = vmatpush1.msra.mxu1 %v10514_v52 }
0x14ea   :  { %6595 = vmatprep.subr.mxu1 %v10272_v5 }
0x1565   :  { %v5876_v50 = vpop.f32.mrf.mxu0 }
0x1566   :  { %v5877_v51 = vadd.f32 %v5876_v50, %v11430_v41 }
0x1567   :  { %v5878_v20 = vpop.f32.mrf.mxu0 }
0x1568   :  { %v5879_v59 = vadd.f32 %v5878_v20, %v11431_v49 }
0x1577   :  { %v5950_v39 = vpop.f32.mrf.mxu1  ;;  %v6049_v22 = vpop.f32.mrf.mxu0 }
0x1578   :  { %v5955_v62 = vadd.f32 %v5950_v39, %v5877_v51  ;;  %v6050_v58 = vadd.f32 %v6049_v22, %v11481_v45 }
0x1579   :  { %v5952_v17 = vpop.f32.mrf.mxu1  ;;  %v6051_v31 = vpop.f32.mrf.mxu0 }
0x157a   :  { %v10576_v1 = vadd.f32 %v5952_v17, %v5879_v59  ;;  %v6052_v40 = vadd.f32 %v6051_v31, %v11280_v8  ;;  %v5957_v61 = vmul.f32 0.5, %v5955_v62 }
0x157c   :  { %7352 = vtanh.f32 %v10576_v1 }
0x1589   :  { %v6123_v38 = vpop.f32.mrf.mxu1  ;;  %v7353_v4 = vpop.eup %7352 }
0x158a   :  { %v6128_v6 = vadd.f32 %v6123_v38, %v6050_v58  ;;  %5968 = vrot.lane.b32.xlu0 %v7353_v4, %s7878_s2  ;;  %v6222_v49 = vpop.f32.mrf.mxu0 }
0x158b   :  { %v6125_v27 = vpop.f32.mrf.mxu1  ;;  %v6223_v10 = vadd.f32 %v6222_v49, %v11281_v46 }
0x158c   :  { %v6129_v41 = vadd.f32 %v6125_v27, %v6052_v40  ;;  %v6224_v15 = vpop.f32.mrf.mxu0  ;;  %v6130_v3 = vmul.f32 0.5, %v6128_v6 }
0x158d   :  { %v6225_v35 = vadd.f32 %v6224_v15, %v11482_v33 }
0x158e   :  { %7354 = vtanh.f32 %v6129_v41 }
0x159a   :  { %v6296_v21 = vpop.f32.mrf.mxu1 }
0x159b   :  { %v6301_v42 = vadd.f32 %v6296_v21, %v6223_v10  ;;  %v7355_v52 = vpop.eup %7354 }
0x159c   :  { %v6298_v24 = vpop.f32.mrf.mxu1  ;;  %6141 = vrot.lane.b32.xlu1 %v7355_v52, %s7878_s2 }
0x159d   :  { %v10584_v2 = vadd.f32 %v6298_v24, %v6225_v35  ;;  %v6303_v51 = vmul.f32 0.5, %v6301_v42 }
0x159f   :  { %7356 = vtanh.f32 %v10584_v2 }
0x15a0   :  { %7358 = vtanh.f32 %v5957_v61  ;;  %v6131_v61 = vmul.f32 0.5, %v6129_v41  ;;  %v11491_v41 = vld [vmem:[#allocation47_spill] sm:$0xff] }
0x15a1   :  { %7360 = vtanh.f32 %v6130_v3 }
0x15a2   :  { %7362 = vtanh.f32 %v6303_v51  ;;  %v11493_v51 = vld [vmem:[#allocation48_spill] sm:$0xff] }
0x15ac   :  { %v7357_v53 = vpop.eup %7356 }
0x15ad   :  { %6314 = vrot.lane.b32.xlu0 %v7357_v53, %s7878_s2  ;;  %v7359_v32 = vpop.eup %7358 }
0x15ae   :  { %v5961_v30 = vmul.f32 0.5, %v7359_v32  ;;  %v7361_v20 = vpop.eup %7360 }
0x15af   :  { %v6134_v39 = vmul.f32 0.5, %v7361_v20  ;;  %v7363_v62 = vpop.eup %7362  ;;  %v11492_v20 = vld [vmem:[#allocation24_spill] sm:$0xff] }
0x15b0   :  { %v5963_v56 = vadd.f32 0.5, %v5961_v30  ;;  %v6307_v31 = vmul.f32 0.5, %v7363_v62  ;;  %v11497_v62 = vld [vmem:[#allocation50_spill] sm:$0xff] }
0x15b1   :  { %v6136_v59 = vadd.f32 0.5, %v6134_v39  ;;  %v11494_v39 = vld [vmem:[#allocation28_spill] sm:$0xff] }
0x15b2   :  { %v6309_v58 = vadd.f32 0.5, %v6307_v31  ;;  %v5966_v40 = vmul.f32 %v5963_v56, %v10390_v12 }
0x15b3   :  { %v6139_v15 = vmul.f32 %v6136_v59, %v10395_v9  ;;  %v5958_v9 = vmul.f32 0.5, %v10576_v1  ;;  %v11490_v1 = vld [vmem:[#allocation23_spill] sm:$0xff] }
0x15b4   :  { %v6312_v42 = vmul.f32 %v6309_v58, %v10400_v54 }
0x15fc   :  { %v5969_v47 = vpop.permute.xlu0 %5968 }
0x15fd   :  { %v5971_v50 = vmul.f32 %v5969_v47, %v5963_v56  ;;  %v11489_v56 = vld [vmem:[#allocation18_spill] sm:$0xff] }
0x15ff   :  { %5973 = vrot.lane.b32.xlu1 %v5971_v50, %s7878_s2  ;;  %v6304_v50 = vmul.f32 0.5, %v10584_v2 }
0x160e   :  { %v6142_v17 = vpop.permute.xlu1 %6141 }
0x160f   :  { %v6144_v22 = vmul.f32 %v6142_v17, %v6136_v59  ;;  %v11495_v59 = vld [vmem:[#allocation49_spill] sm:$0xff] }
0x1611   :  { %6146 = vrot.lane.b32.xlu0 %v6144_v22, %s7878_s2  ;;  %v11496_v22 = vld [vmem:[#allocation29_spill] sm:$0xff] }
0x161f   :  { %v6315_v38 = vpop.permute.xlu0 %6314 }
0x1620   :  { %v6317_v4 = vmul.f32 %v6315_v38, %v6309_v58 }
0x1622   :  { %6319 = vrot.lane.b32.xlu1 %v6317_v4, %s7878_s2 }
0x1671   :  { %v5974_v6 = vpop.permute.xlu1 %5973 }
0x1672   :  { %v5976_v27 = vadd.f32 %v5974_v6, %v5966_v40 }
0x1674   :  { %7364 = vtanh.f32 %v5976_v27 }
0x1681   :  { %v7365_v49 = vpop.eup %7364 }
0x1682   :  { %5979 = vrot.lane.b32.xlu0 %v7365_v49, %s7878_s2 }
0x1683   :  { %v6147_v10 = vpop.permute.xlu0 %6146 }
0x1684   :  { %v10595_v21 = vadd.f32 %v6147_v10, %v6139_v15 }
0x1686   :  { %7366 = vtanh.f32 %v10595_v21 }
0x1693   :  { %v7367_v35 = vpop.eup %7366 }
0x1694   :  { %v6320_v52 = vpop.permute.xlu1 %6319  ;;  %6152 = vrot.lane.b32.xlu1 %v7367_v35, %s7878_s2 }
0x1695   :  { %v10600_v12 = vadd.f32 %v6320_v52, %v6312_v42 }
0x1697   :  { %7368 = vtanh.f32 %v10600_v12 }
0x1698   :  { %7370 = vtanh.f32 %v5958_v9 }
0x1699   :  { %7372 = vtanh.f32 %v6131_v61 }
0x169a   :  { %7374 = vtanh.f32 %v6304_v50 }
0x16a4   :  { %v7369_v24 = vpop.eup %7368 }
0x16a5   :  { %6325 = vrot.lane.b32.xlu0 %v7369_v24, %s7878_s2  ;;  %v7371_v53 = vpop.eup %7370 }
0x16a6   :  { %v5962_v32 = vmul.f32 0.5, %v7371_v53  ;;  %v7373_v47 = vpop.eup %7372 }
0x16a7   :  { %v6135_v17 = vmul.f32 0.5, %v7373_v47 }
0x16a8   :  { %v5964_v3 = vadd.f32 0.5, %v5962_v32 }
0x16a9   :  { %v6137_v31 = vadd.f32 0.5, %v6135_v17 }
0x16f4   :  { %v5980_v30 = vpop.permute.xlu0 %5979 }
0x16f5   :  { %v5982_v54 = vmul.f32 %v5980_v30, %v5964_v3 }
0x16f7   :  { %7029 = vmatmul.mubr.msk.f32.vlgmr.msra.gmra.mxu0 %vm128_vm0, %v5982_v54 }
0x16f8   :  { %6522 = vmatpush1.msra.mxu0 %v10210_v37  ;;  %6569 = vmatprep.mubr.f32.mxu0 %v11018_v44 }
0x16f9   :  { %6523 = vmatprep.subr.mxu0 %v10214_v18 }
0x16fa   :  { %6524 = vmatpush1.msra.mxu0 %v10218_v16 }
0x16fb   :  { %6525 = vmatprep.subr.mxu0 %v11489_v56 }
0x16fc   :  { %6526 = vmatpush1.msra.mxu0 %v11490_v1 }
0x16fd   :  { %6527 = vmatprep.subr.mxu0 %v11491_v41 }
0x16fe   :  { %6528 = vmatpush1.msra.mxu0 %v11492_v20 }
0x16ff   :  { %6529 = vmatprep.subr.mxu0 %v11493_v51 }
0x1700   :  { %6530 = vmatpush1.msra.mxu0 %v11494_v39 }
0x1701   :  { %6531 = vmatprep.subr.mxu0 %v11495_v59 }
0x1702   :  { %6532 = vmatpush1.msra.mxu0 %v11496_v22 }
0x1703   :  { %6533 = vmatprep.subr.mxu0 %v11497_v62 }
0x1704   :  { %6534 = vmatpush1.msra.mxu0 %v10259_v26 }
0x1705   :  { %6535 = vmatprep.subr.mxu0 %v10263_v34 }
0x1706   :  { %v6153_v2 = vpop.permute.xlu1 %6152  ;;  %6536 = vmatpush1.msra.mxu0 %v10268_v14 }
0x1707   :  { %v6155_v58 = vmul.f32 %v6153_v2, %v6137_v31  ;;  %6697 = vmatprep.subr.mxu0 %v10204_v7  ;;  %v7375_v7 = vpop.eup %7374 }
0x1709   :  { %7030 = vmatmul.mubr.msk.f32.vlgmr.msra.gmra.mxu1 %vm128_vm0, %v6155_v58  ;;  %7031 = vmatmul.mubr.msk.f32.vlgmr.msra.gmra.mxu0 %vm128_vm0, %v6155_v58 }
0x170a   :  { %6596 = vmatpush1.msra.mxu1 %v10277_v36  ;;  %6643 = vmatprep.mubr.f32.mxu1 %v11018_v44 }
0x170b   :  { %6597 = vmatprep.subr.mxu1 %v10281_v29  ;;  %6698 = vmatpush1.msra.mxu0 %v10210_v37  ;;  %v6308_v37 = vmul.f32 0.5, %v7375_v7 }
0x170c   :  { %6598 = vmatpush1.msra.mxu1 %v10285_v63  ;;  %6699 = vmatprep.subr.mxu0 %v10214_v18 }
0x170d   :  { %6599 = vmatprep.subr.mxu1 %v10289_v23  ;;  %6700 = vmatpush1.msra.mxu0 %v10218_v16  ;;  %v6310_v18 = vadd.f32 0.5, %v6308_v37 }
0x170e   :  { %6600 = vmatpush1.msra.mxu1 %v11486_v0  ;;  %6701 = vmatprep.subr.mxu0 %v11489_v56 }
0x170f   :  { %6601 = vmatprep.subr.mxu1 %v10297_v19  ;;  %6702 = vmatpush1.msra.mxu0 %v11490_v1 }
0x1710   :  { %6602 = vmatpush1.msra.mxu1 %v10301_v11  ;;  %6703 = vmatprep.subr.mxu0 %v11491_v41 }
0x1711   :  { %6603 = vmatprep.subr.mxu1 %v10305_v43  ;;  %6704 = vmatpush1.msra.mxu0 %v11492_v20 }
0x1712   :  { %6604 = vmatpush1.msra.mxu1 %v10309_v25  ;;  %6705 = vmatprep.subr.mxu0 %v11493_v51 }
0x1713   :  { %6605 = vmatprep.subr.mxu1 %v11487_v57  ;;  %6706 = vmatpush1.msra.mxu0 %v11494_v39 }
0x1714   :  { %6606 = vmatpush1.msra.mxu1 %v11488_v13  ;;  %6707 = vmatprep.subr.mxu0 %v11495_v59 }
0x1715   :  { %6607 = vmatprep.subr.mxu1 %v10321_v48  ;;  %6708 = vmatpush1.msra.mxu0 %v11496_v22 }
0x1716   :  { %6608 = vmatpush1.msra.mxu1 %v10325_v28  ;;  %6709 = vmatprep.subr.mxu0 %v11497_v62 }
0x1717   :  { %v6326_v16 = vpop.permute.xlu0 %6325  ;;  %6609 = vmatprep.subr.mxu1 %v10329_v55  ;;  %6710 = vmatpush1.msra.mxu0 %v10259_v26 }
0x1718   :  { %v6328_v38 = vmul.f32 %v6326_v16, %v6310_v18  ;;  %6610 = vmatpush1.msra.mxu1 %v10333_v60  ;;  %6711 = vmatprep.subr.mxu0 %v10263_v34 }
0x1719   :  { %6712 = vmatpush1.msra.mxu0 %v10268_v14  ;;  %6745 = vmatprep.mubr.f32.mxu0 %v11018_v44 }
0x171a   :  { %7032 = vmatmul.mubr.msk.f32.vlgmr.msra.gmra.mxu1 %vm128_vm0, %v6328_v38  ;;  %6771 = vmatprep.subr.mxu1 %v10272_v5 }
0x171b   :  { %6772 = vmatpush1.msra.mxu1 %v10277_v36  ;;  %6819 = vmatprep.mubr.f32.mxu1 %v11018_v44 }
0x171c   :  { %6773 = vmatprep.subr.mxu1 %v10281_v29  ;;  %7046 = vmatprep.subr.mxu0 %v11018_v44 }
0x171d   :  { %6774 = vmatpush1.msra.mxu1 %v10285_v63 }
0x171e   :  { %6775 = vmatprep.subr.mxu1 %v10289_v23 }
0x171f   :  { %6776 = vmatpush1.msra.mxu1 %v11486_v0 }
0x1720   :  { %6777 = vmatprep.subr.mxu1 %v10297_v19 }
0x1721   :  { %6778 = vmatpush1.msra.mxu1 %v10301_v11 }
0x1722   :  { %6779 = vmatprep.subr.mxu1 %v10305_v43 }
0x1723   :  { %6780 = vmatpush1.msra.mxu1 %v10309_v25 }
0x1724   :  { %6781 = vmatprep.subr.mxu1 %v11487_v57 }
0x1725   :  { %6782 = vmatpush1.msra.mxu1 %v11488_v13 }
0x1726   :  { %6783 = vmatprep.subr.mxu1 %v10321_v48 }
0x1727   :  { %6784 = vmatpush1.msra.mxu1 %v10325_v28 }
0x1728   :  { %6785 = vmatprep.subr.mxu1 %v10329_v55 }
0x1729   :  { %6786 = vmatpush1.msra.mxu1 %v10333_v60 }
0x17b7   :  { %v6398_v14 = vpop.f32.mrf.mxu0 }
0x17b8   :  { %v6399_v34 = vadd.f32 %v6398_v14, %v11481_v45 }
0x17b9   :  { %v6400_v26 = vpop.f32.mrf.mxu0 }
0x17ba   :  { %v6401_v36 = vadd.f32 %v6400_v26, %v11280_v8 }
0x17c9   :  { %v6472_v5 = vpop.f32.mrf.mxu1  ;;  %v6571_v19 = vpop.f32.mrf.mxu0 }
0x17ca   :  { %v6477_v29 = vadd.f32 %v6472_v5, %v6399_v34  ;;  %v6572_v43 = vadd.f32 %v6571_v19, %v11281_v46  ;;  %v6855_v19 = vld [vmem:[#allocation11 + $0x8] sm:$0xff] }
0x17cb   :  { %v6474_v63 = vpop.f32.mrf.mxu1  ;;  %v6573_v11 = vpop.f32.mrf.mxu0 }
0x17cc   :  { %v6478_v23 = vadd.f32 %v6474_v63, %v6401_v36  ;;  %v6574_v55 = vadd.f32 %v6573_v11, %v11482_v33  ;;  %v6479_v8 = vmul.f32 0.5, %v6477_v29  ;;  %v6860_v36 = vld [vmem:[#allocation11 + $0x30] sm:$0xff]  ;;  %v6858_v29 = vld [vmem:[#allocation11 + $0x20] sm:$0xff]  ;;  %v6857_v63 = vld [vmem:[#allocation11 + $0x18] sm:$0xff] }
0x17ce   :  { %7376 = vtanh.f32 %v6478_v23  ;;  %v6480_v54 = vmul.f32 0.5, %v6478_v23  ;;  %v6856_v23 = vld [vmem:[#allocation11 + $0x10] sm:$0xff] }
0x17da   :  { %v6645_v25 = vpop.f32.mrf.mxu1 }
0x17db   :  { %v6650_v48 = vadd.f32 %v6645_v25, %v6572_v43  ;;  %v7377_v60 = vpop.eup %7376 }
0x17dc   :  { %v6647_v28 = vpop.f32.mrf.mxu1  ;;  %6490 = vrot.lane.b32.xlu1 %v7377_v60, %s7878_s2 }
0x17dd   :  { %v6651_v0 = vadd.f32 %v6647_v28, %v6574_v55  ;;  %v6652_v13 = vmul.f32 0.5, %v6650_v48  ;;  %v6854_v55 = vld [vmem:[#allocation11] sm:$0xff] }
0x17df   :  { %7378 = vtanh.f32 %v6651_v0  ;;  %v6653_v1 = vmul.f32 0.5, %v6651_v0 }
0x17e0   :  { %7380 = vtanh.f32 %v6479_v8 }
0x17e1   :  { %7382 = vtanh.f32 %v6652_v13  ;;  %v7035_v13 = vld [vmem:[%s10716_s5] ss:$0 sm:$0xff] }
0x17ec   :  { %v7379_v45 = vpop.eup %7378 }
0x17ed   :  { %6663 = vrot.lane.b32.xlu0 %v7379_v45, %s7878_s2  ;;  %v7381_v57 = vpop.eup %7380 }
0x17ee   :  { %v6483_v4 = vmul.f32 0.5, %v7381_v57  ;;  %v7383_v49 = vpop.eup %7382 }
0x17ef   :  { %v6656_v15 = vmul.f32 0.5, %v7383_v49 }
0x17f0   :  { %v6485_v40 = vadd.f32 0.5, %v6483_v4 }
0x17f1   :  { %v6658_v10 = vadd.f32 0.5, %v6656_v15 }
0x17f2   :  { %v6488_v52 = vmul.f32 %v6485_v40, %v10595_v21 }
0x17f3   :  { %v6661_v61 = vmul.f32 %v6658_v10, %v10600_v12 }
0x184e   :  { %v6491_v6 = vpop.permute.xlu1 %6490 }
0x184f   :  { %v6493_v27 = vmul.f32 %v6491_v6, %v6485_v40 }
0x1851   :  { %6495 = vrot.lane.b32.xlu1 %v6493_v27, %s7878_s2 }
0x185f   :  { %v6664_v35 = vpop.permute.xlu0 %6663 }
0x1860   :  { %v6666_v42 = vmul.f32 %v6664_v35, %v6658_v10 }
0x1862   :  { %6668 = vrot.lane.b32.xlu0 %v6666_v42, %s7878_s2 }
0x18c3   :  { %v6496_v24 = vpop.permute.xlu1 %6495 }
0x18c4   :  { %v6498_v9 = vadd.f32 %v6496_v24, %v6488_v52 }
0x18c6   :  { %7384 = vtanh.f32 %v6498_v9 }
0x18d3   :  { %v7385_v53 = vpop.eup %7384 }
0x18d4   :  { %v6669_v32 = vpop.permute.xlu0 %6668  ;;  %6501 = vrot.lane.b32.xlu1 %v7385_v53, %s7878_s2 }
0x18d5   :  { %v6671_v3 = vadd.f32 %v6669_v32, %v6661_v61 }
0x18d7   :  { %7386 = vtanh.f32 %v6671_v3 }
0x18d8   :  { %7388 = vtanh.f32 %v6480_v54 }
0x18d9   :  { %7390 = vtanh.f32 %v6653_v1 }
0x18e4   :  { %v7387_v30 = vpop.eup %7386 }
0x18e5   :  { %6674 = vrot.lane.b32.xlu0 %v7387_v30, %s7878_s2  ;;  %v7389_v56 = vpop.eup %7388 }
0x18e6   :  { %v6484_v41 = vmul.f32 0.5, %v7389_v56  ;;  %v7391_v12 = vpop.eup %7390 }
0x18e7   :  { %v6657_v20 = vmul.f32 0.5, %v7391_v12 }
0x18e8   :  { %v6486_v21 = vadd.f32 0.5, %v6484_v41 }
0x18e9   :  { %v6659_v51 = vadd.f32 0.5, %v6657_v20 }
0x1946   :  { %v6502_v47 = vpop.permute.xlu1 %6501 }
0x1947   :  { %v6504_v50 = vmul.f32 %v6502_v47, %v6486_v21 }
0x1949   :  { %7033 = vmatmul.mubr.msk.f32.vlgmr.msra.gmra.mxu0 %vm128_vm0, %v6504_v50 }
0x194a   :  { %7062 = vmatprep.mubr.msk.f32.mxu0 %vm7879_vm1, %v11018_v44 }
0x1957   :  { %v6675_v39 = vpop.permute.xlu0 %6674 }
0x1958   :  { %v6677_v59 = vmul.f32 %v6675_v39, %v6659_v51 }
0x195a   :  { %7034 = vmatmul.mubr.msk.f32.vlgmr.msra.gmra.mxu1 %vm128_vm0, %v6677_v59 }
0x1a09   :  { %v6747_v17 = vpop.f32.mrf.mxu0 }
0x1a0a   :  { %v6748_v62 = vadd.f32 %v6747_v17, %v11281_v46  ;;  %v6861_v46 = vld [vmem:[#allocation11 + $0x38] sm:$0xff] }
0x1a0b   :  { %v6749_v22 = vpop.f32.mrf.mxu0  ;;  %7047 = vmatpush3.msra.mxu0 %v6861_v46 }
0x1a0c   :  { %v6750_v2 = vadd.f32 %v6749_v22, %v11482_v33  ;;  %7048 = vmatprep.subr.mxu0 %v11018_v44  ;;  %v6859_v33 = vld [vmem:[#allocation11 + $0x28] sm:$0xff] }
0x1a0d   :  { %7049 = vmatpush3.msra.mxu0 %v6860_v36 }
0x1a0e   :  { %7050 = vmatprep.subr.mxu0 %v11018_v44 }
0x1a0f   :  { %7051 = vmatpush3.msra.mxu0 %v6859_v33 }
0x1a10   :  { %7052 = vmatprep.subr.mxu0 %v11018_v44 }
0x1a11   :  { %7053 = vmatpush3.msra.mxu0 %v6858_v29 }
0x1a12   :  { %7054 = vmatprep.subr.mxu0 %v11018_v44 }
0x1a13   :  { %7055 = vmatpush3.msra.mxu0 %v6857_v63 }
0x1a14   :  { %7056 = vmatprep.subr.mxu0 %v11018_v44 }
0x1a15   :  { %7057 = vmatpush3.msra.mxu0 %v6856_v23 }
0x1a16   :  { %7058 = vmatprep.subr.mxu0 %v11018_v44 }
0x1a17   :  { %7059 = vmatpush3.msra.mxu0 %v6855_v19 }
0x1a18   :  { %7060 = vmatprep.subr.mxu0 %v11018_v44 }
0x1a19   :  { %7061 = vmatpush3.msra.mxu0 %v6854_v55 }
0x1a1a   :  { %v6821_v31 = vpop.f32.mrf.mxu1 }
0x1a1b   :  { %v6826_v58 = vadd.f32 %v6821_v31, %v6748_v62 }
0x1a1c   :  { %v6823_v7 = vpop.f32.mrf.mxu1 }
0x1a1d   :  { %v6827_v37 = vadd.f32 %v6823_v7, %v6750_v2  ;;  %v6828_v16 = vmul.f32 0.5, %v6826_v58 }
0x1a1f   :  { %7392 = vtanh.f32 %v6827_v37  ;;  %v6829_v60 = vmul.f32 0.5, %v6827_v37 }
0x1a20   :  { %7394 = vtanh.f32 %v6828_v16 }
0x1a2c   :  { %v7393_v18 = vpop.eup %7392 }
0x1a2d   :  { %6839 = vrot.lane.b32.xlu1 %v7393_v18, %s7878_s2  ;;  %v7395_v38 = vpop.eup %7394 }
0x1a2e   :  { %v6832_v14 = vmul.f32 0.5, %v7395_v38 }
0x1a30   :  { %v6834_v26 = vadd.f32 0.5, %v6832_v14 }
0x1a32   :  { %v6837_v11 = vmul.f32 %v6834_v26, %v6671_v3 }
0x1a9f   :  { %v6840_v34 = vpop.permute.xlu1 %6839 }
0x1aa0   :  { %v6842_v5 = vmul.f32 %v6840_v34, %v6834_v26 }
0x1aa2   :  { %6844 = vrot.lane.b32.xlu0 %v6842_v5, %s7878_s2 }
0x1b14   :  { %v6845_v43 = vpop.permute.xlu0 %6844 }
0x1b15   :  { %v6847_v25 = vadd.f32 %v6845_v43, %v6837_v11 }
0x1b17   :  { %7396 = vtanh.f32 %v6847_v25 }
0x1b18   :  { %7398 = vtanh.f32 %v6829_v60 }
0x1b24   :  { %v7397_v48 = vpop.eup %7396 }
0x1b25   :  { %6850 = vrot.lane.b32.xlu1 %v7397_v48, %s7878_s2  ;;  %v7399_v28 = vpop.eup %7398 }
0x1b26   :  { %v6833_v0 = vmul.f32 0.5, %v7399_v28 }
0x1b28   :  { %v6835_v45 = vadd.f32 0.5, %v6833_v0 }
0x1b97   :  { %v6851_v8 = vpop.permute.xlu1 %6850 }
0x1b98   :  { %v6853_v57 = vmul.f32 %v6851_v8, %v6835_v45 }
0x1b9a   :  { %7063 = vmatmul.mubr.msk.f32.vlgmr.msra.gmra.mxu0 %vm128_vm0, %v6853_v57 }
0x1c5a   :  { %v6938_v4 = vpop.f32.mrf.mxu0 }
0x1c5b   :  { %v6939_v44 = vadd.f32 %v7035_v13, %v6938_v4 }
0x1c5c   :  { %v7064_v40 = vpop.f32.mrf.mxu0 }
0x1c5d   :  { %6942 = vst [vmem:[#allocation12] sm:$0xff] %v6939_v44 }
0x1c5e   :  { %7849 = shalt.err (!%p7846_p1)
}
0x1c5f   :  { %6952 = dma.vmem_to_hbm [thread:$0]  %s6950_s27, 128, %s10717_s6, [#allocation5]  }
0x1c60   :  { %7864 = dma.done.wait [#allocation5], 128  }
0x1c61   :  { %7865 = vsyncadd [#allocation5], 4294967168 }
0x1c62   :  { %6956 = vsyncpa [#allocation4], 1 }
0x1c63   :  { %6957 = vsyncpa [#allocation7], 1 }
0x1c64   :  { %6958 = vsyncpa [#allocation10], 1 }
0x1c65   :  { %6959 = vsyncpa [#allocation5], 1 }

</bundles_post_ra>
